<compile_context>
chip_gen: v7x
topology: tpu7x:2x2x1
jax: 0.10.0
libtpu: 0.0.40
codegen_flags: <defaults>
</compile_context>

<pallas_src>
import functools

import jax
import jax.numpy as jnp
from jax.experimental import pallas as pl
from jax.experimental.pallas import tpu as pltpu

BN_EPS = 1e-5
_FUSED_ACT_BUDGET = 36 * 1024 * 1024   # activation budget for the fused path
_FUSED_VMEM_LIMIT = 48 * 1024 * 1024   # < v7x's 64 MiB physical VMEM
_MAX_TILED_VMEM = 48 * 1024 * 1024


# ---------------------------------------------------------------------------
# Fused single-call kernel: all activations resident in VMEM.
# ---------------------------------------------------------------------------
def _fused_mlp_kernel(num_layers, inv_n, x_ref, *refs):
    """Whole MLP in one kernel; x and every intermediate stay in VMEM."""
    out_ref = refs[-1]
    prm = refs[:-1]

    h = x_ref[...].astype(jnp.float32)
    idx = 0
    for _ in range(num_layers - 1):
        w_ref, b_ref, norm_ref = prm[idx], prm[idx + 1], prm[idx + 2]
        idx += 3
        h = jnp.dot(h.astype(jnp.bfloat16), w_ref[...],
                    preferred_element_type=jnp.float32) + b_ref[...]
        # Training-mode BatchNorm1d over the node axis (biased variance),
        # computed with centered sums (avoids E[x^2]-E[x]^2 cancellation).
        mean = jnp.sum(h, axis=0, keepdims=True) * inv_n
        d = h - mean
        var = jnp.sum(d * d, axis=0, keepdims=True) * inv_n
        norm = norm_ref[...]                                  # [2, F]: gamma; beta
        h = jnp.maximum(
            norm[0:1, :] * d * jax.lax.rsqrt(var + BN_EPS) + norm[1:2, :], 0.0)

    w_ref, b_ref = prm[idx], prm[idx + 1]
    out_ref[...] = jnp.dot(h.astype(jnp.bfloat16), w_ref[...],
                           preferred_element_type=jnp.float32) + b_ref[...]


def _run_fused(x, layers, dim_emb):
    n = x.shape[0]
    num_layers = len(layers)
    args = [x]
    for li, (w, b, gamma, beta) in enumerate(layers):
        args.append(w.astype(jnp.bfloat16))
        args.append(b.reshape(1, -1).astype(jnp.float32))
        if li < num_layers - 1:
            args.append(jnp.concatenate(
                [gamma.reshape(1, -1), beta.reshape(1, -1)],
                axis=0).astype(jnp.float32))
    return pl.pallas_call(
        functools.partial(_fused_mlp_kernel, num_layers, 1.0 / float(n)),
        out_shape=jax.ShapeDtypeStruct((n, dim_emb), jnp.float32),
        compiler_params=pltpu.CompilerParams(
            vmem_limit_bytes=_FUSED_VMEM_LIMIT),
    )(*args)


# ---------------------------------------------------------------------------
# Tiled streaming path (large graphs): per-layer calls over node tiles.
# ---------------------------------------------------------------------------
def _accumulate_stats(h, stats_ref, n_valid, tile_n):
    """Accumulate per-feature sum / sum-of-squares across node tiles.

    Only the last (possibly partial) tile masks out-of-range rows; every other
    tile accumulates unmasked.
    """
    pid = pl.program_id(0)
    last = pl.num_programs(0) - 1

    @pl.when(pid == 0)
    def _():
        stats_ref[...] = jnp.zeros_like(stats_ref)

    @pl.when(pid != last)
    def _():
        stats_ref[...] += jnp.concatenate(
            [jnp.sum(h, axis=0, keepdims=True),
             jnp.sum(h * h, axis=0, keepdims=True)], axis=0)

    @pl.when(pid == last)
    def _():
        row = pid * tile_n + jax.lax.broadcasted_iota(jnp.int32, (tile_n, 1), 0)
        hm = jnp.where(row < n_valid, h, 0.0)
        stats_ref[...] += jnp.concatenate(
            [jnp.sum(hm, axis=0, keepdims=True),
             jnp.sum(hm * hm, axis=0, keepdims=True)], axis=0)


def _lin_kernel(x_ref, w_ref, b_ref, o_ref):
    """Plain linear layer (used only when num_layers == 1)."""
    o_ref[...] = (jnp.dot(x_ref[...].astype(jnp.bfloat16), w_ref[...],
                          preferred_element_type=jnp.float32)
                  + b_ref[...]).astype(o_ref.dtype)


def _lin_stats_kernel(n_valid, tile_n, x_ref, w_ref, b_ref, h_ref, stats_ref):
    """h = x @ W + b (bf16 out); accumulate f32 sum / sumsq over valid rows."""
    h = jnp.dot(x_ref[...].astype(jnp.bfloat16), w_ref[...],
                preferred_element_type=jnp.float32) + b_ref[...]
    h_ref[...] = h.astype(h_ref.dtype)
    _accumulate_stats(h, stats_ref, n_valid, tile_n)


def _bn_relu_lin_stats_kernel(n_valid, tile_n, h_in_ref, ss_ref, w_ref, b_ref,
                              h_ref, stats_ref):
    """x = ReLU(h_in*scale + shift); h = x @ W + b; accumulate new stats."""
    ss = ss_ref[...]                                   # [2, Fin]: scale; shift
    x = jnp.maximum(h_in_ref[...].astype(jnp.float32) * ss[0:1, :] + ss[1:2, :],
                    0.0)
    h = jnp.dot(x.astype(jnp.bfloat16), w_ref[...],
                preferred_element_type=jnp.float32) + b_ref[...]
    h_ref[...] = h.astype(h_ref.dtype)
    _accumulate_stats(h, stats_ref, n_valid, tile_n)


def _bn_relu_lin_kernel(h_in_ref, ss_ref, w_ref, b_ref, o_ref):
    """Final plain layer: out = ReLU(h_in*scale + shift) @ W + b."""
    ss = ss_ref[...]
    x = jnp.maximum(h_in_ref[...].astype(jnp.float32) * ss[0:1, :] + ss[1:2, :],
                    0.0)
    o_ref[...] = jnp.dot(x.astype(jnp.bfloat16), w_ref[...],
                         preferred_element_type=jnp.float32) + b_ref[...]


def _tiled_compiler_params(tile_n, f_in, f_out, in_bytes, out_bytes, semantics):
    # double-buffered input/output tiles + resident weights + margin
    est = (2 * tile_n * f_in * in_bytes + 2 * tile_n * f_out * out_bytes
           + 2 * f_in * f_out * 2 + (1 << 20))
    limit = int(min(max(2 * est, 16 << 20), _MAX_TILED_VMEM))
    return pltpu.CompilerParams(dimension_semantics=semantics,
                                vmem_limit_bytes=limit)


def _run_tiled(x, layers, dim_emb, tile_n):
    n, dim_in = x.shape
    num_layers = len(layers)
    n_tiles = pl.cdiv(n, tile_n)
    inv_n = 1.0 / float(n)

    # ---- layer 0 ---------------------------------------------------------
    w0, b0, g0, bt0 = layers[0]
    f_out = w0.shape[1]
    w0b = w0.astype(jnp.bfloat16)
    b0r = b0.reshape(1, -1).astype(jnp.float32)
    l0_in_specs = [pl.BlockSpec((tile_n, dim_in), lambda i: (i, 0)),
                   pl.BlockSpec((dim_in, f_out), lambda i: (0, 0)),
                   pl.BlockSpec((1, f_out), lambda i: (0, 0))]

    if num_layers == 1:
        return pl.pallas_call(
            _lin_kernel,
            out_shape=jax.ShapeDtypeStruct((n, f_out), jnp.float32),
            grid=(n_tiles,),
            in_specs=l0_in_specs,
            out_specs=pl.BlockSpec((tile_n, f_out), lambda i: (i, 0)),
            compiler_params=_tiled_compiler_params(
                tile_n, dim_in, f_out, 4, 4, ("parallel",)),
        )(x, w0b, b0r)

    h, stats = pl.pallas_call(
        functools.partial(_lin_stats_kernel, n, tile_n),
        out_shape=(jax.ShapeDtypeStruct((n, f_out), jnp.bfloat16),
                   jax.ShapeDtypeStruct((2, f_out), jnp.float32)),
        grid=(n_tiles,),
        in_specs=l0_in_specs,
        out_specs=(pl.BlockSpec((tile_n, f_out), lambda i: (i, 0)),
                   pl.BlockSpec((2, f_out), lambda i: (0, 0))),
        compiler_params=_tiled_compiler_params(
            tile_n, dim_in, f_out, 4, 2, ("arbitrary",)),
    )(x, w0b, b0r)
    gamma, beta = g0, bt0

    # ---- layers 1 .. L-1 ---------------------------------------------------
    out = None
    for li in range(1, num_layers):
        w, b, g, bt = layers[li]
        f_in, f_out = w.shape
        wb = w.astype(jnp.bfloat16)
        br = b.reshape(1, -1).astype(jnp.float32)

        # Fold the previous layer's BatchNorm (global batch stats) + affine
        # into per-feature scale/shift once, in a tiny XLA op between calls
        # (hoisted out of the per-tile kernel body).
        mean = stats[0:1, :] * inv_n
        var = jnp.maximum(stats[1:2, :] * inv_n - mean * mean, 0.0)
        scale = gamma.reshape(1, -1) * jax.lax.rsqrt(var + BN_EPS)
        shift = beta.reshape(1, -1) - mean * scale
        ss = jnp.concatenate([scale, shift], axis=0).astype(jnp.float32)

        in_specs = [pl.BlockSpec((tile_n, f_in), lambda i: (i, 0)),
                    pl.BlockSpec((2, f_in), lambda i: (0, 0)),
                    pl.BlockSpec((f_in, f_out), lambda i: (0, 0)),
                    pl.BlockSpec((1, f_out), lambda i: (0, 0))]

        if li < num_layers - 1:
            h, stats = pl.pallas_call(
                functools.partial(_bn_relu_lin_stats_kernel, n, tile_n),
                out_shape=(jax.ShapeDtypeStruct((n, f_out), jnp.bfloat16),
                           jax.ShapeDtypeStruct((2, f_out), jnp.float32)),
                grid=(n_tiles,),
                in_specs=in_specs,
                out_specs=(pl.BlockSpec((tile_n, f_out), lambda i: (i, 0)),
                           pl.BlockSpec((2, f_out), lambda i: (0, 0))),
                compiler_params=_tiled_compiler_params(
                    tile_n, f_in, f_out, 2, 2, ("arbitrary",)),
            )(h, ss, wb, br)
            gamma, beta = g, bt
        else:
            out = pl.pallas_call(
                _bn_relu_lin_kernel,
                out_shape=jax.ShapeDtypeStruct((n, f_out), jnp.float32),
                grid=(n_tiles,),
                in_specs=in_specs,
                out_specs=pl.BlockSpec((tile_n, f_out), lambda i: (i, 0)),
                compiler_params=_tiled_compiler_params(
                    tile_n, f_in, f_out, 2, 4, ("parallel",)),
            )(h, ss, wb, br)
    return out


# ---------------------------------------------------------------------------
# Public wrapper
# ---------------------------------------------------------------------------
@functools.partial(jax.jit, static_argnames=("num_layers", "tile_n", "fused"))
def mlp_node_encoder(x, params, num_layers, tile_n=1024, fused=None):
    """x: [N, dim_in] f32; params: flat list (W, b[, gamma, beta]) per layer.

    fused=None : auto — fused single-kernel path when the activations fit in
                 VMEM (budgeted against v7x's 64 MiB), else tiled streaming.
    tile_n     : node tile for the tiled path (multiple of 8; 1024-2048 is a
                 good range on v5e/v6e; keep the per-call footprint under
                 ~48 MiB on v7x).
    """
    assert num_layers >= 1
    n, dim_in = x.shape

    layers = []
    idx = 0
    for layer in range(num_layers):
        last = layer == num_layers - 1
        w, b = params[idx], params[idx + 1]
        idx += 2
        g = bt = None
        if not last:
            g, bt = params[idx], params[idx + 1]
            idx += 2
        layers.append((w, b, g, bt))
    dim_emb = layers[-1][0].shape[1]

    if fused is None:
        max_f = max([dim_in] + [w.shape[1] for (w, _, _, _) in layers])
        act_bytes = 4 * n * (dim_in + 3 * max_f)
        w_bytes = sum(2 * w.size for (w, _, _, _) in layers)
        fused = (act_bytes + w_bytes) <= _FUSED_ACT_BUDGET

    if fused:
        return _run_fused(x, layers, dim_emb)
    return _run_tiled(x, layers, dim_emb, tile_n)


# ---------------------------------------------------------------------------
# Parameters + pure-JAX reference
# ---------------------------------------------------------------------------
def init_params(key, dim_in, dim_hid, dim_emb, num_layers):
    """Deterministic synthetic parameters (shapes match PyG MLP)."""
    params = []
    fan_in = dim_in
    keys = jax.random.split(key, num_layers)
    for layer in range(num_layers):
        fan_out = dim_emb if layer == num_layers - 1 else dim_hid
        kw, kb = jax.random.split(keys[layer])
        scale = 1.0 / jnp.sqrt(jnp.float32(fan_in))
        w = jax.random.uniform(kw, (fan_in, fan_out), jnp.float32,
                               minval=-scale, maxval=scale)
        b = jax.random.uniform(kb, (1, fan_out), jnp.float32,
                               minval=-scale, maxval=scale)
        params.append(w)
        params.append(b)
        if layer < num_layers - 1:
            params.append(jnp.ones((1, fan_out), jnp.float32))   # gamma
            params.append(jnp.zeros((1, fan_out), jnp.float32))  # beta
        fan_in = fan_out
    return params


def mlp_node_encoder_ref(x, params, num_layers, bf16_matmul=False):
    """Pure-JAX reference. bf16_matmul=True mimics the kernel's MXU dtype path."""
    def dot(a, w):
        if bf16_matmul:
            return jnp.dot(a.astype(jnp.bfloat16), w.astype(jnp.bfloat16),
                           preferred_element_type=jnp.float32)
        return jnp.dot(a, w, preferred_element_type=jnp.float32)

    h = x.astype(jnp.float32)
    idx = 0
    for _ in range(num_layers - 1):
        w, b, gamma, beta = (params[idx], params[idx + 1],
                             params[idx + 2], params[idx + 3])
        idx += 4
        h = dot(h, w) + b
        mean = jnp.mean(h, axis=0, keepdims=True)
        var = jnp.mean((h - mean) ** 2, axis=0, keepdims=True)
        h = gamma * (h - mean) * jax.lax.rsqrt(var + BN_EPS) + beta
        h = jnp.maximum(h, 0.0)
    w, b = params[idx], params[idx + 1]
    return dot(h, w) + b


# ---------------------------------------------------------------------------
if __name__ == "__main__":
    # cfg.dataset.node_encoder_init_dim / hid_dim / depths (synthetic, small).
    # N deliberately NOT a multiple of the node tile to exercise the partial
    # last tile + cross-tile BatchNorm statistics masking in the tiled path.
    N_NODES = 1000
    DIM_IN = 16
    DIM_HID = 32
    DIM_EMB = 32
    NUM_LAYERS = 3

    key = jax.random.PRNGKey(0)
    kx, kp = jax.random.split(key)
    x = jax.random.normal(kx, (N_NODES, DIM_IN), jnp.float32)
    params = init_params(kp, DIM_IN, DIM_HID, DIM_EMB, NUM_LAYERS)

    ref_bf16 = mlp_node_encoder_ref(x, params, NUM_LAYERS, bf16_matmul=True)
    ref_f32 = mlp_node_encoder_ref(x, params, NUM_LAYERS, bf16_matmul=False)

    # Path 1: fused single-kernel path (auto-selected for this graph size).
    out_fused = jax.block_until_ready(
        mlp_node_encoder(x, params, num_layers=NUM_LAYERS))
    assert out_fused.shape == (N_NODES, DIM_EMB)
    assert jnp.allclose(out_fused, ref_bf16, atol=5e-3, rtol=5e-3), \
        "fused path: mismatch vs bf16-matmul reference"
    assert jnp.allclose(out_fused, ref_f32, atol=1e-1, rtol=1e-1), \
        "fused path: mismatch vs f32 reference"

    # Path 2: tiled streaming path (forced), bf16 intermediates, partial tile.
    out_tiled = jax.block_until_ready(
        mlp_node_encoder(x, params, num_layers=NUM_LAYERS,
                         tile_n=256, fused=False))
    assert out_tiled.shape == (N_NODES, DIM_EMB)
    assert jnp.allclose(out_tiled, ref_bf16, atol=5e-2, rtol=5e-2), \
        "tiled path: mismatch vs bf16-matmul reference"
    assert jnp.allclose(out_tiled, ref_f32, atol=1e-1, rtol=1e-1), \
        "tiled path: mismatch vs f32 reference"

    print("KERNEL_OK")
</pallas_src>

<mosaic_0001>
module attributes {stable_mosaic.version = 11 : i64} {
  func.func @_fused_mlp_kernel(%arg0: memref<1000x16xf32, #tpu.memory_space<vmem>>, %arg1: memref<16x32xbf16, #tpu.memory_space<vmem>>, %arg2: memref<1x32xf32, #tpu.memory_space<vmem>>, %arg3: memref<2x32xf32, #tpu.memory_space<vmem>>, %arg4: memref<32x32xbf16, #tpu.memory_space<vmem>>, %arg5: memref<1x32xf32, #tpu.memory_space<vmem>>, %arg6: memref<2x32xf32, #tpu.memory_space<vmem>>, %arg7: memref<32x32xbf16, #tpu.memory_space<vmem>>, %arg8: memref<1x32xf32, #tpu.memory_space<vmem>>, %arg9: memref<1000x32xf32, #tpu.memory_space<vmem>>) attributes {dimension_semantics = [], scalar_prefetch = 0 : i64, scratch_operands = 0 : i64, tpu.core_type = #tpu.core_type<tc>} {
    %c0 = arith.constant 0 : index
    %c0_0 = arith.constant 0 : index
    %0 = vector.load %arg0[%c0, %c0_0] : memref<1000x16xf32, #tpu.memory_space<vmem>>, vector<1000x16xf32>
    %1 = arith.truncf %0 : vector<1000x16xf32> to vector<1000x16xbf16>
    %c0_1 = arith.constant 0 : index
    %c0_2 = arith.constant 0 : index
    %2 = vector.load %arg1[%c0_1, %c0_2] : memref<16x32xbf16, #tpu.memory_space<vmem>>, vector<16x32xbf16>
    %cst = arith.constant dense<0.000000e+00> : vector<1000x32xf32>
    %3 = tpu.matmul %1, %2, %cst {dimension_numbers = #tpu.dot_dimension_numbers<[1], [0], [0], [1], [0, 0, 1, 1], [], []>} : vector<1000x16xbf16>, vector<16x32xbf16>, vector<1000x32xf32> -> vector<1000x32xf32>
    %c0_3 = arith.constant 0 : index
    %c0_4 = arith.constant 0 : index
    %4 = vector.load %arg2[%c0_3, %c0_4] : memref<1x32xf32, #tpu.memory_space<vmem>>, vector<1x32xf32>
    %5 = vector.broadcast %4 : vector<1x32xf32> to vector<1000x32xf32>
    %6 = arith.addf %3, %5 : vector<1000x32xf32>
    %cst_5 = arith.constant dense<0.000000e+00> : vector<32xf32>
    %7 = vector.multi_reduction <add>, %6, %cst_5 [0] : vector<1000x32xf32> to vector<32xf32>
    %8 = vector.shape_cast %7 : vector<32xf32> to vector<1x32xf32>
    %cst_6 = arith.constant 1.000000e-03 : f32
    %9 = vector.broadcast %cst_6 : f32 to vector<1x32xf32>
    %10 = arith.mulf %8, %9 : vector<1x32xf32>
    %11 = vector.broadcast %10 : vector<1x32xf32> to vector<1000x32xf32>
    %12 = arith.subf %6, %11 : vector<1000x32xf32>
    %13 = arith.mulf %12, %12 : vector<1000x32xf32>
    %cst_7 = arith.constant dense<0.000000e+00> : vector<32xf32>
    %14 = vector.multi_reduction <add>, %13, %cst_7 [0] : vector<1000x32xf32> to vector<32xf32>
    %15 = vector.shape_cast %14 : vector<32xf32> to vector<1x32xf32>
    %cst_8 = arith.constant 1.000000e-03 : f32
    %16 = vector.broadcast %cst_8 : f32 to vector<1x32xf32>
    %17 = arith.mulf %15, %16 : vector<1x32xf32>
    %c0_9 = arith.constant 0 : index
    %c0_10 = arith.constant 0 : index
    %18 = vector.load %arg3[%c0_9, %c0_10] : memref<2x32xf32, #tpu.memory_space<vmem>>, vector<2x32xf32>
    %19 = vector.extract_strided_slice %18 {offsets = [0, 0], sizes = [1, 32], strides = [1, 1]} : vector<2x32xf32> to vector<1x32xf32>
    %20 = vector.broadcast %19 : vector<1x32xf32> to vector<1000x32xf32>
    %21 = arith.mulf %20, %12 : vector<1000x32xf32>
    %cst_11 = arith.constant 9.99999974E-6 : f32
    %22 = vector.broadcast %cst_11 : f32 to vector<1x32xf32>
    %23 = arith.addf %17, %22 : vector<1x32xf32>
    %24 = math.rsqrt %23 : vector<1x32xf32>
    %25 = vector.broadcast %24 : vector<1x32xf32> to vector<1000x32xf32>
    %26 = arith.mulf %21, %25 : vector<1000x32xf32>
    %27 = vector.extract_strided_slice %18 {offsets = [1, 0], sizes = [1, 32], strides = [1, 1]} : vector<2x32xf32> to vector<1x32xf32>
    %28 = vector.broadcast %27 : vector<1x32xf32> to vector<1000x32xf32>
    %29 = arith.addf %26, %28 : vector<1000x32xf32>
    %cst_12 = arith.constant 0.000000e+00 : f32
    %30 = vector.broadcast %cst_12 : f32 to vector<1000x32xf32>
    %31 = arith.maximumf %29, %30 : vector<1000x32xf32>
    %32 = arith.truncf %31 : vector<1000x32xf32> to vector<1000x32xbf16>
    %c0_13 = arith.constant 0 : index
    %c0_14 = arith.constant 0 : index
    %33 = vector.load %arg4[%c0_13, %c0_14] : memref<32x32xbf16, #tpu.memory_space<vmem>>, vector<32x32xbf16>
    %cst_15 = arith.constant dense<0.000000e+00> : vector<1000x32xf32>
    %34 = tpu.matmul %32, %33, %cst_15 {dimension_numbers = #tpu.dot_dimension_numbers<[1], [0], [0], [1], [0, 0, 1, 1], [], []>} : vector<1000x32xbf16>, vector<32x32xbf16>, vector<1000x32xf32> -> vector<1000x32xf32>
    %c0_16 = arith.constant 0 : index
    %c0_17 = arith.constant 0 : index
    %35 = vector.load %arg5[%c0_16, %c0_17] : memref<1x32xf32, #tpu.memory_space<vmem>>, vector<1x32xf32>
    %36 = vector.broadcast %35 : vector<1x32xf32> to vector<1000x32xf32>
    %37 = arith.addf %34, %36 : vector<1000x32xf32>
    %cst_18 = arith.constant dense<0.000000e+00> : vector<32xf32>
    %38 = vector.multi_reduction <add>, %37, %cst_18 [0] : vector<1000x32xf32> to vector<32xf32>
    %39 = vector.shape_cast %38 : vector<32xf32> to vector<1x32xf32>
    %cst_19 = arith.constant 1.000000e-03 : f32
    %40 = vector.broadcast %cst_19 : f32 to vector<1x32xf32>
    %41 = arith.mulf %39, %40 : vector<1x32xf32>
    %42 = vector.broadcast %41 : vector<1x32xf32> to vector<1000x32xf32>
    %43 = arith.subf %37, %42 : vector<1000x32xf32>
    %44 = arith.mulf %43, %43 : vector<1000x32xf32>
    %cst_20 = arith.constant dense<0.000000e+00> : vector<32xf32>
    %45 = vector.multi_reduction <add>, %44, %cst_20 [0] : vector<1000x32xf32> to vector<32xf32>
    %46 = vector.shape_cast %45 : vector<32xf32> to vector<1x32xf32>
    %cst_21 = arith.constant 1.000000e-03 : f32
    %47 = vector.broadcast %cst_21 : f32 to vector<1x32xf32>
    %48 = arith.mulf %46, %47 : vector<1x32xf32>
    %c0_22 = arith.constant 0 : index
    %c0_23 = arith.constant 0 : index
    %49 = vector.load %arg6[%c0_22, %c0_23] : memref<2x32xf32, #tpu.memory_space<vmem>>, vector<2x32xf32>
    %50 = vector.extract_strided_slice %49 {offsets = [0, 0], sizes = [1, 32], strides = [1, 1]} : vector<2x32xf32> to vector<1x32xf32>
    %51 = vector.broadcast %50 : vector<1x32xf32> to vector<1000x32xf32>
    %52 = arith.mulf %51, %43 : vector<1000x32xf32>
    %cst_24 = arith.constant 9.99999974E-6 : f32
    %53 = vector.broadcast %cst_24 : f32 to vector<1x32xf32>
    %54 = arith.addf %48, %53 : vector<1x32xf32>
    %55 = math.rsqrt %54 : vector<1x32xf32>
    %56 = vector.broadcast %55 : vector<1x32xf32> to vector<1000x32xf32>
    %57 = arith.mulf %52, %56 : vector<1000x32xf32>
    %58 = vector.extract_strided_slice %49 {offsets = [1, 0], sizes = [1, 32], strides = [1, 1]} : vector<2x32xf32> to vector<1x32xf32>
    %59 = vector.broadcast %58 : vector<1x32xf32> to vector<1000x32xf32>
    %60 = arith.addf %57, %59 : vector<1000x32xf32>
    %cst_25 = arith.constant 0.000000e+00 : f32
    %61 = vector.broadcast %cst_25 : f32 to vector<1000x32xf32>
    %62 = arith.maximumf %60, %61 : vector<1000x32xf32>
    %63 = arith.truncf %62 : vector<1000x32xf32> to vector<1000x32xbf16>
    %c0_26 = arith.constant 0 : index
    %c0_27 = arith.constant 0 : index
    %64 = vector.load %arg7[%c0_26, %c0_27] : memref<32x32xbf16, #tpu.memory_space<vmem>>, vector<32x32xbf16>
    %cst_28 = arith.constant dense<0.000000e+00> : vector<1000x32xf32>
    %65 = tpu.matmul %63, %64, %cst_28 {dimension_numbers = #tpu.dot_dimension_numbers<[1], [0], [0], [1], [0, 0, 1, 1], [], []>} : vector<1000x32xbf16>, vector<32x32xbf16>, vector<1000x32xf32> -> vector<1000x32xf32>
    %c0_29 = arith.constant 0 : index
    %c0_30 = arith.constant 0 : index
    %66 = vector.load %arg8[%c0_29, %c0_30] : memref<1x32xf32, #tpu.memory_space<vmem>>, vector<1x32xf32>
    %67 = vector.broadcast %66 : vector<1x32xf32> to vector<1000x32xf32>
    %68 = arith.addf %65, %67 : vector<1000x32xf32>
    %c0_31 = arith.constant 0 : index
    %c0_32 = arith.constant 0 : index
    %69 = vector.load %arg9[%c0_31, %c0_32] : memref<1000x32xf32, #tpu.memory_space<vmem>>, vector<1000x32xf32>
    tpu.vector_store %arg9[%c0_31, %c0_32], %68 {strides = array<i32>} : memref<1000x32xf32, #tpu.memory_space<vmem>>, vector<1000x32xf32>,
    return
  }
}

</mosaic_0001>

<bundles_post_ra>
// kernel: mlp_node_encoder.1
= control target key start
LH: loop header
LB: loop body
LE: loop exit
PB: predicated region body
PF: predicated region fallthrough
CT: control target
= control target key end

     0   :  { %v14972_v0 = vmov 0.0   ;;  %vm6434_vm0 = vmmov 0   ;;  %vm236_vm1 = vcmask 130048   ;;  %vm962_vm2 = vcmask 261120   ;;  %s14962_s1 = inlined_call_operand.vmem [shape: bf16[16,32], index: 1, kind: input, shape index: {}]   ;;  %s14963_s0 = inlined_call_operand.vmem [shape: f32[1000,16], index: 0, kind: input, shape index: {}]   ;;  %s14964_s2 = inlined_call_operand.vmem [shape: f32[1,32], index: 2, kind: input, shape index: {}]   ;;  %s14965_s3 = inlined_call_operand.vmem [shape: f32[2,32], index: 3, kind: input, shape index: {}]   ;;  %s14966_s4 = inlined_call_operand.vmem [shape: bf16[32,32], index: 4, kind: input, shape index: {}]   ;;  %s14967_s5 = inlined_call_operand.vmem [shape: f32[1,32], index: 5, kind: input, shape index: {}]   ;;  %s14968_s6 = inlined_call_operand.vmem [shape: f32[2,32], index: 6, kind: input, shape index: {}]   ;;  %s14969_s7 = inlined_call_operand.vmem [shape: bf16[32,32], index: 7, kind: input, shape index: {}]   ;;  %s14970_s8 = inlined_call_operand.vmem [shape: f32[1,32], index: 8, kind: input, shape index: {}]   ;;  %s14971_s9 = inlined_call_operand.vmem [shape: f32[1000,32], index: 9, kind: output, shape index: {}]  }
   0x1   :  { %5651 = vmatprep.subr.bf16.mxu0 %v14972_v0  ;;  %v6421_v1 = vld [vmem:[%s14962_s1] sm:$0xff]   ;;  %5653 = vmatprep.mubr.msk.bf16.mxu0 %vm6434_vm0, %v14972_v0  ;;  %v34_v3 = vld [vmem:[%s14963_s0 + $0x8] sm:$0xff]  ;;  %v35_v5 = vld [vmem:[%s14963_s0 + $0x10] sm:$0xff] }
   0x2   :  { %v33_v2 = vld [vmem:[%s14963_s0] sm:$0xff]  ;;  %6417 = vmatprep.subr.bf16.mxu1 %v14972_v0  ;;  %5781 = vmatprep.mubr.msk.bf16.mxu1 %vm6434_vm0, %v14972_v0  ;;  %v36_v6 = vld [vmem:[%s14963_s0 + $0x18] sm:$0xff]  ;;  %v98_v9 = vld [vmem:[%s14963_s0 + $0x208] sm:$0xff] }
   0x3   :  { %5652 = vmatpush3.bf16.msra.mxu0 %v6421_v1  ;;  %v158_v4 = vpack.c.bf16 %v34_v3, %v33_v2  ;;  %6418 = vmatpush3.bf16.msra.mxu1 %v6421_v1  ;;  %v159_v7 = vpack.c.bf16 %v36_v6, %v35_v5  ;;  %v97_v8 = vld [vmem:[%s14963_s0 + $0x200] sm:$0xff]  ;;  %v38_v12 = vld [vmem:[%s14963_s0 + $0x28] sm:$0xff]  ;;  %v99_v13 = vld [vmem:[%s14963_s0 + $0x210] sm:$0xff] }
   0x4   :  { %5905 = vmatprep.subr.bf16.mxu1 %v14972_v0  ;;  %6161 = vmatprep.subr.bf16.mxu0 %v14972_v0  ;;  %v190_v10 = vpack.c.bf16 %v98_v9, %v97_v8  ;;  %v37_v11 = vld [vmem:[%s14963_s0 + $0x20] sm:$0xff]  ;;  %v100_v14 = vld [vmem:[%s14963_s0 + $0x218] sm:$0xff]  ;;  %v39_v17 = vld [vmem:[%s14963_s0 + $0x30] sm:$0xff] }
   0x5   :  { %v160_v15 = vpack.c.bf16 %v38_v12, %v37_v11  ;;  %v191_v16 = vpack.c.bf16 %v100_v14, %v99_v13  ;;  %v40_v18 = vld [vmem:[%s14963_s0 + $0x38] sm:$0xff]  ;;  %v101_v19 = vld [vmem:[%s14963_s0 + $0x220] sm:$0xff]  ;;  %v102_v20 = vld [vmem:[%s14963_s0 + $0x228] sm:$0xff] }
   0x6   :  { %5654 = vmatmul.mubr.msk.bf16.vlgmr.msra.gmra.mrb[0].mxu0 %vm236_vm1, %v158_v4  ;;  %5782 = vmatmul.mubr.msk.bf16.vlgmr.msra.gmra.mrb[0].mxu1 %vm236_vm1, %v190_v10  ;;  %v161_v21 = vpack.c.bf16 %v40_v18, %v39_v17  ;;  %v192_v22 = vpack.c.bf16 %v102_v20, %v101_v19  ;;  %v41_v23 = vld [vmem:[%s14963_s0 + $0x40] sm:$0xff]  ;;  %v42_v24 = vld [vmem:[%s14963_s0 + $0x48] sm:$0xff]  ;;  %v103_v25 = vld [vmem:[%s14963_s0 + $0x230] sm:$0xff] }
   0x7   :  { %5657 = vmatprep.mubr.msk.bf16.mxu0 %vm6434_vm0, %v14972_v0  ;;  %5785 = vmatprep.mubr.msk.bf16.mxu1 %vm6434_vm0, %v14972_v0  ;;  %v104_v26 = vld [vmem:[%s14963_s0 + $0x238] sm:$0xff]  ;;  %v162_v27 = vpack.c.bf16 %v42_v24, %v41_v23  ;;  %v43_v29 = vld [vmem:[%s14963_s0 + $0x50] sm:$0xff]  ;;  %v105_v31 = vld [vmem:[%s14963_s0 + $0x240] sm:$0xff] }
   0x8   :  { %v193_v28 = vpack.c.bf16 %v104_v26, %v103_v25  ;;  %v44_v30 = vld [vmem:[%s14963_s0 + $0x58] sm:$0xff]  ;;  %v106_v32 = vld [vmem:[%s14963_s0 + $0x248] sm:$0xff]  ;;  %v45_v35 = vld [vmem:[%s14963_s0 + $0x60] sm:$0xff] }
   0x9   :  { %v163_v33 = vpack.c.bf16 %v44_v30, %v43_v29  ;;  %v194_v34 = vpack.c.bf16 %v106_v32, %v105_v31  ;;  %v46_v36 = vld [vmem:[%s14963_s0 + $0x68] sm:$0xff]  ;;  %v107_v37 = vld [vmem:[%s14963_s0 + $0x250] sm:$0xff]  ;;  %v108_v38 = vld [vmem:[%s14963_s0 + $0x258] sm:$0xff] }
   0xa   :  { %v164_v39 = vpack.c.bf16 %v46_v36, %v45_v35  ;;  %v195_v40 = vpack.c.bf16 %v108_v38, %v107_v37  ;;  %v47_v41 = vld [vmem:[%s14963_s0 + $0x70] sm:$0xff]  ;;  %v48_v42 = vld [vmem:[%s14963_s0 + $0x78] sm:$0xff]  ;;  %v109_v43 = vld [vmem:[%s14963_s0 + $0x260] sm:$0xff] }
   0xb   :  { %v110_v44 = vld [vmem:[%s14963_s0 + $0x268] sm:$0xff]  ;;  %v165_v45 = vpack.c.bf16 %v48_v42, %v47_v41  ;;  %v49_v47 = vld [vmem:[%s14963_s0 + $0x80] sm:$0xff]  ;;  %v111_v49 = vld [vmem:[%s14963_s0 + $0x270] sm:$0xff] }
   0xc   :  { %v196_v46 = vpack.c.bf16 %v110_v44, %v109_v43  ;;  %v50_v48 = vld [vmem:[%s14963_s0 + $0x88] sm:$0xff]  ;;  %v112_v50 = vld [vmem:[%s14963_s0 + $0x278] sm:$0xff]  ;;  %v51_v53 = vld [vmem:[%s14963_s0 + $0x90] sm:$0xff] }
   0xd   :  { %v166_v51 = vpack.c.bf16 %v50_v48, %v49_v47  ;;  %v197_v52 = vpack.c.bf16 %v112_v50, %v111_v49  ;;  %v52_v54 = vld [vmem:[%s14963_s0 + $0x98] sm:$0xff]  ;;  %v113_v55 = vld [vmem:[%s14963_s0 + $0x280] sm:$0xff]  ;;  %v114_v56 = vld [vmem:[%s14963_s0 + $0x288] sm:$0xff] }
   0xe   :  { %5658 = vmatmul.mubr.msk.bf16.gmra.mrb[4].mxu0 %vm236_vm1, %v159_v7  ;;  %5786 = vmatmul.mubr.msk.bf16.gmra.mrb[4].mxu1 %vm236_vm1, %v191_v16  ;;  %v167_v57 = vpack.c.bf16 %v52_v54, %v51_v53  ;;  %v198_v58 = vpack.c.bf16 %v114_v56, %v113_v55  ;;  %v53_v59 = vld [vmem:[%s14963_s0 + $0xa0] sm:$0xff]  ;;  %v54_v60 = vld [vmem:[%s14963_s0 + $0xa8] sm:$0xff]  ;;  %v115_v61 = vld [vmem:[%s14963_s0 + $0x290] sm:$0xff] }
   0xf   :  { %5661 = vmatprep.mubr.msk.bf16.mxu0 %vm6434_vm0, %v14972_v0  ;;  %5789 = vmatprep.mubr.msk.bf16.mxu1 %vm6434_vm0, %v14972_v0  ;;  %v116_v62 = vld [vmem:[%s14963_s0 + $0x298] sm:$0xff]  ;;  %v168_v63 = vpack.c.bf16 %v54_v60, %v53_v59  ;;  %v55_v2 = vld [vmem:[%s14963_s0 + $0xb0] sm:$0xff]  ;;  %v117_v4 = vld [vmem:[%s14963_s0 + $0x2a0] sm:$0xff] }
  0x10   :  { %v199_v1 = vpack.c.bf16 %v116_v62, %v115_v61  ;;  %v56_v3 = vld [vmem:[%s14963_s0 + $0xb8] sm:$0xff]  ;;  %v118_v5 = vld [vmem:[%s14963_s0 + $0x2a8] sm:$0xff]  ;;  %v57_v8 = vld [vmem:[%s14963_s0 + $0xc0] sm:$0xff] }
  0x11   :  { %v169_v6 = vpack.c.bf16 %v56_v3, %v55_v2  ;;  %v200_v7 = vpack.c.bf16 %v118_v5, %v117_v4  ;;  %v58_v9 = vld [vmem:[%s14963_s0 + $0xc8] sm:$0xff]  ;;  %v119_v10 = vld [vmem:[%s14963_s0 + $0x2b0] sm:$0xff]  ;;  %v120_v11 = vld [vmem:[%s14963_s0 + $0x2b8] sm:$0xff] }
  0x12   :  { %v170_v12 = vpack.c.bf16 %v58_v9, %v57_v8  ;;  %v201_v13 = vpack.c.bf16 %v120_v11, %v119_v10  ;;  %v59_v14 = vld [vmem:[%s14963_s0 + $0xd0] sm:$0xff]  ;;  %v121_v16 = vld [vmem:[%s14963_s0 + $0x2c0] sm:$0xff]  ;;  %v122_v17 = vld [vmem:[%s14963_s0 + $0x2c8] sm:$0xff] }
  0x13   :  { %v202_v19 = vpack.c.bf16 %v122_v17, %v121_v16  ;;  %v61_v20 = vld [vmem:[%s14963_s0 + $0xe0] sm:$0xff]  ;;  %v124_v23 = vld [vmem:[%s14963_s0 + $0x2d8] sm:$0xff]  ;;  %v63_v26 = vld [vmem:[%s14963_s0 + $0xf0] sm:$0xff] }
  0x14   :  { %v126_v29 = vld [vmem:[%s14963_s0 + $0x2e8] sm:$0xff]  ;;  %v65_v32 = vld [vmem:[%s14963_s0 + $0x100] sm:$0xff]  ;;  %v128_v35 = vld [vmem:[%s14963_s0 + $0x2f8] sm:$0xff] }
  0x15   :  { %v67_v38 = vld [vmem:[%s14963_s0 + $0x110] sm:$0xff]  ;;  %v130_v41 = vld [vmem:[%s14963_s0 + $0x308] sm:$0xff]  ;;  %v69_v44 = vld [vmem:[%s14963_s0 + $0x120] sm:$0xff] }
  0x16   :  { %5662 = vmatmul.mubr.msk.bf16.gmra.mrb[8].mxu0 %vm236_vm1, %v160_v15  ;;  %5790 = vmatmul.mubr.msk.bf16.gmra.mrb[8].mxu1 %vm236_vm1, %v192_v22  ;;  %v60_v15 = vld [vmem:[%s14963_s0 + $0xd8] sm:$0xff]  ;;  %v123_v22 = vld [vmem:[%s14963_s0 + $0x2d0] sm:$0xff]  ;;  %v134_v53 = vld [vmem:[%s14963_s0 + $0x328] sm:$0xff] }
  0x17   :  { %5665 = vmatprep.mubr.msk.bf16.mxu0 %vm6434_vm0, %v14972_v0  ;;  %5793 = vmatprep.mubr.msk.bf16.mxu1 %vm6434_vm0, %v14972_v0  ;;  %v171_v18 = vpack.c.bf16 %v60_v15, %v59_v14  ;;  %v203_v25 = vpack.c.bf16 %v124_v23, %v123_v22  ;;  %v132_v47 = vld [vmem:[%s14963_s0 + $0x318] sm:$0xff]  ;;  %v71_v50 = vld [vmem:[%s14963_s0 + $0x130] sm:$0xff]  ;;  %v73_v56 = vld [vmem:[%s14963_s0 + $0x140] sm:$0xff] }
  0x18   :  { %v136_v59 = vld [vmem:[%s14963_s0 + $0x338] sm:$0xff]  ;;  %v75_v62 = vld [vmem:[%s14963_s0 + $0x150] sm:$0xff]  ;;  %v138_v2 = vld [vmem:[%s14963_s0 + $0x348] sm:$0xff] }
  0x19   :  { %v77_v5 = vld [vmem:[%s14963_s0 + $0x160] sm:$0xff]  ;;  %v140_v8 = vld [vmem:[%s14963_s0 + $0x358] sm:$0xff]  ;;  %v79_v11 = vld [vmem:[%s14963_s0 + $0x170] sm:$0xff] }
  0x1a   :  { %v142_v14 = vld [vmem:[%s14963_s0 + $0x368] sm:$0xff]  ;;  %v81_v17 = vld [vmem:[%s14963_s0 + $0x180] sm:$0xff]  ;;  %v83_v23 = vld [vmem:[%s14963_s0 + $0x190] sm:$0xff] }
  0x1e   :  { %5666 = vmatmul.mubr.msk.bf16.gmra.mrb[12].mxu0 %vm236_vm1, %v161_v21  ;;  %5794 = vmatmul.mubr.msk.bf16.gmra.mrb[12].mxu1 %vm236_vm1, %v193_v28  ;;  %v62_v21 = vld [vmem:[%s14963_s0 + $0xe8] sm:$0xff]  ;;  %v125_v28 = vld [vmem:[%s14963_s0 + $0x2e0] sm:$0xff] }
  0x1f   :  { %5669 = vmatprep.mubr.msk.bf16.mxu0 %vm6434_vm0, %v14972_v0  ;;  %5797 = vmatprep.mubr.msk.bf16.mxu1 %vm6434_vm0, %v14972_v0  ;;  %v172_v24 = vpack.c.bf16 %v62_v21, %v61_v20  ;;  %v204_v31 = vpack.c.bf16 %v126_v29, %v125_v28  ;;  %v144_v20 = vld [vmem:[%s14963_s0 + $0x378] sm:$0xff]  ;;  %v85_v29 = vld [vmem:[%s14963_s0 + $0x1a0] sm:$0xff] }
  0x26   :  { %5670 = vmatmul.mubr.msk.bf16.gmra.mrb[16].mxu0 %vm236_vm1, %v162_v27  ;;  %5798 = vmatmul.mubr.msk.bf16.gmra.mrb[16].mxu1 %vm236_vm1, %v194_v34  ;;  %v64_v27 = vld [vmem:[%s14963_s0 + $0xf8] sm:$0xff]  ;;  %v127_v34 = vld [vmem:[%s14963_s0 + $0x2f0] sm:$0xff] }
  0x27   :  { %5673 = vmatprep.mubr.msk.bf16.mxu0 %vm6434_vm0, %v14972_v0  ;;  %5801 = vmatprep.mubr.msk.bf16.mxu1 %vm6434_vm0, %v14972_v0  ;;  %v173_v30 = vpack.c.bf16 %v64_v27, %v63_v26  ;;  %v205_v37 = vpack.c.bf16 %v128_v35, %v127_v34  ;;  %v146_v26 = vld [vmem:[%s14963_s0 + $0x388] sm:$0xff]  ;;  %v87_v35 = vld [vmem:[%s14963_s0 + $0x1b0] sm:$0xff] }
  0x2e   :  { %5674 = vmatmul.mubr.msk.bf16.gmra.mrb[20].mxu0 %vm236_vm1, %v163_v33  ;;  %5802 = vmatmul.mubr.msk.bf16.gmra.mrb[20].mxu1 %vm236_vm1, %v195_v40  ;;  %v66_v33 = vld [vmem:[%s14963_s0 + $0x108] sm:$0xff]  ;;  %v129_v40 = vld [vmem:[%s14963_s0 + $0x300] sm:$0xff] }
  0x2f   :  { %5677 = vmatprep.mubr.msk.bf16.mxu0 %vm6434_vm0, %v14972_v0  ;;  %5805 = vmatprep.mubr.msk.bf16.mxu1 %vm6434_vm0, %v14972_v0  ;;  %v174_v36 = vpack.c.bf16 %v66_v33, %v65_v32  ;;  %v206_v43 = vpack.c.bf16 %v130_v41, %v129_v40  ;;  %v148_v32 = vld [vmem:[%s14963_s0 + $0x398] sm:$0xff] }
  0x36   :  { %5678 = vmatmul.mubr.msk.bf16.gmra.mrb[24].mxu0 %vm236_vm1, %v164_v39  ;;  %5806 = vmatmul.mubr.msk.bf16.gmra.mrb[24].mxu1 %vm236_vm1, %v196_v46  ;;  %v68_v39 = vld [vmem:[%s14963_s0 + $0x118] sm:$0xff]  ;;  %v131_v46 = vld [vmem:[%s14963_s0 + $0x310] sm:$0xff] }
  0x37   :  { %5681 = vmatprep.mubr.msk.bf16.mxu0 %vm6434_vm0, %v14972_v0  ;;  %5809 = vmatprep.mubr.msk.bf16.mxu1 %vm6434_vm0, %v14972_v0  ;;  %v175_v42 = vpack.c.bf16 %v68_v39, %v67_v38  ;;  %v207_v49 = vpack.c.bf16 %v132_v47, %v131_v46  ;;  %v149_v38 = vld [vmem:[%s14963_s0 + $0x3a0] sm:$0xff]  ;;  %v150_v39 = vld [vmem:[%s14963_s0 + $0x3a8] sm:$0xff] }
  0x38   :  { %v90_v46 = vld [vmem:[%s14963_s0 + $0x1c8] sm:$0xff] }
  0x3e   :  { %5682 = vmatmul.mubr.msk.bf16.gmra.mrb[28].mxu0 %vm236_vm1, %v165_v45  ;;  %5810 = vmatmul.mubr.msk.bf16.gmra.mrb[28].mxu1 %vm236_vm1, %v197_v52  ;;  %v70_v45 = vld [vmem:[%s14963_s0 + $0x128] sm:$0xff]  ;;  %v133_v52 = vld [vmem:[%s14963_s0 + $0x320] sm:$0xff] }
  0x3f   :  { %5685 = vmatprep.mubr.msk.bf16.mxu0 %vm6434_vm0, %v14972_v0  ;;  %5813 = vmatprep.mubr.msk.bf16.mxu1 %vm6434_vm0, %v14972_v0  ;;  %v176_v48 = vpack.c.bf16 %v70_v45, %v69_v44  ;;  %v208_v55 = vpack.c.bf16 %v134_v53, %v133_v52  ;;  %v216_v44 = vpack.c.bf16 %v150_v39, %v149_v38  ;;  %v89_v45 = vld [vmem:[%s14963_s0 + $0x1c0] sm:$0xff] }
  0x46   :  { %5686 = vmatmul.mubr.msk.bf16.gmra.mrb[32].mxu0 %vm236_vm1, %v166_v51  ;;  %5814 = vmatmul.mubr.msk.bf16.gmra.mrb[32].mxu1 %vm236_vm1, %v198_v58  ;;  %v72_v51 = vld [vmem:[%s14963_s0 + $0x138] sm:$0xff]  ;;  %v135_v58 = vld [vmem:[%s14963_s0 + $0x330] sm:$0xff] }
  0x47   :  { %5689 = vmatprep.mubr.msk.bf16.mxu0 %vm6434_vm0, %v14972_v0  ;;  %5817 = vmatprep.mubr.msk.bf16.mxu1 %vm6434_vm0, %v14972_v0  ;;  %v177_v54 = vpack.c.bf16 %v72_v51, %v71_v50  ;;  %v209_v61 = vpack.c.bf16 %v136_v59, %v135_v58  ;;  %v186_v51 = vpack.c.bf16 %v90_v46, %v89_v45  ;;  %v91_v59 = vld [vmem:[%s14963_s0 + $0x1d0] sm:$0xff] }
  0x4e   :  { %5690 = vmatmul.mubr.msk.bf16.gmra.mrb[36].mxu0 %vm236_vm1, %v167_v57  ;;  %5818 = vmatmul.mubr.msk.bf16.gmra.mrb[36].mxu1 %vm236_vm1, %v199_v1  ;;  %v74_v57 = vld [vmem:[%s14963_s0 + $0x148] sm:$0xff]  ;;  %v137_v1 = vld [vmem:[%s14963_s0 + $0x340] sm:$0xff] }
  0x4f   :  { %5693 = vmatprep.mubr.msk.bf16.mxu0 %vm6434_vm0, %v14972_v0  ;;  %5821 = vmatprep.mubr.msk.bf16.mxu1 %vm6434_vm0, %v14972_v0  ;;  %v178_v60 = vpack.c.bf16 %v74_v57, %v73_v56  ;;  %v210_v4 = vpack.c.bf16 %v138_v2, %v137_v1 }
  0x56   :  { %5694 = vmatmul.mubr.msk.bf16.gmra.mrb[40].mxu0 %vm236_vm1, %v168_v63  ;;  %5822 = vmatmul.mubr.msk.bf16.gmra.mrb[40].mxu1 %vm236_vm1, %v200_v7  ;;  %v76_v63 = vld [vmem:[%s14963_s0 + $0x158] sm:$0xff]  ;;  %v139_v7 = vld [vmem:[%s14963_s0 + $0x350] sm:$0xff] }
  0x57   :  { %5697 = vmatprep.mubr.msk.bf16.mxu0 %vm6434_vm0, %v14972_v0  ;;  %5825 = vmatprep.mubr.msk.bf16.mxu1 %vm6434_vm0, %v14972_v0  ;;  %v179_v3 = vpack.c.bf16 %v76_v63, %v75_v62  ;;  %v211_v10 = vpack.c.bf16 %v140_v8, %v139_v7  ;;  %v153_v62 = vld [vmem:[%s14963_s0 + $0x3c0] sm:$0xff]  ;;  %v154_v63 = vld [vmem:[%s14963_s0 + $0x3c8] sm:$0xff] }
  0x58   :  { %v218_v7 = vpack.c.bf16 %v154_v63, %v153_v62 }
  0x5e   :  { %5698 = vmatmul.mubr.msk.bf16.gmra.mrb[44].mxu0 %vm236_vm1, %v169_v6  ;;  %5826 = vmatmul.mubr.msk.bf16.gmra.mrb[44].mxu1 %vm236_vm1, %v201_v13  ;;  %v78_v6 = vld [vmem:[%s14963_s0 + $0x168] sm:$0xff]  ;;  %v141_v13 = vld [vmem:[%s14963_s0 + $0x360] sm:$0xff] }
  0x5f   :  { %5701 = vmatprep.mubr.msk.bf16.mxu0 %vm6434_vm0, %v14972_v0  ;;  %5829 = vmatprep.mubr.msk.bf16.mxu1 %vm6434_vm0, %v14972_v0  ;;  %v180_v9 = vpack.c.bf16 %v78_v6, %v77_v5  ;;  %v212_v16 = vpack.c.bf16 %v142_v14, %v141_v13  ;;  %v155_v13 = vld [vmem:[%s14963_s0 + $0x3d0] sm:$0xff]  ;;  %v156_v14 = vld [vmem:[%s14963_s0 + $0x3d8] sm:$0xff] }
  0x66   :  { %5702 = vmatmul.mubr.msk.bf16.gmra.mrb[48].mxu0 %vm236_vm1, %v170_v12  ;;  %5830 = vmatmul.mubr.msk.bf16.gmra.mrb[48].mxu1 %vm236_vm1, %v202_v19  ;;  %v80_v12 = vld [vmem:[%s14963_s0 + $0x178] sm:$0xff]  ;;  %v143_v19 = vld [vmem:[%s14963_s0 + $0x370] sm:$0xff] }
  0x67   :  { %5705 = vmatprep.mubr.msk.bf16.mxu0 %vm6434_vm0, %v14972_v0  ;;  %5833 = vmatprep.mubr.msk.bf16.mxu1 %vm6434_vm0, %v14972_v0  ;;  %v181_v15 = vpack.c.bf16 %v80_v12, %v79_v11  ;;  %v213_v22 = vpack.c.bf16 %v144_v20, %v143_v19  ;;  %v94_v11 = vld [vmem:[%s14963_s0 + $0x1e8] sm:$0xff] }
  0x6e   :  { %5706 = vmatmul.mubr.msk.bf16.gmra.mrb[52].mxu0 %vm236_vm1, %v171_v18  ;;  %5834 = vmatmul.mubr.msk.bf16.gmra.mrb[52].mxu1 %vm236_vm1, %v203_v25  ;;  %v82_v18 = vld [vmem:[%s14963_s0 + $0x188] sm:$0xff]  ;;  %v145_v25 = vld [vmem:[%s14963_s0 + $0x380] sm:$0xff] }
  0x6f   :  { %5709 = vmatprep.mubr.msk.bf16.mxu0 %vm6434_vm0, %v14972_v0  ;;  %5837 = vmatprep.mubr.msk.bf16.mxu1 %vm6434_vm0, %v14972_v0  ;;  %v182_v21 = vpack.c.bf16 %v82_v18, %v81_v17  ;;  %v214_v28 = vpack.c.bf16 %v146_v26, %v145_v25  ;;  %v96_v25 = vld [vmem:[%s14963_s0 + $0x1f8] sm:$0xff] }
  0x76   :  { %5710 = vmatmul.mubr.msk.bf16.gmra.mrb[56].mxu0 %vm236_vm1, %v172_v24  ;;  %5838 = vmatmul.mubr.msk.bf16.gmra.mrb[56].mxu1 %vm236_vm1, %v204_v31  ;;  %v84_v24 = vld [vmem:[%s14963_s0 + $0x198] sm:$0xff]  ;;  %v147_v31 = vld [vmem:[%s14963_s0 + $0x390] sm:$0xff] }
  0x77   :  { %5713 = vmatprep.mubr.msk.bf16.mxu0 %vm6434_vm0, %v14972_v0  ;;  %5841 = vmatprep.mubr.msk.bf16.mxu1 %vm6434_vm0, %v14972_v0  ;;  %v183_v27 = vpack.c.bf16 %v84_v24, %v83_v23  ;;  %v215_v34 = vpack.c.bf16 %v148_v32, %v147_v31  ;;  %v95_v24 = vld [vmem:[%s14963_s0 + $0x1f0] sm:$0xff] }
  0x7e   :  { %5714 = vmatmul.mubr.msk.bf16.gmra.mrb[60].mxu0 %vm236_vm1, %v173_v30  ;;  %5842 = vmatmul.mubr.msk.bf16.gmra.mrb[60].mxu1 %vm236_vm1, %v205_v37  ;;  %v86_v30 = vld [vmem:[%s14963_s0 + $0x1a8] sm:$0xff] }
  0x7f   :  { %5717 = vmatprep.mubr.msk.bf16.mxu0 %vm6434_vm0, %v14972_v0  ;;  %5845 = vmatprep.mubr.msk.bf16.mxu1 %vm6434_vm0, %v14972_v0  ;;  %v184_v33 = vpack.c.bf16 %v86_v30, %v85_v29  ;;  %v189_v29 = vpack.c.bf16 %v96_v25, %v95_v24 }
  0x86   :  { %5718 = vmatmul.mubr.msk.bf16.gmra.mrb[64].mxu0 %vm236_vm1, %v174_v36  ;;  %5846 = vmatmul.mubr.msk.bf16.gmra.mrb[64].mxu1 %vm236_vm1, %v206_v43  ;;  %v88_v36 = vld [vmem:[%s14963_s0 + $0x1b8] sm:$0xff] }
  0x87   :  { %5721 = vmatprep.mubr.msk.bf16.mxu0 %vm6434_vm0, %v14972_v0  ;;  %5849 = vmatprep.mubr.msk.bf16.mxu1 %vm6434_vm0, %v14972_v0  ;;  %v185_v41 = vpack.c.bf16 %v88_v36, %v87_v35 }
  0x8e   :  { %5722 = vmatmul.mubr.msk.bf16.gmra.mrb[68].mxu0 %vm236_vm1, %v175_v42  ;;  %5850 = vmatmul.mubr.msk.bf16.gmra.mrb[68].mxu1 %vm236_vm1, %v207_v49  ;;  %v152_v49 = vld [vmem:[%s14963_s0 + $0x3b8] sm:$0xff] }
  0x8f   :  { %5725 = vmatprep.mubr.msk.bf16.mxu0 %vm6434_vm0, %v14972_v0  ;;  %5853 = vmatprep.mubr.msk.bf16.mxu1 %vm6434_vm0, %v14972_v0 }
  0x96   :  { %5726 = vmatmul.mubr.msk.bf16.gmra.mrb[72].mxu0 %vm236_vm1, %v176_v48  ;;  %5854 = vmatmul.mubr.msk.bf16.gmra.mrb[72].mxu1 %vm236_vm1, %v208_v55  ;;  %v151_v48 = vld [vmem:[%s14963_s0 + $0x3b0] sm:$0xff] }
  0x97   :  { %5729 = vmatprep.mubr.msk.bf16.mxu0 %vm6434_vm0, %v14972_v0  ;;  %5857 = vmatprep.mubr.msk.bf16.mxu1 %vm6434_vm0, %v14972_v0  ;;  %v217_v56 = vpack.c.bf16 %v152_v49, %v151_v48 }
  0x9e   :  { %5730 = vmatmul.mubr.msk.bf16.gmra.mrb[76].mxu0 %vm236_vm1, %v177_v54  ;;  %5858 = vmatmul.mubr.msk.bf16.gmra.mrb[76].mxu1 %vm236_vm1, %v209_v61 }
  0x9f   :  { %5733 = vmatprep.mubr.msk.bf16.mxu0 %vm6434_vm0, %v14972_v0  ;;  %5861 = vmatprep.mubr.msk.bf16.mxu1 %vm6434_vm0, %v14972_v0 }
  0xa6   :  { %5734 = vmatmul.mubr.msk.bf16.gmra.mrb[80].mxu0 %vm236_vm1, %v178_v60  ;;  %5862 = vmatmul.mubr.msk.bf16.gmra.mrb[80].mxu1 %vm236_vm1, %v210_v4  ;;  %v92_v60 = vld [vmem:[%s14963_s0 + $0x1d8] sm:$0xff] }
  0xa7   :  { %5737 = vmatprep.mubr.msk.bf16.mxu0 %vm6434_vm0, %v14972_v0  ;;  %5865 = vmatprep.mubr.msk.bf16.mxu1 %vm6434_vm0, %v14972_v0  ;;  %v187_v2 = vpack.c.bf16 %v92_v60, %v91_v59 }
  0xae   :  { %5738 = vmatmul.mubr.msk.bf16.gmra.mrb[84].mxu0 %vm236_vm1, %v179_v3  ;;  %5866 = vmatmul.mubr.msk.bf16.gmra.mrb[84].mxu1 %vm236_vm1, %v211_v10  ;;  %v93_v10 = vld [vmem:[%s14963_s0 + $0x1e0] sm:$0xff] }
  0xaf   :  { %5741 = vmatprep.mubr.msk.bf16.mxu0 %vm6434_vm0, %v14972_v0  ;;  %5869 = vmatprep.mubr.msk.bf16.mxu1 %vm6434_vm0, %v14972_v0 }
  0xb6   :  { %5742 = vmatmul.mubr.msk.bf16.gmra.mrb[88].mxu0 %vm236_vm1, %v180_v9  ;;  %5870 = vmatmul.mubr.msk.bf16.gmra.mrb[88].mxu1 %vm236_vm1, %v212_v16  ;;  %v188_v16 = vpack.c.bf16 %v94_v11, %v93_v10 }
  0xb7   :  { %5745 = vmatprep.mubr.msk.bf16.mxu0 %vm6434_vm0, %v14972_v0  ;;  %5873 = vmatprep.mubr.msk.bf16.mxu1 %vm6434_vm0, %v14972_v0 }
  0xbe   :  { %5746 = vmatmul.mubr.msk.bf16.gmra.mrb[92].mxu0 %vm236_vm1, %v181_v15  ;;  %5874 = vmatmul.mubr.msk.bf16.gmra.mrb[92].mxu1 %vm236_vm1, %v213_v22 }
  0xbf   :  { %5749 = vmatprep.mubr.msk.bf16.mxu0 %vm6434_vm0, %v14972_v0  ;;  %5877 = vmatprep.mubr.msk.bf16.mxu1 %vm6434_vm0, %v14972_v0 }
  0xc6   :  { %5750 = vmatmul.mubr.msk.bf16.gmra.mrb[96].mxu0 %vm236_vm1, %v182_v21  ;;  %5878 = vmatmul.mubr.msk.bf16.gmra.mrb[96].mxu1 %vm236_vm1, %v214_v28  ;;  %v219_v21 = vpack.c.bf16 %v156_v14, %v155_v13 }
  0xc7   :  { %5753 = vmatprep.mubr.msk.bf16.mxu0 %vm6434_vm0, %v14972_v0  ;;  %5881 = vmatprep.mubr.msk.bf16.mxu1 %vm6434_vm0, %v14972_v0 }
  0xce   :  { %5754 = vmatmul.mubr.msk.bf16.gmra.mrb[100].mxu0 %vm236_vm1, %v183_v27  ;;  %5882 = vmatmul.mubr.msk.bf16.gmra.mrb[100].mxu1 %vm236_vm1, %v215_v34  ;;  %v157_v27 = vld [vmem:[%s14963_s0 + $0x3e0] sm:$0xff] }
  0xcf   :  { %5757 = vmatprep.mubr.msk.bf16.mxu0 %vm6434_vm0, %v14972_v0  ;;  %5885 = vmatprep.mubr.msk.bf16.mxu1 %vm6434_vm0, %v14972_v0  ;;  %v220_v34 = vpack.c.bf16 %v157_v27, %v157_v27 }
  0xd6   :  { %5758 = vmatmul.mubr.msk.bf16.gmra.mrb[104].mxu0 %vm236_vm1, %v184_v33  ;;  %5886 = vmatmul.mubr.msk.bf16.gmra.mrb[104].mxu1 %vm236_vm1, %v216_v44 }
  0xd7   :  { %5761 = vmatprep.mubr.msk.bf16.mxu0 %vm6434_vm0, %v14972_v0  ;;  %5889 = vmatprep.mubr.msk.bf16.mxu1 %vm6434_vm0, %v14972_v0 }
  0xd9   :  { %v6977_v37 = vpop.f32.mrb[0].mxu0  ;;  %v7011_v53 = vpop.f32.mrb[0].mxu1 }
  0xda   :  { %v5655_v40 = vpop.f32.mrb[1].mxu0  ;;  %v5783_v55 = vpop.f32.mrb[1].mxu1 }
  0xdb   :  { %v6987_v42 = vpop.f32.mrb[2].mxu0  ;;  %v7013_v57 = vpop.f32.mrb[2].mxu1 }
  0xdc   :  { %v5656_v43 = vpop.f32.mrb[3].mxu0  ;;  %v5784_v58 = vpop.f32.mrb[3].mxu1 }
  0xde   :  { %5762 = vmatmul.mubr.msk.bf16.gmra.mrb[108].mxu0 %vm236_vm1, %v185_v41  ;;  %5890 = vmatmul.mubr.msk.bf16.gmra.mrb[108].mxu1 %vm236_vm1, %v217_v56 }
  0xdf   :  { %5765 = vmatprep.mubr.msk.bf16.mxu0 %vm6434_vm0, %v14972_v0  ;;  %5893 = vmatprep.mubr.msk.bf16.mxu1 %vm6434_vm0, %v14972_v0 }
  0xe1   :  { %v6999_v47 = vpop.f32.mrb[4].mxu0  ;;  %v7037_v4 = vpop.f32.mrb[4].mxu1 }
  0xe2   :  { %v5659_v50 = vpop.f32.mrb[5].mxu0  ;;  %v5787_v6 = vpop.f32.mrb[5].mxu1 }
  0xe3   :  { %v7009_v52 = vpop.f32.mrb[6].mxu0  ;;  %v7039_v8 = vpop.f32.mrb[6].mxu1 }
  0xe4   :  { %v5660_v54 = vpop.f32.mrb[7].mxu0  ;;  %v5788_v9 = vpop.f32.mrb[7].mxu1 }
  0xe6   :  { %5766 = vmatmul.mubr.msk.bf16.gmra.mrb[112].mxu0 %vm236_vm1, %v186_v51  ;;  %5894 = vmatmul.mubr.msk.bf16.gmra.mrb[112].mxu1 %vm236_vm1, %v218_v7  ;;  %v7123_v7 = vld [vmem:[%s14964_s2] ss:$0 sm:$0xff] }
  0xe7   :  { %5769 = vmatprep.mubr.msk.bf16.mxu0 %vm6434_vm0, %v14972_v0  ;;  %5897 = vmatprep.mubr.msk.bf16.mxu1 %vm6434_vm0, %v14972_v0  ;;  %v7127_v9 = vadd.f32 %v7123_v7, %v6987_v42  ;;  %v7133_v11 = vadd.f32 %v7123_v7, %v6977_v37  ;;  %v7137_v13 = vadd.f32 %v7123_v7, %v6999_v47 }
  0xe9   :  { %v7025_v61 = vpop.f32.mrb[8].mxu0  ;;  %v7063_v18 = vpop.f32.mrb[8].mxu1  ;;  %15360 = vst [vmem:[#allocation2_spill] sm:$0xff] %v7127_v9  ;;  %15361 = vst [vmem:[#allocation3_spill] sm:$0xff] %v7133_v11  ;;  %v964_v42 = vsel %vm962_vm2, %v7127_v9, 0.0  ;;  %v963_v37 = vsel %vm962_vm2, %v7133_v11, 0.0 }
  0xea   :  { %v5663_v1 = vpop.f32.mrb[9].mxu0  ;;  %v5791_v20 = vpop.f32.mrb[9].mxu1  ;;  %15362 = vst [vmem:[#allocation4_spill] sm:$0xff] %v7137_v13  ;;  %v966_v47 = vsel %vm962_vm2, %v7137_v13, 0.0  ;;  %v965_v25 = vadd.f32 %v964_v42, %v963_v37  ;;  %v7157_v27 = vadd.f32 %v7123_v7, %v7025_v61 }
  0xeb   :  { %v7035_v3 = vpop.f32.mrb[10].mxu0  ;;  %v7065_v22 = vpop.f32.mrb[10].mxu1 }
  0xec   :  { %v5664_v5 = vpop.f32.mrb[11].mxu0  ;;  %v5792_v23 = vpop.f32.mrb[11].mxu1  ;;  %15364 = vst [vmem:[#allocation6_spill] sm:$0xff] %v7157_v27 }
  0xed   :  { %v7153_v23 = vadd.f32 %v7123_v7, %v7009_v52  ;;  %v970_v52 = vsel %vm962_vm2, %v7157_v27, 0.0 }
  0xee   :  { %5770 = vmatmul.mubr.msk.bf16.gmra.mrb[116].mxu0 %vm236_vm1, %v187_v2  ;;  %5898 = vmatmul.mubr.msk.bf16.gmra.mrb[116].mxu1 %vm236_vm1, %v219_v21 }
  0xef   :  { %5773 = vmatprep.mubr.msk.bf16.mxu0 %vm6434_vm0, %v14972_v0  ;;  %5901 = vmatprep.mubr.msk.bf16.mxu1 %vm6434_vm0, %v14972_v0  ;;  %15363 = vst [vmem:[#allocation5_spill] sm:$0xff] %v7153_v23 }
  0xf1   :  { %v7051_v12 = vpop.f32.mrb[12].mxu0  ;;  %v7086_v31 = vpop.f32.mrb[12].mxu1 }
  0xf2   :  { %v5667_v15 = vpop.f32.mrb[13].mxu0  ;;  %v5795_v33 = vpop.f32.mrb[13].mxu1 }
  0xf3   :  { %v7061_v17 = vpop.f32.mrb[14].mxu0  ;;  %v7088_v35 = vpop.f32.mrb[14].mxu1 }
  0xf4   :  { %v5668_v19 = vpop.f32.mrb[15].mxu0  ;;  %v5796_v36 = vpop.f32.mrb[15].mxu1 }
  0xf6   :  { %5774 = vmatmul.mubr.msk.bf16.gmra.mrb[120].mxu0 %vm236_vm1, %v188_v16  ;;  %5902 = vmatmul.mubr.msk.bf16.gmra.mrb[120].mxu1 %vm236_vm1, %v220_v34 }
  0xf7   :  { %5777 = vmatprep.mubr.msk.bf16.mxu0 %vm6434_vm0, %v14972_v0  ;;  %5909 = vmatprep.mubr.msk.bf16.mxu1 %vm6434_vm0, %v14972_v0 }
  0xf9   :  { %v7077_v26 = vpop.f32.mrb[16].mxu0  ;;  %v7100_v41 = vpop.f32.mrb[16].mxu1 }
  0xfa   :  { %v5671_v28 = vpop.f32.mrb[17].mxu0  ;;  %v5799_v44 = vpop.f32.mrb[17].mxu1  ;;  %v7195_v42 = vadd.f32 %v7123_v7, %v7077_v26 }
  0xfb   :  { %v7084_v30 = vpop.f32.mrb[18].mxu0  ;;  %v7102_v45 = vpop.f32.mrb[18].mxu1  ;;  %v967_v28 = vadd.f32 %v966_v47, %v965_v25 }
  0xfc   :  { %v5672_v32 = vpop.f32.mrb[19].mxu0  ;;  %v5800_v46 = vpop.f32.mrb[19].mxu1  ;;  %15368 = vst [vmem:[#allocation10_spill] sm:$0xff] %v7195_v42  ;;  %v978_v25 = vsel %vm962_vm2, %v7195_v42, 0.0 }
  0xfd   :  { %v968_v32 = vsel %vm962_vm2, %v7153_v23, 0.0 }
  0xfe   :  { %5778 = vmatmul.mubr.msk.bf16.gmra.mrb[124].mxu0 %vm236_vm1, %v189_v29  ;;  %v969_v44 = vadd.f32 %v968_v32, %v967_v28  ;;  %v7205_v28 = vadd.f32 %v7123_v7, %v7084_v30 }
  0xff   :  { %6165 = vmatprep.mubr.msk.bf16.mxu0 %vm6434_vm0, %v14972_v0 }
 0x100   :  { %15369 = vst [vmem:[#allocation11_spill] sm:$0xff] %v7205_v28 }
 0x101   :  { %v7094_v38 = vpop.f32.mrb[20].mxu0  ;;  %v7108_v51 = vpop.f32.mrb[20].mxu1 }
 0x102   :  { %v5675_v39 = vpop.f32.mrb[21].mxu0  ;;  %v5803_v55 = vpop.f32.mrb[21].mxu1  ;;  %v7211_v26 = vadd.f32 %v7123_v7, %v7094_v38 }
 0x103   :  { %v7098_v40 = vpop.f32.mrb[22].mxu0  ;;  %v7110_v56 = vpop.f32.mrb[22].mxu1  ;;  %v7171_v39 = vadd.f32 %v7123_v7, %v7035_v3  ;;  %v971_v55 = vadd.f32 %v970_v52, %v969_v44 }
 0x104   :  { %v5676_v43 = vpop.f32.mrb[23].mxu0  ;;  %v5804_v58 = vpop.f32.mrb[23].mxu1  ;;  %15370 = vst [vmem:[#allocation12_spill] sm:$0xff] %v7211_v26  ;;  %v7225_v38 = vadd.f32 %v7123_v7, %v7098_v40 }
 0x105   :  { %15365 = vst [vmem:[#allocation7_spill] sm:$0xff] %v7171_v39  ;;  %v972_v58 = vsel %vm962_vm2, %v7171_v39, 0.0 }
 0x106   :  { %15371 = vst [vmem:[#allocation13_spill] sm:$0xff] %v7225_v38 }
 0x109   :  { %v7104_v48 = vpop.f32.mrb[24].mxu0  ;;  %v7116_v63 = vpop.f32.mrb[24].mxu1 }
 0x10a   :  { %v5679_v49 = vpop.f32.mrb[25].mxu0  ;;  %v5807_v2 = vpop.f32.mrb[25].mxu1 }
 0x10b   :  { %v7106_v50 = vpop.f32.mrb[26].mxu0  ;;  %v7118_v5 = vpop.f32.mrb[26].mxu1  ;;  %v7177_v49 = vadd.f32 %v7123_v7, %v7051_v12 }
 0x10c   :  { %v5680_v54 = vpop.f32.mrb[27].mxu0  ;;  %v5808_v6 = vpop.f32.mrb[27].mxu1 }
 0x10d   :  { %15366 = vst [vmem:[#allocation8_spill] sm:$0xff] %v7177_v49  ;;  %v974_v3 = vsel %vm962_vm2, %v7177_v49, 0.0  ;;  %v973_v6 = vadd.f32 %v972_v58, %v971_v55 }
 0x10f   :  { %v975_v37 = vadd.f32 %v974_v3, %v973_v6  ;;  %v982_v3 = vsel %vm962_vm2, %v7211_v26, 0.0 }
 0x111   :  { %v7112_v59 = vpop.f32.mrb[28].mxu0  ;;  %v7141_v16 = vpop.f32.mrb[28].mxu1 }
 0x112   :  { %v5683_v60 = vpop.f32.mrb[29].mxu0  ;;  %v5811_v20 = vpop.f32.mrb[29].mxu1 }
 0x113   :  { %v7114_v62 = vpop.f32.mrb[30].mxu0  ;;  %v7145_v21 = vpop.f32.mrb[30].mxu1 }
 0x114   :  { %v5684_v1 = vpop.f32.mrb[31].mxu0  ;;  %v5812_v24 = vpop.f32.mrb[31].mxu1 }
 0x115   :  { %v7187_v1 = vadd.f32 %v7123_v7, %v7061_v17 }
 0x117   :  { %15367 = vst [vmem:[#allocation9_spill] sm:$0xff] %v7187_v1  ;;  %v976_v24 = vsel %vm962_vm2, %v7187_v1, 0.0 }
 0x118   :  { %v977_v32 = vadd.f32 %v976_v24, %v975_v37  ;;  %v984_v24 = vsel %vm962_vm2, %v7225_v38, 0.0 }
 0x119   :  { %v7129_v10 = vpop.f32.mrb[32].mxu0  ;;  %v7165_v36 = vpop.f32.mrb[32].mxu1 }
 0x11a   :  { %v5687_v14 = vpop.f32.mrb[33].mxu0  ;;  %v5815_v43 = vpop.f32.mrb[33].mxu1 }
 0x11b   :  { %v7139_v15 = vpop.f32.mrb[34].mxu0  ;;  %v7173_v46 = vpop.f32.mrb[34].mxu1 }
 0x11c   :  { %v5688_v19 = vpop.f32.mrb[35].mxu0  ;;  %v5816_v54 = vpop.f32.mrb[35].mxu1 }
 0x11d   :  { %v980_v54 = vsel %vm962_vm2, %v7205_v28, 0.0 }
 0x121   :  { %v7159_v29 = vpop.f32.mrb[36].mxu0  ;;  %v7191_v12 = vpop.f32.mrb[36].mxu1 }
 0x122   :  { %v5691_v33 = vpop.f32.mrb[37].mxu0  ;;  %v5819_v20 = vpop.f32.mrb[37].mxu1 }
 0x123   :  { %v7163_v34 = vpop.f32.mrb[38].mxu0  ;;  %v7197_v47 = vpop.f32.mrb[38].mxu1 }
 0x124   :  { %v5692_v61 = vpop.f32.mrb[39].mxu0  ;;  %v5820_v17 = vpop.f32.mrb[39].mxu1 }
 0x125   :  { %v979_v61 = vadd.f32 %v978_v25, %v977_v32 }
 0x127   :  { %v981_v6 = vadd.f32 %v980_v54, %v979_v61 }
 0x129   :  { %v7181_v60 = vpop.f32.mrb[40].mxu0  ;;  %v7215_v44 = vpop.f32.mrb[40].mxu1  ;;  %v983_v20 = vadd.f32 %v982_v3, %v981_v6 }
 0x12a   :  { %v5695_v2 = vpop.f32.mrb[41].mxu0  ;;  %v5823_v58 = vpop.f32.mrb[41].mxu1 }
 0x12b   :  { %v7189_v14 = vpop.f32.mrb[42].mxu0  ;;  %v7219_v30 = vpop.f32.mrb[42].mxu1  ;;  %v985_v54 = vadd.f32 %v984_v24, %v983_v20  ;;  %v7249_v58 = vadd.f32 %v7123_v7, %v7112_v59 }
 0x12c   :  { %v5696_v19 = vpop.f32.mrb[43].mxu0  ;;  %v5824_v2 = vpop.f32.mrb[43].mxu1 }
 0x12d   :  { %v7229_v19 = vadd.f32 %v7123_v7, %v7104_v48  ;;  %15374 = vst [vmem:[#allocation16_spill] sm:$0xff] %v7249_v58 }
 0x12f   :  { %15372 = vst [vmem:[#allocation14_spill] sm:$0xff] %v7229_v19  ;;  %v986_v40 = vsel %vm962_vm2, %v7229_v19, 0.0 }
 0x130   :  { %v987_v2 = vadd.f32 %v986_v40, %v985_v54  ;;  %v7267_v40 = vadd.f32 %v7123_v7, %v7129_v10  ;;  %v7281_v10 = vadd.f32 %v7123_v7, %v7159_v29 }
 0x131   :  { %v7207_v33 = vpop.f32.mrb[44].mxu0  ;;  %v7237_v32 = vpop.f32.mrb[44].mxu1 }
 0x132   :  { %v5699_v52 = vpop.f32.mrb[45].mxu0  ;;  %v5827_v61 = vpop.f32.mrb[45].mxu1  ;;  %15376 = vst [vmem:[#allocation18_spill] sm:$0xff] %v7267_v40  ;;  %15378 = vst [vmem:[#allocation20_spill] sm:$0xff] %v7281_v10 }
 0x133   :  { %v7213_v43 = vpop.f32.mrb[46].mxu0  ;;  %v7243_v52 = vadd.f32 %v7123_v7, %v7106_v50  ;;  %v990_v50 = vsel %vm962_vm2, %v7249_v58, 0.0 }
 0x134   :  { %v5700_v55 = vpop.f32.mrb[47].mxu0 }
 0x135   :  { %15373 = vst [vmem:[#allocation15_spill] sm:$0xff] %v7243_v52  ;;  %v7245_v55 = vpop.f32.mrb[46].mxu1  ;;  %v988_v6 = vsel %vm962_vm2, %v7243_v52, 0.0 }
 0x136   :  { %v5828_v3 = vpop.f32.mrb[47].mxu1  ;;  %v989_v24 = vadd.f32 %v988_v6, %v987_v2  ;;  %v994_v2 = vsel %vm962_vm2, %v7267_v40, 0.0  ;;  %v7277_v6 = vadd.f32 %v7123_v7, %v7139_v15  ;;  %v7295_v15 = vadd.f32 %v7123_v7, %v7163_v34 }
 0x137   :  { %v7309_v34 = vadd.f32 %v7123_v7, %v7189_v14  ;;  %v7323_v14 = vadd.f32 %v7123_v7, %v7213_v43 }
 0x138   :  { %v991_v0 = vadd.f32 %v990_v50, %v989_v24  ;;  %15377 = vst [vmem:[#allocation19_spill] sm:$0xff] %v7277_v6  ;;  %15379 = vst [vmem:[#allocation21_spill] sm:$0xff] %v7295_v15 }
 0x139   :  { %v7231_v37 = vpop.f32.mrb[48].mxu0  ;;  %v7263_v59 = vpop.f32.mrb[48].mxu1  ;;  %15381 = vst [vmem:[#allocation23_spill] sm:$0xff] %v7309_v34  ;;  %15383 = vst [vmem:[#allocation25_spill] sm:$0xff] %v7323_v14 }
 0x13a   :  { %v5703_v17 = vpop.f32.mrb[49].mxu0  ;;  %v5831_v3 = vpop.f32.mrb[49].mxu1 }
 0x13b   :  { %v7235_v25 = vpop.f32.mrb[50].mxu0  ;;  %v7269_v52 = vpop.f32.mrb[50].mxu1 }
 0x13c   :  { %v5704_v48 = vpop.f32.mrb[51].mxu0 }
 0x13d   :  { %v7259_v48 = vadd.f32 %v7123_v7, %v7114_v62  ;;  %v5832_v62 = vpop.f32.mrb[51].mxu1 }
 0x13e   :  { %v996_v62 = vsel %vm962_vm2, %v7277_v6, 0.0 }
 0x13f   :  { %15375 = vst [vmem:[#allocation17_spill] sm:$0xff] %v7259_v48  ;;  %v992_v58 = vsel %vm962_vm2, %v7259_v48, 0.0 }
 0x141   :  { %v7253_v17 = vpop.f32.mrb[52].mxu0  ;;  %v7285_v3 = vpop.f32.mrb[52].mxu1 }
 0x142   :  { %v5707_v20 = vpop.f32.mrb[53].mxu0  ;;  %v5835_v48 = vpop.f32.mrb[53].mxu1 }
 0x143   :  { %v7261_v61 = vpop.f32.mrb[54].mxu0  ;;  %v993_v20 = vadd.f32 %v992_v58, %v991_v0  ;;  %v7289_v38 = vpop.f32.mrb[54].mxu1  ;;  %v998_v0 = vsel %vm962_vm2, %v7281_v10, 0.0  ;;  %v1000_v48 = vsel %vm962_vm2, %v7295_v15, 0.0  ;;  %v1004_v15 = vsel %vm962_vm2, %v7309_v34, 0.0 }
 0x144   :  { %v5708_v54 = vpop.f32.mrb[55].mxu0  ;;  %v5836_v29 = vpop.f32.mrb[55].mxu1 }
 0x145   :  { %v995_v24 = vadd.f32 %v994_v2, %v993_v20  ;;  %v7299_v2 = vadd.f32 %v7123_v7, %v7181_v60 }
 0x147   :  { %v997_v58 = vadd.f32 %v996_v62, %v995_v24  ;;  %15380 = vst [vmem:[#allocation22_spill] sm:$0xff] %v7299_v2  ;;  %v1002_v10 = vsel %vm962_vm2, %v7299_v2, 0.0 }
 0x149   :  { %v572_v19 = vpop.f32.mrb[56].mxu0  ;;  %v999_v20 = vadd.f32 %v998_v0, %v997_v58  ;;  %v7303_v26 = vpop.f32.mrb[56].mxu1  ;;  %v7315_v0 = vadd.f32 %v7123_v7, %v7207_v33  ;;  %v7329_v33 = vadd.f32 %v7123_v7, %v7231_v37  ;;  %v7343_v37 = vadd.f32 %v7123_v7, %v7253_v17 }
 0x14a   :  { %v5711_v50 = vpop.f32.mrb[57].mxu0  ;;  %v5839_v62 = vpop.f32.mrb[57].mxu1 }
 0x14b   :  { %v7283_v54 = vpop.f32.mrb[58].mxu0  ;;  %v1001_v60 = vadd.f32 %v1000_v48, %v999_v20  ;;  %v7311_v29 = vpop.f32.mrb[58].mxu1  ;;  %15382 = vst [vmem:[#allocation24_spill] sm:$0xff] %v7315_v0  ;;  %v1006_v2 = vsel %vm962_vm2, %v7315_v0, 0.0  ;;  %15384 = vst [vmem:[#allocation26_spill] sm:$0xff] %v7329_v33  ;;  %v1008_v0 = vsel %vm962_vm2, %v7323_v14, 0.0 }
 0x14c   :  { %v5712_v40 = vpop.f32.mrb[59].mxu0  ;;  %v5840_v58 = vpop.f32.mrb[59].mxu1  ;;  %v1010_v43 = vsel %vm962_vm2, %v7329_v33, 0.0  ;;  %15386 = vst [vmem:[#allocation28_spill] sm:$0xff] %v7343_v37 }
 0x151   :  { %v580_v50 = vpop.f32.mrb[60].mxu0  ;;  %v7325_v62 = vpop.f32.mrb[60].mxu1 }
 0x152   :  { %v5715_v40 = vpop.f32.mrb[61].mxu0 }
 0x153   :  { %v583_v6 = vpop.f32.mrb[62].mxu0  ;;  %v1003_v40 = vadd.f32 %v1002_v10, %v1001_v60  ;;  %v5843_v60 = vpop.f32.mrb[61].mxu1 }
 0x154   :  { %v5716_v24 = vpop.f32.mrb[63].mxu0  ;;  %v7331_v34 = vpop.f32.mrb[62].mxu1 }
 0x155   :  { %v1005_v48 = vadd.f32 %v1004_v15, %v1003_v40  ;;  %v5844_v42 = vpop.f32.mrb[63].mxu1  ;;  %v7339_v15 = vadd.f32 %v7123_v7, %v7235_v25  ;;  %v1014_v25 = vsel %vm962_vm2, %v7343_v37, 0.0 }
 0x157   :  { %v1007_v58 = vadd.f32 %v1006_v2, %v1005_v48  ;;  %15385 = vst [vmem:[#allocation27_spill] sm:$0xff] %v7339_v15  ;;  %v1012_v42 = vsel %vm962_vm2, %v7339_v15, 0.0 }
 0x159   :  { %v588_v28 = vpop.f32.mrb[64].mxu0  ;;  %v1009_v40 = vadd.f32 %v1008_v0, %v1007_v58  ;;  %v7345_v60 = vpop.f32.mrb[64].mxu1  ;;  %v7355_v0 = vadd.f32 %v7123_v7, %v7261_v61  ;;  %v7368_v61 = vadd.f32 %v7123_v7, %v7283_v54  ;;  %v7380_v54 = vadd.f32 %v7123_v7, %v583_v6 }
 0x15a   :  { %v5719_v20 = vpop.f32.mrb[65].mxu0  ;;  %v5847_v33 = vpop.f32.mrb[65].mxu1 }
 0x15b   :  { %v591_v24 = vpop.f32.mrb[66].mxu0  ;;  %v1011_v48 = vadd.f32 %v1010_v43, %v1009_v40  ;;  %v7349_v1 = vpop.f32.mrb[66].mxu1  ;;  %15387 = vst [vmem:[#allocation29_spill] sm:$0xff] %v7355_v0  ;;  %v7358_v43 = vadd.f32 %v7123_v7, %v572_v19  ;;  %15389 = vst [vmem:[#allocation31_spill] sm:$0xff] %v7368_v61 }
 0x15c   :  { %v5720_v10 = vpop.f32.mrb[67].mxu0  ;;  %v5848_v17 = vpop.f32.mrb[67].mxu1  ;;  %15391 = vst [vmem:[#allocation33_spill] sm:$0xff] %v7380_v54 }
 0x15d   :  { %v1013_v58 = vadd.f32 %v1012_v42, %v1011_v48  ;;  %15388 = vst [vmem:[#allocation30_spill] sm:$0xff] %v7358_v43  ;;  %v1018_v37 = vsel %vm962_vm2, %v7358_v43, 0.0 }
 0x15f   :  { %v1015_v40 = vadd.f32 %v1014_v25, %v1013_v58  ;;  %v7373_v25 = vadd.f32 %v7123_v7, %v580_v50  ;;  %v7385_v50 = vadd.f32 %v7123_v7, %v588_v28 }
 0x161   :  { %v596_v20 = vpop.f32.mrb[68].mxu0  ;;  %v7362_v49 = vpop.f32.mrb[68].mxu1  ;;  %15390 = vst [vmem:[#allocation32_spill] sm:$0xff] %v7373_v25  ;;  %v1022_v43 = vsel %vm962_vm2, %v7373_v25, 0.0  ;;  %15392 = vst [vmem:[#allocation34_spill] sm:$0xff] %v7385_v50  ;;  %v1026_v6 = vsel %vm962_vm2, %v7385_v50, 0.0 }
 0x162   :  { %v5723_v2 = vpop.f32.mrb[69].mxu0  ;;  %v5851_v42 = vpop.f32.mrb[69].mxu1  ;;  %v7397_v28 = vadd.f32 %v7123_v7, %v596_v20 }
 0x163   :  { %v599_v10 = vpop.f32.mrb[70].mxu0  ;;  %v7370_v17 = vpop.f32.mrb[70].mxu1 }
 0x164   :  { %v5724_v14 = vpop.f32.mrb[71].mxu0  ;;  %v5852_v58 = vpop.f32.mrb[71].mxu1  ;;  %15394 = vst [vmem:[#allocation36_spill] sm:$0xff] %v7397_v28 }
 0x165   :  { %v1016_v14 = vsel %vm962_vm2, %v7355_v0, 0.0  ;;  %v1020_v0 = vsel %vm962_vm2, %v7368_v61, 0.0  ;;  %v1024_v61 = vsel %vm962_vm2, %v7380_v54, 0.0 }
 0x166   :  { %v1017_v19 = vadd.f32 %v1016_v14, %v1015_v40 }
 0x169   :  { %v604_v2 = vpop.f32.mrb[72].mxu0  ;;  %v7382_v14 = vpop.f32.mrb[72].mxu1 }
 0x16a   :  { %v5727_v33 = vpop.f32.mrb[73].mxu0 }
 0x16b   :  { %v607_v15 = vpop.f32.mrb[74].mxu0  ;;  %v1019_v33 = vadd.f32 %v1018_v37, %v1017_v19  ;;  %v5855_v37 = vpop.f32.mrb[73].mxu1 }
 0x16c   :  { %v5728_v48 = vpop.f32.mrb[75].mxu0  ;;  %v7387_v27 = vpop.f32.mrb[74].mxu1 }
 0x16d   :  { %v1021_v42 = vadd.f32 %v1020_v0, %v1019_v33  ;;  %v5856_v25 = vpop.f32.mrb[75].mxu1  ;;  %v7394_v0 = vadd.f32 %v7123_v7, %v591_v24  ;;  %v1030_v24 = vsel %vm962_vm2, %v7397_v28, 0.0 }
 0x16f   :  { %v1023_v19 = vadd.f32 %v1022_v43, %v1021_v42  ;;  %15393 = vst [vmem:[#allocation35_spill] sm:$0xff] %v7394_v0  ;;  %v1028_v54 = vsel %vm962_vm2, %v7394_v0, 0.0 }
 0x171   :  { %v612_v39 = vpop.f32.mrb[76].mxu0  ;;  %v1025_v33 = vadd.f32 %v1024_v61, %v1023_v19  ;;  %v7399_v42 = vpop.f32.mrb[76].mxu1  ;;  %v7408_v61 = vadd.f32 %v7123_v7, %v599_v10  ;;  %v7420_v10 = vadd.f32 %v7123_v7, %v607_v15 }
 0x172   :  { %v5731_v48 = vpop.f32.mrb[77].mxu0  ;;  %v5859_v23 = vpop.f32.mrb[77].mxu1 }
 0x173   :  { %v615_v40 = vpop.f32.mrb[78].mxu0  ;;  %v1027_v37 = vadd.f32 %v1026_v6, %v1025_v33  ;;  %v7403_v13 = vpop.f32.mrb[78].mxu1  ;;  %15395 = vst [vmem:[#allocation37_spill] sm:$0xff] %v7408_v61  ;;  %v7411_v6 = vadd.f32 %v7123_v7, %v604_v2  ;;  %v1032_v0 = vsel %vm962_vm2, %v7408_v61, 0.0  ;;  %15397 = vst [vmem:[#allocation39_spill] sm:$0xff] %v7420_v10 }
 0x174   :  { %v5732_v58 = vpop.f32.mrb[79].mxu0  ;;  %v5860_v20 = vpop.f32.mrb[79].mxu1  ;;  %v7432_v15 = vadd.f32 %v7123_v7, %v615_v40 }
 0x175   :  { %v1029_v19 = vadd.f32 %v1028_v54, %v1027_v37  ;;  %15396 = vst [vmem:[#allocation38_spill] sm:$0xff] %v7411_v6  ;;  %v1034_v28 = vsel %vm962_vm2, %v7411_v6, 0.0 }
 0x176   :  { %15399 = vst [vmem:[#allocation41_spill] sm:$0xff] %v7432_v15 }
 0x177   :  { %v1031_v33 = vadd.f32 %v1030_v24, %v1029_v19  ;;  %v7425_v24 = vadd.f32 %v7123_v7, %v612_v39 }
 0x179   :  { %v620_v48 = vpop.f32.mrb[80].mxu0  ;;  %v7415_v50 = vpop.f32.mrb[80].mxu1  ;;  %v1033_v37 = vadd.f32 %v1032_v0, %v1031_v33  ;;  %15398 = vst [vmem:[#allocation40_spill] sm:$0xff] %v7425_v24  ;;  %v1038_v6 = vsel %vm962_vm2, %v7425_v24, 0.0 }
 0x17a   :  { %v5735_v58 = vpop.f32.mrb[81].mxu0  ;;  %v5863_v54 = vpop.f32.mrb[81].mxu1  ;;  %v7437_v39 = vadd.f32 %v7123_v7, %v620_v48 }
 0x17b   :  { %v623_v43 = vpop.f32.mrb[82].mxu0  ;;  %v7422_v2 = vpop.f32.mrb[82].mxu1  ;;  %v1035_v61 = vadd.f32 %v1034_v28, %v1033_v37 }
 0x17c   :  { %v5736_v25 = vpop.f32.mrb[83].mxu0  ;;  %v5864_v19 = vpop.f32.mrb[83].mxu1  ;;  %15401 = vst [vmem:[#allocation43_spill] sm:$0xff] %v7437_v39  ;;  %v1042_v40 = vsel %vm962_vm2, %v7437_v39, 0.0 }
 0x181   :  { %v628_v58 = vpop.f32.mrb[84].mxu0  ;;  %v7434_v33 = vpop.f32.mrb[84].mxu1 }
 0x182   :  { %v5739_v25 = vpop.f32.mrb[85].mxu0  ;;  %15400 = vst [vmem:[#allocation42_spill] sm:$0xff] %v7434_v33  ;;  %v5867_v28 = vpop.f32.mrb[85].mxu1  ;;  %v7449_v48 = vadd.f32 %v7123_v7, %v628_v58 }
 0x183   :  { %v631_v23 = vpop.f32.mrb[86].mxu0  ;;  %v1036_v25 = vsel %vm962_vm2, %v7420_v10, 0.0  ;;  %v7439_v11 = vpop.f32.mrb[86].mxu1  ;;  %v1040_v10 = vsel %vm962_vm2, %v7432_v15, 0.0 }
 0x184   :  { %v5740_v20 = vpop.f32.mrb[87].mxu0  ;;  %v1037_v54 = vadd.f32 %v1036_v25, %v1035_v61  ;;  %15402 = vst [vmem:[#allocation44_spill] sm:$0xff] %v7439_v11  ;;  %v5868_v24 = vpop.f32.mrb[87].mxu1  ;;  %v7446_v61 = vadd.f32 %v7123_v7, %v623_v43  ;;  %15404 = vst [vmem:[#allocation46_spill] sm:$0xff] %v7449_v48  ;;  %v1046_v43 = vsel %vm962_vm2, %v7449_v48, 0.0 }
 0x186   :  { %v1039_v37 = vadd.f32 %v1038_v6, %v1037_v54  ;;  %15403 = vst [vmem:[#allocation45_spill] sm:$0xff] %v7446_v61  ;;  %v1044_v15 = vsel %vm962_vm2, %v7446_v61, 0.0 }
 0x188   :  { %v1041_v25 = vadd.f32 %v1040_v10, %v1039_v37  ;;  %v7460_v10 = vadd.f32 %v7123_v7, %v631_v23 }
 0x189   :  { %v636_v9 = vpop.f32.mrb[88].mxu0  ;;  %v7451_v54 = vpop.f32.mrb[88].mxu1 }
 0x18a   :  { %v5743_v20 = vpop.f32.mrb[89].mxu0  ;;  %v1043_v28 = vadd.f32 %v1042_v40, %v1041_v25  ;;  %v5871_v11 = vpop.f32.mrb[89].mxu1  ;;  %15405 = vst [vmem:[#allocation47_spill] sm:$0xff] %v7460_v10  ;;  %v7463_v40 = vadd.f32 %v7123_v7, %v636_v9  ;;  %v1048_v61 = vsel %vm962_vm2, %v7460_v10, 0.0 }
 0x18b   :  { %v639_v0 = vpop.f32.mrb[90].mxu0  ;;  %v7455_v33 = vpop.f32.mrb[90].mxu1 }
 0x18c   :  { %v5744_v19 = vpop.f32.mrb[91].mxu0  ;;  %v5872_v58 = vpop.f32.mrb[91].mxu1  ;;  %v1045_v37 = vadd.f32 %v1044_v15, %v1043_v28  ;;  %15406 = vst [vmem:[#allocation48_spill] sm:$0xff] %v7463_v40  ;;  %v1050_v48 = vsel %vm962_vm2, %v7463_v40, 0.0  ;;  %v7472_v23 = vadd.f32 %v7123_v7, %v639_v0 }
 0x18e   :  { %v1047_v25 = vadd.f32 %v1046_v43, %v1045_v37  ;;  %15408 = vst [vmem:[#allocation50_spill] sm:$0xff] %v7472_v23 }
 0x190   :  { %v1049_v28 = vadd.f32 %v1048_v61, %v1047_v25 }
 0x191   :  { %v644_v20 = vpop.f32.mrb[92].mxu0  ;;  %v7467_v39 = vpop.f32.mrb[92].mxu1 }
 0x192   :  { %v5747_v19 = vpop.f32.mrb[93].mxu0  ;;  %15407 = vst [vmem:[#allocation49_spill] sm:$0xff] %v7467_v39  ;;  %v5875_v15 = vpop.f32.mrb[93].mxu1  ;;  %v7477_v43 = vadd.f32 %v7123_v7, %v644_v20  ;;  %v1051_v10 = vadd.f32 %v1050_v48, %v1049_v28 }
 0x193   :  { %v647_v6 = vpop.f32.mrb[94].mxu0  ;;  %v7474_v9 = vpop.f32.mrb[94].mxu1 }
 0x194   :  { %v5748_v24 = vpop.f32.mrb[95].mxu0  ;;  %15409 = vst [vmem:[#allocation51_spill] sm:$0xff] %v7474_v9  ;;  %15410 = vst [vmem:[#allocation52_spill] sm:$0xff] %v7477_v43  ;;  %v5876_v37 = vpop.f32.mrb[95].mxu1  ;;  %v1054_v40 = vsel %vm962_vm2, %v7477_v43, 0.0  ;;  %v7484_v0 = vadd.f32 %v7123_v7, %v647_v6 }
 0x196   :  { %15411 = vst [vmem:[#allocation53_spill] sm:$0xff] %v7484_v0 }
 0x199   :  { %v652_v19 = vpop.f32.mrb[96].mxu0  ;;  %v7486_v25 = vpop.f32.mrb[96].mxu1 }
 0x19a   :  { %v5751_v24 = vpop.f32.mrb[97].mxu0  ;;  %15412 = vst [vmem:[#allocation54_spill] sm:$0xff] %v7486_v25  ;;  %v7489_v20 = vadd.f32 %v7123_v7, %v652_v19  ;;  %v5879_v48 = vpop.f32.mrb[97].mxu1 }
 0x19b   :  { %v655_v11 = vpop.f32.mrb[98].mxu0  ;;  %v1052_v24 = vsel %vm962_vm2, %v7472_v23, 0.0  ;;  %v7491_v9 = vpop.f32.mrb[98].mxu1  ;;  %v1056_v23 = vsel %vm962_vm2, %v7484_v0, 0.0 }
 0x19c   :  { %v5752_v58 = vpop.f32.mrb[99].mxu0  ;;  %v1053_v15 = vadd.f32 %v1052_v24, %v1051_v10  ;;  %15413 = vst [vmem:[#allocation55_spill] sm:$0xff] %v7489_v20  ;;  %15414 = vst [vmem:[#allocation56_spill] sm:$0xff] %v7491_v9  ;;  %v5880_v43 = vpop.f32.mrb[99].mxu1  ;;  %v1058_v6 = vsel %vm962_vm2, %v7489_v20, 0.0  ;;  %v7498_v10 = vadd.f32 %v7123_v7, %v655_v11 }
 0x19e   :  { %v1055_v28 = vadd.f32 %v1054_v40, %v1053_v15  ;;  %15415 = vst [vmem:[#allocation57_spill] sm:$0xff] %v7498_v10  ;;  %v1060_v0 = vsel %vm962_vm2, %v7498_v10, 0.0 }
 0x1a0   :  { %v1057_v24 = vadd.f32 %v1056_v23, %v1055_v28 }
 0x1a1   :  { %v660_v39 = vpop.f32.mrb[100].mxu0  ;;  %v7503_v15 = vpop.f32.mrb[100].mxu1 }
 0x1a2   :  { %v5755_v58 = vpop.f32.mrb[101].mxu0  ;;  %v7501_v19 = vadd.f32 %v7123_v7, %v660_v39  ;;  %v1059_v48 = vadd.f32 %v1058_v6, %v1057_v24  ;;  %v5883_v9 = vpop.f32.mrb[101].mxu1 }
 0x1a3   :  { %v663_v61 = vpop.f32.mrb[102].mxu0  ;;  %v7507_v25 = vpop.f32.mrb[102].mxu1 }
 0x1a4   :  { %v5756_v37 = vpop.f32.mrb[103].mxu0  ;;  %15416 = vst [vmem:[#allocation58_spill] sm:$0xff] %v7501_v19  ;;  %15417 = vst [vmem:[#allocation59_spill] sm:$0xff] %v7507_v25  ;;  %v1062_v11 = vsel %vm962_vm2, %v7501_v19, 0.0  ;;  %v7512_v23 = vadd.f32 %v7123_v7, %v663_v61  ;;  %v5884_v39 = vpop.f32.mrb[103].mxu1  ;;  %v1061_v28 = vadd.f32 %v1060_v0, %v1059_v48 }
 0x1a6   :  { %15418 = vst [vmem:[#allocation60_spill] sm:$0xff] %v7512_v23  ;;  %v1063_v24 = vadd.f32 %v1062_v11, %v1061_v28  ;;  %v1064_v10 = vsel %vm962_vm2, %v7512_v23, 0.0 }
 0x1a8   :  { %v1065_v48 = vadd.f32 %v1064_v10, %v1063_v24 }
 0x1a9   :  { %v668_v58 = vpop.f32.mrb[104].mxu0  ;;  %v7519_v20 = vpop.f32.mrb[104].mxu1 }
 0x1aa   :  { %v5759_v37 = vpop.f32.mrb[105].mxu0  ;;  %v7515_v6 = vadd.f32 %v7123_v7, %v668_v58  ;;  %15420 = vst [vmem:[#allocation62_spill] sm:$0xff] %v7519_v20  ;;  %v5887_v0 = vpop.f32.mrb[105].mxu1 }
 0x1ab   :  { %v671_v40 = vpop.f32.mrb[106].mxu0  ;;  %v7526_v58 = vpop.f32.mrb[106].mxu1 }
 0x1ac   :  { %v5760_v43 = vpop.f32.mrb[107].mxu0  ;;  %15419 = vst [vmem:[#allocation61_spill] sm:$0xff] %v7515_v6  ;;  %v1066_v19 = vsel %vm962_vm2, %v7515_v6, 0.0  ;;  %v7524_v61 = vadd.f32 %v7123_v7, %v671_v40  ;;  %15422 = vst [vmem:[#allocation64_spill] sm:$0xff] %v7526_v58  ;;  %v5888_v28 = vpop.f32.mrb[107].mxu1 }
 0x1ad   :  { %v1067_v23 = vadd.f32 %v1066_v19, %v1065_v48 }
 0x1ae   :  { %15421 = vst [vmem:[#allocation63_spill] sm:$0xff] %v7524_v61 }
 0x1b1   :  { %v676_v37 = vpop.f32.mrb[108].mxu0  ;;  %v7538_v24 = vpop.f32.mrb[108].mxu1 }
 0x1b2   :  { %v5763_v43 = vpop.f32.mrb[109].mxu0  ;;  %v7529_v11 = vadd.f32 %v7123_v7, %v676_v37  ;;  %15425 = vst [vmem:[#allocation67_spill] sm:$0xff] %v7538_v24  ;;  %v5891_v19 = vpop.f32.mrb[109].mxu1 }
 0x1b3   :  { %v679_v9 = vpop.f32.mrb[110].mxu0  ;;  %v1068_v43 = vsel %vm962_vm2, %v7524_v61, 0.0  ;;  %v7543_v58 = vpop.f32.mrb[110].mxu1 }
 0x1b4   :  { %v5764_v39 = vpop.f32.mrb[111].mxu0  ;;  %15423 = vst [vmem:[#allocation65_spill] sm:$0xff] %v7529_v11  ;;  %v1070_v6 = vsel %vm962_vm2, %v7529_v11, 0.0  ;;  %v7536_v40 = vadd.f32 %v7123_v7, %v679_v9  ;;  %v1069_v0 = vadd.f32 %v1068_v43, %v1067_v23  ;;  %15427 = vst [vmem:[#allocation69_spill] sm:$0xff] %v7543_v58  ;;  %v5892_v11 = vpop.f32.mrb[111].mxu1 }
 0x1b6   :  { %15424 = vst [vmem:[#allocation66_spill] sm:$0xff] %v7536_v40  ;;  %v1071_v48 = vadd.f32 %v1070_v6, %v1069_v0  ;;  %v1072_v61 = vsel %vm962_vm2, %v7536_v40, 0.0 }
 0x1b8   :  { %v1073_v43 = vadd.f32 %v1072_v61, %v1071_v48 }
 0x1b9   :  { %v684_v20 = vpop.f32.mrb[112].mxu0  ;;  %v7555_v0 = vpop.f32.mrb[112].mxu1 }
 0x1ba   :  { %v5767_v39 = vpop.f32.mrb[113].mxu0  ;;  %v7541_v37 = vadd.f32 %v7123_v7, %v684_v20  ;;  %15430 = vst [vmem:[#allocation72_spill] sm:$0xff] %v7555_v0  ;;  %v5895_v58 = vpop.f32.mrb[113].mxu1 }
 0x1bb   :  { %v687_v10 = vpop.f32.mrb[114].mxu0  ;;  %v7559_v24 = vpop.f32.mrb[114].mxu1 }
 0x1bc   :  { %15426 = vst [vmem:[#allocation68_spill] sm:$0xff] %v7541_v37  ;;  %v5768_v28 = vpop.f32.mrb[115].mxu0  ;;  %v1074_v9 = vsel %vm962_vm2, %v7541_v37, 0.0  ;;  %v7550_v23 = vadd.f32 %v7123_v7, %v687_v10  ;;  %15431 = vst [vmem:[#allocation73_spill] sm:$0xff] %v7559_v24  ;;  %v5896_v48 = vpop.f32.mrb[115].mxu1 }
 0x1bd   :  { %v1075_v19 = vadd.f32 %v1074_v9, %v1073_v43 }
 0x1be   :  { %15428 = vst [vmem:[#allocation70_spill] sm:$0xff] %v7550_v23  ;;  %v1076_v40 = vsel %vm962_vm2, %v7550_v23, 0.0 }
 0x1c1   :  { %v692_v39 = vpop.f32.mrb[116].mxu0  ;;  %v7571_v23 = vpop.f32.mrb[116].mxu1 }
 0x1c2   :  { %v7553_v20 = vadd.f32 %v7123_v7, %v692_v39  ;;  %v5771_v28 = vpop.f32.mrb[117].mxu0  ;;  %v1077_v39 = vadd.f32 %v1076_v40, %v1075_v19  ;;  %15434 = vst [vmem:[#allocation76_spill] sm:$0xff] %v7571_v23  ;;  %v5899_v40 = vpop.f32.mrb[117].mxu1 }
 0x1c3   :  { %v695_v6 = vpop.f32.mrb[118].mxu0 }
 0x1c4   :  { %15429 = vst [vmem:[#allocation71_spill] sm:$0xff] %v7553_v20  ;;  %v5772_v11 = vpop.f32.mrb[119].mxu0  ;;  %v1078_v10 = vsel %vm962_vm2, %v7553_v20, 0.0  ;;  %v7564_v61 = vadd.f32 %v7123_v7, %v695_v6 }
 0x1c5   :  { %v1079_v28 = vadd.f32 %v1078_v10, %v1077_v39  ;;  %v7578_v10 = vpop.f32.mrb[118].mxu1 }
 0x1c6   :  { %15432 = vst [vmem:[#allocation74_spill] sm:$0xff] %v7564_v61  ;;  %v1080_v43 = vsel %vm962_vm2, %v7564_v61, 0.0  ;;  %v5900_v39 = vpop.f32.mrb[119].mxu1 }
 0x1c7   :  { %v1081_v19 = vadd.f32 %v1080_v43, %v1079_v28 }
 0x1c9   :  { %v700_v9 = vpop.f32.mrb[120].mxu0  ;;  %v7585_v25 = vpop.f32.mrb[120].mxu1 }
 0x1ca   :  { %v7569_v37 = vadd.f32 %v7123_v7, %v700_v9  ;;  %v5775_v11 = vpop.f32.mrb[121].mxu0 }
 0x1cb   :  { %v703_v58 = vpop.f32.mrb[122].mxu0 }
 0x1cc   :  { %15433 = vst [vmem:[#allocation75_spill] sm:$0xff] %v7569_v37  ;;  %v1082_v20 = vsel %vm962_vm2, %v7569_v37, 0.0  ;;  %v7576_v6 = vadd.f32 %v7123_v7, %v703_v58  ;;  %v5776_v48 = vpop.f32.mrb[123].mxu0  ;;  %v7589_v58 = vadd.f32 %v7123_v7, %v7011_v53 }
 0x1cd   :  { %v1083_v61 = vadd.f32 %v1082_v20, %v1081_v19  ;;  %v5903_v48 = vpop.f32.mrb[121].mxu1 }
 0x1ce   :  { %v1084_v9 = vsel %vm962_vm2, %v7576_v6, 0.0  ;;  %v959_v19 = vpop.f32.mrb[122].mxu1  ;;  %v7618_v48 = vadd.f32 %v7123_v7, %v7063_v18 }
 0x1cf   :  { %v1085_v0 = vadd.f32 %v1084_v9, %v1083_v61  ;;  %v5904_v39 = vpop.f32.mrb[123].mxu1  ;;  %v1090_v9 = vsel %vm962_vm2, %v7589_v58, 0.0  ;;  %v7624_v19 = vadd.f32 %v7123_v7, %v7065_v22 }
 0x1d0   :  { %v7630_v39 = vadd.f32 %v7123_v7, %v7086_v31 }
 0x1d1   :  { %v708_v11 = vpop.f32.mrb[124].mxu0  ;;  %v1100_v18 = vsel %vm962_vm2, %v7624_v19, 0.0 }
 0x1d2   :  { %v7583_v24 = vadd.f32 %v7123_v7, %v708_v11  ;;  %v5779_v23 = vpop.f32.mrb[125].mxu0  ;;  %v1102_v22 = vsel %vm962_vm2, %v7630_v39, 0.0 }
 0x1d3   :  { %v711_v37 = vpop.f32.mrb[126].mxu0  ;;  %v7598_v23 = vadd.f32 %v7123_v7, %v7013_v57  ;;  %v7612_v57 = vadd.f32 %v7123_v7, %v7039_v8  ;;  %v1098_v8 = vsel %vm962_vm2, %v7618_v48, 0.0 }
 0x1d4   :  { %v1086_v28 = vsel %vm962_vm2, %v7583_v24, 0.0  ;;  %v7594_v20 = vadd.f32 %v7123_v7, %v711_v37  ;;  %v5780_v43 = vpop.f32.mrb[127].mxu0  ;;  %v7606_v37 = vadd.f32 %v7123_v7, %v7037_v4 }
 0x1d5   :  { %v1087_v40 = vadd.f32 %v1086_v28, %v1085_v0  ;;  %v1092_v0 = vsel %vm962_vm2, %v7598_v23, 0.0  ;;  %v1096_v4 = vsel %vm962_vm2, %v7612_v57, 0.0 }
 0x1d6   :  { %v1088_v61 = vsel %vm962_vm2, %v7594_v20, 0.0  ;;  %v1094_v43 = vsel %vm962_vm2, %v7606_v37, 0.0 }
 0x1d7   :  { %v1089_v53 = vadd.f32 %v1088_v61, %v1087_v40 }
 0x1d9   :  { %v1091_v11 = vadd.f32 %v1090_v9, %v1089_v53  ;;  %v7636_v9 = vadd.f32 %v7123_v7, %v7088_v35 }
 0x1db   :  { %v1093_v28 = vadd.f32 %v1092_v0, %v1091_v11  ;;  %v7642_v0 = vadd.f32 %v7123_v7, %v7100_v41  ;;  %v1104_v31 = vsel %vm962_vm2, %v7636_v9, 0.0 }
 0x1dd   :  { %v1095_v40 = vadd.f32 %v1094_v43, %v1093_v28  ;;  %v7648_v43 = vadd.f32 %v7123_v7, %v7102_v45  ;;  %v1106_v35 = vsel %vm962_vm2, %v7642_v0, 0.0 }
 0x1df   :  { %v1097_v61 = vadd.f32 %v1096_v4, %v1095_v40  ;;  %v7654_v4 = vadd.f32 %v7123_v7, %v7108_v51  ;;  %v1108_v41 = vsel %vm962_vm2, %v7648_v43, 0.0 }
 0x1e1   :  { %v1099_v53 = vadd.f32 %v1098_v8, %v1097_v61  ;;  %v7660_v8 = vadd.f32 %v7123_v7, %v7110_v56  ;;  %v1110_v45 = vsel %vm962_vm2, %v7654_v4, 0.0 }
 0x1e3   :  { %v1101_v11 = vadd.f32 %v1100_v18, %v1099_v53  ;;  %v7666_v18 = vadd.f32 %v7123_v7, %v7116_v63  ;;  %v1112_v51 = vsel %vm962_vm2, %v7660_v8, 0.0 }
 0x1e5   :  { %v1103_v28 = vadd.f32 %v1102_v22, %v1101_v11  ;;  %v7672_v22 = vadd.f32 %v7123_v7, %v7118_v5  ;;  %v1114_v56 = vsel %vm962_vm2, %v7666_v18, 0.0 }
 0x1e7   :  { %v1105_v40 = vadd.f32 %v1104_v31, %v1103_v28  ;;  %v7678_v31 = vadd.f32 %v7123_v7, %v7141_v16  ;;  %v1116_v63 = vsel %vm962_vm2, %v7672_v22, 0.0 }
 0x1e9   :  { %v1107_v61 = vadd.f32 %v1106_v35, %v1105_v40  ;;  %v7684_v35 = vadd.f32 %v7123_v7, %v7145_v21  ;;  %v1118_v5 = vsel %vm962_vm2, %v7678_v31, 0.0 }
 0x1eb   :  { %v1109_v53 = vadd.f32 %v1108_v41, %v1107_v61  ;;  %v7690_v41 = vadd.f32 %v7123_v7, %v7165_v36  ;;  %v1120_v16 = vsel %vm962_vm2, %v7684_v35, 0.0 }
 0x1ed   :  { %v1111_v11 = vadd.f32 %v1110_v45, %v1109_v53  ;;  %v7696_v45 = vadd.f32 %v7123_v7, %v7173_v46  ;;  %v1122_v21 = vsel %vm962_vm2, %v7690_v41, 0.0 }
 0x1ef   :  { %v1113_v28 = vadd.f32 %v1112_v51, %v1111_v11  ;;  %v7702_v51 = vadd.f32 %v7123_v7, %v7191_v12  ;;  %v1124_v36 = vsel %vm962_vm2, %v7696_v45, 0.0 }
 0x1f1   :  { %v1115_v40 = vadd.f32 %v1114_v56, %v1113_v28  ;;  %v7708_v56 = vadd.f32 %v7123_v7, %v7197_v47  ;;  %v1126_v46 = vsel %vm962_vm2, %v7702_v51, 0.0 }
 0x1f3   :  { %v1117_v61 = vadd.f32 %v1116_v63, %v1115_v40  ;;  %v7714_v63 = vadd.f32 %v7123_v7, %v7215_v44  ;;  %v1128_v12 = vsel %vm962_vm2, %v7708_v56, 0.0 }
 0x1f5   :  { %v1119_v53 = vadd.f32 %v1118_v5, %v1117_v61  ;;  %v7720_v5 = vadd.f32 %v7123_v7, %v7219_v30  ;;  %v1130_v47 = vsel %vm962_vm2, %v7714_v63, 0.0 }
 0x1f7   :  { %v1121_v11 = vadd.f32 %v1120_v16, %v1119_v53  ;;  %v7726_v16 = vadd.f32 %v7123_v7, %v7237_v32  ;;  %v1132_v44 = vsel %vm962_vm2, %v7720_v5, 0.0 }
 0x1f9   :  { %v1123_v28 = vadd.f32 %v1122_v21, %v1121_v11  ;;  %v7732_v21 = vadd.f32 %v7123_v7, %v7245_v55  ;;  %v1134_v30 = vsel %vm962_vm2, %v7726_v16, 0.0 }
 0x1fb   :  { %v1125_v40 = vadd.f32 %v1124_v36, %v1123_v28  ;;  %v7738_v36 = vadd.f32 %v7123_v7, %v7263_v59  ;;  %v1136_v32 = vsel %vm962_vm2, %v7732_v21, 0.0 }
 0x1fd   :  { %v1127_v61 = vadd.f32 %v1126_v46, %v1125_v40  ;;  %v7744_v46 = vadd.f32 %v7123_v7, %v7269_v52  ;;  %v1138_v55 = vsel %vm962_vm2, %v7738_v36, 0.0 }
 0x1ff   :  { %v1129_v53 = vadd.f32 %v1128_v12, %v1127_v61  ;;  %v7750_v12 = vadd.f32 %v7123_v7, %v7285_v3  ;;  %v1140_v59 = vsel %vm962_vm2, %v7744_v46, 0.0 }
 0x201   :  { %v1131_v11 = vadd.f32 %v1130_v47, %v1129_v53  ;;  %v7756_v47 = vadd.f32 %v7123_v7, %v7289_v38  ;;  %v1142_v52 = vsel %vm962_vm2, %v7750_v12, 0.0 }
 0x203   :  { %v1133_v28 = vadd.f32 %v1132_v44, %v1131_v11  ;;  %v7762_v44 = vadd.f32 %v7123_v7, %v7303_v26  ;;  %v1144_v3 = vsel %vm962_vm2, %v7756_v47, 0.0 }
 0x205   :  { %v1135_v40 = vadd.f32 %v1134_v30, %v1133_v28  ;;  %v7768_v30 = vadd.f32 %v7123_v7, %v7311_v29  ;;  %v1146_v38 = vsel %vm962_vm2, %v7762_v44, 0.0 }
 0x207   :  { %v1137_v61 = vadd.f32 %v1136_v32, %v1135_v40  ;;  %v7774_v32 = vadd.f32 %v7123_v7, %v7325_v62  ;;  %v1148_v26 = vsel %vm962_vm2, %v7768_v30, 0.0 }
 0x209   :  { %v1139_v53 = vadd.f32 %v1138_v55, %v1137_v61  ;;  %v7780_v55 = vadd.f32 %v7123_v7, %v7331_v34  ;;  %v1150_v29 = vsel %vm962_vm2, %v7774_v32, 0.0 }
 0x20b   :  { %v1141_v11 = vadd.f32 %v1140_v59, %v1139_v53  ;;  %v7786_v59 = vadd.f32 %v7123_v7, %v7345_v60  ;;  %v1152_v62 = vsel %vm962_vm2, %v7780_v55, 0.0 }
 0x20d   :  { %v1143_v28 = vadd.f32 %v1142_v52, %v1141_v11  ;;  %v7792_v52 = vadd.f32 %v7123_v7, %v7349_v1  ;;  %v1154_v34 = vsel %vm962_vm2, %v7786_v59, 0.0 }
 0x20f   :  { %v1145_v40 = vadd.f32 %v1144_v3, %v1143_v28  ;;  %v7798_v3 = vadd.f32 %v7123_v7, %v7362_v49  ;;  %v1156_v60 = vsel %vm962_vm2, %v7792_v52, 0.0 }
 0x211   :  { %v1147_v61 = vadd.f32 %v1146_v38, %v1145_v40  ;;  %v7804_v38 = vadd.f32 %v7123_v7, %v7370_v17  ;;  %v1158_v1 = vsel %vm962_vm2, %v7798_v3, 0.0 }
 0x213   :  { %v1149_v53 = vadd.f32 %v1148_v26, %v1147_v61  ;;  %v7810_v26 = vadd.f32 %v7123_v7, %v7382_v14  ;;  %v1160_v49 = vsel %vm962_vm2, %v7804_v38, 0.0 }
 0x215   :  { %v1151_v11 = vadd.f32 %v1150_v29, %v1149_v53  ;;  %v7816_v29 = vadd.f32 %v7123_v7, %v7387_v27  ;;  %v1162_v17 = vsel %vm962_vm2, %v7810_v26, 0.0 }
 0x217   :  { %v1153_v28 = vadd.f32 %v1152_v62, %v1151_v11  ;;  %v7822_v62 = vadd.f32 %v7123_v7, %v7399_v42  ;;  %v1164_v14 = vsel %vm962_vm2, %v7816_v29, 0.0 }
 0x219   :  { %v1155_v40 = vadd.f32 %v1154_v34, %v1153_v28  ;;  %v7828_v34 = vadd.f32 %v7123_v7, %v7403_v13  ;;  %v1166_v27 = vsel %vm962_vm2, %v7822_v62, 0.0 }
 0x21b   :  { %v1157_v61 = vadd.f32 %v1156_v60, %v1155_v40  ;;  %v7834_v60 = vadd.f32 %v7123_v7, %v7415_v50  ;;  %v1168_v42 = vsel %vm962_vm2, %v7828_v34, 0.0 }
 0x21d   :  { %v1159_v53 = vadd.f32 %v1158_v1, %v1157_v61  ;;  %15435 = vst [vmem:[#allocation77_spill] sm:$0xff] %v7834_v60  ;;  %v7840_v1 = vadd.f32 %v7123_v7, %v7422_v2  ;;  %v1170_v13 = vsel %vm962_vm2, %v7834_v60, 0.0  ;;  %v6430_v2 = vld [vmem:[%s14964_s2] ss:$0 sm:$0xff] }
 0x21f   :  { %v1161_v11 = vadd.f32 %v1160_v49, %v1159_v53  ;;  %15436 = vst [vmem:[#allocation78_spill] sm:$0xff] %v7840_v1 }
 0x221   :  { %v1163_v28 = vadd.f32 %v1162_v17, %v1161_v11  ;;  %v1172_v11 = vsel %vm962_vm2, %v7840_v1, 0.0  ;;  %v15437_v17 = vld [vmem:[#allocation42_spill] sm:$0xff] }
 0x222   :  { %v7848_v50 = vadd.f32 %v7123_v7, %v15437_v17 }
 0x223   :  { %v1165_v40 = vadd.f32 %v1164_v14, %v1163_v28 }
 0x224   :  { %15438 = vst [vmem:[#allocation42_spill] sm:$0xff] %v7848_v50  ;;  %v1174_v14 = vsel %vm962_vm2, %v7848_v50, 0.0 }
 0x225   :  { %v1167_v61 = vadd.f32 %v1166_v27, %v1165_v40  ;;  %v15439_v40 = vld [vmem:[#allocation44_spill] sm:$0xff] }
 0x226   :  { %v7856_v27 = vadd.f32 %v6430_v2, %v15439_v40  ;;  %v15443_v40 = vld [vmem:[#allocation49_spill] sm:$0xff] }
 0x227   :  { %v1169_v53 = vadd.f32 %v1168_v42, %v1167_v61  ;;  %v7871_v50 = vadd.f32 %v6430_v2, %v15443_v40  ;;  %v15449_v40 = vld [vmem:[#allocation56_spill] sm:$0xff] }
 0x228   :  { %15440 = vst [vmem:[#allocation44_spill] sm:$0xff] %v7856_v27  ;;  %v1176_v42 = vsel %vm962_vm2, %v7856_v27, 0.0 }
 0x229   :  { %v1171_v49 = vadd.f32 %v1170_v13, %v1169_v53  ;;  %v7861_v53 = vadd.f32 %v6430_v2, %v7451_v54  ;;  %15444 = vst [vmem:[#allocation49_spill] sm:$0xff] %v7871_v50  ;;  %v15445_v54 = vld [vmem:[#allocation51_spill] sm:$0xff] }
 0x22a   :  { %v7876_v27 = vadd.f32 %v6430_v2, %v15445_v54  ;;  %v7891_v54 = vadd.f32 %v6430_v2, %v7503_v15  ;;  %v15456_v15 = vld [vmem:[#allocation64_spill] sm:$0xff] }
 0x22b   :  { %v1173_v28 = vadd.f32 %v1172_v11, %v1171_v49  ;;  %15441 = vst [vmem:[#allocation79_spill] sm:$0xff] %v7861_v53  ;;  %v1178_v13 = vsel %vm962_vm2, %v7861_v53, 0.0  ;;  %v7866_v49 = vadd.f32 %v6430_v2, %v7455_v33  ;;  %v15447_v33 = vld [vmem:[#allocation54_spill] sm:$0xff] }
 0x22c   :  { %15446 = vst [vmem:[#allocation51_spill] sm:$0xff] %v7876_v27  ;;  %v7881_v53 = vadd.f32 %v6430_v2, %v15447_v33  ;;  %15451 = vst [vmem:[#allocation81_spill] sm:$0xff] %v7891_v54  ;;  %v15452_v33 = vld [vmem:[#allocation59_spill] sm:$0xff] }
 0x22d   :  { %v1175_v61 = vadd.f32 %v1174_v14, %v1173_v28  ;;  %15442 = vst [vmem:[#allocation80_spill] sm:$0xff] %v7866_v49  ;;  %v1180_v17 = vsel %vm962_vm2, %v7866_v49, 0.0  ;;  %v1182_v14 = vsel %vm962_vm2, %v7871_v50, 0.0  ;;  %v7886_v49 = vadd.f32 %v6430_v2, %v15449_v40  ;;  %v15454_v40 = vld [vmem:[#allocation62_spill] sm:$0xff] }
 0x22e   :  { %15448 = vst [vmem:[#allocation54_spill] sm:$0xff] %v7881_v53 }
 0x22f   :  { %v1177_v7 = vadd.f32 %v1176_v42, %v1175_v61  ;;  %v1184_v42 = vsel %vm962_vm2, %v7876_v27, 0.0  ;;  %15450 = vst [vmem:[#allocation56_spill] sm:$0xff] %v7886_v49  ;;  %v7896_v27 = vadd.f32 %v6430_v2, %v15452_v33  ;;  %v15458_v33 = vld [vmem:[#allocation67_spill] sm:$0xff] }
 0x231   :  { %v1179_v11 = vadd.f32 %v1178_v13, %v1177_v7  ;;  %v1186_v13 = vsel %vm962_vm2, %v7881_v53, 0.0  ;;  %15453 = vst [vmem:[#allocation59_spill] sm:$0xff] %v7896_v27  ;;  %v7901_v53 = vadd.f32 %v6430_v2, %v15454_v40  ;;  %v15460_v40 = vld [vmem:[#allocation69_spill] sm:$0xff] }
 0x233   :  { %v1181_v28 = vadd.f32 %v1180_v17, %v1179_v11  ;;  %v1188_v17 = vsel %vm962_vm2, %v7886_v49, 0.0  ;;  %15455 = vst [vmem:[#allocation62_spill] sm:$0xff] %v7901_v53  ;;  %v7906_v49 = vadd.f32 %v6430_v2, %v15456_v15  ;;  %v15462_v15 = vld [vmem:[#allocation72_spill] sm:$0xff] }
 0x235   :  { %v1183_v61 = vadd.f32 %v1182_v14, %v1181_v28  ;;  %v1190_v14 = vsel %vm962_vm2, %v7891_v54, 0.0  ;;  %15457 = vst [vmem:[#allocation64_spill] sm:$0xff] %v7906_v49  ;;  %v7911_v54 = vadd.f32 %v6430_v2, %v15458_v33  ;;  %v15464_v33 = vld [vmem:[#allocation73_spill] sm:$0xff] }
 0x237   :  { %v1185_v7 = vadd.f32 %v1184_v42, %v1183_v61  ;;  %v1192_v42 = vsel %vm962_vm2, %v7896_v27, 0.0  ;;  %15459 = vst [vmem:[#allocation67_spill] sm:$0xff] %v7911_v54  ;;  %v7916_v27 = vadd.f32 %v6430_v2, %v15460_v40  ;;  %v15466_v40 = vld [vmem:[#allocation76_spill] sm:$0xff] }
 0x239   :  { %v1187_v11 = vadd.f32 %v1186_v13, %v1185_v7  ;;  %v1194_v13 = vsel %vm962_vm2, %v7901_v53, 0.0  ;;  %15461 = vst [vmem:[#allocation69_spill] sm:$0xff] %v7916_v27  ;;  %v7921_v53 = vadd.f32 %v6430_v2, %v15462_v15  ;;  %v7936_v15 = vadd.f32 %v6430_v2, %v7578_v10 }
 0x23b   :  { %v1189_v28 = vadd.f32 %v1188_v17, %v1187_v11  ;;  %v1196_v17 = vsel %vm962_vm2, %v7906_v49, 0.0  ;;  %15463 = vst [vmem:[#allocation72_spill] sm:$0xff] %v7921_v53  ;;  %v7926_v49 = vadd.f32 %v6430_v2, %v15464_v33  ;;  %15468 = vst [vmem:[#allocation82_spill] sm:$0xff] %v7936_v15 }
 0x23d   :  { %v1191_v61 = vadd.f32 %v1190_v14, %v1189_v28  ;;  %v1198_v14 = vsel %vm962_vm2, %v7911_v54, 0.0  ;;  %15465 = vst [vmem:[#allocation73_spill] sm:$0xff] %v7926_v49  ;;  %v7931_v54 = vadd.f32 %v6430_v2, %v15466_v40 }
 0x23f   :  { %v1193_v7 = vadd.f32 %v1192_v42, %v1191_v61  ;;  %v1200_v42 = vsel %vm962_vm2, %v7916_v27, 0.0  ;;  %15467 = vst [vmem:[#allocation76_spill] sm:$0xff] %v7931_v54 }
 0x241   :  { %v1195_v11 = vadd.f32 %v1194_v13, %v1193_v7  ;;  %v1202_v13 = vsel %vm962_vm2, %v7921_v53, 0.0 }
 0x243   :  { %v1197_v28 = vadd.f32 %v1196_v17, %v1195_v11  ;;  %v1204_v17 = vsel %vm962_vm2, %v7926_v49, 0.0 }
 0x245   :  { %v1199_v61 = vadd.f32 %v1198_v14, %v1197_v28  ;;  %v1206_v14 = vsel %vm962_vm2, %v7931_v54, 0.0 }
 0x247   :  { %v1201_v7 = vadd.f32 %v1200_v42, %v1199_v61  ;;  %v7939_v42 = vadd.f32 %v6430_v2, %v7585_v25  ;;  %v15471_v2 = vld [vmem:[#allocation2_spill] sm:$0xff] }
 0x249   :  { %v1203_v11 = vadd.f32 %v1202_v13, %v1201_v7  ;;  %v1208_v7 = vsel %vm962_vm2, %v7936_v15, 0.0  ;;  %v1210_v33 = vsel %vm962_vm2, %v7939_v42, 0.0 }
 0x24b   :  { %v1205_v28 = vadd.f32 %v1204_v17, %v1203_v11 }
 0x24d   :  { %v1207_v61 = vadd.f32 %v1206_v14, %v1205_v28  ;;  %v15469_v28 = vld [vmem:[#allocation3_spill] sm:$0xff] }
 0x24f   :  { %v1209_v13 = vadd.f32 %v1208_v7, %v1207_v61  ;;  %v15473_v61 = vld [vmem:[#allocation4_spill] sm:$0xff] }
 0x251   :  { %v1211_v40 = vadd.f32 %v1210_v33, %v1209_v13 }
 0x253   :  { %v1212_v49 = vrot.slane %v1211_v40, 4 }
 0x255   :  { %v1213_v11 = vadd.f32 %v1212_v49, %v1211_v40  ;;  %v15475_v49 = vld [vmem:[#allocation5_spill] sm:$0xff] }
 0x257   :  { %v1214_v17 = vrot.slane %v1213_v11, 2 }
 0x259   :  { %v1215_v53 = vadd.f32 %v1214_v17, %v1213_v11  ;;  %v15479_v11 = vld [vmem:[#allocation7_spill] sm:$0xff] }
 0x25b   :  { %v1216_v54 = vrot.slane %v1215_v53, 1 }
 0x25d   :  { %v1217_v27 = vadd.f32 %v1216_v54, %v1215_v53  ;;  %v15477_v54 = vld [vmem:[#allocation6_spill] sm:$0xff] }
 0x25f   :  { %v7945_v10 = vmul.f32 0.001, %v1217_v27 }
 0x261   :  { %v7949_v25 = vsub.f32 %v15469_v28, %v7945_v10  ;;  %v7953_v14 = vsub.f32 %v15471_v2, %v7945_v10  ;;  %v7957_v7 = vsub.f32 %v15473_v61, %v7945_v10  ;;  %v7961_v13 = vsub.f32 %v15475_v49, %v7945_v10 }
 0x262   :  { %v7969_v33 = vsub.f32 %v15477_v54, %v7945_v10  ;;  %v7975_v17 = vsub.f32 %v15479_v11, %v7945_v10  ;;  %v15483_v11 = vld [vmem:[#allocation9_spill] sm:$0xff] }
 0x263   :  { %15470 = vst [vmem:[#allocation3_spill] sm:$0xff] %v7949_v25  ;;  %15472 = vst [vmem:[#allocation2_spill] sm:$0xff] %v7953_v14  ;;  %v1344_v27 = vmul.f32 %v7949_v25, %v7949_v25  ;;  %v1345_v53 = vmul.f32 %v7953_v14, %v7953_v14  ;;  %v1346_v40 = vmul.f32 %v7957_v7, %v7957_v7  ;;  %v15481_v14 = vld [vmem:[#allocation8_spill] sm:$0xff] }
 0x264   :  { %15474 = vst [vmem:[#allocation4_spill] sm:$0xff] %v7957_v7  ;;  %15476 = vst [vmem:[#allocation5_spill] sm:$0xff] %v7961_v13  ;;  %v1347_v28 = vmul.f32 %v7961_v13, %v7961_v13  ;;  %v7983_v25 = vsub.f32 %v15481_v14, %v7945_v10  ;;  %v1348_v54 = vmul.f32 %v7969_v33, %v7969_v33 }
 0x265   :  { %15478 = vst [vmem:[#allocation6_spill] sm:$0xff] %v7969_v33  ;;  %15480 = vst [vmem:[#allocation7_spill] sm:$0xff] %v7975_v17  ;;  %v1469_v2 = vsel %vm962_vm2, %v1344_v27, 0.0  ;;  %v1470_v61 = vsel %vm962_vm2, %v1345_v53, 0.0  ;;  %v1472_v7 = vsel %vm962_vm2, %v1346_v40, 0.0  ;;  %v7990_v50 = vsub.f32 %v15483_v11, %v7945_v10 }
 0x266   :  { %v1471_v49 = vadd.f32 %v1470_v61, %v1469_v2  ;;  %15482 = vst [vmem:[#allocation8_spill] sm:$0xff] %v7983_v25  ;;  %v1349_v27 = vmul.f32 %v7975_v17, %v7975_v17  ;;  %v1474_v53 = vsel %vm962_vm2, %v1347_v28, 0.0  ;;  %v15485_v61 = vld [vmem:[#allocation10_spill] sm:$0xff]  ;;  %v1350_v33 = vmul.f32 %v7983_v25, %v7983_v25 }
 0x267   :  { %15484 = vst [vmem:[#allocation9_spill] sm:$0xff] %v7990_v50  ;;  %v7997_v14 = vsub.f32 %v15485_v61, %v7945_v10  ;;  %v1476_v40 = vsel %vm962_vm2, %v1348_v54, 0.0  ;;  %v1351_v17 = vmul.f32 %v7990_v50, %v7990_v50 }
 0x268   :  { %v1473_v15 = vadd.f32 %v1472_v7, %v1471_v49  ;;  %v15487_v49 = vld [vmem:[#allocation11_spill] sm:$0xff]  ;;  %v1478_v28 = vsel %vm962_vm2, %v1349_v27, 0.0  ;;  %v1480_v54 = vsel %vm962_vm2, %v1350_v33, 0.0 }
 0x269   :  { %15486 = vst [vmem:[#allocation10_spill] sm:$0xff] %v7997_v14  ;;  %v8004_v11 = vsub.f32 %v15487_v49, %v7945_v10  ;;  %v1352_v25 = vmul.f32 %v7997_v14, %v7997_v14  ;;  %v1482_v27 = vsel %vm962_vm2, %v1351_v17, 0.0 }
 0x26a   :  { %v1475_v2 = vadd.f32 %v1474_v53, %v1473_v15  ;;  %v15489_v53 = vld [vmem:[#allocation12_spill] sm:$0xff] }
 0x26b   :  { %15488 = vst [vmem:[#allocation11_spill] sm:$0xff] %v8004_v11  ;;  %v8011_v61 = vsub.f32 %v15489_v53, %v7945_v10  ;;  %v1353_v50 = vmul.f32 %v8004_v11, %v8004_v11  ;;  %v1484_v33 = vsel %vm962_vm2, %v1352_v25, 0.0 }
 0x26c   :  { %v1477_v7 = vadd.f32 %v1476_v40, %v1475_v2  ;;  %v15491_v40 = vld [vmem:[#allocation13_spill] sm:$0xff] }
 0x26d   :  { %15490 = vst [vmem:[#allocation12_spill] sm:$0xff] %v8011_v61  ;;  %v8018_v49 = vsub.f32 %v15491_v40, %v7945_v10  ;;  %v1354_v14 = vmul.f32 %v8011_v61, %v8011_v61  ;;  %v1486_v17 = vsel %vm962_vm2, %v1353_v50, 0.0 }
 0x26e   :  { %v1479_v15 = vadd.f32 %v1478_v28, %v1477_v7  ;;  %v15493_v28 = vld [vmem:[#allocation14_spill] sm:$0xff] }
 0x26f   :  { %15492 = vst [vmem:[#allocation13_spill] sm:$0xff] %v8018_v49  ;;  %v8025_v53 = vsub.f32 %v15493_v28, %v7945_v10  ;;  %v1355_v11 = vmul.f32 %v8018_v49, %v8018_v49  ;;  %v1488_v25 = vsel %vm962_vm2, %v1354_v14, 0.0 }
 0x270   :  { %v1481_v2 = vadd.f32 %v1480_v54, %v1479_v15  ;;  %v15495_v54 = vld [vmem:[#allocation15_spill] sm:$0xff] }
 0x271   :  { %15494 = vst [vmem:[#allocation14_spill] sm:$0xff] %v8025_v53  ;;  %v8032_v40 = vsub.f32 %v15495_v54, %v7945_v10  ;;  %v1356_v61 = vmul.f32 %v8025_v53, %v8025_v53  ;;  %v15499_v54 = vld [vmem:[#allocation17_spill] sm:$0xff]  ;;  %v1490_v50 = vsel %vm962_vm2, %v1355_v11, 0.0 }
 0x272   :  { %v1483_v7 = vadd.f32 %v1482_v27, %v1481_v2  ;;  %v15497_v27 = vld [vmem:[#allocation16_spill] sm:$0xff]  ;;  %v8046_v13 = vsub.f32 %v15499_v54, %v7945_v10  ;;  %v15504_v54 = vld [vmem:[#allocation19_spill] sm:$0xff] }
 0x273   :  { %15496 = vst [vmem:[#allocation15_spill] sm:$0xff] %v8032_v40  ;;  %v8039_v28 = vsub.f32 %v15497_v27, %v7945_v10  ;;  %v1357_v49 = vmul.f32 %v8032_v40, %v8032_v40  ;;  %v1492_v14 = vsel %vm962_vm2, %v1356_v61, 0.0  ;;  %v8062_v1 = vsub.f32 %v15504_v54, %v7945_v10  ;;  %v8078_v54 = vld [vmem:[%s14965_s3] sm:$0x3] }
 0x274   :  { %v1485_v15 = vadd.f32 %v1484_v33, %v1483_v7  ;;  %v1726_v7 = vlaneseq  ;;  %15500 = vst [vmem:[#allocation17_spill] sm:$0xff] %v8046_v13  ;;  %v1359_v11 = vmul.f32 %v8046_v13, %v8046_v13 }
 0x275   :  { %15498 = vst [vmem:[#allocation16_spill] sm:$0xff] %v8039_v28  ;;  %v1358_v53 = vmul.f32 %v8039_v28, %v8039_v28  ;;  %15505 = vst [vmem:[#allocation19_spill] sm:$0xff] %v8062_v1 }
 0x276   :  { %v1487_v2 = vadd.f32 %v1486_v17, %v1485_v15  ;;  %v15501_v17 = vld [vmem:[#allocation18_spill] sm:$0xff] }
 0x277   :  { %v8053_v27 = vsub.f32 %v15501_v17, %v7945_v10  ;;  %v15506_v17 = vld [vmem:[#allocation20_spill] sm:$0xff] }
 0x278   :  { %v1489_v33 = vadd.f32 %v1488_v25, %v1487_v2  ;;  %v8058_v2 = vshrl.u32 %v1726_v7, 7  ;;  %v8069_v40 = vsub.f32 %v15506_v17, %v7945_v10  ;;  %v1496_v7 = vsel %vm962_vm2, %v1358_v53, 0.0  ;;  %v15510_v53 = vld [vmem:[#allocation22_spill] sm:$0xff] }
 0x279   :  { %15502 = vst [vmem:[#allocation18_spill] sm:$0xff] %v8053_v27  ;;  %v1360_v61 = vmul.f32 %v8053_v27, %v8053_v27  ;;  %v1498_v17 = vsel %vm962_vm2, %v1359_v11, 0.0  ;;  %v8089_v28 = vsub.f32 %v15510_v53, %v7945_v10  ;;  %v8105_v11 = vsub.f32 %v7939_v42, %v7945_v10  ;;  %v15515_v53 = vld [vmem:[#allocation24_spill] sm:$0xff] }
 0x27a   :  { %v1491_v15 = vadd.f32 %v1490_v50, %v1489_v33  ;;  %15503 = vst [vmem:[#allocation83_spill] sm:$0xff] %v8058_v2  ;;  %v1494_v33 = vsel %vm962_vm2, %v1357_v49, 0.0  ;;  %15507 = vst [vmem:[#allocation20_spill] sm:$0xff] %v8069_v40  ;;  %v15508_v49 = vld [vmem:[#allocation21_spill] sm:$0xff] }
 0x27b   :  { %15511 = vst [vmem:[#allocation22_spill] sm:$0xff] %v8089_v28 }
 0x27c   :  { %v1493_v25 = vadd.f32 %v1492_v14, %v1491_v15  ;;  %v15074_v15 = vsub.s32 0, %v8058_v2 }
 0x27e   :  { %v1495_v50 = vadd.f32 %v1494_v33, %v1493_v25  ;;  %v8082_v25 = vsub.f32 %v15508_v49, %v7945_v10  ;;  %v1361_v33 = vmul.f32 %v8062_v1, %v8062_v1  ;;  %v8097_v49 = vrot.slane %v8078_v54, %v15074_v15  ;;  %v15513_v1 = vld [vmem:[#allocation23_spill] sm:$0xff]  ;;  %v15517_v15 = vld [vmem:[#allocation25_spill] sm:$0xff] }
 0x27f   :  { %v8101_v60 = vsub.f32 %v15513_v1, %v7945_v10  ;;  %v8119_v42 = vsub.f32 %v15517_v15, %v7945_v10 }
 0x280   :  { %v1497_v14 = vadd.f32 %v1496_v7, %v1495_v50  ;;  %15509 = vst [vmem:[#allocation21_spill] sm:$0xff] %v8082_v25  ;;  %v1362_v50 = vmul.f32 %v8069_v40, %v8069_v40  ;;  %v1500_v7 = vsel %vm962_vm2, %v1360_v61, 0.0  ;;  %15512 = vst [vmem:[#allocation84_spill] sm:$0xff] %v8097_v49  ;;  %v8112_v40 = vsub.f32 %v15515_v53, %v7945_v10  ;;  %v15520_v53 = vld [vmem:[#allocation26_spill] sm:$0xff] }
 0x281   :  { %15514 = vst [vmem:[#allocation23_spill] sm:$0xff] %v8101_v60  ;;  %15518 = vst [vmem:[#allocation25_spill] sm:$0xff] %v8119_v42 }
 0x282   :  { %v1499_v13 = vadd.f32 %v1498_v17, %v1497_v14  ;;  %v1363_v14 = vmul.f32 %v8082_v25, %v8082_v25  ;;  %v1502_v17 = vsel %vm962_vm2, %v1361_v33, 0.0  ;;  %15516 = vst [vmem:[#allocation24_spill] sm:$0xff] %v8112_v40  ;;  %v1504_v1 = vsel %vm962_vm2, %v1362_v50, 0.0 }
 0x283   :  { %v1365_v25 = vmul.f32 %v8101_v60, %v8101_v60  ;;  %v1366_v50 = vmul.f32 %v8112_v40, %v8112_v40 }
 0x284   :  { %v1501_v27 = vadd.f32 %v1500_v7, %v1499_v13  ;;  %v1364_v13 = vmul.f32 %v8089_v28, %v8089_v28  ;;  %v1506_v33 = vsel %vm962_vm2, %v1363_v14, 0.0  ;;  %v8130_v28 = vsub.f32 %v15520_v53, %v7945_v10 }
 0x285   :  { %v1367_v14 = vmul.f32 %v8119_v42, %v8119_v42 }
 0x286   :  { %v1503_v61 = vadd.f32 %v1502_v17, %v1501_v27  ;;  %v8126_v27 = vmul.f32 %v8097_v49, %v8105_v11  ;;  %15521 = vst [vmem:[#allocation26_spill] sm:$0xff] %v8130_v28  ;;  %v1508_v15 = vsel %vm962_vm2, %v1364_v13, 0.0  ;;  %v1368_v40 = vmul.f32 %v8130_v28, %v8130_v28 }
 0x287   :  { %v1512_v13 = vsel %vm962_vm2, %v1366_v50, 0.0 }
 0x288   :  { %v1505_v7 = vadd.f32 %v1504_v1, %v1503_v61  ;;  %15519 = vst [vmem:[#allocation85_spill] sm:$0xff] %v8126_v27  ;;  %v15522_v1 = vld [vmem:[#allocation27_spill] sm:$0xff]  ;;  %v1510_v27 = vsel %vm962_vm2, %v1365_v25, 0.0  ;;  %v1514_v25 = vsel %vm962_vm2, %v1367_v14, 0.0  ;;  %v1516_v50 = vsel %vm962_vm2, %v1368_v40, 0.0 }
 0x289   :  { %v8137_v60 = vsub.f32 %v15522_v1, %v7945_v10 }
 0x28a   :  { %v1507_v17 = vadd.f32 %v1506_v33, %v1505_v7  ;;  %v15524_v33 = vld [vmem:[#allocation28_spill] sm:$0xff] }
 0x28b   :  { %15523 = vst [vmem:[#allocation27_spill] sm:$0xff] %v8137_v60  ;;  %v8144_v53 = vsub.f32 %v15524_v33, %v7945_v10  ;;  %v1369_v42 = vmul.f32 %v8137_v60, %v8137_v60 }
 0x28c   :  { %v1509_v61 = vadd.f32 %v1508_v15, %v1507_v17  ;;  %v15526_v15 = vld [vmem:[#allocation29_spill] sm:$0xff] }
 0x28d   :  { %15525 = vst [vmem:[#allocation28_spill] sm:$0xff] %v8144_v53  ;;  %v8151_v1 = vsub.f32 %v15526_v15, %v7945_v10  ;;  %v1370_v28 = vmul.f32 %v8144_v53, %v8144_v53  ;;  %v1518_v14 = vsel %vm962_vm2, %v1369_v42, 0.0 }
 0x28e   :  { %v1511_v7 = vadd.f32 %v1510_v27, %v1509_v61  ;;  %v15528_v61 = vld [vmem:[#allocation30_spill] sm:$0xff] }
 0x28f   :  { %15527 = vst [vmem:[#allocation29_spill] sm:$0xff] %v8151_v1  ;;  %v8158_v33 = vsub.f32 %v15528_v61, %v7945_v10  ;;  %v1371_v60 = vmul.f32 %v8151_v1, %v8151_v1  ;;  %v1520_v40 = vsel %vm962_vm2, %v1370_v28, 0.0 }
 0x290   :  { %v1513_v17 = vadd.f32 %v1512_v13, %v1511_v7  ;;  %v15530_v13 = vld [vmem:[#allocation31_spill] sm:$0xff] }
 0x291   :  { %15529 = vst [vmem:[#allocation30_spill] sm:$0xff] %v8158_v33  ;;  %v8165_v15 = vsub.f32 %v15530_v13, %v7945_v10  ;;  %v1372_v53 = vmul.f32 %v8158_v33, %v8158_v33  ;;  %v1522_v42 = vsel %vm962_vm2, %v1371_v60, 0.0 }
 0x292   :  { %v1515_v27 = vadd.f32 %v1514_v25, %v1513_v17  ;;  %v15532_v25 = vld [vmem:[#allocation32_spill] sm:$0xff] }
 0x293   :  { %15531 = vst [vmem:[#allocation31_spill] sm:$0xff] %v8165_v15  ;;  %v8172_v61 = vsub.f32 %v15532_v25, %v7945_v10  ;;  %v1373_v1 = vmul.f32 %v8165_v15, %v8165_v15  ;;  %v1524_v28 = vsel %vm962_vm2, %v1372_v53, 0.0 }
 0x294   :  { %v1517_v7 = vadd.f32 %v1516_v50, %v1515_v27  ;;  %v15534_v50 = vld [vmem:[#allocation33_spill] sm:$0xff] }
 0x295   :  { %15533 = vst [vmem:[#allocation32_spill] sm:$0xff] %v8172_v61  ;;  %v8179_v13 = vsub.f32 %v15534_v50, %v7945_v10  ;;  %v1374_v33 = vmul.f32 %v8172_v61, %v8172_v61  ;;  %v1526_v60 = vsel %vm962_vm2, %v1373_v1, 0.0 }
 0x296   :  { %v1519_v17 = vadd.f32 %v1518_v14, %v1517_v7  ;;  %v15536_v14 = vld [vmem:[#allocation34_spill] sm:$0xff] }
 0x297   :  { %15535 = vst [vmem:[#allocation33_spill] sm:$0xff] %v8179_v13  ;;  %v8186_v25 = vsub.f32 %v15536_v14, %v7945_v10  ;;  %v1375_v15 = vmul.f32 %v8179_v13, %v8179_v13  ;;  %v1528_v53 = vsel %vm962_vm2, %v1374_v33, 0.0 }
 0x298   :  { %v1521_v27 = vadd.f32 %v1520_v40, %v1519_v17  ;;  %v15538_v40 = vld [vmem:[#allocation35_spill] sm:$0xff] }
 0x299   :  { %15537 = vst [vmem:[#allocation34_spill] sm:$0xff] %v8186_v25  ;;  %v8193_v50 = vsub.f32 %v15538_v40, %v7945_v10  ;;  %v1376_v61 = vmul.f32 %v8186_v25, %v8186_v25  ;;  %v1530_v1 = vsel %vm962_vm2, %v1375_v15, 0.0 }
 0x29a   :  { %v1523_v7 = vadd.f32 %v1522_v42, %v1521_v27  ;;  %v15540_v42 = vld [vmem:[#allocation36_spill] sm:$0xff] }
 0x29b   :  { %15539 = vst [vmem:[#allocation35_spill] sm:$0xff] %v8193_v50  ;;  %v8200_v14 = vsub.f32 %v15540_v42, %v7945_v10  ;;  %v1377_v13 = vmul.f32 %v8193_v50, %v8193_v50  ;;  %v1532_v33 = vsel %vm962_vm2, %v1376_v61, 0.0 }
 0x29c   :  { %v1525_v17 = vadd.f32 %v1524_v28, %v1523_v7  ;;  %v15542_v28 = vld [vmem:[#allocation37_spill] sm:$0xff] }
 0x29d   :  { %15541 = vst [vmem:[#allocation36_spill] sm:$0xff] %v8200_v14  ;;  %v8207_v40 = vsub.f32 %v15542_v28, %v7945_v10  ;;  %v1378_v25 = vmul.f32 %v8200_v14, %v8200_v14  ;;  %v1534_v15 = vsel %vm962_vm2, %v1377_v13, 0.0 }
 0x29e   :  { %v1527_v27 = vadd.f32 %v1526_v60, %v1525_v17  ;;  %v15544_v60 = vld [vmem:[#allocation38_spill] sm:$0xff] }
 0x29f   :  { %15543 = vst [vmem:[#allocation37_spill] sm:$0xff] %v8207_v40  ;;  %v8214_v42 = vsub.f32 %v15544_v60, %v7945_v10  ;;  %v1379_v50 = vmul.f32 %v8207_v40, %v8207_v40  ;;  %v1536_v61 = vsel %vm962_vm2, %v1378_v25, 0.0 }
 0x2a0   :  { %v1529_v7 = vadd.f32 %v1528_v53, %v1527_v27  ;;  %v15546_v53 = vld [vmem:[#allocation39_spill] sm:$0xff] }
 0x2a1   :  { %15545 = vst [vmem:[#allocation38_spill] sm:$0xff] %v8214_v42  ;;  %v8221_v28 = vsub.f32 %v15546_v53, %v7945_v10  ;;  %v1380_v14 = vmul.f32 %v8214_v42, %v8214_v42  ;;  %v1538_v13 = vsel %vm962_vm2, %v1379_v50, 0.0 }
 0x2a2   :  { %v1531_v17 = vadd.f32 %v1530_v1, %v1529_v7  ;;  %v15548_v1 = vld [vmem:[#allocation40_spill] sm:$0xff] }
 0x2a3   :  { %15547 = vst [vmem:[#allocation39_spill] sm:$0xff] %v8221_v28  ;;  %v8228_v60 = vsub.f32 %v15548_v1, %v7945_v10  ;;  %v1381_v40 = vmul.f32 %v8221_v28, %v8221_v28  ;;  %v1540_v25 = vsel %vm962_vm2, %v1380_v14, 0.0 }
 0x2a4   :  { %v1533_v27 = vadd.f32 %v1532_v33, %v1531_v17  ;;  %v15550_v33 = vld [vmem:[#allocation41_spill] sm:$0xff] }
 0x2a5   :  { %15549 = vst [vmem:[#allocation40_spill] sm:$0xff] %v8228_v60  ;;  %v8235_v53 = vsub.f32 %v15550_v33, %v7945_v10  ;;  %v1382_v42 = vmul.f32 %v8228_v60, %v8228_v60  ;;  %v1542_v50 = vsel %vm962_vm2, %v1381_v40, 0.0 }
 0x2a6   :  { %v1535_v7 = vadd.f32 %v1534_v15, %v1533_v27  ;;  %v15552_v15 = vld [vmem:[#allocation43_spill] sm:$0xff] }
 0x2a7   :  { %15551 = vst [vmem:[#allocation41_spill] sm:$0xff] %v8235_v53  ;;  %v8242_v1 = vsub.f32 %v15552_v15, %v7945_v10  ;;  %v1383_v28 = vmul.f32 %v8235_v53, %v8235_v53  ;;  %v1544_v14 = vsel %vm962_vm2, %v1382_v42, 0.0 }
 0x2a8   :  { %v1537_v17 = vadd.f32 %v1536_v61, %v1535_v7  ;;  %v15554_v61 = vld [vmem:[#allocation45_spill] sm:$0xff] }
 0x2a9   :  { %15553 = vst [vmem:[#allocation43_spill] sm:$0xff] %v8242_v1  ;;  %v8249_v33 = vsub.f32 %v15554_v61, %v7945_v10  ;;  %v1384_v60 = vmul.f32 %v8242_v1, %v8242_v1  ;;  %v1546_v40 = vsel %vm962_vm2, %v1383_v28, 0.0 }
 0x2aa   :  { %v1539_v27 = vadd.f32 %v1538_v13, %v1537_v17  ;;  %v15556_v13 = vld [vmem:[#allocation46_spill] sm:$0xff] }
 0x2ab   :  { %15555 = vst [vmem:[#allocation45_spill] sm:$0xff] %v8249_v33  ;;  %v8256_v15 = vsub.f32 %v15556_v13, %v7945_v10  ;;  %v1385_v53 = vmul.f32 %v8249_v33, %v8249_v33  ;;  %v1548_v42 = vsel %vm962_vm2, %v1384_v60, 0.0 }
 0x2ac   :  { %v1541_v7 = vadd.f32 %v1540_v25, %v1539_v27  ;;  %v15558_v25 = vld [vmem:[#allocation47_spill] sm:$0xff] }
 0x2ad   :  { %15557 = vst [vmem:[#allocation46_spill] sm:$0xff] %v8256_v15  ;;  %v8263_v61 = vsub.f32 %v15558_v25, %v7945_v10  ;;  %v1386_v1 = vmul.f32 %v8256_v15, %v8256_v15  ;;  %v1550_v28 = vsel %vm962_vm2, %v1385_v53, 0.0 }
 0x2ae   :  { %v1543_v17 = vadd.f32 %v1542_v50, %v1541_v7  ;;  %v15560_v50 = vld [vmem:[#allocation48_spill] sm:$0xff] }
 0x2af   :  { %15559 = vst [vmem:[#allocation47_spill] sm:$0xff] %v8263_v61  ;;  %v8270_v13 = vsub.f32 %v15560_v50, %v7945_v10  ;;  %v1387_v33 = vmul.f32 %v8263_v61, %v8263_v61  ;;  %v1552_v60 = vsel %vm962_vm2, %v1386_v1, 0.0 }
 0x2b0   :  { %v1545_v27 = vadd.f32 %v1544_v14, %v1543_v17  ;;  %v15562_v14 = vld [vmem:[#allocation50_spill] sm:$0xff] }
 0x2b1   :  { %15561 = vst [vmem:[#allocation48_spill] sm:$0xff] %v8270_v13  ;;  %v8277_v25 = vsub.f32 %v15562_v14, %v7945_v10  ;;  %v1388_v15 = vmul.f32 %v8270_v13, %v8270_v13  ;;  %v1554_v53 = vsel %vm962_vm2, %v1387_v33, 0.0 }
 0x2b2   :  { %v1547_v7 = vadd.f32 %v1546_v40, %v1545_v27  ;;  %v15564_v40 = vld [vmem:[#allocation52_spill] sm:$0xff] }
 0x2b3   :  { %15563 = vst [vmem:[#allocation50_spill] sm:$0xff] %v8277_v25  ;;  %v8284_v50 = vsub.f32 %v15564_v40, %v7945_v10  ;;  %v1389_v61 = vmul.f32 %v8277_v25, %v8277_v25  ;;  %v1556_v1 = vsel %vm962_vm2, %v1388_v15, 0.0 }
 0x2b4   :  { %v1549_v17 = vadd.f32 %v1548_v42, %v1547_v7  ;;  %v15566_v42 = vld [vmem:[#allocation53_spill] sm:$0xff] }
 0x2b5   :  { %15565 = vst [vmem:[#allocation52_spill] sm:$0xff] %v8284_v50  ;;  %v8291_v14 = vsub.f32 %v15566_v42, %v7945_v10  ;;  %v1390_v13 = vmul.f32 %v8284_v50, %v8284_v50  ;;  %v1558_v33 = vsel %vm962_vm2, %v1389_v61, 0.0 }
 0x2b6   :  { %v1551_v27 = vadd.f32 %v1550_v28, %v1549_v17  ;;  %v15568_v28 = vld [vmem:[#allocation55_spill] sm:$0xff] }
 0x2b7   :  { %15567 = vst [vmem:[#allocation53_spill] sm:$0xff] %v8291_v14  ;;  %v8298_v40 = vsub.f32 %v15568_v28, %v7945_v10  ;;  %v1391_v25 = vmul.f32 %v8291_v14, %v8291_v14  ;;  %v1560_v15 = vsel %vm962_vm2, %v1390_v13, 0.0 }
 0x2b8   :  { %v1553_v7 = vadd.f32 %v1552_v60, %v1551_v27  ;;  %v15570_v60 = vld [vmem:[#allocation57_spill] sm:$0xff] }
 0x2b9   :  { %15569 = vst [vmem:[#allocation55_spill] sm:$0xff] %v8298_v40  ;;  %v8305_v42 = vsub.f32 %v15570_v60, %v7945_v10  ;;  %v1392_v50 = vmul.f32 %v8298_v40, %v8298_v40  ;;  %v1562_v61 = vsel %vm962_vm2, %v1391_v25, 0.0 }
 0x2ba   :  { %v1555_v17 = vadd.f32 %v1554_v53, %v1553_v7  ;;  %v15572_v53 = vld [vmem:[#allocation58_spill] sm:$0xff] }
 0x2bb   :  { %15571 = vst [vmem:[#allocation57_spill] sm:$0xff] %v8305_v42  ;;  %v8312_v28 = vsub.f32 %v15572_v53, %v7945_v10  ;;  %v1393_v14 = vmul.f32 %v8305_v42, %v8305_v42  ;;  %v1564_v13 = vsel %vm962_vm2, %v1392_v50, 0.0 }
 0x2bc   :  { %v1557_v27 = vadd.f32 %v1556_v1, %v1555_v17  ;;  %v15574_v1 = vld [vmem:[#allocation60_spill] sm:$0xff] }
 0x2bd   :  { %15573 = vst [vmem:[#allocation58_spill] sm:$0xff] %v8312_v28  ;;  %v8319_v60 = vsub.f32 %v15574_v1, %v7945_v10  ;;  %v1394_v40 = vmul.f32 %v8312_v28, %v8312_v28  ;;  %v1566_v25 = vsel %vm962_vm2, %v1393_v14, 0.0 }
 0x2be   :  { %v1559_v7 = vadd.f32 %v1558_v33, %v1557_v27  ;;  %v15576_v33 = vld [vmem:[#allocation61_spill] sm:$0xff] }
 0x2bf   :  { %15575 = vst [vmem:[#allocation60_spill] sm:$0xff] %v8319_v60  ;;  %v8326_v53 = vsub.f32 %v15576_v33, %v7945_v10  ;;  %v1395_v42 = vmul.f32 %v8319_v60, %v8319_v60  ;;  %v1568_v50 = vsel %vm962_vm2, %v1394_v40, 0.0 }
 0x2c0   :  { %v1561_v17 = vadd.f32 %v1560_v15, %v1559_v7  ;;  %v15578_v15 = vld [vmem:[#allocation63_spill] sm:$0xff] }
 0x2c1   :  { %15577 = vst [vmem:[#allocation61_spill] sm:$0xff] %v8326_v53  ;;  %v8333_v1 = vsub.f32 %v15578_v15, %v7945_v10  ;;  %v1396_v28 = vmul.f32 %v8326_v53, %v8326_v53  ;;  %v1570_v14 = vsel %vm962_vm2, %v1395_v42, 0.0 }
 0x2c2   :  { %v1563_v27 = vadd.f32 %v1562_v61, %v1561_v17  ;;  %v15580_v61 = vld [vmem:[#allocation65_spill] sm:$0xff] }
 0x2c3   :  { %15579 = vst [vmem:[#allocation63_spill] sm:$0xff] %v8333_v1  ;;  %v8340_v33 = vsub.f32 %v15580_v61, %v7945_v10  ;;  %v1397_v60 = vmul.f32 %v8333_v1, %v8333_v1  ;;  %v1572_v40 = vsel %vm962_vm2, %v1396_v28, 0.0 }
 0x2c4   :  { %v1565_v7 = vadd.f32 %v1564_v13, %v1563_v27  ;;  %v15582_v13 = vld [vmem:[#allocation66_spill] sm:$0xff] }
 0x2c5   :  { %15581 = vst [vmem:[#allocation65_spill] sm:$0xff] %v8340_v33  ;;  %v8347_v15 = vsub.f32 %v15582_v13, %v7945_v10  ;;  %v1398_v53 = vmul.f32 %v8340_v33, %v8340_v33  ;;  %v1574_v42 = vsel %vm962_vm2, %v1397_v60, 0.0 }
 0x2c6   :  { %v1567_v17 = vadd.f32 %v1566_v25, %v1565_v7  ;;  %v15584_v25 = vld [vmem:[#allocation68_spill] sm:$0xff] }
 0x2c7   :  { %15583 = vst [vmem:[#allocation66_spill] sm:$0xff] %v8347_v15  ;;  %v8354_v61 = vsub.f32 %v15584_v25, %v7945_v10  ;;  %v1399_v1 = vmul.f32 %v8347_v15, %v8347_v15  ;;  %v1576_v28 = vsel %vm962_vm2, %v1398_v53, 0.0 }
 0x2c8   :  { %v1569_v27 = vadd.f32 %v1568_v50, %v1567_v17  ;;  %v15586_v50 = vld [vmem:[#allocation70_spill] sm:$0xff] }
 0x2c9   :  { %15585 = vst [vmem:[#allocation68_spill] sm:$0xff] %v8354_v61  ;;  %v8361_v13 = vsub.f32 %v15586_v50, %v7945_v10  ;;  %v1400_v33 = vmul.f32 %v8354_v61, %v8354_v61  ;;  %v1578_v60 = vsel %vm962_vm2, %v1399_v1, 0.0 }
 0x2ca   :  { %v1571_v7 = vadd.f32 %v1570_v14, %v1569_v27  ;;  %v15587_v14 = vld [vmem:[#allocation71_spill] sm:$0xff] }
 0x2cb   :  { %v8368_v25 = vsub.f32 %v15587_v14, %v7945_v10  ;;  %v1401_v15 = vmul.f32 %v8361_v13, %v8361_v13  ;;  %v1580_v53 = vsel %vm962_vm2, %v1400_v33, 0.0 }
 0x2cc   :  { %v1573_v17 = vadd.f32 %v1572_v40, %v1571_v7  ;;  %v15588_v40 = vld [vmem:[#allocation74_spill] sm:$0xff] }
 0x2cd   :  { %v8375_v50 = vsub.f32 %v15588_v40, %v7945_v10  ;;  %v1402_v61 = vmul.f32 %v8368_v25, %v8368_v25  ;;  %v1582_v1 = vsel %vm962_vm2, %v1401_v15, 0.0 }
 0x2ce   :  { %v1575_v27 = vadd.f32 %v1574_v42, %v1573_v17  ;;  %v15589_v42 = vld [vmem:[#allocation75_spill] sm:$0xff] }
 0x2cf   :  { %v8382_v14 = vsub.f32 %v15589_v42, %v7945_v10  ;;  %v1403_v40 = vmul.f32 %v8375_v50, %v8375_v50  ;;  %v1584_v33 = vsel %vm962_vm2, %v1402_v61, 0.0 }
 0x2d0   :  { %v1577_v7 = vadd.f32 %v1576_v28, %v1575_v27  ;;  %v8389_v28 = vsub.f32 %v7576_v6, %v7945_v10  ;;  %v8403_v6 = vsub.f32 %v7594_v20, %v7945_v10  ;;  %v8417_v20 = vsub.f32 %v7598_v23, %v7945_v10 }
 0x2d1   :  { %v1404_v42 = vmul.f32 %v8382_v14, %v8382_v14  ;;  %v1586_v15 = vsel %vm962_vm2, %v1403_v40, 0.0  ;;  %v8431_v23 = vsub.f32 %v7612_v57, %v7945_v10  ;;  %v8445_v57 = vsub.f32 %v7624_v19, %v7945_v10 }
 0x2d2   :  { %v1579_v17 = vadd.f32 %v1578_v60, %v1577_v7  ;;  %v8396_v60 = vsub.f32 %v7583_v24, %v7945_v10  ;;  %v8410_v24 = vsub.f32 %v7589_v58, %v7945_v10  ;;  %v8424_v58 = vsub.f32 %v7606_v37, %v7945_v10 }
 0x2d3   :  { %v1588_v61 = vsel %vm962_vm2, %v1404_v42, 0.0  ;;  %v8438_v37 = vsub.f32 %v7618_v48, %v7945_v10  ;;  %v8452_v48 = vsub.f32 %v7630_v39, %v7945_v10  ;;  %v8459_v19 = vsub.f32 %v7636_v9, %v7945_v10 }
 0x2d4   :  { %v1581_v27 = vadd.f32 %v1580_v53, %v1579_v17  ;;  %v1405_v53 = vmul.f32 %v8389_v28, %v8389_v28  ;;  %v8466_v39 = vsub.f32 %v7642_v0, %v7945_v10  ;;  %v8473_v9 = vsub.f32 %v7648_v43, %v7945_v10 }
 0x2d5   :  { %v8480_v0 = vsub.f32 %v7654_v4, %v7945_v10  ;;  %v8487_v43 = vsub.f32 %v7660_v8, %v7945_v10  ;;  %v8494_v4 = vsub.f32 %v7666_v18, %v7945_v10  ;;  %v8501_v8 = vsub.f32 %v7672_v22, %v7945_v10 }
 0x2d6   :  { %v1583_v7 = vadd.f32 %v1582_v1, %v1581_v27  ;;  %v1406_v1 = vmul.f32 %v8396_v60, %v8396_v60  ;;  %v1590_v40 = vsel %vm962_vm2, %v1405_v53, 0.0  ;;  %v8508_v18 = vsub.f32 %v7678_v31, %v7945_v10 }
 0x2d7   :  { %v8515_v22 = vsub.f32 %v7684_v35, %v7945_v10  ;;  %v8522_v31 = vsub.f32 %v7690_v41, %v7945_v10  ;;  %v8529_v35 = vsub.f32 %v7696_v45, %v7945_v10  ;;  %v8536_v41 = vsub.f32 %v7702_v51, %v7945_v10 }
 0x2d8   :  { %v1585_v17 = vadd.f32 %v1584_v33, %v1583_v7  ;;  %v1407_v33 = vmul.f32 %v8403_v6, %v8403_v6  ;;  %v1592_v42 = vsel %vm962_vm2, %v1406_v1, 0.0  ;;  %v8543_v45 = vsub.f32 %v7708_v56, %v7945_v10 }
 0x2d9   :  { %v8550_v51 = vsub.f32 %v7714_v63, %v7945_v10  ;;  %v8557_v56 = vsub.f32 %v7720_v5, %v7945_v10  ;;  %v8564_v63 = vsub.f32 %v7726_v16, %v7945_v10  ;;  %v8571_v5 = vsub.f32 %v7732_v21, %v7945_v10 }
 0x2da   :  { %v1587_v27 = vadd.f32 %v1586_v15, %v1585_v17  ;;  %v1408_v15 = vmul.f32 %v8410_v24, %v8410_v24  ;;  %v1594_v53 = vsel %vm962_vm2, %v1407_v33, 0.0  ;;  %v8578_v16 = vsub.f32 %v7738_v36, %v7945_v10 }
 0x2db   :  { %v8585_v21 = vsub.f32 %v7744_v46, %v7945_v10  ;;  %v8592_v36 = vsub.f32 %v7750_v12, %v7945_v10  ;;  %v8599_v46 = vsub.f32 %v7756_v47, %v7945_v10  ;;  %v8606_v12 = vsub.f32 %v7762_v44, %v7945_v10 }
 0x2dc   :  { %v1589_v7 = vadd.f32 %v1588_v61, %v1587_v27  ;;  %v1409_v61 = vmul.f32 %v8417_v20, %v8417_v20  ;;  %v1596_v1 = vsel %vm962_vm2, %v1408_v15, 0.0  ;;  %v8613_v47 = vsub.f32 %v7768_v30, %v7945_v10 }
 0x2dd   :  { %v8620_v44 = vsub.f32 %v7774_v32, %v7945_v10  ;;  %v8627_v30 = vsub.f32 %v7780_v55, %v7945_v10  ;;  %v8634_v32 = vsub.f32 %v7786_v59, %v7945_v10  ;;  %v8641_v55 = vsub.f32 %v7792_v52, %v7945_v10 }
 0x2de   :  { %v1591_v17 = vadd.f32 %v1590_v40, %v1589_v7  ;;  %v1410_v40 = vmul.f32 %v8424_v58, %v8424_v58  ;;  %v1598_v33 = vsel %vm962_vm2, %v1409_v61, 0.0  ;;  %v8648_v59 = vsub.f32 %v7798_v3, %v7945_v10 }
 0x2df   :  { %v8655_v52 = vsub.f32 %v7804_v38, %v7945_v10  ;;  %v8662_v3 = vsub.f32 %v7810_v26, %v7945_v10  ;;  %v8669_v38 = vsub.f32 %v7816_v29, %v7945_v10  ;;  %v8676_v26 = vsub.f32 %v7822_v62, %v7945_v10 }
 0x2e0   :  { %v1593_v27 = vadd.f32 %v1592_v42, %v1591_v17  ;;  %v1411_v42 = vmul.f32 %v8431_v23, %v8431_v23  ;;  %v1600_v15 = vsel %vm962_vm2, %v1410_v40, 0.0  ;;  %15590 = vst [vmem:[#allocation70_spill] sm:$0xff] %v8648_v59  ;;  %v8683_v29 = vsub.f32 %v7828_v34, %v7945_v10 }
 0x2e1   :  { %15591 = vst [vmem:[#allocation71_spill] sm:$0xff] %v8655_v52  ;;  %15592 = vst [vmem:[#allocation74_spill] sm:$0xff] %v8662_v3 }
 0x2e2   :  { %v1595_v7 = vadd.f32 %v1594_v53, %v1593_v27  ;;  %v1412_v53 = vmul.f32 %v8438_v37, %v8438_v37  ;;  %v1602_v61 = vsel %vm962_vm2, %v1411_v42, 0.0  ;;  %15593 = vst [vmem:[#allocation75_spill] sm:$0xff] %v8669_v38  ;;  %15594 = vst [vmem:[#allocation86_spill] sm:$0xff] %v8676_v26 }
 0x2e3   :  { %15595 = vst [vmem:[#allocation87_spill] sm:$0xff] %v8683_v29 }
 0x2e4   :  { %v1597_v17 = vadd.f32 %v1596_v1, %v1595_v7  ;;  %v1413_v1 = vmul.f32 %v8445_v57, %v8445_v57  ;;  %v1604_v40 = vsel %vm962_vm2, %v1412_v53, 0.0 }
 0x2e6   :  { %v1599_v27 = vadd.f32 %v1598_v33, %v1597_v17  ;;  %v1414_v33 = vmul.f32 %v8452_v48, %v8452_v48  ;;  %v1606_v42 = vsel %vm962_vm2, %v1413_v1, 0.0 }
 0x2e8   :  { %v1601_v7 = vadd.f32 %v1600_v15, %v1599_v27  ;;  %v1415_v15 = vmul.f32 %v8459_v19, %v8459_v19  ;;  %v1608_v53 = vsel %vm962_vm2, %v1414_v33, 0.0 }
 0x2ea   :  { %v1603_v17 = vadd.f32 %v1602_v61, %v1601_v7  ;;  %v1416_v61 = vmul.f32 %v8466_v39, %v8466_v39  ;;  %v1610_v1 = vsel %vm962_vm2, %v1415_v15, 0.0 }
 0x2ec   :  { %v1605_v27 = vadd.f32 %v1604_v40, %v1603_v17  ;;  %v1417_v40 = vmul.f32 %v8473_v9, %v8473_v9  ;;  %v1612_v33 = vsel %vm962_vm2, %v1416_v61, 0.0 }
 0x2ee   :  { %v1607_v7 = vadd.f32 %v1606_v42, %v1605_v27  ;;  %v1418_v42 = vmul.f32 %v8480_v0, %v8480_v0  ;;  %v1614_v15 = vsel %vm962_vm2, %v1417_v40, 0.0 }
 0x2f0   :  { %v1609_v17 = vadd.f32 %v1608_v53, %v1607_v7  ;;  %v1419_v53 = vmul.f32 %v8487_v43, %v8487_v43  ;;  %v1616_v61 = vsel %vm962_vm2, %v1418_v42, 0.0 }
 0x2f2   :  { %v1611_v27 = vadd.f32 %v1610_v1, %v1609_v17  ;;  %v1420_v1 = vmul.f32 %v8494_v4, %v8494_v4  ;;  %v1618_v40 = vsel %vm962_vm2, %v1419_v53, 0.0 }
 0x2f4   :  { %v1613_v7 = vadd.f32 %v1612_v33, %v1611_v27  ;;  %v1421_v33 = vmul.f32 %v8501_v8, %v8501_v8  ;;  %v1620_v42 = vsel %vm962_vm2, %v1420_v1, 0.0 }
 0x2f6   :  { %v1615_v17 = vadd.f32 %v1614_v15, %v1613_v7  ;;  %v1422_v15 = vmul.f32 %v8508_v18, %v8508_v18  ;;  %v1622_v53 = vsel %vm962_vm2, %v1421_v33, 0.0 }
 0x2f8   :  { %v1617_v27 = vadd.f32 %v1616_v61, %v1615_v17  ;;  %v1423_v61 = vmul.f32 %v8515_v22, %v8515_v22  ;;  %v1624_v1 = vsel %vm962_vm2, %v1422_v15, 0.0 }
 0x2fa   :  { %v1619_v7 = vadd.f32 %v1618_v40, %v1617_v27  ;;  %v1424_v40 = vmul.f32 %v8522_v31, %v8522_v31  ;;  %v1626_v33 = vsel %vm962_vm2, %v1423_v61, 0.0 }
 0x2fc   :  { %v1621_v17 = vadd.f32 %v1620_v42, %v1619_v7  ;;  %v1425_v42 = vmul.f32 %v8529_v35, %v8529_v35  ;;  %v1628_v15 = vsel %vm962_vm2, %v1424_v40, 0.0 }
 0x2fe   :  { %v1623_v27 = vadd.f32 %v1622_v53, %v1621_v17  ;;  %v1426_v53 = vmul.f32 %v8536_v41, %v8536_v41  ;;  %v1630_v61 = vsel %vm962_vm2, %v1425_v42, 0.0 }
 0x300   :  { %v1625_v7 = vadd.f32 %v1624_v1, %v1623_v27  ;;  %v1427_v1 = vmul.f32 %v8543_v45, %v8543_v45  ;;  %v1632_v40 = vsel %vm962_vm2, %v1426_v53, 0.0 }
 0x302   :  { %v1627_v17 = vadd.f32 %v1626_v33, %v1625_v7  ;;  %v1428_v33 = vmul.f32 %v8550_v51, %v8550_v51  ;;  %v1634_v42 = vsel %vm962_vm2, %v1427_v1, 0.0 }
 0x304   :  { %v1629_v27 = vadd.f32 %v1628_v15, %v1627_v17  ;;  %v1429_v15 = vmul.f32 %v8557_v56, %v8557_v56  ;;  %v1636_v53 = vsel %vm962_vm2, %v1428_v33, 0.0 }
 0x306   :  { %v1631_v7 = vadd.f32 %v1630_v61, %v1629_v27  ;;  %v1430_v61 = vmul.f32 %v8564_v63, %v8564_v63  ;;  %v1638_v1 = vsel %vm962_vm2, %v1429_v15, 0.0 }
 0x308   :  { %v1633_v17 = vadd.f32 %v1632_v40, %v1631_v7  ;;  %v1431_v40 = vmul.f32 %v8571_v5, %v8571_v5  ;;  %v1640_v33 = vsel %vm962_vm2, %v1430_v61, 0.0 }
 0x30a   :  { %v1635_v27 = vadd.f32 %v1634_v42, %v1633_v17  ;;  %v1432_v42 = vmul.f32 %v8578_v16, %v8578_v16  ;;  %v1642_v15 = vsel %vm962_vm2, %v1431_v40, 0.0 }
 0x30c   :  { %v1637_v7 = vadd.f32 %v1636_v53, %v1635_v27  ;;  %v1433_v53 = vmul.f32 %v8585_v21, %v8585_v21  ;;  %v1644_v61 = vsel %vm962_vm2, %v1432_v42, 0.0 }
 0x30e   :  { %v1639_v17 = vadd.f32 %v1638_v1, %v1637_v7  ;;  %v1434_v1 = vmul.f32 %v8592_v36, %v8592_v36  ;;  %v1646_v40 = vsel %vm962_vm2, %v1433_v53, 0.0 }
 0x310   :  { %v1641_v27 = vadd.f32 %v1640_v33, %v1639_v17  ;;  %v1435_v33 = vmul.f32 %v8599_v46, %v8599_v46  ;;  %v1648_v42 = vsel %vm962_vm2, %v1434_v1, 0.0 }
 0x312   :  { %v1643_v7 = vadd.f32 %v1642_v15, %v1641_v27  ;;  %v1436_v15 = vmul.f32 %v8606_v12, %v8606_v12  ;;  %v1650_v53 = vsel %vm962_vm2, %v1435_v33, 0.0 }
 0x314   :  { %v1645_v17 = vadd.f32 %v1644_v61, %v1643_v7  ;;  %v1437_v61 = vmul.f32 %v8613_v47, %v8613_v47  ;;  %v1652_v1 = vsel %vm962_vm2, %v1436_v15, 0.0 }
 0x316   :  { %v1647_v27 = vadd.f32 %v1646_v40, %v1645_v17  ;;  %v1438_v40 = vmul.f32 %v8620_v44, %v8620_v44  ;;  %v1654_v33 = vsel %vm962_vm2, %v1437_v61, 0.0 }
 0x318   :  { %v1649_v7 = vadd.f32 %v1648_v42, %v1647_v27  ;;  %v1439_v42 = vmul.f32 %v8627_v30, %v8627_v30  ;;  %v1656_v15 = vsel %vm962_vm2, %v1438_v40, 0.0 }
 0x31a   :  { %v1651_v17 = vadd.f32 %v1650_v53, %v1649_v7  ;;  %v1440_v53 = vmul.f32 %v8634_v32, %v8634_v32  ;;  %v1658_v61 = vsel %vm962_vm2, %v1439_v42, 0.0 }
 0x31c   :  { %v1653_v27 = vadd.f32 %v1652_v1, %v1651_v17  ;;  %v1441_v1 = vmul.f32 %v8641_v55, %v8641_v55  ;;  %v1660_v40 = vsel %vm962_vm2, %v1440_v53, 0.0 }
 0x31e   :  { %v1655_v7 = vadd.f32 %v1654_v33, %v1653_v27  ;;  %v1442_v33 = vmul.f32 %v8648_v59, %v8648_v59  ;;  %v1662_v42 = vsel %vm962_vm2, %v1441_v1, 0.0 }
 0x320   :  { %v1657_v17 = vadd.f32 %v1656_v15, %v1655_v7  ;;  %v1443_v15 = vmul.f32 %v8655_v52, %v8655_v52  ;;  %v1664_v53 = vsel %vm962_vm2, %v1442_v33, 0.0 }
 0x322   :  { %v1659_v27 = vadd.f32 %v1658_v61, %v1657_v17  ;;  %v1444_v61 = vmul.f32 %v8662_v3, %v8662_v3  ;;  %v1666_v1 = vsel %vm962_vm2, %v1443_v15, 0.0  ;;  %v1446_v3 = vmul.f32 %v8676_v26, %v8676_v26 }
 0x324   :  { %v1661_v7 = vadd.f32 %v1660_v40, %v1659_v27  ;;  %v1445_v40 = vmul.f32 %v8669_v38, %v8669_v38  ;;  %v1668_v33 = vsel %vm962_vm2, %v1444_v61, 0.0  ;;  %v1447_v38 = vmul.f32 %v8683_v29, %v8683_v29 }
 0x325   :  { %v1672_v61 = vsel %vm962_vm2, %v1446_v3, 0.0 }
 0x326   :  { %v1663_v17 = vadd.f32 %v1662_v42, %v1661_v7  ;;  %v15596_v42 = vld [vmem:[#allocation77_spill] sm:$0xff]  ;;  %v1670_v15 = vsel %vm962_vm2, %v1445_v40, 0.0  ;;  %v1674_v40 = vsel %vm962_vm2, %v1447_v38, 0.0 }
 0x327   :  { %v8690_v62 = vsub.f32 %v15596_v42, %v7945_v10 }
 0x328   :  { %v1665_v27 = vadd.f32 %v1664_v53, %v1663_v17  ;;  %v15598_v53 = vld [vmem:[#allocation78_spill] sm:$0xff] }
 0x329   :  { %15597 = vst [vmem:[#allocation77_spill] sm:$0xff] %v8690_v62  ;;  %v8697_v34 = vsub.f32 %v15598_v53, %v7945_v10  ;;  %v1448_v26 = vmul.f32 %v8690_v62, %v8690_v62 }
 0x32a   :  { %v1667_v7 = vadd.f32 %v1666_v1, %v1665_v27  ;;  %v15600_v1 = vld [vmem:[#allocation42_spill] sm:$0xff] }
 0x32b   :  { %15599 = vst [vmem:[#allocation78_spill] sm:$0xff] %v8697_v34  ;;  %v8704_v42 = vsub.f32 %v15600_v1, %v7945_v10  ;;  %v1449_v29 = vmul.f32 %v8697_v34, %v8697_v34  ;;  %v1676_v3 = vsel %vm962_vm2, %v1448_v26, 0.0 }
 0x32c   :  { %v1669_v17 = vadd.f32 %v1668_v33, %v1667_v7  ;;  %v15602_v33 = vld [vmem:[#allocation44_spill] sm:$0xff] }
 0x32d   :  { %15601 = vst [vmem:[#allocation42_spill] sm:$0xff] %v8704_v42  ;;  %v8711_v53 = vsub.f32 %v15602_v33, %v7945_v10  ;;  %v1450_v62 = vmul.f32 %v8704_v42, %v8704_v42  ;;  %v1678_v38 = vsel %vm962_vm2, %v1449_v29, 0.0 }
 0x32e   :  { %v1671_v27 = vadd.f32 %v1670_v15, %v1669_v17  ;;  %v15604_v15 = vld [vmem:[#allocation79_spill] sm:$0xff] }
 0x32f   :  { %15603 = vst [vmem:[#allocation44_spill] sm:$0xff] %v8711_v53  ;;  %v8718_v1 = vsub.f32 %v15604_v15, %v7945_v10  ;;  %v1451_v34 = vmul.f32 %v8711_v53, %v8711_v53  ;;  %v1680_v26 = vsel %vm962_vm2, %v1450_v62, 0.0 }
 0x330   :  { %v1673_v7 = vadd.f32 %v1672_v61, %v1671_v27  ;;  %v15606_v61 = vld [vmem:[#allocation80_spill] sm:$0xff] }
 0x331   :  { %15605 = vst [vmem:[#allocation79_spill] sm:$0xff] %v8718_v1  ;;  %v8725_v33 = vsub.f32 %v15606_v61, %v7945_v10  ;;  %v1452_v42 = vmul.f32 %v8718_v1, %v8718_v1  ;;  %v1682_v29 = vsel %vm962_vm2, %v1451_v34, 0.0 }
 0x332   :  { %v1675_v17 = vadd.f32 %v1674_v40, %v1673_v7  ;;  %v15608_v40 = vld [vmem:[#allocation49_spill] sm:$0xff] }
 0x333   :  { %15607 = vst [vmem:[#allocation80_spill] sm:$0xff] %v8725_v33  ;;  %v8732_v15 = vsub.f32 %v15608_v40, %v7945_v10  ;;  %v1453_v53 = vmul.f32 %v8725_v33, %v8725_v33  ;;  %v1684_v62 = vsel %vm962_vm2, %v1452_v42, 0.0 }
 0x334   :  { %v1677_v27 = vadd.f32 %v1676_v3, %v1675_v17  ;;  %v15610_v3 = vld [vmem:[#allocation51_spill] sm:$0xff] }
 0x335   :  { %15609 = vst [vmem:[#allocation49_spill] sm:$0xff] %v8732_v15  ;;  %v8739_v61 = vsub.f32 %v15610_v3, %v7945_v10  ;;  %v1454_v1 = vmul.f32 %v8732_v15, %v8732_v15  ;;  %v1686_v34 = vsel %vm962_vm2, %v1453_v53, 0.0 }
 0x336   :  { %v1679_v7 = vadd.f32 %v1678_v38, %v1677_v27  ;;  %v15612_v38 = vld [vmem:[#allocation54_spill] sm:$0xff] }
 0x337   :  { %15611 = vst [vmem:[#allocation51_spill] sm:$0xff] %v8739_v61  ;;  %v8746_v40 = vsub.f32 %v15612_v38, %v7945_v10  ;;  %v1455_v33 = vmul.f32 %v8739_v61, %v8739_v61  ;;  %v1688_v42 = vsel %vm962_vm2, %v1454_v1, 0.0  ;;  %v6423_v1 = vld [vmem:[%s14966_s4 + $0x8] sm:$0xff]  }
 0x338   :  { %v1681_v17 = vadd.f32 %v1680_v26, %v1679_v7  ;;  %v15614_v26 = vld [vmem:[#allocation56_spill] sm:$0xff] }
 0x339   :  { %15613 = vst [vmem:[#allocation54_spill] sm:$0xff] %v8746_v40  ;;  %v8753_v3 = vsub.f32 %v15614_v26, %v7945_v10  ;;  %v1456_v15 = vmul.f32 %v8746_v40, %v8746_v40  ;;  %v15617_v26 = vld [vmem:[#allocation59_spill] sm:$0xff]  ;;  %v15621_v40 = vmov 0.0  }
 0x33a   :  { %v1683_v27 = vadd.f32 %v1682_v29, %v1681_v17  ;;  %v15616_v29 = vld [vmem:[#allocation81_spill] sm:$0xff]  ;;  %v8770_v61 = vsub.f32 %v15617_v26, %v7945_v10 }
 0x33b   :  { %15615 = vst [vmem:[#allocation56_spill] sm:$0xff] %v8753_v3  ;;  %v8760_v38 = vsub.f32 %v15616_v29, %v7945_v10  ;;  %v1457_v53 = vmul.f32 %v8753_v3, %v8753_v3  ;;  %v1692_v26 = vsel %vm962_vm2, %v1456_v15, 0.0 }
 0x33c   :  { %v1685_v7 = vadd.f32 %v1684_v62, %v1683_v27  ;;  %v6422_v62 = vld [vmem:[%s14966_s4] sm:$0xff]   ;;  %15618 = vst [vmem:[#allocation81_spill] sm:$0xff] %v8770_v61 }
 0x33d   :  { %5906 = vmatpush3.bf16.msra.mxu1 %v6422_v62  ;;  %v1459_v62 = vmul.f32 %v8770_v61, %v8770_v61 }
 0x33e   :  { %v1687_v17 = vadd.f32 %v1686_v34, %v1685_v7  ;;  %v1690_v7 = vsel %vm962_vm2, %v1455_v33, 0.0  ;;  %5907 = vmatprep.subr.bf16.mxu1 %v15621_v40  ;;  %v15622_v33 = vld [vmem:[#allocation64_spill] sm:$0xff] }
 0x340   :  { %v1689_v27 = vadd.f32 %v1688_v42, %v1687_v17  ;;  %v15619_v17 = vld [vmem:[#allocation62_spill] sm:$0xff]  ;;  %v1458_v42 = vmul.f32 %v8760_v38, %v8760_v38 }
 0x341   :  { %v8780_v29 = vsub.f32 %v15619_v17, %v7945_v10  ;;  %5908 = vmatpush3.bf16.msra.mxu1 %v6423_v1  ;;  %v15624_v17 = vld [vmem:[#allocation67_spill] sm:$0xff]  ;;  %v15628_v1 = vld [vmem:[#allocation72_spill] sm:$0xff] }
 0x342   :  { %v1691_v34 = vadd.f32 %v1690_v7, %v1689_v27  ;;  %v8788_v27 = vsub.f32 %v15622_v33, %v7945_v10  ;;  %v1694_v7 = vsel %vm962_vm2, %v1457_v53, 0.0  ;;  %v8795_v59 = vsub.f32 %v15624_v17, %v7945_v10  ;;  %v15626_v33 = vld [vmem:[#allocation69_spill] sm:$0xff] }
 0x343   :  { %15620 = vst [vmem:[#allocation59_spill] sm:$0xff] %v8780_v29  ;;  %v1460_v15 = vmul.f32 %v8780_v29, %v8780_v29  ;;  %v8802_v40 = vsub.f32 %v15626_v33, %v7945_v10 }
 0x344   :  { %v1693_v3 = vadd.f32 %v1692_v26, %v1691_v34  ;;  %15623 = vst [vmem:[#allocation62_spill] sm:$0xff] %v8788_v27  ;;  %15625 = vst [vmem:[#allocation64_spill] sm:$0xff] %v8795_v59  ;;  %v1696_v34 = vsel %vm962_vm2, %v1458_v42, 0.0  ;;  %v1461_v61 = vmul.f32 %v8788_v27, %v8788_v27  ;;  %v1462_v17 = vmul.f32 %v8795_v59, %v8795_v59 }
 0x345   :  { %15627 = vst [vmem:[#allocation67_spill] sm:$0xff] %v8802_v40  ;;  %v1700_v42 = vsel %vm962_vm2, %v1460_v15, 0.0  ;;  %v1463_v27 = vmul.f32 %v8802_v40, %v8802_v40 }
 0x346   :  { %v1695_v52 = vadd.f32 %v1694_v7, %v1693_v3  ;;  %v1698_v3 = vsel %vm962_vm2, %v1459_v62, 0.0  ;;  %v8809_v7 = vsub.f32 %v15628_v1, %v7945_v10  ;;  %v1702_v62 = vsel %vm962_vm2, %v1461_v61, 0.0 }
 0x347   :  { %v1704_v15 = vsel %vm962_vm2, %v1462_v17, 0.0  ;;  %v1706_v61 = vsel %vm962_vm2, %v1463_v27, 0.0 }
 0x348   :  { %v1697_v26 = vadd.f32 %v1696_v34, %v1695_v52  ;;  %v15629_v34 = vld [vmem:[#allocation73_spill] sm:$0xff]  ;;  %v1464_v59 = vmul.f32 %v8809_v7, %v8809_v7 }
 0x349   :  { %v8816_v33 = vsub.f32 %v15629_v34, %v7945_v10 }
 0x34a   :  { %v1699_v53 = vadd.f32 %v1698_v3, %v1697_v26  ;;  %v15630_v3 = vld [vmem:[#allocation76_spill] sm:$0xff] }
 0x34b   :  { %v8823_v1 = vsub.f32 %v15630_v3, %v7945_v10  ;;  %v1465_v40 = vmul.f32 %v8816_v33, %v8816_v33  ;;  %v1708_v3 = vsel %vm962_vm2, %v1464_v59, 0.0 }
 0x34c   :  { %v1701_v52 = vadd.f32 %v1700_v42, %v1699_v53  ;;  %v15632_v42 = vld [vmem:[#allocation82_spill] sm:$0xff] }
 0x34d   :  { %15631 = vst [vmem:[#allocation69_spill] sm:$0xff] %v8823_v1  ;;  %v8830_v34 = vsub.f32 %v15632_v42, %v7945_v10  ;;  %v15136_v10 = vsub.s32 1, %v8058_v2  ;;  %v15648_v2 = vld [vmem:[#allocation11_spill] sm:$0xff] }
 0x34e   :  { %v1703_v26 = vadd.f32 %v1702_v62, %v1701_v52  ;;  %v1466_v62 = vmul.f32 %v8823_v1, %v8823_v1  ;;  %v15636_v1 = vld [vmem:[#allocation2_spill] sm:$0xff] }
 0x34f   :  { %15633 = vst [vmem:[#allocation72_spill] sm:$0xff] %v8830_v34  ;;  %v1467_v17 = vmul.f32 %v8830_v34, %v8830_v34  ;;  %v8849_v59 = vrot.slane %v8078_v54, %v15136_v10  ;;  %v15639_v54 = vld [vmem:[#allocation6_spill] sm:$0xff] }
 0x350   :  { %v1705_v53 = vadd.f32 %v1704_v15, %v1703_v26  ;;  %v1710_v26 = vsel %vm962_vm2, %v1465_v40, 0.0  ;;  %v1468_v15 = vmul.f32 %v8105_v11, %v8105_v11  ;;  %v1712_v27 = vsel %vm962_vm2, %v1466_v62, 0.0  ;;  %v15635_v40 = vld [vmem:[#allocation3_spill] sm:$0xff]  ;;  %v15646_v10 = vld [vmem:[#allocation10_spill] sm:$0xff] }
 0x351   :  { %15634 = vst [vmem:[#allocation73_spill] sm:$0xff] %v8849_v59  ;;  %v8854_v34 = vmul.f32 %v8097_v49, %v15635_v40  ;;  %v8858_v11 = vmul.f32 %v8097_v49, %v15636_v1  ;;  %v15644_v40 = vld [vmem:[#allocation9_spill] sm:$0xff] }
 0x352   :  { %v1707_v52 = vadd.f32 %v1706_v61, %v1705_v53  ;;  %v1714_v61 = vsel %vm962_vm2, %v1467_v17, 0.0  ;;  %v15638_v17 = vld [vmem:[#allocation5_spill] sm:$0xff] }
 0x354   :  { %v1709_v29 = vadd.f32 %v1708_v3, %v1707_v52  ;;  %v1716_v3 = vsel %vm962_vm2, %v1468_v15, 0.0 }
 0x356   :  { %v1711_v42 = vadd.f32 %v1710_v26, %v1709_v29  ;;  %v15637_v29 = vld [vmem:[#allocation4_spill] sm:$0xff]  ;;  %v8866_v26 = vmul.f32 %v8097_v49, %v15638_v17  ;;  %v8886_v17 = vmul.f32 %v8097_v49, %v15646_v10 }
 0x357   :  { %v8862_v62 = vmul.f32 %v8097_v49, %v15637_v29  ;;  %v8882_v29 = vmul.f32 %v8097_v49, %v15644_v40 }
 0x358   :  { %v1713_v53 = vadd.f32 %v1712_v27, %v1711_v42  ;;  %v8870_v42 = vmul.f32 %v8097_v49, %v15639_v54  ;;  %v15640_v27 = vld [vmem:[#allocation7_spill] sm:$0xff]  ;;  %15647 = vst [vmem:[#allocation2_spill] sm:$0xff] %v8886_v17  ;;  %v8890_v54 = vmul.f32 %v8097_v49, %v15648_v2 }
 0x359   :  { %15645 = vst [vmem:[#allocation3_spill] sm:$0xff] %v8882_v29  ;;  %v15656_v29 = vld [vmem:[#allocation18_spill] sm:$0xff]  ;;  %v15658_v17 = vld [vmem:[#allocation19_spill] sm:$0xff] }
 0x35a   :  { %v1715_v52 = vadd.f32 %v1714_v61, %v1713_v53  ;;  %v8874_v53 = vmul.f32 %v8097_v49, %v15640_v27  ;;  %v15642_v61 = vld [vmem:[#allocation8_spill] sm:$0xff]  ;;  %15649 = vst [vmem:[#allocation4_spill] sm:$0xff] %v8890_v54  ;;  %v15652_v27 = vld [vmem:[#allocation13_spill] sm:$0xff]  ;;  %v8906_v10 = vmul.f32 %v8097_v49, %v15656_v29  ;;  %v8910_v2 = vmul.f32 %v8097_v49, %v15658_v17 }
 0x35b   :  { %v8878_v1 = vmul.f32 %v8097_v49, %v15642_v61  ;;  %v8898_v61 = vmul.f32 %v8097_v49, %v15652_v27  ;;  %v15660_v54 = vld [vmem:[#allocation20_spill] sm:$0xff] }
 0x35c   :  { %v1717_v15 = vadd.f32 %v1716_v3, %v1715_v52  ;;  %15641 = vst [vmem:[#allocation76_spill] sm:$0xff] %v8874_v53  ;;  %v15650_v52 = vld [vmem:[#allocation12_spill] sm:$0xff]  ;;  %15657 = vst [vmem:[#allocation8_spill] sm:$0xff] %v8906_v10 }
 0x35d   :  { %15643 = vst [vmem:[#allocation82_spill] sm:$0xff] %v8878_v1  ;;  %v8894_v3 = vmul.f32 %v8097_v49, %v15650_v52  ;;  %15653 = vst [vmem:[#allocation6_spill] sm:$0xff] %v8898_v61  ;;  %v15654_v1 = vld [vmem:[#allocation14_spill] sm:$0xff]  ;;  %v8914_v52 = vmul.f32 %v8097_v49, %v15660_v54  ;;  %v15668_v53 = vld [vmem:[#allocation24_spill] sm:$0xff] }
 0x35e   :  { %v1718_v59 = vrot.slane %v1717_v15, 4  ;;  %v8902_v40 = vmul.f32 %v8097_v49, %v15654_v1  ;;  %15659 = vst [vmem:[#allocation9_spill] sm:$0xff] %v8910_v2  ;;  %v15664_v61 = vld [vmem:[#allocation22_spill] sm:$0xff]  ;;  %v8930_v17 = vmul.f32 %v8097_v49, %v15668_v53  ;;  %v15670_v2 = vld [vmem:[#allocation25_spill] sm:$0xff] }
 0x35f   :  { %15651 = vst [vmem:[#allocation5_spill] sm:$0xff] %v8894_v3  ;;  %15661 = vst [vmem:[#allocation10_spill] sm:$0xff] %v8914_v52  ;;  %v15662_v3 = vld [vmem:[#allocation21_spill] sm:$0xff]  ;;  %v8922_v1 = vmul.f32 %v8097_v49, %v15664_v61  ;;  %v8934_v54 = vmul.f32 %v8097_v49, %v15670_v2  ;;  %v15672_v52 = vld [vmem:[#allocation26_spill] sm:$0xff] }
 0x360   :  { %15655 = vst [vmem:[#allocation7_spill] sm:$0xff] %v8902_v40  ;;  %v8918_v27 = vmul.f32 %v8097_v49, %v15662_v3  ;;  %v15666_v40 = vld [vmem:[#allocation23_spill] sm:$0xff]  ;;  %v1719_v10 = vadd.f32 %v1718_v59, %v1717_v15  ;;  %15669 = vst [vmem:[#allocation14_spill] sm:$0xff] %v8930_v17  ;;  %v8938_v3 = vmul.f32 %v8097_v49, %v15672_v52  ;;  %v15678_v59 = vld [vmem:[#allocation29_spill] sm:$0xff] }
 0x361   :  { %15665 = vst [vmem:[#allocation12_spill] sm:$0xff] %v8922_v1  ;;  %v8926_v29 = vmul.f32 %v8097_v49, %v15666_v40  ;;  %15671 = vst [vmem:[#allocation18_spill] sm:$0xff] %v8934_v54  ;;  %v15676_v1 = vld [vmem:[#allocation28_spill] sm:$0xff]  ;;  %v8950_v15 = vmul.f32 %v8097_v49, %v15678_v59  ;;  %v15680_v53 = vld [vmem:[#allocation30_spill] sm:$0xff] }
 0x362   :  { %15663 = vst [vmem:[#allocation11_spill] sm:$0xff] %v8918_v27  ;;  %15673 = vst [vmem:[#allocation19_spill] sm:$0xff] %v8938_v3  ;;  %v15674_v27 = vld [vmem:[#allocation27_spill] sm:$0xff]  ;;  %v8946_v40 = vmul.f32 %v8097_v49, %v15676_v1  ;;  %v8954_v2 = vmul.f32 %v8097_v49, %v15680_v53  ;;  %v1720_v54 = vrot.slane %v1719_v10, 2  ;;  %v15684_v3 = vld [vmem:[#allocation32_spill] sm:$0xff] }
 0x363   :  { %15667 = vst [vmem:[#allocation13_spill] sm:$0xff] %v8926_v29  ;;  %v8942_v61 = vmul.f32 %v8097_v49, %v15674_v27  ;;  %15679 = vst [vmem:[#allocation22_spill] sm:$0xff] %v8950_v15  ;;  %v15682_v17 = vld [vmem:[#allocation31_spill] sm:$0xff]  ;;  %v8962_v27 = vmul.f32 %v8097_v49, %v15684_v3  ;;  %v15696_v29 = vld [vmem:[#allocation38_spill] sm:$0xff] }
 0x364   :  { %15677 = vst [vmem:[#allocation21_spill] sm:$0xff] %v8946_v40  ;;  %15681 = vst [vmem:[#allocation23_spill] sm:$0xff] %v8954_v2  ;;  %v8958_v52 = vmul.f32 %v8097_v49, %v15682_v17  ;;  %v15688_v40 = vld [vmem:[#allocation34_spill] sm:$0xff]  ;;  %v15690_v15 = vld [vmem:[#allocation35_spill] sm:$0xff] }
 0x365   :  { %15675 = vst [vmem:[#allocation20_spill] sm:$0xff] %v8942_v61  ;;  %15685 = vst [vmem:[#allocation25_spill] sm:$0xff] %v8962_v27  ;;  %v15686_v61 = vld [vmem:[#allocation33_spill] sm:$0xff]  ;;  %v8970_v59 = vmul.f32 %v8097_v49, %v15688_v40  ;;  %v8974_v53 = vmul.f32 %v8097_v49, %v15690_v15  ;;  %v15692_v2 = vld [vmem:[#allocation36_spill] sm:$0xff]  ;;  %v1721_v27 = vadd.f32 %v1720_v54, %v1719_v10 }
 0x366   :  { %15683 = vst [vmem:[#allocation24_spill] sm:$0xff] %v8958_v52  ;;  %v8966_v1 = vmul.f32 %v8097_v49, %v15686_v61  ;;  %v8978_v17 = vmul.f32 %v8097_v49, %v15692_v2  ;;  %v15694_v52 = vld [vmem:[#allocation37_spill] sm:$0xff]  ;;  %v8986_v61 = vmul.f32 %v8097_v49, %v15696_v29  ;;  %v15708_v54 = vld [vmem:[#allocation46_spill] sm:$0xff] }
 0x367   :  { %15689 = vst [vmem:[#allocation27_spill] sm:$0xff] %v8970_v59  ;;  %15691 = vst [vmem:[#allocation28_spill] sm:$0xff] %v8974_v53  ;;  %v8982_v3 = vmul.f32 %v8097_v49, %v15694_v52  ;;  %v15700_v59 = vld [vmem:[#allocation40_spill] sm:$0xff]  ;;  %v15702_v53 = vld [vmem:[#allocation41_spill] sm:$0xff] }
 0x368   :  { %15687 = vst [vmem:[#allocation26_spill] sm:$0xff] %v8966_v1  ;;  %15693 = vst [vmem:[#allocation29_spill] sm:$0xff] %v8978_v17  ;;  %v15698_v1 = vld [vmem:[#allocation39_spill] sm:$0xff]  ;;  %v8994_v15 = vmul.f32 %v8097_v49, %v15700_v59  ;;  %v8998_v2 = vmul.f32 %v8097_v49, %v15702_v53  ;;  %v15706_v10 = vld [vmem:[#allocation45_spill] sm:$0xff] }
 0x369   :  { %15695 = vst [vmem:[#allocation30_spill] sm:$0xff] %v8982_v3  ;;  %15697 = vst [vmem:[#allocation31_spill] sm:$0xff] %v8986_v61  ;;  %v8990_v40 = vmul.f32 %v8097_v49, %v15698_v1  ;;  %v15704_v17 = vld [vmem:[#allocation43_spill] sm:$0xff]  ;;  %v9006_v29 = vmul.f32 %v8097_v49, %v15706_v10  ;;  %v9010_v1 = vmul.f32 %v8097_v49, %v15708_v54  ;;  %v15723_v3 = vld [vmem:[#allocation58_spill] sm:$0xff] }
 0x36a   :  { %15701 = vst [vmem:[#allocation33_spill] sm:$0xff] %v8994_v15  ;;  %15703 = vst [vmem:[#allocation34_spill] sm:$0xff] %v8998_v2  ;;  %v9002_v52 = vmul.f32 %v8097_v49, %v15704_v17  ;;  %v15710_v61 = vld [vmem:[#allocation47_spill] sm:$0xff]  ;;  %v15712_v15 = vld [vmem:[#allocation48_spill] sm:$0xff] }
 0x36b   :  { %15699 = vst [vmem:[#allocation32_spill] sm:$0xff] %v8990_v40  ;;  %15707 = vst [vmem:[#allocation36_spill] sm:$0xff] %v9006_v29  ;;  %v1722_v40 = vrot.slane %v1721_v27, 1  ;;  %v9014_v59 = vmul.f32 %v8097_v49, %v15710_v61  ;;  %v9018_v53 = vmul.f32 %v8097_v49, %v15712_v15  ;;  %v15714_v2 = vld [vmem:[#allocation50_spill] sm:$0xff]  ;;  %v15718_v29 = vld [vmem:[#allocation53_spill] sm:$0xff] }
 0x36c   :  { %15705 = vst [vmem:[#allocation35_spill] sm:$0xff] %v9002_v52  ;;  %15709 = vst [vmem:[#allocation37_spill] sm:$0xff] %v9010_v1  ;;  %v9022_v17 = vmul.f32 %v8097_v49, %v15714_v2  ;;  %v15716_v52 = vld [vmem:[#allocation52_spill] sm:$0xff]  ;;  %v9030_v54 = vmul.f32 %v8097_v49, %v15718_v29  ;;  %v15720_v1 = vld [vmem:[#allocation55_spill] sm:$0xff]  ;;  %v9042_v2 = vmul.f32 %v8097_v49, %v15723_v3 }
 0x36d   :  { %15711 = vst [vmem:[#allocation38_spill] sm:$0xff] %v9014_v59  ;;  %15713 = vst [vmem:[#allocation39_spill] sm:$0xff] %v9018_v53  ;;  %v9026_v10 = vmul.f32 %v8097_v49, %v15716_v52  ;;  %v9034_v61 = vmul.f32 %v8097_v49, %v15720_v1  ;;  %v15722_v59 = vld [vmem:[#allocation57_spill] sm:$0xff]  ;;  %v1723_v53 = vadd.f32 %v1722_v40, %v1721_v27  ;;  %v15729_v27 = vld [vmem:[#allocation66_spill] sm:$0xff] }
 0x36e   :  { %15715 = vst [vmem:[#allocation40_spill] sm:$0xff] %v9022_v17  ;;  %15719 = vst [vmem:[#allocation43_spill] sm:$0xff] %v9030_v54  ;;  %v9038_v15 = vmul.f32 %v8097_v49, %v15722_v59  ;;  %v15724_v17 = vld [vmem:[#allocation60_spill] sm:$0xff]  ;;  %v15727_v54 = vld [vmem:[#allocation63_spill] sm:$0xff]  ;;  %v9062_v3 = vmul.f32 %v8097_v49, %v15729_v27  ;;  %v9082_v27 = vmul.f32 %v8097_v49, %v8382_v14 }
 0x36f   :  { %15717 = vst [vmem:[#allocation41_spill] sm:$0xff] %v9026_v10  ;;  %15721 = vst [vmem:[#allocation45_spill] sm:$0xff] %v9034_v61  ;;  %v9046_v52 = vmul.f32 %v8097_v49, %v15724_v17  ;;  %v15726_v10 = vld [vmem:[#allocation61_spill] sm:$0xff]  ;;  %v9054_v1 = vmul.f32 %v8097_v49, %v15727_v54  ;;  %v15730_v40 = vld [vmem:[#allocation68_spill] sm:$0xff]  ;;  %v9074_v54 = vmul.f32 %v8097_v49, %v8368_v25 }
 0x370   :  { %v9050_v29 = vmul.f32 %v8097_v49, %v15726_v10  ;;  %v15728_v61 = vld [vmem:[#allocation65_spill] sm:$0xff]  ;;  %v9066_v17 = vmul.f32 %v8097_v49, %v15730_v40  ;;  %v9070_v10 = vmul.f32 %v8097_v49, %v8361_v13  ;;  %v9086_v40 = vmul.f32 %v8097_v49, %v8389_v28 }
 0x371   :  { %15725 = vst [vmem:[#allocation46_spill] sm:$0xff] %v9046_v52  ;;  %v9058_v59 = vmul.f32 %v8097_v49, %v15728_v61  ;;  %v1724_v52 = vmul.f32 0.001, %v1723_v53  ;;  %v9078_v61 = vmul.f32 %v8097_v49, %v8375_v50  ;;  %v9090_v13 = vmul.f32 %v8097_v49, %v8396_v60 }
 0x372   :  { %v9094_v25 = vmul.f32 %v8097_v49, %v8403_v6  ;;  %v9098_v50 = vmul.f32 %v8097_v49, %v8410_v24  ;;  %v9102_v14 = vmul.f32 %v8097_v49, %v8417_v20  ;;  %v9106_v28 = vmul.f32 %v8097_v49, %v8424_v58 }
 0x373   :  { %v1855_v53 = vadd.f32 1e-05, %v1724_v52  ;;  %v9110_v60 = vmul.f32 %v8097_v49, %v8431_v23  ;;  %v9114_v6 = vmul.f32 %v8097_v49, %v8438_v37  ;;  %v9118_v24 = vmul.f32 %v8097_v49, %v8445_v57  ;;  %v15735_v52 = vld [vmem:[#allocation70_spill] sm:$0xff] }
 0x374   :  { %v9122_v20 = vmul.f32 %v8097_v49, %v8452_v48  ;;  %v9126_v58 = vmul.f32 %v8097_v49, %v8459_v19  ;;  %v9130_v23 = vmul.f32 %v8097_v49, %v8466_v39  ;;  %v9134_v37 = vmul.f32 %v8097_v49, %v8473_v9 }
 0x375   :  { %6426 = vrsqrt.f32 %v1855_v53  ;;  %v9138_v57 = vmul.f32 %v8097_v49, %v8480_v0  ;;  %v9142_v48 = vmul.f32 %v8097_v49, %v8487_v43  ;;  %v9146_v19 = vmul.f32 %v8097_v49, %v8494_v4  ;;  %v15737_v53 = vld [vmem:[#allocation71_spill] sm:$0xff] }
 0x376   :  { %v9150_v39 = vmul.f32 %v8097_v49, %v8501_v8  ;;  %v9154_v9 = vmul.f32 %v8097_v49, %v8508_v18  ;;  %v9158_v0 = vmul.f32 %v8097_v49, %v8515_v22  ;;  %v9162_v43 = vmul.f32 %v8097_v49, %v8522_v31 }
 0x377   :  { %v9166_v4 = vmul.f32 %v8097_v49, %v8529_v35  ;;  %v9170_v8 = vmul.f32 %v8097_v49, %v8536_v41  ;;  %v9174_v18 = vmul.f32 %v8097_v49, %v8543_v45  ;;  %v9178_v22 = vmul.f32 %v8097_v49, %v8550_v51 }
 0x378   :  { %v9182_v31 = vmul.f32 %v8097_v49, %v8557_v56  ;;  %v9186_v35 = vmul.f32 %v8097_v49, %v8564_v63  ;;  %v9190_v41 = vmul.f32 %v8097_v49, %v8571_v5  ;;  %v9194_v45 = vmul.f32 %v8097_v49, %v8578_v16 }
 0x379   :  { %v9198_v51 = vmul.f32 %v8097_v49, %v8585_v21  ;;  %v9202_v56 = vmul.f32 %v8097_v49, %v8592_v36  ;;  %v9206_v63 = vmul.f32 %v8097_v49, %v8599_v46  ;;  %v9210_v5 = vmul.f32 %v8097_v49, %v8606_v12 }
 0x37a   :  { %v9214_v16 = vmul.f32 %v8097_v49, %v8613_v47  ;;  %v9218_v21 = vmul.f32 %v8097_v49, %v8620_v44  ;;  %v9222_v36 = vmul.f32 %v8097_v49, %v8627_v30  ;;  %v9226_v46 = vmul.f32 %v8097_v49, %v8634_v32 }
 0x37b   :  { %v9230_v12 = vmul.f32 %v8097_v49, %v8641_v55  ;;  %v9234_v47 = vmul.f32 %v8097_v49, %v15735_v52  ;;  %v9238_v44 = vmul.f32 %v8097_v49, %v15737_v53 }
 0x37c   :  { %15731 = vst [vmem:[#allocation47_spill] sm:$0xff] %v9218_v21  ;;  %15732 = vst [vmem:[#allocation48_spill] sm:$0xff] %v9222_v36  ;;  %v15739_v21 = vld [vmem:[#allocation74_spill] sm:$0xff]  ;;  %v15741_v36 = vld [vmem:[#allocation75_spill] sm:$0xff] }
 0x37d   :  { %15733 = vst [vmem:[#allocation50_spill] sm:$0xff] %v9226_v46  ;;  %15734 = vst [vmem:[#allocation52_spill] sm:$0xff] %v9230_v12  ;;  %v9242_v30 = vmul.f32 %v8097_v49, %v15739_v21  ;;  %v9246_v32 = vmul.f32 %v8097_v49, %v15741_v36  ;;  %v15743_v46 = vld [vmem:[#allocation86_spill] sm:$0xff]  ;;  %v15745_v12 = vld [vmem:[#allocation87_spill] sm:$0xff] }
 0x37e   :  { %15736 = vst [vmem:[#allocation53_spill] sm:$0xff] %v9234_v47  ;;  %15738 = vst [vmem:[#allocation55_spill] sm:$0xff] %v9238_v44  ;;  %v9250_v55 = vmul.f32 %v8097_v49, %v15743_v46  ;;  %v9254_v52 = vmul.f32 %v8097_v49, %v15745_v12  ;;  %v15747_v47 = vld [vmem:[#allocation77_spill] sm:$0xff]  ;;  %v15749_v44 = vld [vmem:[#allocation78_spill] sm:$0xff] }
 0x37f   :  { %15740 = vst [vmem:[#allocation57_spill] sm:$0xff] %v9242_v30  ;;  %15742 = vst [vmem:[#allocation58_spill] sm:$0xff] %v9246_v32  ;;  %v9258_v53 = vmul.f32 %v8097_v49, %v15747_v47  ;;  %v9262_v21 = vmul.f32 %v8097_v49, %v15749_v44  ;;  %v15751_v30 = vld [vmem:[#allocation42_spill] sm:$0xff]  ;;  %v15753_v32 = vld [vmem:[#allocation44_spill] sm:$0xff] }
 0x380   :  { %15744 = vst [vmem:[#allocation60_spill] sm:$0xff] %v9250_v55  ;;  %15746 = vst [vmem:[#allocation61_spill] sm:$0xff] %v9254_v52  ;;  %v9266_v36 = vmul.f32 %v8097_v49, %v15751_v30  ;;  %v9270_v46 = vmul.f32 %v8097_v49, %v15753_v32  ;;  %v15755_v55 = vld [vmem:[#allocation79_spill] sm:$0xff]  ;;  %v15757_v52 = vld [vmem:[#allocation80_spill] sm:$0xff] }
 0x381   :  { %15748 = vst [vmem:[#allocation63_spill] sm:$0xff] %v9258_v53  ;;  %15750 = vst [vmem:[#allocation65_spill] sm:$0xff] %v9262_v21  ;;  %v9274_v12 = vmul.f32 %v8097_v49, %v15755_v55  ;;  %v9278_v47 = vmul.f32 %v8097_v49, %v15757_v52  ;;  %v9280_v53 = vpop.eup %6426  ;;  %v15760_v44 = vld [vmem:[#allocation49_spill] sm:$0xff]  ;;  %v15762_v30 = vld [vmem:[#allocation51_spill] sm:$0xff] }
 0x382   :  { %15752 = vst [vmem:[#allocation66_spill] sm:$0xff] %v9266_v36  ;;  %15754 = vst [vmem:[#allocation68_spill] sm:$0xff] %v9270_v46  ;;  %v9284_v21 = vmul.f32 %v8097_v49, %v15760_v44  ;;  %v9288_v36 = vmul.f32 %v8097_v49, %v15762_v30  ;;  %v15764_v32 = vld [vmem:[#allocation54_spill] sm:$0xff]  ;;  %v15766_v55 = vld [vmem:[#allocation56_spill] sm:$0xff]  ;;  %v9304_v44 = vmul.f32 %v8097_v49, %v8760_v38 }
 0x383   :  { %15756 = vst [vmem:[#allocation70_spill] sm:$0xff] %v9274_v12  ;;  %15758 = vst [vmem:[#allocation71_spill] sm:$0xff] %v9278_v47  ;;  %v9292_v46 = vmul.f32 %v8097_v49, %v15764_v32  ;;  %v9296_v12 = vmul.f32 %v8097_v49, %v15766_v55  ;;  %v15768_v52 = vld [vmem:[#allocation85_spill] sm:$0xff] }
 0x384   :  { %15759 = vst [vmem:[#allocation74_spill] sm:$0xff] %v9280_v53  ;;  %15761 = vst [vmem:[#allocation75_spill] sm:$0xff] %v9284_v21  ;;  %v9300_v47 = vmul.f32 %v9280_v53, %v15768_v52  ;;  %v15770_v21 = vld [vmem:[#allocation81_spill] sm:$0xff] }
 0x385   :  { %15763 = vst [vmem:[#allocation86_spill] sm:$0xff] %v9288_v36  ;;  %15765 = vst [vmem:[#allocation87_spill] sm:$0xff] %v9292_v46  ;;  %v9308_v30 = vmul.f32 %v8097_v49, %v15770_v21  ;;  %v15771_v36 = vld [vmem:[#allocation59_spill] sm:$0xff]  ;;  %v15773_v46 = vld [vmem:[#allocation62_spill] sm:$0xff]  ;;  %v9328_v21 = vmul.f32 %v8097_v49, %v8809_v7  ;;  %v9348_v7 = vmul.f32 %v9280_v53, %v8858_v11 }
 0x386   :  { %15767 = vst [vmem:[#allocation77_spill] sm:$0xff] %v9296_v12  ;;  %15769 = vst [vmem:[#allocation78_spill] sm:$0xff] %v9300_v47  ;;  %v9312_v32 = vmul.f32 %v8097_v49, %v15771_v36  ;;  %v9316_v55 = vmul.f32 %v8097_v49, %v15773_v46  ;;  %v15775_v12 = vld [vmem:[#allocation64_spill] sm:$0xff]  ;;  %v15776_v47 = vld [vmem:[#allocation67_spill] sm:$0xff]  ;;  %v9332_v36 = vmul.f32 %v8097_v49, %v8816_v33 }
 0x387   :  { %v9320_v52 = vmul.f32 %v8097_v49, %v15775_v12  ;;  %v9324_v38 = vmul.f32 %v8097_v49, %v15776_v47  ;;  %v9344_v47 = vmul.f32 %v9280_v53, %v8854_v34  ;;  %15780 = vst [vmem:[#allocation80_spill] sm:$0xff] %v9348_v7  ;;  %v9352_v33 = vmul.f32 %v9280_v53, %v8862_v62  ;;  %v15788_v7 = vld [vmem:[#allocation3_spill] sm:$0xff] }
 0x388   :  { %15772 = vst [vmem:[#allocation42_spill] sm:$0xff] %v9312_v32  ;;  %15774 = vst [vmem:[#allocation44_spill] sm:$0xff] %v9316_v55  ;;  %v15777_v32 = vld [vmem:[#allocation69_spill] sm:$0xff]  ;;  %v15778_v55 = vld [vmem:[#allocation72_spill] sm:$0xff]  ;;  %v9372_v62 = vmul.f32 %v9280_v53, %v15788_v7 }
 0x389   :  { %v9336_v46 = vmul.f32 %v8097_v49, %v15777_v32  ;;  %v9340_v12 = vmul.f32 %v8097_v49, %v15778_v55  ;;  %15779 = vst [vmem:[#allocation79_spill] sm:$0xff] %v9344_v47  ;;  %15781 = vst [vmem:[#allocation49_spill] sm:$0xff] %v9352_v33  ;;  %v9356_v32 = vmul.f32 %v9280_v53, %v8866_v26  ;;  %v15784_v49 = vld [vmem:[#allocation76_spill] sm:$0xff]  ;;  %v15786_v47 = vld [vmem:[#allocation82_spill] sm:$0xff] }
 0x38a   :  { %v9360_v55 = vmul.f32 %v9280_v53, %v8870_v42  ;;  %v9364_v34 = vmul.f32 %v9280_v53, %v15784_v49  ;;  %v9368_v11 = vmul.f32 %v9280_v53, %v15786_v47  ;;  %15789 = vst [vmem:[#allocation81_spill] sm:$0xff] %v9372_v62  ;;  %v15790_v33 = vld [vmem:[#allocation8_spill] sm:$0xff]  ;;  %v15800_v62 = vld [vmem:[#allocation2_spill] sm:$0xff] }
 0x38b   :  { %15782 = vst [vmem:[#allocation51_spill] sm:$0xff] %v9356_v32  ;;  %v9376_v26 = vmul.f32 %v9280_v53, %v15790_v33  ;;  %v15792_v32 = vld [vmem:[#allocation9_spill] sm:$0xff]  ;;  %v9396_v33 = vmul.f32 %v9280_v53, %v15800_v62 }
 0x38c   :  { %15783 = vst [vmem:[#allocation54_spill] sm:$0xff] %v9360_v55  ;;  %15785 = vst [vmem:[#allocation56_spill] sm:$0xff] %v9364_v34  ;;  %v9380_v42 = vmul.f32 %v9280_v53, %v15792_v32  ;;  %v15794_v55 = vld [vmem:[#allocation10_spill] sm:$0xff]  ;;  %v15796_v34 = vld [vmem:[#allocation11_spill] sm:$0xff] }
 0x38d   :  { %15787 = vst [vmem:[#allocation85_spill] sm:$0xff] %v9368_v11  ;;  %15791 = vst [vmem:[#allocation59_spill] sm:$0xff] %v9376_v26  ;;  %v9384_v49 = vmul.f32 %v9280_v53, %v15794_v55  ;;  %v9388_v47 = vmul.f32 %v9280_v53, %v15796_v34  ;;  %v15798_v11 = vld [vmem:[#allocation12_spill] sm:$0xff]  ;;  %v15802_v26 = vld [vmem:[#allocation13_spill] sm:$0xff] }
 0x38e   :  { %15793 = vst [vmem:[#allocation62_spill] sm:$0xff] %v9380_v42  ;;  %v9392_v7 = vmul.f32 %v9280_v53, %v15798_v11  ;;  %15801 = vst [vmem:[#allocation72_spill] sm:$0xff] %v9396_v33  ;;  %v9400_v32 = vmul.f32 %v9280_v53, %v15802_v26  ;;  %v15804_v42 = vld [vmem:[#allocation14_spill] sm:$0xff]  ;;  %v15812_v33 = vld [vmem:[#allocation21_spill] sm:$0xff] }
 0x38f   :  { %15795 = vst [vmem:[#allocation64_spill] sm:$0xff] %v9384_v49  ;;  %15797 = vst [vmem:[#allocation67_spill] sm:$0xff] %v9388_v47  ;;  %v9404_v55 = vmul.f32 %v9280_v53, %v15804_v42  ;;  %v15806_v49 = vld [vmem:[#allocation18_spill] sm:$0xff]  ;;  %v15808_v47 = vld [vmem:[#allocation19_spill] sm:$0xff]  ;;  %v9420_v26 = vmul.f32 %v9280_v53, %v15812_v33 }
 0x390   :  { %15799 = vst [vmem:[#allocation69_spill] sm:$0xff] %v9392_v7  ;;  %15803 = vst [vmem:[#allocation76_spill] sm:$0xff] %v9400_v32  ;;  %v9408_v34 = vmul.f32 %v9280_v53, %v15806_v49  ;;  %v9412_v11 = vmul.f32 %v9280_v53, %v15808_v47  ;;  %v15810_v7 = vld [vmem:[#allocation20_spill] sm:$0xff]  ;;  %v15814_v32 = vld [vmem:[#allocation22_spill] sm:$0xff] }
 0x391   :  { %15805 = vst [vmem:[#allocation82_spill] sm:$0xff] %v9404_v55  ;;  %v9416_v62 = vmul.f32 %v9280_v53, %v15810_v7  ;;  %15813 = vst [vmem:[#allocation10_spill] sm:$0xff] %v9420_v26  ;;  %v9424_v42 = vmul.f32 %v9280_v53, %v15814_v32  ;;  %v15816_v55 = vld [vmem:[#allocation23_spill] sm:$0xff] }
 0x392   :  { %15807 = vst [vmem:[#allocation3_spill] sm:$0xff] %v9408_v34  ;;  %15809 = vst [vmem:[#allocation8_spill] sm:$0xff] %v9412_v11  ;;  %v9428_v49 = vmul.f32 %v9280_v53, %v15816_v55  ;;  %v15818_v34 = vld [vmem:[#allocation24_spill] sm:$0xff]  ;;  %v15820_v11 = vld [vmem:[#allocation25_spill] sm:$0xff] }
 0x393   :  { %15811 = vst [vmem:[#allocation9_spill] sm:$0xff] %v9416_v62  ;;  %15815 = vst [vmem:[#allocation11_spill] sm:$0xff] %v9424_v42  ;;  %v9432_v47 = vmul.f32 %v9280_v53, %v15818_v34  ;;  %v9436_v7 = vmul.f32 %v9280_v53, %v15820_v11  ;;  %v15822_v62 = vld [vmem:[#allocation26_spill] sm:$0xff]  ;;  %v15824_v26 = vld [vmem:[#allocation27_spill] sm:$0xff] }
 0x394   :  { %15817 = vst [vmem:[#allocation12_spill] sm:$0xff] %v9428_v49  ;;  %v9440_v33 = vmul.f32 %v9280_v53, %v15822_v62  ;;  %v9444_v32 = vmul.f32 %v9280_v53, %v15824_v26  ;;  %v15826_v42 = vld [vmem:[#allocation28_spill] sm:$0xff]  ;;  %v15828_v49 = vld [vmem:[#allocation29_spill] sm:$0xff] }
 0x395   :  { %15819 = vst [vmem:[#allocation2_spill] sm:$0xff] %v9432_v47  ;;  %15821 = vst [vmem:[#allocation13_spill] sm:$0xff] %v9436_v7  ;;  %v9448_v55 = vmul.f32 %v9280_v53, %v15826_v42  ;;  %v9452_v34 = vmul.f32 %v9280_v53, %v15828_v49  ;;  %v15830_v47 = vld [vmem:[#allocation30_spill] sm:$0xff]  ;;  %v15832_v7 = vld [vmem:[#allocation31_spill] sm:$0xff] }
 0x396   :  { %15823 = vst [vmem:[#allocation14_spill] sm:$0xff] %v9440_v33  ;;  %15825 = vst [vmem:[#allocation18_spill] sm:$0xff] %v9444_v32  ;;  %v9456_v11 = vmul.f32 %v9280_v53, %v15830_v47  ;;  %v9460_v62 = vmul.f32 %v9280_v53, %v15832_v7  ;;  %v15834_v33 = vld [vmem:[#allocation32_spill] sm:$0xff]  ;;  %v15836_v32 = vld [vmem:[#allocation33_spill] sm:$0xff] }
 0x397   :  { %15827 = vst [vmem:[#allocation19_spill] sm:$0xff] %v9448_v55  ;;  %15829 = vst [vmem:[#allocation20_spill] sm:$0xff] %v9452_v34  ;;  %v9464_v26 = vmul.f32 %v9280_v53, %v15834_v33  ;;  %v9468_v42 = vmul.f32 %v9280_v53, %v15836_v32  ;;  %v15838_v55 = vld [vmem:[#allocation34_spill] sm:$0xff]  ;;  %v15840_v34 = vld [vmem:[#allocation35_spill] sm:$0xff] }
 0x398   :  { %15831 = vst [vmem:[#allocation21_spill] sm:$0xff] %v9456_v11  ;;  %15833 = vst [vmem:[#allocation22_spill] sm:$0xff] %v9460_v62  ;;  %v9472_v49 = vmul.f32 %v9280_v53, %v15838_v55  ;;  %v9476_v47 = vmul.f32 %v9280_v53, %v15840_v34  ;;  %v15842_v11 = vld [vmem:[#allocation36_spill] sm:$0xff]  ;;  %v15844_v62 = vld [vmem:[#allocation37_spill] sm:$0xff] }
 0x399   :  { %15835 = vst [vmem:[#allocation23_spill] sm:$0xff] %v9464_v26  ;;  %15837 = vst [vmem:[#allocation24_spill] sm:$0xff] %v9468_v42  ;;  %v9480_v7 = vmul.f32 %v9280_v53, %v15842_v11  ;;  %v9484_v33 = vmul.f32 %v9280_v53, %v15844_v62  ;;  %v15846_v26 = vld [vmem:[#allocation38_spill] sm:$0xff]  ;;  %v15848_v42 = vld [vmem:[#allocation39_spill] sm:$0xff] }
 0x39a   :  { %15839 = vst [vmem:[#allocation25_spill] sm:$0xff] %v9472_v49  ;;  %15841 = vst [vmem:[#allocation26_spill] sm:$0xff] %v9476_v47  ;;  %v9488_v32 = vmul.f32 %v9280_v53, %v15846_v26  ;;  %v9492_v55 = vmul.f32 %v9280_v53, %v15848_v42  ;;  %v15850_v49 = vld [vmem:[#allocation40_spill] sm:$0xff]  ;;  %v15852_v47 = vld [vmem:[#allocation41_spill] sm:$0xff]  ;;  %v9512_v42 = vmul.f32 %v9280_v53, %v9038_v15 }
 0x39b   :  { %15843 = vst [vmem:[#allocation27_spill] sm:$0xff] %v9480_v7  ;;  %15845 = vst [vmem:[#allocation28_spill] sm:$0xff] %v9484_v33  ;;  %v9496_v34 = vmul.f32 %v9280_v53, %v15850_v49  ;;  %v9500_v11 = vmul.f32 %v9280_v53, %v15852_v47  ;;  %v15854_v7 = vld [vmem:[#allocation43_spill] sm:$0xff]  ;;  %v15856_v33 = vld [vmem:[#allocation45_spill] sm:$0xff]  ;;  %v9516_v49 = vmul.f32 %v9280_v53, %v9042_v2 }
 0x39c   :  { %15847 = vst [vmem:[#allocation29_spill] sm:$0xff] %v9488_v32  ;;  %15849 = vst [vmem:[#allocation30_spill] sm:$0xff] %v9492_v55  ;;  %v9504_v62 = vmul.f32 %v9280_v53, %v15854_v7  ;;  %v9508_v26 = vmul.f32 %v9280_v53, %v15856_v33  ;;  %v9524_v7 = vmul.f32 %v9280_v53, %v9050_v29  ;;  %v15894_v55 = vld [vmem:[#allocation87_spill] sm:$0xff]  ;;  %v15895_v32 = vld [vmem:[#allocation77_spill] sm:$0xff] }
 0x39d   :  { %15851 = vst [vmem:[#allocation31_spill] sm:$0xff] %v9496_v34  ;;  %15853 = vst [vmem:[#allocation32_spill] sm:$0xff] %v9500_v11  ;;  %v15860_v34 = vld [vmem:[#allocation46_spill] sm:$0xff]  ;;  %v9528_v33 = vmul.f32 %v9280_v53, %v9054_v1  ;;  %v9532_v15 = vmul.f32 %v9280_v53, %v9058_v59  ;;  %v9536_v2 = vmul.f32 %v9280_v53, %v9062_v3 }
 0x39e   :  { %15855 = vst [vmem:[#allocation33_spill] sm:$0xff] %v9504_v62  ;;  %15857 = vst [vmem:[#allocation34_spill] sm:$0xff] %v9508_v26  ;;  %v9520_v47 = vmul.f32 %v9280_v53, %v15860_v34  ;;  %v9540_v34 = vmul.f32 %v9280_v53, %v9066_v17  ;;  %v9544_v29 = vmul.f32 %v9280_v53, %v9070_v10  ;;  %v15890_v26 = vld [vmem:[#allocation71_spill] sm:$0xff]  ;;  %v15892_v11 = vld [vmem:[#allocation86_spill] sm:$0xff] }
 0x39f   :  { %15858 = vst [vmem:[#allocation35_spill] sm:$0xff] %v9512_v42  ;;  %15859 = vst [vmem:[#allocation36_spill] sm:$0xff] %v9516_v49  ;;  %v9548_v1 = vmul.f32 %v9280_v53, %v9074_v54  ;;  %v9552_v59 = vmul.f32 %v9280_v53, %v9078_v61  ;;  %v9556_v3 = vmul.f32 %v9280_v53, %v9082_v27  ;;  %v15888_v49 = vld [vmem:[#allocation68_spill] sm:$0xff]  ;;  %v15889_v42 = vld [vmem:[#allocation70_spill] sm:$0xff] }
 0x3a0   :  { %15861 = vst [vmem:[#allocation37_spill] sm:$0xff] %v9520_v47  ;;  %15862 = vst [vmem:[#allocation38_spill] sm:$0xff] %v9524_v7  ;;  %v9560_v17 = vmul.f32 %v9280_v53, %v9086_v40  ;;  %v9564_v10 = vmul.f32 %v9280_v53, %v9090_v13  ;;  %v9568_v54 = vmul.f32 %v9280_v53, %v9094_v25  ;;  %v15886_v7 = vld [vmem:[#allocation65_spill] sm:$0xff]  ;;  %v15887_v47 = vld [vmem:[#allocation66_spill] sm:$0xff] }
 0x3a1   :  { %15863 = vst [vmem:[#allocation39_spill] sm:$0xff] %v9528_v33  ;;  %15864 = vst [vmem:[#allocation40_spill] sm:$0xff] %v9532_v15  ;;  %v9572_v61 = vmul.f32 %v9280_v53, %v9098_v50  ;;  %v9576_v27 = vmul.f32 %v9280_v53, %v9102_v14  ;;  %v9580_v40 = vmul.f32 %v9280_v53, %v9106_v28  ;;  %v15884_v15 = vld [vmem:[#allocation61_spill] sm:$0xff]  ;;  %v15885_v33 = vld [vmem:[#allocation63_spill] sm:$0xff] }
 0x3a2   :  { %15865 = vst [vmem:[#allocation41_spill] sm:$0xff] %v9536_v2  ;;  %15866 = vst [vmem:[#allocation43_spill] sm:$0xff] %v9540_v34  ;;  %v9584_v13 = vmul.f32 %v9280_v53, %v9110_v60  ;;  %v9588_v25 = vmul.f32 %v9280_v53, %v9114_v6  ;;  %v9592_v50 = vmul.f32 %v9280_v53, %v9118_v24  ;;  %v15882_v34 = vld [vmem:[#allocation58_spill] sm:$0xff]  ;;  %v15883_v2 = vld [vmem:[#allocation60_spill] sm:$0xff] }
 0x3a3   :  { %15867 = vst [vmem:[#allocation45_spill] sm:$0xff] %v9544_v29  ;;  %15868 = vst [vmem:[#allocation46_spill] sm:$0xff] %v9548_v1  ;;  %v9596_v14 = vmul.f32 %v9280_v53, %v9122_v20  ;;  %v9600_v28 = vmul.f32 %v9280_v53, %v9126_v58  ;;  %v9604_v60 = vmul.f32 %v9280_v53, %v9130_v23  ;;  %v15880_v1 = vld [vmem:[#allocation55_spill] sm:$0xff]  ;;  %v15881_v29 = vld [vmem:[#allocation57_spill] sm:$0xff] }
 0x3a4   :  { %15869 = vst [vmem:[#allocation88_spill] sm:$0xff] %v9552_v59  ;;  %15870 = vst [vmem:[#allocation89_spill] sm:$0xff] %v9556_v3  ;;  %v9608_v6 = vmul.f32 %v9280_v53, %v9134_v37  ;;  %v9612_v24 = vmul.f32 %v9280_v53, %v9138_v57  ;;  %v9616_v20 = vmul.f32 %v9280_v53, %v9142_v48  ;;  %v15878_v3 = vld [vmem:[#allocation52_spill] sm:$0xff]  ;;  %v15879_v59 = vld [vmem:[#allocation53_spill] sm:$0xff] }
 0x3a5   :  { %15871 = vst [vmem:[#allocation90_spill] sm:$0xff] %v9560_v17  ;;  %15872 = vst [vmem:[#allocation91_spill] sm:$0xff] %v9568_v54  ;;  %v9620_v58 = vmul.f32 %v9280_v53, %v9146_v19  ;;  %v9624_v23 = vmul.f32 %v9280_v53, %v9150_v39  ;;  %v9628_v37 = vmul.f32 %v9280_v53, %v9154_v9  ;;  %v15877_v17 = vld [vmem:[#allocation50_spill] sm:$0xff]  ;;  %v15891_v62 = vld [vmem:[#allocation75_spill] sm:$0xff] }
 0x3a6   :  { %15873 = vst [vmem:[#allocation92_spill] sm:$0xff] %v9572_v61  ;;  %15874 = vst [vmem:[#allocation93_spill] sm:$0xff] %v9576_v27  ;;  %v9632_v57 = vmul.f32 %v9280_v53, %v9158_v0  ;;  %v9636_v48 = vmul.f32 %v9280_v53, %v9162_v43  ;;  %v9640_v19 = vmul.f32 %v9280_v53, %v9166_v4  ;;  %v15875_v27 = vld [vmem:[#allocation47_spill] sm:$0xff]  ;;  %v15876_v61 = vld [vmem:[#allocation48_spill] sm:$0xff] }
 0x3a7   :  { %v9644_v39 = vmul.f32 %v9280_v53, %v9170_v8  ;;  %v9648_v9 = vmul.f32 %v9280_v53, %v9174_v18  ;;  %v9652_v0 = vmul.f32 %v9280_v53, %v9178_v22  ;;  %v9656_v43 = vmul.f32 %v9280_v53, %v9182_v31  ;;  %v15896_v54 = vld [vmem:[#allocation42_spill] sm:$0xff] }
 0x3a8   :  { %v9660_v4 = vmul.f32 %v9280_v53, %v9186_v35  ;;  %v9664_v8 = vmul.f32 %v9280_v53, %v9190_v41  ;;  %v9668_v18 = vmul.f32 %v9280_v53, %v9194_v45  ;;  %v9672_v22 = vmul.f32 %v9280_v53, %v9198_v51 }
 0x3a9   :  { %v9676_v31 = vmul.f32 %v9280_v53, %v9202_v56  ;;  %v9680_v35 = vmul.f32 %v9280_v53, %v9206_v63  ;;  %v9684_v41 = vmul.f32 %v9280_v53, %v9210_v5  ;;  %v9688_v45 = vmul.f32 %v9280_v53, %v9214_v16 }
 0x3aa   :  { %v9692_v51 = vmul.f32 %v9280_v53, %v15875_v27  ;;  %v9696_v56 = vmul.f32 %v9280_v53, %v15876_v61  ;;  %v9700_v63 = vmul.f32 %v9280_v53, %v15877_v17  ;;  %v9704_v5 = vmul.f32 %v9280_v53, %v15878_v3 }
 0x3ab   :  { %v9708_v16 = vmul.f32 %v9280_v53, %v15879_v59  ;;  %v9712_v27 = vmul.f32 %v9280_v53, %v15880_v1  ;;  %v9716_v61 = vmul.f32 %v9280_v53, %v15881_v29  ;;  %v9720_v17 = vmul.f32 %v9280_v53, %v15882_v34 }
 0x3ac   :  { %v9724_v3 = vmul.f32 %v9280_v53, %v15883_v2  ;;  %v9728_v59 = vmul.f32 %v9280_v53, %v15884_v15  ;;  %v9732_v1 = vmul.f32 %v9280_v53, %v15885_v33  ;;  %v9736_v29 = vmul.f32 %v9280_v53, %v15886_v7 }
 0x3ad   :  { %v9740_v34 = vmul.f32 %v9280_v53, %v15887_v47  ;;  %v9744_v2 = vmul.f32 %v9280_v53, %v15888_v49  ;;  %v9748_v15 = vmul.f32 %v9280_v53, %v15889_v42  ;;  %v9752_v33 = vmul.f32 %v9280_v53, %v15890_v26 }
 0x3ae   :  { %v9756_v7 = vmul.f32 %v9280_v53, %v15891_v62  ;;  %v9760_v47 = vmul.f32 %v9280_v53, %v15892_v11  ;;  %v9764_v49 = vmul.f32 %v9280_v53, %v15894_v55  ;;  %v9768_v42 = vmul.f32 %v9280_v53, %v15895_v32 }
 0x3af   :  { %v9772_v26 = vmul.f32 %v9280_v53, %v9304_v44  ;;  %v9776_v62 = vmul.f32 %v9280_v53, %v9308_v30  ;;  %v9780_v11 = vmul.f32 %v9280_v53, %v15896_v54  ;;  %v9788_v32 = vmul.f32 %v9280_v53, %v9320_v52 }
 0x3b0   :  { %15893 = vst [vmem:[#allocation47_spill] sm:$0xff] %v9760_v47  ;;  %v15897_v47 = vld [vmem:[#allocation44_spill] sm:$0xff]  ;;  %v9792_v44 = vmul.f32 %v9280_v53, %v9324_v38  ;;  %v9796_v30 = vmul.f32 %v9280_v53, %v9328_v21  ;;  %v9800_v54 = vmul.f32 %v9280_v53, %v9332_v36  ;;  %v9808_v52 = vmul.f32 %v9280_v53, %v9340_v12 }
 0x3b1   :  { %v9784_v55 = vmul.f32 %v9280_v53, %v15897_v47  ;;  %15899 = vst [vmem:[#allocation50_spill] sm:$0xff] %v9788_v32  ;;  %v9804_v47 = vmul.f32 %v9280_v53, %v9336_v46  ;;  %v15904_v32 = vld [vmem:[#allocation4_spill] sm:$0xff] }
 0x3b2   :  { %15900 = vst [vmem:[#allocation52_spill] sm:$0xff] %v9792_v44  ;;  %15901 = vst [vmem:[#allocation53_spill] sm:$0xff] %v9796_v30  ;;  %v9812_v38 = vmul.f32 %v9280_v53, %v15904_v32  ;;  %v15906_v44 = vld [vmem:[#allocation5_spill] sm:$0xff]  ;;  %v15908_v30 = vld [vmem:[#allocation6_spill] sm:$0xff] }
 0x3b3   :  { %15898 = vst [vmem:[#allocation48_spill] sm:$0xff] %v9784_v55  ;;  %15902 = vst [vmem:[#allocation55_spill] sm:$0xff] %v9800_v54  ;;  %v9816_v21 = vmul.f32 %v9280_v53, %v15906_v44  ;;  %v9820_v36 = vmul.f32 %v9280_v53, %v15908_v30  ;;  %v15910_v54 = vld [vmem:[#allocation79_spill] sm:$0xff]  ;;  %v15911_v55 = vld [vmem:[#allocation73_spill] sm:$0xff] }
 0x3b4   :  { %15903 = vst [vmem:[#allocation57_spill] sm:$0xff] %v9804_v47  ;;  %15905 = vst [vmem:[#allocation58_spill] sm:$0xff] %v9812_v38  ;;  %v9824_v46 = vadd.f32 %v15911_v55, %v15910_v54  ;;  %v15912_v47 = vld [vmem:[#allocation80_spill] sm:$0xff]  ;;  %v9832_v32 = vadd.f32 %v15911_v55, %v9564_v10  ;;  %v9836_v44 = vadd.f32 %v15911_v55, %v9580_v40 }
 0x3b5   :  { %15907 = vst [vmem:[#allocation60_spill] sm:$0xff] %v9816_v21  ;;  %15909 = vst [vmem:[#allocation61_spill] sm:$0xff] %v9820_v36  ;;  %v9828_v12 = vadd.f32 %v15911_v55, %v15912_v47  ;;  %v9840_v30 = vadd.f32 %v15911_v55, %v9584_v13  ;;  %v9844_v54 = vadd.f32 %v15911_v55, %v9588_v25 }
 0x3b6   :  { %15913 = vst [vmem:[#allocation63_spill] sm:$0xff] %v9832_v32  ;;  %v9848_v47 = vadd.f32 %v15911_v55, %v9592_v50  ;;  %v9852_v10 = vadd.f32 %v15911_v55, %v9596_v14  ;;  %v9856_v40 = vadd.f32 %v15911_v55, %v9600_v28  ;;  %v9860_v13 = vadd.f32 %v15911_v55, %v9604_v60 }
 0x3b7   :  { %v9864_v25 = vadd.f32 %v15911_v55, %v9608_v6  ;;  %v9868_v50 = vadd.f32 %v15911_v55, %v9612_v24  ;;  %v9872_v14 = vadd.f32 %v15911_v55, %v9616_v20  ;;  %v9876_v28 = vadd.f32 %v15911_v55, %v9620_v58  ;;  %v15914_v32 = vld [vmem:[#allocation47_spill] sm:$0xff] }
 0x3b8   :  { %v9880_v60 = vadd.f32 %v15911_v55, %v9624_v23  ;;  %v9884_v6 = vadd.f32 %v15911_v55, %v9628_v37  ;;  %v9888_v24 = vadd.f32 %v15911_v55, %v9632_v57  ;;  %v9892_v20 = vadd.f32 %v15911_v55, %v9636_v48  ;;  %v15918_v53 = vld [vmem:[#allocation50_spill] sm:$0xff] }
 0x3b9   :  { %v9896_v58 = vadd.f32 %v15911_v55, %v9640_v19  ;;  %v9900_v23 = vadd.f32 %v15911_v55, %v9644_v39  ;;  %v9904_v37 = vadd.f32 %v15911_v55, %v9648_v9  ;;  %v9908_v57 = vadd.f32 %v15911_v55, %v9652_v0  ;;  %v15920_v21 = vld [vmem:[#allocation52_spill] sm:$0xff]  ;;  %v15922_v38 = vld [vmem:[#allocation53_spill] sm:$0xff] }
 0x3ba   :  { %v9912_v48 = vadd.f32 %v15911_v55, %v9656_v43  ;;  %v9916_v19 = vadd.f32 %v15911_v55, %v9660_v4  ;;  %v9920_v39 = vadd.f32 %v15911_v55, %v9664_v8  ;;  %v9924_v9 = vadd.f32 %v15911_v55, %v9668_v18  ;;  %v15917_v36 = vld [vmem:[#allocation48_spill] sm:$0xff] }
 0x3bb   :  { %v9928_v0 = vadd.f32 %v15911_v55, %v9672_v22  ;;  %v9932_v43 = vadd.f32 %v15911_v55, %v9676_v31  ;;  %v9936_v4 = vadd.f32 %v15911_v55, %v9680_v35  ;;  %v9940_v8 = vadd.f32 %v15911_v55, %v9684_v41 }
 0x3bc   :  { %v9944_v18 = vadd.f32 %v15911_v55, %v9688_v45  ;;  %v9948_v22 = vadd.f32 %v15911_v55, %v9692_v51  ;;  %v9952_v31 = vadd.f32 %v15911_v55, %v9696_v56  ;;  %v9956_v35 = vadd.f32 %v15911_v55, %v9700_v63 }
 0x3bd   :  { %v9960_v41 = vadd.f32 %v15911_v55, %v9704_v5  ;;  %v9964_v45 = vadd.f32 %v15911_v55, %v9708_v16  ;;  %v9968_v51 = vadd.f32 %v15911_v55, %v9712_v27  ;;  %v9972_v56 = vadd.f32 %v15911_v55, %v9716_v61 }
 0x3be   :  { %v9976_v63 = vadd.f32 %v15911_v55, %v9720_v17  ;;  %v9980_v5 = vadd.f32 %v15911_v55, %v9724_v3  ;;  %v9984_v16 = vadd.f32 %v15911_v55, %v9728_v59  ;;  %v9988_v27 = vadd.f32 %v15911_v55, %v9732_v1 }
 0x3bf   :  { %v9992_v61 = vadd.f32 %v15911_v55, %v9736_v29  ;;  %v9996_v17 = vadd.f32 %v15911_v55, %v9740_v34  ;;  %v10000_v3 = vadd.f32 %v15911_v55, %v9744_v2  ;;  %v10004_v59 = vadd.f32 %v15911_v55, %v9748_v15 }
 0x3c0   :  { %v10008_v1 = vadd.f32 %v15911_v55, %v9752_v33  ;;  %v10012_v29 = vadd.f32 %v15911_v55, %v9756_v7  ;;  %v10016_v34 = vadd.f32 %v15911_v55, %v15914_v32  ;;  %v10020_v2 = vadd.f32 %v15911_v55, %v9764_v49 }
 0x3c1   :  { %v10024_v15 = vadd.f32 %v15911_v55, %v9768_v42  ;;  %v10028_v33 = vadd.f32 %v15911_v55, %v9772_v26  ;;  %v10032_v7 = vadd.f32 %v15911_v55, %v9776_v62  ;;  %v10036_v32 = vadd.f32 %v15911_v55, %v9780_v11 }
 0x3c2   :  { %v10040_v49 = vadd.f32 %v15911_v55, %v15917_v36  ;;  %v10044_v42 = vadd.f32 %v15911_v55, %v15918_v53  ;;  %v10048_v26 = vadd.f32 %v15911_v55, %v15920_v21  ;;  %v10052_v62 = vadd.f32 %v15911_v55, %v15922_v38 }
 0x3c3   :  { %15915 = vst [vmem:[#allocation65_spill] sm:$0xff] %v10032_v7  ;;  %15916 = vst [vmem:[#allocation66_spill] sm:$0xff] %v10036_v32  ;;  %v15924_v7 = vld [vmem:[#allocation55_spill] sm:$0xff]  ;;  %v15926_v32 = vld [vmem:[#allocation57_spill] sm:$0xff]  ;;  %v10064_v53 = vadd.f32 %v15911_v55, %v9808_v52  ;;  %v2112_v21 = vmax.f32 %v9828_v12, 0.0  ;;  %v2178_v38 = vmax.f32 %v9840_v30, 0.0 }
 0x3c4   :  { %15919 = vst [vmem:[#allocation68_spill] sm:$0xff] %v10044_v42  ;;  %15921 = vst [vmem:[#allocation70_spill] sm:$0xff] %v10048_v26  ;;  %v10056_v11 = vadd.f32 %v15911_v55, %v15924_v7  ;;  %v10060_v36 = vadd.f32 %v15911_v55, %v15926_v32  ;;  %v2111_v42 = vmax.f32 %v9824_v46, 0.0  ;;  %v2177_v26 = vmax.f32 %v9836_v44, 0.0 }
 0x3c5   :  { %15923 = vst [vmem:[#allocation71_spill] sm:$0xff] %v10052_v62  ;;  %15928 = vst [vmem:[#allocation87_spill] sm:$0xff] %v10064_v53  ;;  %v2179_v62 = vmax.f32 %v9844_v54, 0.0  ;;  %v2180_v7 = vmax.f32 %v9848_v47, 0.0  ;;  %v2182_v32 = vmax.f32 %v9856_v40, 0.0  ;;  %v2184_v52 = vmax.f32 %v9864_v25, 0.0 }
 0x3c6   :  { %15925 = vst [vmem:[#allocation75_spill] sm:$0xff] %v10056_v11  ;;  %15927 = vst [vmem:[#allocation86_spill] sm:$0xff] %v10060_v36  ;;  %v2181_v11 = vmax.f32 %v9852_v10, 0.0  ;;  %v2183_v36 = vmax.f32 %v9860_v13, 0.0  ;;  %v2185_v46 = vmax.f32 %v9868_v50, 0.0  ;;  %v2186_v12 = vmax.f32 %v9872_v14, 0.0 }
 0x3c7   :  { %v2187_v44 = vmax.f32 %v9876_v28, 0.0  ;;  %v2188_v30 = vmax.f32 %v9880_v60, 0.0  ;;  %v2189_v54 = vmax.f32 %v9884_v6, 0.0  ;;  %v2190_v47 = vmax.f32 %v9888_v24, 0.0 }
 0x3c8   :  { %v2191_v10 = vmax.f32 %v9892_v20, 0.0  ;;  %v2192_v40 = vmax.f32 %v9896_v58, 0.0  ;;  %v2193_v13 = vmax.f32 %v9900_v23, 0.0  ;;  %v2194_v25 = vmax.f32 %v9904_v37, 0.0 }
 0x3c9   :  { %v2195_v50 = vmax.f32 %v9908_v57, 0.0  ;;  %v2196_v14 = vmax.f32 %v9912_v48, 0.0  ;;  %v2197_v28 = vmax.f32 %v9916_v19, 0.0  ;;  %v2198_v60 = vmax.f32 %v9920_v39, 0.0 }
 0x3ca   :  { %v2199_v6 = vmax.f32 %v9924_v9, 0.0  ;;  %v2200_v24 = vmax.f32 %v9928_v0, 0.0  ;;  %v2201_v20 = vmax.f32 %v9932_v43, 0.0  ;;  %v2202_v58 = vmax.f32 %v9936_v4, 0.0  ;;  %v15929_v55 = vld [vmem:[#allocation65_spill] sm:$0xff]  ;;  %v15930_v53 = vld [vmem:[#allocation66_spill] sm:$0xff] }
 0x3cb   :  { %v2203_v23 = vmax.f32 %v9940_v8, 0.0  ;;  %v2204_v37 = vmax.f32 %v9944_v18, 0.0  ;;  %v2205_v57 = vmax.f32 %v9948_v22, 0.0  ;;  %v2206_v48 = vmax.f32 %v9952_v31, 0.0 }
 0x3cc   :  { %v2207_v19 = vmax.f32 %v9956_v35, 0.0  ;;  %v2208_v39 = vmax.f32 %v9960_v41, 0.0  ;;  %v2209_v9 = vmax.f32 %v9964_v45, 0.0  ;;  %v2210_v0 = vmax.f32 %v9968_v51, 0.0 }
 0x3cd   :  { %v2211_v43 = vmax.f32 %v9972_v56, 0.0  ;;  %v2212_v4 = vmax.f32 %v9976_v63, 0.0  ;;  %v2213_v8 = vmax.f32 %v9980_v5, 0.0  ;;  %v2214_v18 = vmax.f32 %v9984_v16, 0.0 }
 0x3ce   :  { %v2215_v22 = vmax.f32 %v9988_v27, 0.0  ;;  %v2216_v31 = vmax.f32 %v9992_v61, 0.0  ;;  %v2217_v35 = vmax.f32 %v9996_v17, 0.0  ;;  %v2218_v41 = vmax.f32 %v10000_v3, 0.0 }
 0x3cf   :  { %v2219_v45 = vmax.f32 %v10004_v59, 0.0  ;;  %v2220_v51 = vmax.f32 %v10008_v1, 0.0  ;;  %v2221_v56 = vmax.f32 %v10012_v29, 0.0  ;;  %v2222_v63 = vmax.f32 %v10016_v34, 0.0  ;;  %v15931_v59 = vld [vmem:[#allocation68_spill] sm:$0xff]  ;;  %v15932_v29 = vld [vmem:[#allocation70_spill] sm:$0xff] }
 0x3d0   :  { %v2223_v5 = vmax.f32 %v10020_v2, 0.0  ;;  %v2224_v16 = vmax.f32 %v10024_v15, 0.0  ;;  %v2225_v27 = vmax.f32 %v10028_v33, 0.0  ;;  %v2226_v61 = vmax.f32 %v15929_v55, 0.0  ;;  %v15933_v2 = vld [vmem:[#allocation71_spill] sm:$0xff] }
 0x3d1   :  { %v2227_v17 = vmax.f32 %v15930_v53, 0.0  ;;  %v2228_v3 = vmax.f32 %v10040_v49, 0.0  ;;  %v2229_v1 = vmax.f32 %v15931_v59, 0.0  ;;  %v2230_v34 = vmax.f32 %v15932_v29, 0.0  ;;  %v15934_v33 = vld [vmem:[#allocation75_spill] sm:$0xff]  ;;  %v15935_v53 = vld [vmem:[#allocation86_spill] sm:$0xff] }
 0x3d2   :  { %v2231_v15 = vmax.f32 %v15933_v2, 0.0  ;;  %v2232_v55 = vmax.f32 %v15934_v33, 0.0  ;;  %v2233_v49 = vmax.f32 %v15935_v53, 0.0  ;;  %v15936_v59 = vld [vmem:[#allocation87_spill] sm:$0xff]  ;;  %v2236_v2 = vpack.c.bf16 %v2112_v21, %v2111_v42 }
 0x3d3   :  { %v2234_v29 = vmax.f32 %v15936_v59, 0.0  ;;  %v10126_v33 = vpack.c.bf16 %v2178_v38, %v2177_v26  ;;  %v10128_v53 = vpack.c.bf16 %v2180_v7, %v2179_v62  ;;  %v10130_v59 = vpack.c.bf16 %v2182_v32, %v2181_v11 }
 0x3d4   :  { %v10132_v21 = vpack.c.bf16 %v2184_v52, %v2183_v36  ;;  %v10134_v42 = vpack.c.bf16 %v2186_v12, %v2185_v46  ;;  %v10136_v26 = vpack.c.bf16 %v2188_v30, %v2187_v44  ;;  %v10138_v38 = vpack.c.bf16 %v2190_v47, %v2189_v54  ;;  %5910 = vmatmul.mubr.msk.bf16.vlgmr.msra.gmra.mrb[124].mxu1 %vm962_vm2, %v2236_v2 }
 0x3d5   :  { %15937 = vst [vmem:[#allocation77_spill] sm:$0xff] %v10126_v33  ;;  %15938 = vst [vmem:[#allocation42_spill] sm:$0xff] %v10128_v53  ;;  %v10140_v33 = vpack.c.bf16 %v2192_v40, %v2191_v10  ;;  %v10142_v7 = vpack.c.bf16 %v2194_v25, %v2193_v13  ;;  %v10144_v62 = vpack.c.bf16 %v2196_v14, %v2195_v50  ;;  %v15939_v46 = vmov 0.0  }
 0x3d6   :  { %v10146_v53 = vpack.c.bf16 %v2198_v60, %v2197_v28  ;;  %v10149_v11 = vpack.c.bf16 %v2200_v24, %v2199_v6  ;;  %v10151_v36 = vpack.c.bf16 %v2202_v58, %v2201_v20  ;;  %v10153_v32 = vpack.c.bf16 %v2204_v37, %v2203_v23  ;;  %5913 = vmatprep.mubr.msk.bf16.mxu1 %vm6434_vm0, %v15939_v46  ;;  %v15953_v24 = vld [vmem:[#allocation49_spill] sm:$0xff]  ;;  %v15955_v23 = vld [vmem:[#allocation51_spill] sm:$0xff] }
 0x3d7   :  { %v10155_v52 = vpack.c.bf16 %v2206_v48, %v2205_v57  ;;  %v10159_v12 = vpack.c.bf16 %v2208_v39, %v2207_v19  ;;  %v10161_v44 = vpack.c.bf16 %v2210_v0, %v2209_v9  ;;  %v10163_v30 = vpack.c.bf16 %v2212_v4, %v2211_v43  ;;  %v15954_v20 = vld [vmem:[#allocation73_spill] sm:$0xff]  ;;  %v15956_v57 = vld [vmem:[#allocation54_spill] sm:$0xff]  ;;  %v15957_v19 = vld [vmem:[#allocation56_spill] sm:$0xff] }
 0x3d8   :  { %v10165_v54 = vpack.c.bf16 %v2214_v18, %v2213_v8  ;;  %v10167_v47 = vpack.c.bf16 %v2216_v31, %v2215_v22  ;;  %v10169_v10 = vpack.c.bf16 %v2218_v41, %v2217_v35  ;;  %v10171_v40 = vpack.c.bf16 %v2220_v51, %v2219_v45  ;;  %v15958_v9 = vld [vmem:[#allocation85_spill] sm:$0xff]  ;;  %v15960_v22 = vld [vmem:[#allocation72_spill] sm:$0xff]  ;;  %v15961_v35 = vld [vmem:[#allocation58_spill] sm:$0xff] }
 0x3d9   :  { %15940 = vst [vmem:[#allocation44_spill] sm:$0xff] %v10161_v44  ;;  %15941 = vst [vmem:[#allocation4_spill] sm:$0xff] %v10163_v30  ;;  %v10173_v13 = vpack.c.bf16 %v2222_v63, %v2221_v56  ;;  %v10175_v25 = vpack.c.bf16 %v2224_v16, %v2223_v5  ;;  %v10177_v50 = vpack.c.bf16 %v2226_v61, %v2225_v27  ;;  %v15959_v43 = vld [vmem:[#allocation81_spill] sm:$0xff]  ;;  %v15962_v45 = vld [vmem:[#allocation15_spill] sm:$0xff] }
 0x3da   :  { %15942 = vst [vmem:[#allocation5_spill] sm:$0xff] %v10165_v54  ;;  %15943 = vst [vmem:[#allocation6_spill] sm:$0xff] %v10167_v47  ;;  %v10179_v14 = vpack.c.bf16 %v2228_v3, %v2227_v17  ;;  %v10181_v28 = vpack.c.bf16 %v2230_v34, %v2229_v1  ;;  %v10183_v60 = vpack.c.bf16 %v2232_v55, %v2231_v15  ;;  %v15963_v51 = vld [vmem:[#allocation84_spill] sm:$0xff]  ;;  %v15964_v63 = vld [vmem:[#allocation91_spill] sm:$0xff] }
 0x3db   :  { %15944 = vst [vmem:[#allocation79_spill] sm:$0xff] %v10169_v10  ;;  %15945 = vst [vmem:[#allocation80_spill] sm:$0xff] %v10171_v40  ;;  %v10185_v6 = vpack.c.bf16 %v2234_v29, %v2233_v49  ;;  %v1988_v58 = vadd.f32 %v15954_v20, %v15953_v24  ;;  %v1989_v37 = vadd.f32 %v15954_v20, %v15955_v23  ;;  %v15965_v1 = vld [vmem:[#allocation60_spill] sm:$0xff]  ;;  %v15966_v15 = vld [vmem:[#allocation7_spill] sm:$0xff] }
 0x3dc   :  { %15946 = vst [vmem:[#allocation47_spill] sm:$0xff] %v10173_v13  ;;  %15947 = vst [vmem:[#allocation48_spill] sm:$0xff] %v10175_v25  ;;  %v1990_v48 = vadd.f32 %v15954_v20, %v15956_v57  ;;  %v1991_v39 = vadd.f32 %v15954_v20, %v15957_v19  ;;  %v1992_v0 = vadd.f32 %v15954_v20, %v15958_v9  ;;  %v15967_v55 = vld [vmem:[#allocation74_spill] sm:$0xff]  ;;  %v15968_v24 = vld [vmem:[#allocation61_spill] sm:$0xff] }
 0x3dd   :  { %15948 = vst [vmem:[#allocation50_spill] sm:$0xff] %v10177_v50  ;;  %15949 = vst [vmem:[#allocation52_spill] sm:$0xff] %v10179_v14  ;;  %v1993_v4 = vadd.f32 %v15954_v20, %v15959_v43  ;;  %v2113_v8 = vmax.f32 %v1988_v58, 0.0  ;;  %v2114_v18 = vmax.f32 %v1989_v37, 0.0  ;;  %v1994_v31 = vadd.f32 %v15954_v20, %v15960_v22  ;;  %v15969_v23 = vld [vmem:[#allocation16_spill] sm:$0xff]  ;;  %v15971_v43 = vld [vmem:[#allocation59_spill] sm:$0xff] }
 0x3de   :  { %15950 = vst [vmem:[#allocation53_spill] sm:$0xff] %v10181_v28  ;;  %15951 = vst [vmem:[#allocation55_spill] sm:$0xff] %v10183_v60  ;;  %v1995_v41 = vadd.f32 %v15954_v20, %v15961_v35  ;;  %v1743_v56 = vmul.f32 %v15963_v51, %v15962_v45  ;;  %v10207_v5 = vadd.f32 %v15954_v20, %v15964_v63  ;;  %v2115_v16 = vmax.f32 %v1990_v48, 0.0  ;;  %v15970_v48 = vld [vmem:[#allocation63_spill] sm:$0xff]  ;;  %v15972_v22 = vld [vmem:[#allocation62_spill] sm:$0xff] }
 0x3df   :  { %15952 = vst [vmem:[#allocation57_spill] sm:$0xff] %v10185_v6  ;;  %v2116_v27 = vmax.f32 %v1991_v39, 0.0  ;;  %v2237_v61 = vpack.c.bf16 %v2114_v18, %v2113_v8  ;;  %v2117_v17 = vmax.f32 %v1992_v0, 0.0  ;;  %v2118_v3 = vmax.f32 %v1993_v4, 0.0  ;;  %v15973_v35 = vld [vmem:[#allocation64_spill] sm:$0xff]  ;;  %v15987_v19 = vld [vmem:[#allocation18_spill] sm:$0xff] }
 0x3e0   :  { %v1996_v34 = vadd.f32 %v15954_v20, %v15965_v1  ;;  %v1869_v49 = vmul.f32 %v15967_v55, %v15966_v15  ;;  %v2119_v29 = vmax.f32 %v1994_v31, 0.0  ;;  %v2120_v2 = vmax.f32 %v1995_v41, 0.0  ;;  %v16003_v13 = vld [vmem:[#allocation34_spill] sm:$0xff]  ;;  %v16011_v10 = vld [vmem:[#allocation43_spill] sm:$0xff]  ;;  %v16020_v44 = vld [vmem:[#allocation17_spill] sm:$0xff] }
 0x3e1   :  { %v1997_v58 = vadd.f32 %v15954_v20, %v15968_v24  ;;  %v10217_v37 = vmul.f32 %v15963_v51, %v15969_v23  ;;  %v1870_v57 = vmul.f32 %v15967_v55, %v1743_v56  ;;  %5914 = vmatmul.mubr.msk.bf16.gmra.mrb[128].mxu1 %vm962_vm2, %v2237_v61  ;;  %v2002_v4 = vadd.f32 %v15954_v20, %v15971_v43  ;;  %v15974_v61 = vld [vmem:[#allocation67_spill] sm:$0xff] }
 0x3e2   :  { %5917 = vmatprep.mubr.msk.bf16.mxu1 %vm6434_vm0, %v15939_v46  ;;  %v2121_v9 = vmax.f32 %v1996_v34, 0.0  ;;  %v2238_v8 = vpack.c.bf16 %v2116_v27, %v2115_v16  ;;  %v2239_v18 = vpack.c.bf16 %v2118_v3, %v2117_v17  ;;  %v2003_v31 = vadd.f32 %v15954_v20, %v15972_v22  ;;  %v15975_v17 = vld [vmem:[#allocation69_spill] sm:$0xff]  ;;  %v15979_v22 = vld [vmem:[#allocation8_spill] sm:$0xff] }
 0x3e3   :  { %v2122_v0 = vmax.f32 %v1997_v58, 0.0  ;;  %v2004_v41 = vadd.f32 %v15954_v20, %v15973_v35  ;;  %v10231_v45 = vpack.c.bf16 %v2120_v2, %v2119_v29  ;;  %v10234_v56 = vadd.f32 %v15954_v20, %v1869_v49  ;;  %v15976_v29 = vld [vmem:[#allocation76_spill] sm:$0xff]  ;;  %v15977_v49 = vld [vmem:[#allocation82_spill] sm:$0xff] }
 0x3e4   :  { %v2127_v63 = vmax.f32 %v2002_v4, 0.0  ;;  %v2005_v1 = vadd.f32 %v15954_v20, %v15974_v61  ;;  %v10239_v34 = vadd.f32 %v15954_v20, %v1870_v57  ;;  %v2128_v16 = vmax.f32 %v2003_v31, 0.0  ;;  %v15978_v4 = vld [vmem:[#allocation3_spill] sm:$0xff] }
 0x3e5   :  { %v2129_v27 = vmax.f32 %v2004_v41, 0.0  ;;  %v2006_v3 = vadd.f32 %v15954_v20, %v15975_v17  ;;  %v10243_v15 = vpack.c.bf16 %v2122_v0, %v2121_v9  ;;  %v2007_v2 = vadd.f32 %v15954_v20, %v15976_v29  ;;  %v15980_v41 = vld [vmem:[#allocation9_spill] sm:$0xff] }
 0x3e6   :  { %v2130_v24 = vmax.f32 %v2005_v1, 0.0  ;;  %v2008_v58 = vadd.f32 %v15954_v20, %v15977_v49  ;;  %v10249_v23 = vpack.c.bf16 %v2128_v16, %v2127_v63  ;;  %v2009_v57 = vadd.f32 %v15954_v20, %v15978_v4  ;;  %v15981_v63 = vld [vmem:[#allocation10_spill] sm:$0xff] }
 0x3e7   :  { %v2131_v43 = vmax.f32 %v2006_v3, 0.0  ;;  %v2010_v31 = vadd.f32 %v15954_v20, %v15979_v22  ;;  %v2132_v9 = vmax.f32 %v2007_v2, 0.0  ;;  %v2011_v61 = vadd.f32 %v15954_v20, %v15980_v41  ;;  %v15982_v3 = vld [vmem:[#allocation11_spill] sm:$0xff]  ;;  %v15983_v2 = vld [vmem:[#allocation12_spill] sm:$0xff] }
 0x3e8   :  { %v10255_v35 = vpack.c.bf16 %v2130_v24, %v2129_v27  ;;  %v2133_v0 = vmax.f32 %v2008_v58, 0.0  ;;  %v2134_v1 = vmax.f32 %v2009_v57, 0.0  ;;  %v2012_v16 = vadd.f32 %v15954_v20, %v15981_v63  ;;  %v15984_v58 = vld [vmem:[#allocation2_spill] sm:$0xff] }
 0x3e9   :  { %5918 = vmatmul.mubr.msk.bf16.gmra.mrb[132].mxu1 %vm962_vm2, %v2238_v8  ;;  %v2135_v17 = vmax.f32 %v2010_v31, 0.0  ;;  %v2013_v29 = vadd.f32 %v15954_v20, %v15982_v3  ;;  %v10266_v27 = vpack.c.bf16 %v2132_v9, %v2131_v43  ;;  %v2136_v24 = vmax.f32 %v2011_v61, 0.0  ;;  %v15985_v31 = vld [vmem:[#allocation13_spill] sm:$0xff]  ;;  %v15986_v43 = vld [vmem:[#allocation14_spill] sm:$0xff] }
 0x3ea   :  { %5921 = vmatprep.mubr.msk.bf16.mxu1 %vm6434_vm0, %v15939_v46  ;;  %v2014_v49 = vadd.f32 %v15954_v20, %v15983_v2  ;;  %v2015_v8 = vadd.f32 %v15954_v20, %v15984_v58  ;;  %v10272_v4 = vpack.c.bf16 %v2134_v1, %v2133_v0  ;;  %v2137_v57 = vmax.f32 %v2012_v16, 0.0  ;;  %v15988_v0 = vld [vmem:[#allocation19_spill] sm:$0xff] }
 0x3eb   :  { %v2138_v22 = vmax.f32 %v2013_v29, 0.0  ;;  %v2016_v41 = vadd.f32 %v15954_v20, %v15985_v31  ;;  %v10276_v63 = vpack.c.bf16 %v2136_v24, %v2135_v17  ;;  %v2017_v9 = vadd.f32 %v15954_v20, %v15986_v43  ;;  %v15989_v31 = vld [vmem:[#allocation20_spill] sm:$0xff]  ;;  %v15990_v24 = vld [vmem:[#allocation21_spill] sm:$0xff] }
 0x3ec   :  { %v2139_v3 = vmax.f32 %v2014_v49, 0.0  ;;  %v2140_v39 = vmax.f32 %v2015_v8, 0.0  ;;  %v2018_v58 = vadd.f32 %v15954_v20, %v15987_v19  ;;  %v2019_v1 = vadd.f32 %v15954_v20, %v15988_v0 }
 0x3ed   :  { %v10280_v61 = vpack.c.bf16 %v2138_v22, %v2137_v57  ;;  %v2141_v2 = vmax.f32 %v2016_v41, 0.0  ;;  %v2142_v29 = vmax.f32 %v2017_v9, 0.0  ;;  %v2020_v17 = vadd.f32 %v15954_v20, %v15989_v31  ;;  %v15991_v57 = vld [vmem:[#allocation22_spill] sm:$0xff]  ;;  %v15992_v41 = vld [vmem:[#allocation23_spill] sm:$0xff] }
 0x3ee   :  { %v10286_v16 = vpack.c.bf16 %v2140_v39, %v2139_v3  ;;  %v2021_v49 = vadd.f32 %v15954_v20, %v15990_v24  ;;  %v2143_v8 = vmax.f32 %v2018_v58, 0.0  ;;  %v2144_v43 = vmax.f32 %v2019_v1, 0.0  ;;  %v15993_v3 = vld [vmem:[#allocation24_spill] sm:$0xff]  ;;  %v15994_v1 = vld [vmem:[#allocation25_spill] sm:$0xff] }
 0x3ef   :  { %v2022_v22 = vadd.f32 %v15954_v20, %v15991_v57  ;;  %v2023_v19 = vadd.f32 %v15954_v20, %v15992_v41  ;;  %v10296_v6 = vpack.c.bf16 %v2142_v29, %v2141_v2  ;;  %v2145_v0 = vmax.f32 %v2020_v17, 0.0  ;;  %v15995_v29 = vld [vmem:[#allocation26_spill] sm:$0xff] }
 0x3f0   :  { %v2146_v39 = vmax.f32 %v2021_v49, 0.0  ;;  %v2024_v9 = vadd.f32 %v15954_v20, %v15993_v3  ;;  %v10301_v31 = vpack.c.bf16 %v2144_v43, %v2143_v8  ;;  %v2025_v60 = vadd.f32 %v15954_v20, %v15994_v1  ;;  %v15996_v49 = vld [vmem:[#allocation27_spill] sm:$0xff]  ;;  %v15997_v43 = vld [vmem:[#allocation28_spill] sm:$0xff] }
 0x3f1   :  { %5922 = vmatmul.mubr.msk.bf16.gmra.mrb[136].mxu1 %vm962_vm2, %v2239_v18  ;;  %v2147_v24 = vmax.f32 %v2022_v22, 0.0  ;;  %v2148_v58 = vmax.f32 %v2023_v19, 0.0  ;;  %v2026_v17 = vadd.f32 %v15954_v20, %v15995_v29  ;;  %v2027_v41 = vadd.f32 %v15954_v20, %v15996_v49  ;;  %v15998_v19 = vld [vmem:[#allocation29_spill] sm:$0xff] }
 0x3f2   :  { %5925 = vmatprep.mubr.msk.bf16.mxu1 %vm6434_vm0, %v15939_v46  ;;  %v10307_v57 = vpack.c.bf16 %v2146_v39, %v2145_v0  ;;  %v2149_v2 = vmax.f32 %v2024_v9, 0.0  ;;  %v2150_v8 = vmax.f32 %v2025_v60, 0.0  ;;  %v2028_v22 = vadd.f32 %v15954_v20, %v15997_v43  ;;  %v15999_v0 = vld [vmem:[#allocation30_spill] sm:$0xff]  ;;  %v16000_v9 = vld [vmem:[#allocation31_spill] sm:$0xff] }
 0x3f3   :  { %v10313_v18 = vpack.c.bf16 %v2148_v58, %v2147_v24  ;;  %v2029_v3 = vadd.f32 %v15954_v20, %v15998_v19  ;;  %v2151_v1 = vmax.f32 %v2026_v17, 0.0  ;;  %v2152_v28 = vmax.f32 %v2027_v41, 0.0  ;;  %v16001_v58 = vld [vmem:[#allocation32_spill] sm:$0xff]  ;;  %v16002_v19 = vld [vmem:[#allocation33_spill] sm:$0xff] }
 0x3f4   :  { %v2030_v39 = vadd.f32 %v15954_v20, %v15999_v0  ;;  %v2031_v29 = vadd.f32 %v15954_v20, %v16000_v9  ;;  %v10323_v14 = vpack.c.bf16 %v2150_v8, %v2149_v2  ;;  %v2153_v49 = vmax.f32 %v2028_v22, 0.0  ;;  %v16004_v2 = vld [vmem:[#allocation35_spill] sm:$0xff] }
 0x3f5   :  { %v2154_v24 = vmax.f32 %v2029_v3, 0.0  ;;  %v2032_v60 = vadd.f32 %v15954_v20, %v16001_v58  ;;  %v10327_v50 = vpack.c.bf16 %v2152_v28, %v2151_v1  ;;  %v2033_v17 = vadd.f32 %v15954_v20, %v16002_v19  ;;  %v16005_v58 = vld [vmem:[#allocation36_spill] sm:$0xff]  ;;  %v16006_v1 = vld [vmem:[#allocation37_spill] sm:$0xff] }
 0x3f6   :  { %v2155_v43 = vmax.f32 %v2030_v39, 0.0  ;;  %v2156_v25 = vmax.f32 %v2031_v29, 0.0  ;;  %v2034_v9 = vadd.f32 %v15954_v20, %v16003_v13  ;;  %v2035_v8 = vadd.f32 %v15954_v20, %v16004_v2  ;;  %v16009_v2 = vld [vmem:[#allocation40_spill] sm:$0xff] }
 0x3f7   :  { %v10331_v41 = vpack.c.bf16 %v2154_v24, %v2153_v49  ;;  %v2157_v0 = vmax.f32 %v2032_v60, 0.0  ;;  %v2158_v3 = vmax.f32 %v2033_v17, 0.0  ;;  %v2036_v28 = vadd.f32 %v15954_v20, %v16005_v58  ;;  %v16007_v24 = vld [vmem:[#allocation38_spill] sm:$0xff]  ;;  %v16008_v60 = vld [vmem:[#allocation39_spill] sm:$0xff] }
 0x3f8   :  { %v10337_v22 = vpack.c.bf16 %v2156_v25, %v2155_v43  ;;  %v2037_v39 = vadd.f32 %v15954_v20, %v16006_v1  ;;  %v2159_v29 = vmax.f32 %v2034_v9, 0.0  ;;  %v2160_v49 = vmax.f32 %v2035_v8, 0.0  ;;  %v16010_v8 = vld [vmem:[#allocation41_spill] sm:$0xff] }
 0x3f9   :  { %5926 = vmatmul.mubr.msk.bf16.gmra.mrb[140].mxu1 %vm962_vm2, %v10231_v45  ;;  %v2038_v13 = vadd.f32 %v15954_v20, %v16007_v24  ;;  %v2039_v19 = vadd.f32 %v15954_v20, %v16008_v60  ;;  %v10351_v25 = vpack.c.bf16 %v2158_v3, %v2157_v0  ;;  %v2161_v43 = vmax.f32 %v2036_v28, 0.0  ;;  %v16012_v0 = vld [vmem:[#allocation45_spill] sm:$0xff] }
 0x3fa   :  { %5929 = vmatprep.mubr.msk.bf16.mxu1 %vm6434_vm0, %v15939_v46  ;;  %v2162_v17 = vmax.f32 %v2037_v39, 0.0  ;;  %v2040_v58 = vadd.f32 %v15954_v20, %v16009_v2  ;;  %v10355_v1 = vpack.c.bf16 %v2160_v49, %v2159_v29  ;;  %v2041_v24 = vadd.f32 %v15954_v20, %v16010_v8  ;;  %v16013_v2 = vld [vmem:[#allocation46_spill] sm:$0xff]  ;;  %v16014_v49 = vld [vmem:[#allocation88_spill] sm:$0xff] }
 0x3fb   :  { %v2163_v45 = vmax.f32 %v2038_v13, 0.0  ;;  %v2164_v9 = vmax.f32 %v2039_v19, 0.0  ;;  %v2042_v47 = vadd.f32 %v15954_v20, %v16011_v10  ;;  %v2043_v3 = vadd.f32 %v15954_v20, %v16012_v0 }
 0x3fc   :  { %v10359_v40 = vpack.c.bf16 %v2162_v17, %v2161_v43  ;;  %v2165_v60 = vmax.f32 %v2040_v58, 0.0  ;;  %v2166_v39 = vmax.f32 %v2041_v24, 0.0  ;;  %v2044_v29 = vadd.f32 %v15954_v20, %v16013_v2  ;;  %v16015_v43 = vld [vmem:[#allocation89_spill] sm:$0xff]  ;;  %v16016_v58 = vld [vmem:[#allocation90_spill] sm:$0xff] }
 0x3fd   :  { %v10365_v28 = vpack.c.bf16 %v2164_v9, %v2163_v45  ;;  %v2045_v13 = vadd.f32 %v15954_v20, %v16014_v49  ;;  %v2167_v19 = vmax.f32 %v2042_v47, 0.0  ;;  %v2168_v8 = vmax.f32 %v2043_v3, 0.0  ;;  %v16019_v49 = vld [vmem:[#allocation92_spill] sm:$0xff] }
 0x3fe   :  { %v2046_v17 = vadd.f32 %v15954_v20, %v16015_v43  ;;  %v2047_v10 = vadd.f32 %v15954_v20, %v16016_v58  ;;  %v10375_v54 = vpack.c.bf16 %v2166_v39, %v2165_v60  ;;  %v2169_v0 = vmax.f32 %v2044_v29, 0.0 }
 0x3ff   :  { %v2170_v45 = vmax.f32 %v2045_v13, 0.0  ;;  %v16017_v9 = vmax.f32 %v15970_v48, 0.0  ;;  %v16018_v24 = vmax.f32 %v10207_v5, 0.0  ;;  %v10383_v30 = vpack.c.bf16 %v2168_v8, %v2167_v19  ;;  %v16021_v48 = vld [vmem:[#allocation93_spill] sm:$0xff] }
 0x400   :  { %v2171_v47 = vmax.f32 %v2046_v17, 0.0  ;;  %v2172_v3 = vmax.f32 %v2047_v10, 0.0  ;;  %v2050_v43 = vadd.f32 %v15954_v20, %v16019_v49  ;;  %v1745_v58 = vmul.f32 %v15963_v51, %v16020_v44  ;;  %v16022_v49 = vld [vmem:[#allocation77_spill] sm:$0xff] }
 0x401   :  { %v10381_v2 = vpack.c.bf16 %v16018_v24, %v16017_v9  ;;  %5930 = vmatmul.mubr.msk.bf16.gmra.mrb[144].mxu1 %vm962_vm2, %v10243_v15  ;;  %v10391_v60 = vpack.c.bf16 %v2170_v45, %v2169_v0  ;;  %v2051_v5 = vadd.f32 %v15954_v20, %v16021_v48  ;;  %v1871_v39 = vmul.f32 %v15967_v55, %v10217_v37 }
 0x402   :  { %5933 = vmatprep.mubr.msk.bf16.mxu1 %vm6434_vm0, %v15939_v46  ;;  %v10399_v29 = vpack.c.bf16 %v2172_v3, %v2171_v47  ;;  %v2175_v13 = vmax.f32 %v2050_v43, 0.0  ;;  %v1872_v19 = vmul.f32 %v15967_v55, %v1745_v58  ;;  %v2123_v44 = vmax.f32 %v10234_v56, 0.0 }
 0x403   :  { %v2124_v51 = vmax.f32 %v10239_v34, 0.0  ;;  %v2176_v15 = vmax.f32 %v2051_v5, 0.0  ;;  %v2000_v10 = vadd.f32 %v15954_v20, %v1871_v39  ;;  %v16023_v5 = vld [vmem:[#allocation42_spill] sm:$0xff] }
 0x404   :  { %v2001_v37 = vadd.f32 %v15954_v20, %v1872_v19 }
 0x405   :  { %v10404_v8 = vpack.c.bf16 %v2176_v15, %v2175_v13  ;;  %v2242_v17 = vpack.c.bf16 %v2124_v51, %v2123_v44  ;;  %v2125_v0 = vmax.f32 %v2000_v10, 0.0 }
 0x406   :  { %v2126_v45 = vmax.f32 %v2001_v37, 0.0 }
 0x408   :  { %v2243_v55 = vpack.c.bf16 %v2126_v45, %v2125_v0 }
 0x409   :  { %5934 = vmatmul.mubr.msk.bf16.gmra.mrb[148].mxu1 %vm962_vm2, %v2242_v17 }
 0x40a   :  { %5937 = vmatprep.mubr.msk.bf16.mxu1 %vm6434_vm0, %v15939_v46 }
 0x411   :  { %5938 = vmatmul.mubr.msk.bf16.gmra.mrb[152].mxu1 %vm962_vm2, %v2243_v55 }
 0x412   :  { %5941 = vmatprep.mubr.msk.bf16.mxu1 %vm6434_vm0, %v15939_v46 }
 0x419   :  { %5942 = vmatmul.mubr.msk.bf16.gmra.mrb[156].mxu1 %vm962_vm2, %v10249_v23 }
 0x41a   :  { %5945 = vmatprep.mubr.msk.bf16.mxu1 %vm6434_vm0, %v15939_v46 }
 0x421   :  { %5946 = vmatmul.mubr.msk.bf16.gmra.mrb[160].mxu1 %vm962_vm2, %v10255_v35 }
 0x422   :  { %5949 = vmatprep.mubr.msk.bf16.mxu1 %vm6434_vm0, %v15939_v46 }
 0x429   :  { %5950 = vmatmul.mubr.msk.bf16.gmra.mrb[164].mxu1 %vm962_vm2, %v10266_v27 }
 0x42a   :  { %5953 = vmatprep.mubr.msk.bf16.mxu1 %vm6434_vm0, %v15939_v46 }
 0x431   :  { %5954 = vmatmul.mubr.msk.bf16.gmra.mrb[168].mxu1 %vm962_vm2, %v10272_v4 }
 0x432   :  { %5957 = vmatprep.mubr.msk.bf16.mxu1 %vm6434_vm0, %v15939_v46 }
 0x439   :  { %5958 = vmatmul.mubr.msk.bf16.gmra.mrb[172].mxu1 %vm962_vm2, %v10276_v63 }
 0x43a   :  { %5961 = vmatprep.mubr.msk.bf16.mxu1 %vm6434_vm0, %v15939_v46 }
 0x441   :  { %5962 = vmatmul.mubr.msk.bf16.gmra.mrb[176].mxu1 %vm962_vm2, %v10280_v61 }
 0x442   :  { %5965 = vmatprep.mubr.msk.bf16.mxu1 %vm6434_vm0, %v15939_v46 }
 0x449   :  { %5966 = vmatmul.mubr.msk.bf16.gmra.mrb[180].mxu1 %vm962_vm2, %v10286_v16 }
 0x44a   :  { %5969 = vmatprep.mubr.msk.bf16.mxu1 %vm6434_vm0, %v15939_v46 }
 0x451   :  { %5970 = vmatmul.mubr.msk.bf16.gmra.mrb[184].mxu1 %vm962_vm2, %v10296_v6 }
 0x452   :  { %5973 = vmatprep.mubr.msk.bf16.mxu1 %vm6434_vm0, %v15939_v46 }
 0x459   :  { %5974 = vmatmul.mubr.msk.bf16.gmra.mrb[188].mxu1 %vm962_vm2, %v10301_v31 }
 0x45a   :  { %5977 = vmatprep.mubr.msk.bf16.mxu1 %vm6434_vm0, %v15939_v46 }
 0x461   :  { %5978 = vmatmul.mubr.msk.bf16.gmra.mrb[192].mxu1 %vm962_vm2, %v10307_v57 }
 0x462   :  { %5981 = vmatprep.mubr.msk.bf16.mxu1 %vm6434_vm0, %v15939_v46 }
 0x469   :  { %5982 = vmatmul.mubr.msk.bf16.gmra.mrb[196].mxu1 %vm962_vm2, %v10313_v18 }
 0x46a   :  { %5985 = vmatprep.mubr.msk.bf16.mxu1 %vm6434_vm0, %v15939_v46 }
 0x471   :  { %5986 = vmatmul.mubr.msk.bf16.gmra.mrb[200].mxu1 %vm962_vm2, %v10323_v14 }
 0x472   :  { %5989 = vmatprep.mubr.msk.bf16.mxu1 %vm6434_vm0, %v15939_v46 }
 0x479   :  { %5990 = vmatmul.mubr.msk.bf16.gmra.mrb[204].mxu1 %vm962_vm2, %v10327_v50 }
 0x47a   :  { %5993 = vmatprep.mubr.msk.bf16.mxu1 %vm6434_vm0, %v15939_v46 }
 0x481   :  { %5994 = vmatmul.mubr.msk.bf16.gmra.mrb[208].mxu1 %vm962_vm2, %v10331_v41 }
 0x482   :  { %5997 = vmatprep.mubr.msk.bf16.mxu1 %vm6434_vm0, %v15939_v46 }
 0x489   :  { %5998 = vmatmul.mubr.msk.bf16.gmra.mrb[212].mxu1 %vm962_vm2, %v10337_v22 }
 0x48a   :  { %6001 = vmatprep.mubr.msk.bf16.mxu1 %vm6434_vm0, %v15939_v46 }
 0x491   :  { %6002 = vmatmul.mubr.msk.bf16.gmra.mrb[216].mxu1 %vm962_vm2, %v10351_v25 }
 0x492   :  { %6005 = vmatprep.mubr.msk.bf16.mxu1 %vm6434_vm0, %v15939_v46 }
 0x499   :  { %6006 = vmatmul.mubr.msk.bf16.gmra.mrb[220].mxu1 %vm962_vm2, %v10355_v1 }
 0x49a   :  { %6009 = vmatprep.mubr.msk.bf16.mxu1 %vm6434_vm0, %v15939_v46 }
 0x4a1   :  { %6010 = vmatmul.mubr.msk.bf16.gmra.mrb[224].mxu1 %vm962_vm2, %v10359_v40 }
 0x4a2   :  { %6013 = vmatprep.mubr.msk.bf16.mxu1 %vm6434_vm0, %v15939_v46 }
 0x4a7   :  { %v10488_v50 = vpop.f32.mrb[124].mxu1 }
 0x4a8   :  { %v5911_v14 = vpop.f32.mrb[125].mxu1 }
 0x4a9   :  { %6014 = vmatmul.mubr.msk.bf16.gmra.mrb[228].mxu1 %vm962_vm2, %v10365_v28  ;;  %v10492_v6 = vpop.f32.mrb[126].mxu1 }
 0x4aa   :  { %6017 = vmatprep.mubr.msk.bf16.mxu1 %vm6434_vm0, %v15939_v46  ;;  %v5912_v56 = vpop.f32.mrb[127].mxu1 }
 0x4b1   :  { %6018 = vmatmul.mubr.msk.bf16.gmra.mrb[232].mxu1 %vm962_vm2, %v10375_v54 }
 0x4b2   :  { %6021 = vmatprep.mubr.msk.bf16.mxu1 %vm6434_vm0, %v15939_v46 }
 0x4b4   :  { %v10498_v40 = vpop.f32.mrb[128].mxu1 }
 0x4b5   :  { %v5915_v34 = vpop.f32.mrb[129].mxu1 }
 0x4b6   :  { %v10500_v23 = vpop.f32.mrb[130].mxu1 }
 0x4b7   :  { %v5916_v35 = vpop.f32.mrb[131].mxu1 }
 0x4b9   :  { %6022 = vmatmul.mubr.msk.bf16.gmra.mrb[236].mxu1 %vm962_vm2, %v10383_v30 }
 0x4ba   :  { %6025 = vmatprep.mubr.msk.bf16.mxu1 %vm6434_vm0, %v15939_v46 }
 0x4bc   :  { %v10506_v27 = vpop.f32.mrb[132].mxu1 }
 0x4bd   :  { %v5919_v4 = vpop.f32.mrb[133].mxu1 }
 0x4be   :  { %v10508_v63 = vpop.f32.mrb[134].mxu1 }
 0x4bf   :  { %v5920_v54 = vpop.f32.mrb[135].mxu1 }
 0x4c1   :  { %6026 = vmatmul.mubr.msk.bf16.gmra.mrb[240].mxu1 %vm962_vm2, %v10391_v60 }
 0x4c2   :  { %6029 = vmatprep.mubr.msk.bf16.mxu1 %vm6434_vm0, %v15939_v46 }
 0x4c4   :  { %v10514_v61 = vpop.f32.mrb[136].mxu1 }
 0x4c5   :  { %v5923_v16 = vpop.f32.mrb[137].mxu1 }
 0x4c6   :  { %v10516_v31 = vpop.f32.mrb[138].mxu1 }
 0x4c7   :  { %v5924_v30 = vpop.f32.mrb[139].mxu1 }
 0x4c9   :  { %6030 = vmatmul.mubr.msk.bf16.gmra.mrb[244].mxu1 %vm962_vm2, %v10399_v29 }
 0x4ca   :  { %6033 = vmatprep.mubr.msk.bf16.mxu1 %vm6434_vm0, %v15939_v46 }
 0x4cc   :  { %v10522_v57 = vpop.f32.mrb[140].mxu1 }
 0x4cd   :  { %v5927_v18 = vpop.f32.mrb[141].mxu1 }
 0x4ce   :  { %v10524_v41 = vpop.f32.mrb[142].mxu1 }
 0x4cf   :  { %v5928_v22 = vpop.f32.mrb[143].mxu1 }
 0x4d0   :  { %v10613_v22 = vld [vmem:[%s14967_s5] ss:$0 sm:$0xff] }
 0x4d1   :  { %6034 = vmatmul.mubr.msk.bf16.gmra.mrb[248].mxu1 %vm962_vm2, %v10381_v2 }
 0x4d2   :  { %6037 = vmatprep.mubr.msk.bf16.mxu1 %vm6434_vm0, %v15939_v46 }
 0x4d4   :  { %v10530_v25 = vpop.f32.mrb[144].mxu1 }
 0x4d5   :  { %v5931_v1 = vpop.f32.mrb[145].mxu1 }
 0x4d6   :  { %v10532_v28 = vpop.f32.mrb[146].mxu1  ;;  %v10619_v1 = vadd.f32 %v10613_v22, %v10492_v6 }
 0x4d7   :  { %v5932_v9 = vpop.f32.mrb[147].mxu1 }
 0x4d9   :  { %6038 = vmatmul.mubr.msk.bf16.gmra.mrb[252].mxu1 %vm962_vm2, %v10404_v8 }
 0x4da   :  { %6041 = vmatprep.mubr.msk.bf16.mxu1 %vm6434_vm0, %v15939_v46 }
 0x4dc   :  { %v10538_v24 = vpop.f32.mrb[148].mxu1 }
 0x4dd   :  { %v5935_v47 = vpop.f32.mrb[149].mxu1 }
 0x4de   :  { %v10540_v3 = vpop.f32.mrb[150].mxu1 }
 0x4df   :  { %v5936_v2 = vpop.f32.mrb[151].mxu1 }
 0x4e0   :  { %v10629_v2 = vadd.f32 %v10613_v22, %v10498_v40  ;;  %v10643_v40 = vadd.f32 %v10613_v22, %v10500_v23  ;;  %v10659_v23 = vadd.f32 %v10613_v22, %v10508_v63 }
 0x4e1   :  { %6042 = vmatmul.mubr.msk.bf16.gmra.mrb[0].mxu1 %vm962_vm2, %v16022_v49 }
 0x4e2   :  { %6045 = vmatprep.mubr.msk.bf16.mxu1 %vm6434_vm0, %v15939_v46 }
 0x4e4   :  { %v10546_v43 = vpop.f32.mrb[152].mxu1 }
 0x4e5   :  { %v5939_v58 = vpop.f32.mrb[153].mxu1 }
 0x4e6   :  { %v10548_v60 = vpop.f32.mrb[154].mxu1  ;;  %v3048_v58 = vsel %vm962_vm2, %v10619_v1, 0.0 }
 0x4e7   :  { %v5940_v48 = vpop.f32.mrb[155].mxu1 }
 0x4e9   :  { %6046 = vmatmul.mubr.msk.bf16.gmra.mrb[4].mxu1 %vm962_vm2, %v16023_v5 }
 0x4ea   :  { %6049 = vmatprep.mubr.msk.bf16.mxu1 %vm6434_vm0, %v15939_v46 }
 0x4ec   :  { %v10554_v39 = vpop.f32.mrb[156].mxu1 }
 0x4ed   :  { %v5943_v29 = vpop.f32.mrb[157].mxu1 }
 0x4ee   :  { %v10556_v13 = vpop.f32.mrb[158].mxu1  ;;  %v10649_v29 = vadd.f32 %v10613_v22, %v10506_v27 }
 0x4ef   :  { %v5944_v19 = vpop.f32.mrb[159].mxu1 }
 0x4f1   :  { %6050 = vmatmul.mubr.msk.bf16.gmra.mrb[8].mxu1 %vm962_vm2, %v10130_v59 }
 0x4f2   :  { %6053 = vmatprep.mubr.msk.bf16.mxu1 %vm6434_vm0, %v15939_v46 }
 0x4f4   :  { %v10562_v44 = vpop.f32.mrb[160].mxu1 }
 0x4f5   :  { %v5947_v51 = vpop.f32.mrb[161].mxu1 }
 0x4f6   :  { %v10564_v15 = vpop.f32.mrb[162].mxu1 }
 0x4f7   :  { %v5948_v8 = vpop.f32.mrb[163].mxu1 }
 0x4f8   :  { %v3052_v8 = vsel %vm962_vm2, %v10643_v40, 0.0 }
 0x4f9   :  { %6054 = vmatmul.mubr.msk.bf16.gmra.mrb[12].mxu1 %vm962_vm2, %v10132_v21 }
 0x4fa   :  { %6057 = vmatprep.mubr.msk.bf16.mxu1 %vm6434_vm0, %v15939_v46 }
 0x4fc   :  { %v10570_v17 = vpop.f32.mrb[164].mxu1 }
 0x4fd   :  { %v5951_v10 = vpop.f32.mrb[165].mxu1 }
 0x4fe   :  { %v10572_v37 = vpop.f32.mrb[166].mxu1 }
 0x4ff   :  { %v5952_v59 = vpop.f32.mrb[167].mxu1 }
 0x500   :  { %v3054_v59 = vsel %vm962_vm2, %v10649_v29, 0.0 }
 0x501   :  { %6058 = vmatmul.mubr.msk.bf16.gmra.mrb[16].mxu1 %vm962_vm2, %v10134_v42 }
 0x502   :  { %6061 = vmatprep.mubr.msk.bf16.mxu1 %vm6434_vm0, %v15939_v46 }
 0x504   :  { %v10578_v0 = vpop.f32.mrb[168].mxu1 }
 0x505   :  { %v5955_v45 = vpop.f32.mrb[169].mxu1 }
 0x506   :  { %v10580_v55 = vpop.f32.mrb[170].mxu1  ;;  %v10667_v45 = vadd.f32 %v10613_v22, %v10514_v61  ;;  %v10683_v61 = vadd.f32 %v10613_v22, %v10522_v57 }
 0x507   :  { %v5956_v21 = vpop.f32.mrb[171].mxu1 }
 0x509   :  { %6062 = vmatmul.mubr.msk.bf16.gmra.mrb[20].mxu1 %vm962_vm2, %v10136_v26 }
 0x50a   :  { %6065 = vmatprep.mubr.msk.bf16.mxu1 %vm6434_vm0, %v15939_v46 }
 0x50c   :  { %v10586_v14 = vpop.f32.mrb[172].mxu1 }
 0x50d   :  { %v5959_v56 = vpop.f32.mrb[173].mxu1 }
 0x50e   :  { %v10588_v34 = vpop.f32.mrb[174].mxu1 }
 0x50f   :  { %v5960_v42 = vpop.f32.mrb[175].mxu1 }
 0x510   :  { %v3056_v42 = vsel %vm962_vm2, %v10659_v23, 0.0 }
 0x511   :  { %6066 = vmatmul.mubr.msk.bf16.gmra.mrb[24].mxu1 %vm962_vm2, %v10138_v38 }
 0x512   :  { %6069 = vmatprep.mubr.msk.bf16.mxu1 %vm6434_vm0, %v15939_v46 }
 0x514   :  { %v10594_v35 = vpop.f32.mrb[176].mxu1 }
 0x515   :  { %v5963_v4 = vpop.f32.mrb[177].mxu1 }
 0x516   :  { %v10596_v54 = vpop.f32.mrb[178].mxu1 }
 0x517   :  { %v5964_v26 = vpop.f32.mrb[179].mxu1 }
 0x518   :  { %v10679_v26 = vadd.f32 %v10613_v22, %v10516_v31  ;;  %v3062_v31 = vsel %vm962_vm2, %v10683_v61, 0.0 }
 0x519   :  { %6070 = vmatmul.mubr.msk.bf16.gmra.mrb[28].mxu1 %vm962_vm2, %v10140_v33 }
 0x51a   :  { %6073 = vmatprep.mubr.msk.bf16.mxu1 %vm6434_vm0, %v15939_v46 }
 0x51c   :  { %v10602_v16 = vpop.f32.mrb[180].mxu1 }
 0x51d   :  { %v5967_v30 = vpop.f32.mrb[181].mxu1 }
 0x51e   :  { %v10604_v18 = vpop.f32.mrb[182].mxu1 }
 0x51f   :  { %v5968_v38 = vpop.f32.mrb[183].mxu1 }
 0x521   :  { %6074 = vmatmul.mubr.msk.bf16.gmra.mrb[32].mxu1 %vm962_vm2, %v10142_v7  ;;  %v10625_v7 = vadd.f32 %v10613_v22, %v10488_v50  ;;  %v3050_v50 = vsel %vm962_vm2, %v10629_v2, 0.0 }
 0x522   :  { %6077 = vmatprep.mubr.msk.bf16.mxu1 %vm6434_vm0, %v15939_v46 }
 0x523   :  { %v3047_v6 = vsel %vm962_vm2, %v10625_v7, 0.0 }
 0x524   :  { %v10615_v33 = vpop.f32.mrb[184].mxu1  ;;  %v3049_v48 = vadd.f32 %v3048_v58, %v3047_v6  ;;  %v10697_v6 = vadd.f32 %v10613_v22, %v10524_v41 }
 0x525   :  { %v5971_v9 = vpop.f32.mrb[185].mxu1 }
 0x526   :  { %v10621_v47 = vpop.f32.mrb[186].mxu1  ;;  %v3051_v19 = vadd.f32 %v3050_v50, %v3049_v48 }
 0x527   :  { %v5972_v49 = vpop.f32.mrb[187].mxu1 }
 0x528   :  { %v3053_v27 = vadd.f32 %v3052_v8, %v3051_v19  ;;  %v3060_v49 = vsel %vm962_vm2, %v10679_v26, 0.0  ;;  %v3064_v8 = vsel %vm962_vm2, %v10697_v6, 0.0 }
 0x529   :  { %6078 = vmatmul.mubr.msk.bf16.gmra.mrb[36].mxu1 %vm962_vm2, %v10144_v62 }
 0x52a   :  { %6081 = vmatprep.mubr.msk.bf16.mxu1 %vm6434_vm0, %v15939_v46  ;;  %v3055_v21 = vadd.f32 %v3054_v59, %v3053_v27  ;;  %v10721_v27 = vadd.f32 %v10613_v22, %v10538_v24 }
 0x52c   :  { %v10645_v5 = vpop.f32.mrb[188].mxu1  ;;  %v3057_v38 = vadd.f32 %v3056_v42, %v3055_v21 }
 0x52d   :  { %v5975_v62 = vpop.f32.mrb[189].mxu1 }
 0x52e   :  { %v10651_v51 = vpop.f32.mrb[190].mxu1 }
 0x52f   :  { %v5976_v10 = vpop.f32.mrb[191].mxu1 }
 0x530   :  { %v10715_v10 = vadd.f32 %v10613_v22, %v10532_v28  ;;  %v10731_v28 = vadd.f32 %v10613_v22, %v10540_v3 }
 0x531   :  { %6082 = vmatmul.mubr.msk.bf16.gmra.mrb[40].mxu1 %vm962_vm2, %v10146_v53  ;;  %v3058_v53 = vsel %vm962_vm2, %v10667_v45, 0.0 }
 0x532   :  { %6085 = vmatprep.mubr.msk.bf16.mxu1 %vm6434_vm0, %v15939_v46  ;;  %v3059_v9 = vadd.f32 %v3058_v53, %v3057_v38  ;;  %v10739_v38 = vadd.f32 %v10613_v22, %v10546_v43  ;;  %v10755_v43 = vadd.f32 %v10613_v22, %v10554_v39 }
 0x534   :  { %v10669_v56 = vpop.f32.mrb[192].mxu1  ;;  %v3061_v50 = vadd.f32 %v3060_v49, %v3059_v9 }
 0x535   :  { %v5979_v4 = vpop.f32.mrb[193].mxu1 }
 0x536   :  { %v10673_v63 = vpop.f32.mrb[194].mxu1  ;;  %v3063_v19 = vadd.f32 %v3062_v31, %v3061_v50  ;;  %v3068_v4 = vsel %vm962_vm2, %v10715_v10, 0.0  ;;  %v3072_v31 = vsel %vm962_vm2, %v10731_v28, 0.0  ;;  %v10751_v50 = vadd.f32 %v10613_v22, %v10548_v60 }
 0x537   :  { %v5980_v30 = vpop.f32.mrb[195].mxu1  ;;  %v3078_v60 = vsel %vm962_vm2, %v10755_v43, 0.0 }
 0x538   :  { %v3070_v30 = vsel %vm962_vm2, %v10721_v27, 0.0 }
 0x539   :  { %6086 = vmatmul.mubr.msk.bf16.gmra.mrb[44].mxu1 %vm962_vm2, %v10149_v11  ;;  %v10703_v11 = vadd.f32 %v10613_v22, %v10530_v25  ;;  %v3065_v25 = vadd.f32 %v3064_v8, %v3063_v19 }
 0x53a   :  { %6089 = vmatprep.mubr.msk.bf16.mxu1 %vm6434_vm0, %v15939_v46 }
 0x53b   :  { %v3066_v41 = vsel %vm962_vm2, %v10703_v11, 0.0 }
 0x53c   :  { %v10691_v58 = vpop.f32.mrb[196].mxu1  ;;  %v3067_v42 = vadd.f32 %v3066_v41, %v3065_v25  ;;  %v3076_v41 = vsel %vm962_vm2, %v10751_v50, 0.0 }
 0x53d   :  { %v5983_v57 = vpop.f32.mrb[197].mxu1 }
 0x53e   :  { %v10699_v48 = vpop.f32.mrb[198].mxu1  ;;  %v3069_v24 = vadd.f32 %v3068_v4, %v3067_v42 }
 0x53f   :  { %v5984_v62 = vpop.f32.mrb[199].mxu1 }
 0x540   :  { %v3071_v9 = vadd.f32 %v3070_v30, %v3069_v24 }
 0x541   :  { %6090 = vmatmul.mubr.msk.bf16.gmra.mrb[48].mxu1 %vm962_vm2, %v10151_v36 }
 0x542   :  { %6093 = vmatprep.mubr.msk.bf16.mxu1 %vm6434_vm0, %v15939_v46  ;;  %v3073_v19 = vadd.f32 %v3072_v31, %v3071_v9  ;;  %v10787_v9 = vadd.f32 %v10613_v22, %v10564_v15  ;;  %v10803_v15 = vadd.f32 %v10613_v22, %v10572_v37 }
 0x544   :  { %v10717_v59 = vpop.f32.mrb[200].mxu1 }
 0x545   :  { %v5987_v21 = vpop.f32.mrb[201].mxu1 }
 0x546   :  { %v10723_v36 = vpop.f32.mrb[202].mxu1  ;;  %v10769_v21 = vadd.f32 %v10613_v22, %v10556_v13 }
 0x547   :  { %v5988_v53 = vpop.f32.mrb[203].mxu1 }
 0x548   :  { %v3080_v24 = vsel %vm962_vm2, %v10769_v21, 0.0 }
 0x549   :  { %6094 = vmatmul.mubr.msk.bf16.gmra.mrb[52].mxu1 %vm962_vm2, %v10153_v32  ;;  %v3074_v32 = vsel %vm962_vm2, %v10739_v38, 0.0 }
 0x54a   :  { %6097 = vmatprep.mubr.msk.bf16.mxu1 %vm6434_vm0, %v15939_v46  ;;  %v3075_v8 = vadd.f32 %v3074_v32, %v3073_v19  ;;  %v3084_v19 = vsel %vm962_vm2, %v10787_v9, 0.0 }
 0x54c   :  { %v10741_v49 = vpop.f32.mrb[204].mxu1  ;;  %v3077_v42 = vadd.f32 %v3076_v41, %v3075_v8 }
 0x54d   :  { %v5991_v57 = vpop.f32.mrb[205].mxu1 }
 0x54e   :  { %v10745_v3 = vpop.f32.mrb[206].mxu1  ;;  %v3079_v30 = vadd.f32 %v3078_v60, %v3077_v42  ;;  %v10793_v57 = vadd.f32 %v10613_v22, %v10570_v17  ;;  %v16024_v60 = vld [vmem:[#allocation44_spill] sm:$0xff] }
 0x54f   :  { %v5992_v62 = vpop.f32.mrb[207].mxu1 }
 0x550   :  { %v3086_v41 = vsel %vm962_vm2, %v10793_v57, 0.0 }
 0x551   :  { %6098 = vmatmul.mubr.msk.bf16.gmra.mrb[56].mxu1 %vm962_vm2, %v10155_v52  ;;  %v10775_v52 = vadd.f32 %v10613_v22, %v10562_v44  ;;  %v3081_v44 = vadd.f32 %v3080_v24, %v3079_v30  ;;  %v3088_v30 = vsel %vm962_vm2, %v10803_v15, 0.0 }
 0x552   :  { %6101 = vmatprep.mubr.msk.bf16.mxu1 %vm6434_vm0, %v15939_v46 }
 0x553   :  { %v3082_v13 = vsel %vm962_vm2, %v10775_v52, 0.0 }
 0x554   :  { %v10763_v25 = vpop.f32.mrb[208].mxu1  ;;  %v3083_v62 = vadd.f32 %v3082_v13, %v3081_v44  ;;  %v10823_v44 = vadd.f32 %v10613_v22, %v10580_v55 }
 0x555   :  { %v5995_v39 = vpop.f32.mrb[209].mxu1 }
 0x556   :  { %v10771_v4 = vpop.f32.mrb[210].mxu1  ;;  %v3085_v17 = vadd.f32 %v3084_v19, %v3083_v62  ;;  %v10811_v39 = vadd.f32 %v10613_v22, %v10578_v0  ;;  %v10827_v0 = vadd.f32 %v10613_v22, %v10586_v14  ;;  %v16025_v19 = vld [vmem:[#allocation4_spill] sm:$0xff] }
 0x557   :  { %v5996_v53 = vpop.f32.mrb[211].mxu1 }
 0x558   :  { %v3087_v42 = vadd.f32 %v3086_v41, %v3085_v17  ;;  %v3090_v13 = vsel %vm962_vm2, %v10811_v39, 0.0  ;;  %v3092_v41 = vsel %vm962_vm2, %v10823_v44, 0.0  ;;  %v3094_v55 = vsel %vm962_vm2, %v10827_v0, 0.0 }
 0x559   :  { %6102 = vmatmul.mubr.msk.bf16.gmra.mrb[60].mxu1 %vm962_vm2, %v10159_v12  ;;  %v10841_v17 = vadd.f32 %v10613_v22, %v10588_v34 }
 0x55a   :  { %6105 = vmatprep.mubr.msk.bf16.mxu1 %vm6434_vm0, %v15939_v46  ;;  %v3089_v62 = vadd.f32 %v3088_v30, %v3087_v42 }
 0x55b   :  { %16026 = vst [vmem:[#allocation65_spill] sm:$0xff] %v10841_v17 }
 0x55c   :  { %v10789_v31 = vpop.f32.mrb[212].mxu1 }
 0x55d   :  { %v5999_v32 = vpop.f32.mrb[213].mxu1 }
 0x55e   :  { %v10795_v12 = vpop.f32.mrb[214].mxu1 }
 0x55f   :  { %v6000_v8 = vpop.f32.mrb[215].mxu1 }
 0x560   :  { %v3091_v8 = vadd.f32 %v3090_v13, %v3089_v62  ;;  %v3096_v62 = vsel %vm962_vm2, %v10841_v17, 0.0 }
 0x561   :  { %6106 = vmatmul.mubr.msk.bf16.gmra.mrb[64].mxu1 %vm962_vm2, %v16024_v60 }
 0x562   :  { %6109 = vmatprep.mubr.msk.bf16.mxu1 %vm6434_vm0, %v15939_v46  ;;  %v3093_v42 = vadd.f32 %v3092_v41, %v3091_v8  ;;  %v10859_v8 = vadd.f32 %v10613_v22, %v10596_v54  ;;  %v10875_v54 = vadd.f32 %v10613_v22, %v10604_v18 }
 0x564   :  { %v10813_v53 = vpop.f32.mrb[216].mxu1  ;;  %16030 = vst [vmem:[#allocation70_spill] sm:$0xff] %v10875_v54 }
 0x565   :  { %v6003_v24 = vpop.f32.mrb[217].mxu1 }
 0x566   :  { %v10817_v37 = vpop.f32.mrb[218].mxu1  ;;  %v10847_v24 = vadd.f32 %v10613_v22, %v10594_v35 }
 0x567   :  { %v6004_v32 = vpop.f32.mrb[219].mxu1 }
 0x568   :  { %16027 = vst [vmem:[#allocation66_spill] sm:$0xff] %v10847_v24  ;;  %v3095_v32 = vadd.f32 %v3094_v55, %v3093_v42  ;;  %v3098_v34 = vsel %vm962_vm2, %v10847_v24, 0.0  ;;  %v10865_v55 = vadd.f32 %v10613_v22, %v10602_v16 }
 0x569   :  { %6110 = vmatmul.mubr.msk.bf16.gmra.mrb[68].mxu1 %vm962_vm2, %v16025_v19  ;;  %v16028_v19 = vld [vmem:[#allocation5_spill] sm:$0xff] }
 0x56a   :  { %6113 = vmatprep.mubr.msk.bf16.mxu1 %vm6434_vm0, %v15939_v46  ;;  %v3097_v35 = vadd.f32 %v3096_v62, %v3095_v32  ;;  %16029 = vst [vmem:[#allocation68_spill] sm:$0xff] %v10865_v55  ;;  %v3102_v24 = vsel %vm962_vm2, %v10865_v55, 0.0  ;;  %v16031_v32 = vld [vmem:[#allocation6_spill] sm:$0xff]  ;;  %v10883_v62 = vadd.f32 %v10613_v22, %v10615_v33  ;;  %v10899_v33 = vadd.f32 %v10613_v22, %v10645_v5 }
 0x56c   :  { %v10835_v60 = vpop.f32.mrb[220].mxu1  ;;  %v3099_v42 = vadd.f32 %v3098_v34, %v3097_v35  ;;  %16032 = vst [vmem:[#allocation71_spill] sm:$0xff] %v10883_v62  ;;  %v3104_v35 = vsel %vm962_vm2, %v10875_v54, 0.0  ;;  %v16037_v54 = vld [vmem:[#allocation80_spill] sm:$0xff] }
 0x56d   :  { %v6007_v14 = vpop.f32.mrb[221].mxu1 }
 0x56e   :  { %v10843_v30 = vpop.f32.mrb[222].mxu1 }
 0x56f   :  { %v6008_v13 = vpop.f32.mrb[223].mxu1 }
 0x571   :  { %6114 = vmatmul.mubr.msk.bf16.gmra.mrb[72].mxu1 %vm962_vm2, %v16028_v19  ;;  %v3100_v19 = vsel %vm962_vm2, %v10859_v8, 0.0 }
 0x572   :  { %6117 = vmatprep.mubr.msk.bf16.mxu1 %vm6434_vm0, %v15939_v46  ;;  %v3101_v16 = vadd.f32 %v3100_v19, %v3099_v42  ;;  %v10895_v42 = vadd.f32 %v10613_v22, %v10621_v47  ;;  %v3110_v47 = vsel %vm962_vm2, %v10899_v33, 0.0 }
 0x574   :  { %v10861_v41 = vpop.f32.mrb[224].mxu1  ;;  %v3103_v34 = vadd.f32 %v3102_v24, %v3101_v16  ;;  %16033 = vst [vmem:[#allocation75_spill] sm:$0xff] %v10895_v42  ;;  %v16034_v24 = vld [vmem:[#allocation79_spill] sm:$0xff] }
 0x575   :  { %v6011_v14 = vpop.f32.mrb[225].mxu1 }
 0x576   :  { %v10867_v13 = vpop.f32.mrb[226].mxu1  ;;  %v3105_v55 = vadd.f32 %v3104_v35, %v3103_v34  ;;  %v10913_v34 = vadd.f32 %v10613_v22, %v10651_v51 }
 0x577   :  { %v6012_v17 = vpop.f32.mrb[227].mxu1 }
 0x578   :  { %16035 = vst [vmem:[#allocation86_spill] sm:$0xff] %v10913_v34 }
 0x579   :  { %6118 = vmatmul.mubr.msk.bf16.gmra.mrb[76].mxu1 %vm962_vm2, %v16031_v32  ;;  %v3106_v32 = vsel %vm962_vm2, %v10883_v62, 0.0 }
 0x57a   :  { %6121 = vmatprep.mubr.msk.bf16.mxu1 %vm6434_vm0, %v15939_v46  ;;  %v3107_v16 = vadd.f32 %v3106_v32, %v3105_v55  ;;  %v10919_v55 = vadd.f32 %v10613_v22, %v10669_v56 }
 0x57c   :  { %v10885_v17 = vpop.f32.mrb[228].mxu1  ;;  %16036 = vst [vmem:[#allocation87_spill] sm:$0xff] %v10919_v55  ;;  %v3114_v51 = vsel %vm962_vm2, %v10919_v55, 0.0 }
 0x57d   :  { %v6015_v14 = vpop.f32.mrb[229].mxu1 }
 0x57e   :  { %v10889_v18 = vpop.f32.mrb[230].mxu1  ;;  %v3108_v14 = vsel %vm962_vm2, %v10895_v42, 0.0  ;;  %v3112_v42 = vsel %vm962_vm2, %v10913_v34, 0.0 }
 0x57f   :  { %v6016_v19 = vpop.f32.mrb[231].mxu1  ;;  %v3109_v35 = vadd.f32 %v3108_v14, %v3107_v16  ;;  %v10931_v16 = vadd.f32 %v10613_v22, %v10673_v63  ;;  %v10947_v63 = vadd.f32 %v10613_v22, %v10699_v48 }
 0x581   :  { %6122 = vmatmul.mubr.msk.bf16.gmra.mrb[80].mxu1 %vm962_vm2, %v16034_v24  ;;  %v3111_v24 = vadd.f32 %v3110_v47, %v3109_v35  ;;  %v10937_v47 = vadd.f32 %v10613_v22, %v10691_v58  ;;  %16039 = vst [vmem:[#allocation73_spill] sm:$0xff] %v10947_v63 }
 0x582   :  { %6125 = vmatprep.mubr.msk.bf16.mxu1 %vm6434_vm0, %v15939_v46 }
 0x583   :  { %v3113_v56 = vadd.f32 %v3112_v42, %v3111_v24  ;;  %16038 = vst [vmem:[#allocation49_spill] sm:$0xff] %v10937_v47  ;;  %v3118_v55 = vsel %vm962_vm2, %v10937_v47, 0.0  ;;  %v16040_v42 = vld [vmem:[#allocation47_spill] sm:$0xff]  ;;  %v10955_v24 = vadd.f32 %v10613_v22, %v10717_v59  ;;  %v10971_v59 = vadd.f32 %v10613_v22, %v10741_v49 }
 0x584   :  { %v10907_v62 = vpop.f32.mrb[232].mxu1 }
 0x585   :  { %v6019_v5 = vpop.f32.mrb[233].mxu1  ;;  %v3115_v35 = vadd.f32 %v3114_v51, %v3113_v56  ;;  %16041 = vst [vmem:[#allocation51_spill] sm:$0xff] %v10955_v24  ;;  %v3120_v56 = vsel %vm962_vm2, %v10947_v63, 0.0  ;;  %v16046_v63 = vld [vmem:[#allocation50_spill] sm:$0xff] }
 0x586   :  { %v10915_v19 = vpop.f32.mrb[234].mxu1 }
 0x587   :  { %v6020_v32 = vpop.f32.mrb[235].mxu1 }
 0x588   :  { %v3116_v32 = vsel %vm962_vm2, %v10931_v16, 0.0 }
 0x589   :  { %6126 = vmatmul.mubr.msk.bf16.gmra.mrb[84].mxu1 %vm962_vm2, %v16037_v54  ;;  %v3117_v58 = vadd.f32 %v3116_v32, %v3115_v35  ;;  %v10967_v35 = vadd.f32 %v10613_v22, %v10723_v36  ;;  %v3126_v36 = vsel %vm962_vm2, %v10971_v59, 0.0 }
 0x58a   :  { %6129 = vmatprep.mubr.msk.bf16.mxu1 %vm6434_vm0, %v15939_v46 }
 0x58b   :  { %v3119_v51 = vadd.f32 %v3118_v55, %v3117_v58  ;;  %16042 = vst [vmem:[#allocation54_spill] sm:$0xff] %v10967_v35  ;;  %v16043_v55 = vld [vmem:[#allocation48_spill] sm:$0xff] }
 0x58c   :  { %v10933_v14 = vpop.f32.mrb[236].mxu1 }
 0x58d   :  { %v6023_v5 = vpop.f32.mrb[237].mxu1  ;;  %v3121_v47 = vadd.f32 %v3120_v56, %v3119_v51  ;;  %v10985_v51 = vadd.f32 %v10613_v22, %v10745_v3 }
 0x58e   :  { %v10939_v54 = vpop.f32.mrb[238].mxu1 }
 0x58f   :  { %v6024_v34 = vpop.f32.mrb[239].mxu1  ;;  %16044 = vst [vmem:[#allocation56_spill] sm:$0xff] %v10985_v51 }
 0x591   :  { %6130 = vmatmul.mubr.msk.bf16.gmra.mrb[88].mxu1 %vm962_vm2, %v16040_v42  ;;  %v3122_v42 = vsel %vm962_vm2, %v10955_v24, 0.0 }
 0x592   :  { %6133 = vmatprep.mubr.msk.bf16.mxu1 %vm6434_vm0, %v15939_v46  ;;  %v3123_v58 = vadd.f32 %v3122_v42, %v3121_v47  ;;  %v10991_v47 = vadd.f32 %v10613_v22, %v10763_v25 }
 0x594   :  { %v10957_v34 = vpop.f32.mrb[240].mxu1  ;;  %16045 = vst [vmem:[#allocation85_spill] sm:$0xff] %v10991_v47  ;;  %v3130_v3 = vsel %vm962_vm2, %v10991_v47, 0.0 }
 0x595   :  { %v6027_v5 = vpop.f32.mrb[241].mxu1 }
 0x596   :  { %v10961_v48 = vpop.f32.mrb[242].mxu1  ;;  %v3124_v5 = vsel %vm962_vm2, %v10967_v35, 0.0  ;;  %v3128_v35 = vsel %vm962_vm2, %v10985_v51, 0.0 }
 0x597   :  { %v6028_v32 = vpop.f32.mrb[243].mxu1  ;;  %v3125_v56 = vadd.f32 %v3124_v5, %v3123_v58  ;;  %v11003_v58 = vadd.f32 %v10613_v22, %v10771_v4  ;;  %v11019_v4 = vadd.f32 %v10613_v22, %v10795_v12 }
 0x599   :  { %6134 = vmatmul.mubr.msk.bf16.gmra.mrb[92].mxu1 %vm962_vm2, %v16043_v55  ;;  %v3127_v55 = vadd.f32 %v3126_v36, %v3125_v56  ;;  %v11009_v36 = vadd.f32 %v10613_v22, %v10789_v31  ;;  %16048 = vst [vmem:[#allocation72_spill] sm:$0xff] %v11019_v4 }
 0x59a   :  { %6137 = vmatprep.mubr.msk.bf16.mxu1 %vm6434_vm0, %v15939_v46 }
 0x59b   :  { %v3129_v25 = vadd.f32 %v3128_v35, %v3127_v55  ;;  %16047 = vst [vmem:[#allocation81_spill] sm:$0xff] %v11009_v36  ;;  %v3134_v47 = vsel %vm962_vm2, %v11009_v36, 0.0  ;;  %v16049_v35 = vld [vmem:[#allocation52_spill] sm:$0xff]  ;;  %v11027_v55 = vadd.f32 %v10613_v22, %v10813_v53  ;;  %v11043_v53 = vadd.f32 %v10613_v22, %v10835_v60 }
 0x59c   :  { %v10979_v24 = vpop.f32.mrb[244].mxu1 }
 0x59d   :  { %v6031_v49 = vpop.f32.mrb[245].mxu1  ;;  %v3131_v56 = vadd.f32 %v3130_v3, %v3129_v25  ;;  %16050 = vst [vmem:[#allocation58_spill] sm:$0xff] %v11027_v55  ;;  %v3136_v25 = vsel %vm962_vm2, %v11019_v4, 0.0  ;;  %16052 = vst [vmem:[#allocation84_spill] sm:$0xff] %v11043_v53  ;;  %v16056_v4 = vld [vmem:[#allocation55_spill] sm:$0xff] }
 0x59e   :  { %v10987_v32 = vpop.f32.mrb[246].mxu1 }
 0x59f   :  { %v6032_v42 = vpop.f32.mrb[247].mxu1 }
 0x5a0   :  { %v3132_v42 = vsel %vm962_vm2, %v11003_v58, 0.0 }
 0x5a1   :  { %6138 = vmatmul.mubr.msk.bf16.gmra.mrb[96].mxu1 %vm962_vm2, %v16046_v63  ;;  %v3133_v31 = vadd.f32 %v3132_v42, %v3131_v56  ;;  %v11039_v56 = vadd.f32 %v10613_v22, %v10817_v37  ;;  %v3142_v37 = vsel %vm962_vm2, %v11043_v53, 0.0 }
 0x5a2   :  { %6141 = vmatprep.mubr.msk.bf16.mxu1 %vm6434_vm0, %v15939_v46 }
 0x5a3   :  { %v3135_v3 = vadd.f32 %v3134_v47, %v3133_v31  ;;  %16051 = vst [vmem:[#allocation15_spill] sm:$0xff] %v11039_v56  ;;  %v16053_v47 = vld [vmem:[#allocation53_spill] sm:$0xff] }
 0x5a4   :  { %v11005_v5 = vpop.f32.mrb[248].mxu1 }
 0x5a5   :  { %v6035_v49 = vpop.f32.mrb[249].mxu1  ;;  %v3137_v36 = vadd.f32 %v3136_v25, %v3135_v3  ;;  %v11057_v3 = vadd.f32 %v10613_v22, %v10843_v30 }
 0x5a6   :  { %v11011_v63 = vpop.f32.mrb[250].mxu1 }
 0x5a7   :  { %v6036_v51 = vpop.f32.mrb[251].mxu1  ;;  %16054 = vst [vmem:[#allocation91_spill] sm:$0xff] %v11057_v3 }
 0x5a9   :  { %6142 = vmatmul.mubr.msk.bf16.gmra.mrb[100].mxu1 %vm962_vm2, %v16049_v35  ;;  %v3138_v35 = vsel %vm962_vm2, %v11027_v55, 0.0 }
 0x5aa   :  { %6145 = vmatprep.mubr.msk.bf16.mxu1 %vm6434_vm0, %v15939_v46  ;;  %v3139_v31 = vadd.f32 %v3138_v35, %v3137_v36  ;;  %v11063_v36 = vadd.f32 %v10613_v22, %v10861_v41 }
 0x5ac   :  { %v11029_v51 = vpop.f32.mrb[252].mxu1  ;;  %16055 = vst [vmem:[#allocation60_spill] sm:$0xff] %v11063_v36  ;;  %v3146_v30 = vsel %vm962_vm2, %v11063_v36, 0.0 }
 0x5ad   :  { %v6039_v49 = vpop.f32.mrb[253].mxu1 }
 0x5ae   :  { %v11033_v12 = vpop.f32.mrb[254].mxu1  ;;  %v3140_v49 = vsel %vm962_vm2, %v11039_v56, 0.0  ;;  %v3144_v56 = vsel %vm962_vm2, %v11057_v3, 0.0 }
 0x5af   :  { %v6040_v42 = vpop.f32.mrb[255].mxu1  ;;  %v3141_v25 = vadd.f32 %v3140_v49, %v3139_v31  ;;  %v11075_v31 = vadd.f32 %v10613_v22, %v10867_v13 }
 0x5b1   :  { %6146 = vmatmul.mubr.msk.bf16.gmra.mrb[104].mxu1 %vm962_vm2, %v16053_v47  ;;  %v3143_v47 = vadd.f32 %v3142_v37, %v3141_v25  ;;  %v11081_v37 = vadd.f32 %v10613_v22, %v10885_v17  ;;  %v3148_v36 = vsel %vm962_vm2, %v11075_v31, 0.0  ;;  %v16059_v17 = vld [vmem:[#allocation57_spill] sm:$0xff] }
 0x5b2   :  { %6149 = vmatprep.mubr.msk.bf16.mxu1 %vm6434_vm0, %v15939_v46 }
 0x5b3   :  { %v3145_v41 = vadd.f32 %v3144_v56, %v3143_v47  ;;  %16057 = vst [vmem:[#allocation7_spill] sm:$0xff] %v11081_v37  ;;  %v3150_v13 = vsel %vm962_vm2, %v11081_v37, 0.0  ;;  %v11093_v56 = vadd.f32 %v10613_v22, %v10889_v18 }
 0x5b4   :  { %v11051_v55 = vpop.f32.mrb[0].mxu1 }
 0x5b5   :  { %v6043_v60 = vpop.f32.mrb[1].mxu1  ;;  %v3147_v25 = vadd.f32 %v3146_v30, %v3145_v41 }
 0x5b6   :  { %v11059_v42 = vpop.f32.mrb[2].mxu1 }
 0x5b7   :  { %v6044_v35 = vpop.f32.mrb[3].mxu1  ;;  %v3149_v47 = vadd.f32 %v3148_v36, %v3147_v25 }
 0x5b8   :  { %v16058_v35 = vld [vmem:[#allocation78_spill] sm:$0xff] }
 0x5b9   :  { %6150 = vmatmul.mubr.msk.bf16.gmra.mrb[108].mxu1 %vm962_vm2, %v16056_v4  ;;  %v2110_v3 = vadd.f32 %v15954_v20, %v16058_v35  ;;  %v11101_v20 = vadd.f32 %v10613_v22, %v10907_v62 }
 0x5ba   :  { %6153 = vmatprep.mubr.msk.bf16.mxu1 %vm6434_vm0, %v15939_v46 }
 0x5bb   :  { %v2235_v30 = vmax.f32 %v2110_v3, 0.0  ;;  %v3154_v36 = vsel %vm962_vm2, %v11101_v20, 0.0  ;;  %v11113_v3 = vadd.f32 %v10613_v22, %v10915_v19  ;;  %v11128_v19 = vadd.f32 %v10613_v22, %v10939_v54 }
 0x5bc   :  { %v11077_v49 = vpop.f32.mrb[4].mxu1  ;;  %v11142_v54 = vadd.f32 %v10613_v22, %v10961_v48  ;;  %v11158_v48 = vadd.f32 %v10613_v22, %v10987_v32  ;;  %v11172_v32 = vadd.f32 %v10613_v22, %v11011_v63 }
 0x5bd   :  { %v6047_v60 = vpop.f32.mrb[5].mxu1  ;;  %v2298_v37 = vpack.c.bf16 %v2235_v30, %v2235_v30  ;;  %16060 = vst [vmem:[#allocation74_spill] sm:$0xff] %v11128_v19 }
 0x5be   :  { %v11083_v4 = vpop.f32.mrb[6].mxu1  ;;  %v3152_v60 = vsel %vm962_vm2, %v11093_v56, 0.0  ;;  %16062 = vst [vmem:[#allocation16_spill] sm:$0xff] %v11142_v54  ;;  %16064 = vst [vmem:[#allocation59_spill] sm:$0xff] %v11158_v48 }
 0x5bf   :  { %v6048_v53 = vpop.f32.mrb[7].mxu1 }
 0x5c0   :  { %v3151_v53 = vadd.f32 %v3150_v13, %v3149_v47  ;;  %v11117_v13 = vadd.f32 %v10613_v22, %v10933_v14  ;;  %v3156_v47 = vsel %vm962_vm2, %v11113_v3, 0.0  ;;  %v11134_v14 = vadd.f32 %v10613_v22, %v10957_v34 }
 0x5c1   :  { %6154 = vmatmul.mubr.msk.bf16.gmra.mrb[112].mxu1 %vm962_vm2, %v16059_v17 }
 0x5c2   :  { %6157 = vmatprep.mubr.msk.bf16.mxu1 %vm6434_vm0, %v15939_v46  ;;  %v3153_v62 = vadd.f32 %v3152_v60, %v3151_v53  ;;  %16061 = vst [vmem:[#allocation61_spill] sm:$0xff] %v11134_v14  ;;  %v3162_v46 = vsel %vm962_vm2, %v11134_v14, 0.0 }
 0x5c4   :  { %v11103_v41 = vpop.f32.mrb[8].mxu1  ;;  %v3155_v17 = vadd.f32 %v3154_v36, %v3153_v62  ;;  %v3160_v62 = vsel %vm962_vm2, %v11128_v19, 0.0 }
 0x5c5   :  { %v6051_v18 = vpop.f32.mrb[9].mxu1 }
 0x5c6   :  { %v11107_v35 = vpop.f32.mrb[10].mxu1  ;;  %v3158_v18 = vsel %vm962_vm2, %v11117_v13, 0.0  ;;  %v3157_v60 = vadd.f32 %v3156_v47, %v3155_v17  ;;  %v11148_v47 = vadd.f32 %v10613_v22, %v10979_v24  ;;  %v11162_v24 = vadd.f32 %v10613_v22, %v11005_v5 }
 0x5c7   :  { %v6052_v25 = vpop.f32.mrb[11].mxu1  ;;  %v11176_v5 = vadd.f32 %v10613_v22, %v11029_v51 }
 0x5c8   :  { %v3159_v36 = vadd.f32 %v3158_v18, %v3157_v60  ;;  %16063 = vst [vmem:[#allocation63_spill] sm:$0xff] %v11148_v47  ;;  %v3164_v60 = vsel %vm962_vm2, %v11142_v54, 0.0  ;;  %v3166_v14 = vsel %vm962_vm2, %v11148_v47, 0.0  ;;  %16065 = vst [vmem:[#allocation62_spill] sm:$0xff] %v11162_v24 }
 0x5c9   :  { %6158 = vmatmul.mubr.msk.bf16.gmra.mrb[116].mxu1 %vm962_vm2, %v2298_v37  ;;  %16066 = vst [vmem:[#allocation64_spill] sm:$0xff] %v11176_v5 }
 0x5cc   :  { %v11122_v30 = vpop.f32.mrb[12].mxu1 }
 0x5cd   :  { %v6055_v53 = vpop.f32.mrb[13].mxu1 }
 0x5ce   :  { %v11130_v25 = vpop.f32.mrb[14].mxu1  ;;  %v3161_v53 = vadd.f32 %v3160_v62, %v3159_v36 }
 0x5cf   :  { %v6056_v37 = vpop.f32.mrb[15].mxu1 }
 0x5d0   :  { %v3163_v37 = vadd.f32 %v3162_v46, %v3161_v53  ;;  %v3168_v53 = vsel %vm962_vm2, %v11158_v48, 0.0  ;;  %v3174_v48 = vsel %vm962_vm2, %v11176_v5, 0.0  ;;  %v11196_v5 = vadd.f32 %v10613_v22, %v11059_v42 }
 0x5d1   :  { %v11208_v42 = vadd.f32 %v10613_v22, %v11083_v4 }
 0x5d2   :  { %v3165_v36 = vadd.f32 %v3164_v60, %v3163_v37  ;;  %16068 = vst [vmem:[#allocation69_spill] sm:$0xff] %v11196_v5 }
 0x5d3   :  { %16070 = vst [vmem:[#allocation82_spill] sm:$0xff] %v11208_v42 }
 0x5d4   :  { %v11144_v17 = vpop.f32.mrb[16].mxu1  ;;  %v3167_v62 = vadd.f32 %v3166_v14, %v3165_v36  ;;  %v3172_v36 = vsel %vm962_vm2, %v11172_v32, 0.0 }
 0x5d5   :  { %v6059_v34 = vpop.f32.mrb[17].mxu1 }
 0x5d6   :  { %v11150_v18 = vpop.f32.mrb[18].mxu1  ;;  %v3169_v60 = vadd.f32 %v3168_v53, %v3167_v62  ;;  %v11188_v62 = vadd.f32 %v10613_v22, %v11051_v55 }
 0x5d7   :  { %v6060_v19 = vpop.f32.mrb[19].mxu1 }
 0x5d8   :  { %v3170_v19 = vsel %vm962_vm2, %v11162_v24, 0.0  ;;  %v11184_v24 = vadd.f32 %v10613_v22, %v11033_v12  ;;  %16067 = vst [vmem:[#allocation67_spill] sm:$0xff] %v11188_v62 }
 0x5d9   :  { %v3171_v14 = vadd.f32 %v3170_v19, %v3169_v60  ;;  %v3178_v60 = vsel %vm962_vm2, %v11188_v62, 0.0 }
 0x5da   :  { %v3176_v19 = vsel %vm962_vm2, %v11184_v24, 0.0 }
 0x5db   :  { %v3173_v47 = vadd.f32 %v3172_v36, %v3171_v14  ;;  %v11200_v14 = vadd.f32 %v10613_v22, %v11077_v49 }
 0x5dc   :  { %v2849_v46 = vpop.f32.mrb[20].mxu1 }
 0x5dd   :  { %v6063_v34 = vpop.f32.mrb[21].mxu1  ;;  %v3175_v53 = vadd.f32 %v3174_v48, %v3173_v47  ;;  %16069 = vst [vmem:[#allocation76_spill] sm:$0xff] %v11200_v14  ;;  %v3180_v47 = vsel %vm962_vm2, %v11196_v5, 0.0  ;;  %v3182_v62 = vsel %vm962_vm2, %v11200_v14, 0.0  ;;  %v11220_v14 = vadd.f32 %v10613_v22, %v11107_v35 }
 0x5de   :  { %v11166_v54 = vpop.f32.mrb[22].mxu1 }
 0x5df   :  { %v6064_v37 = vpop.f32.mrb[23].mxu1  ;;  %v3177_v12 = vadd.f32 %v3176_v19, %v3175_v53  ;;  %v11212_v19 = vadd.f32 %v10613_v22, %v11103_v41  ;;  %16072 = vst [vmem:[#allocation8_spill] sm:$0xff] %v11220_v14  ;;  %v11224_v41 = vadd.f32 %v10613_v22, %v11122_v30 }
 0x5e1   :  { %v3179_v36 = vadd.f32 %v3178_v60, %v3177_v12  ;;  %16071 = vst [vmem:[#allocation3_spill] sm:$0xff] %v11212_v19  ;;  %v3184_v60 = vsel %vm962_vm2, %v11208_v42, 0.0  ;;  %16073 = vst [vmem:[#allocation9_spill] sm:$0xff] %v11224_v41 }
 0x5e3   :  { %v3181_v53 = vadd.f32 %v3180_v47, %v3179_v36  ;;  %v3188_v47 = vsel %vm962_vm2, %v11220_v14, 0.0 }
 0x5e4   :  { %v2857_v34 = vpop.f32.mrb[24].mxu1 }
 0x5e5   :  { %v6067_v63 = vpop.f32.mrb[25].mxu1  ;;  %v3183_v49 = vadd.f32 %v3182_v62, %v3181_v53 }
 0x5e6   :  { %v2860_v37 = vpop.f32.mrb[26].mxu1 }
 0x5e7   :  { %v6068_v51 = vpop.f32.mrb[27].mxu1  ;;  %v3185_v36 = vadd.f32 %v3184_v60, %v3183_v49  ;;  %v11236_v49 = vadd.f32 %v10613_v22, %v11144_v17 }
 0x5e9   :  { %16074 = vst [vmem:[#allocation10_spill] sm:$0xff] %v11236_v49 }
 0x5ec   :  { %v2865_v63 = vpop.f32.mrb[28].mxu1 }
 0x5ed   :  { %v6071_v55 = vpop.f32.mrb[29].mxu1 }
 0x5ee   :  { %v2868_v51 = vpop.f32.mrb[30].mxu1 }
 0x5ef   :  { %v6072_v48 = vpop.f32.mrb[31].mxu1 }
 0x5f0   :  { %v3186_v48 = vsel %vm962_vm2, %v11212_v19, 0.0  ;;  %v11232_v19 = vadd.f32 %v10613_v22, %v11130_v25 }
 0x5f1   :  { %v3187_v62 = vadd.f32 %v3186_v48, %v3185_v36  ;;  %v3194_v36 = vsel %vm962_vm2, %v11236_v49, 0.0  ;;  %v11255_v49 = vadd.f32 %v10613_v22, %v11166_v54 }
 0x5f2   :  { %v3192_v48 = vsel %vm962_vm2, %v11232_v19, 0.0 }
 0x5f3   :  { %v3189_v42 = vadd.f32 %v3188_v47, %v3187_v62  ;;  %v11247_v62 = vadd.f32 %v10613_v22, %v2849_v46  ;;  %16077 = vst [vmem:[#allocation2_spill] sm:$0xff] %v11255_v49 }
 0x5f4   :  { %v2873_v55 = vpop.f32.mrb[32].mxu1 }
 0x5f5   :  { %v6075_v12 = vpop.f32.mrb[33].mxu1  ;;  %16076 = vst [vmem:[#allocation12_spill] sm:$0xff] %v11247_v62 }
 0x5f6   :  { %v2876_v5 = vpop.f32.mrb[34].mxu1  ;;  %v3190_v12 = vsel %vm962_vm2, %v11224_v41, 0.0  ;;  %v11244_v41 = vadd.f32 %v10613_v22, %v11150_v18 }
 0x5f7   :  { %v6076_v4 = vpop.f32.mrb[35].mxu1  ;;  %v3191_v60 = vadd.f32 %v3190_v12, %v3189_v42 }
 0x5f8   :  { %16075 = vst [vmem:[#allocation11_spill] sm:$0xff] %v11244_v41  ;;  %v3196_v42 = vsel %vm962_vm2, %v11244_v41, 0.0 }
 0x5f9   :  { %v3193_v25 = vadd.f32 %v3192_v48, %v3191_v60  ;;  %v11258_v60 = vadd.f32 %v10613_v22, %v2857_v34 }
 0x5fb   :  { %v3195_v17 = vadd.f32 %v3194_v36, %v3193_v25  ;;  %16078 = vst [vmem:[#allocation13_spill] sm:$0xff] %v11258_v60  ;;  %v3200_v36 = vsel %vm962_vm2, %v11255_v49, 0.0 }
 0x5fc   :  { %v2881_v53 = vpop.f32.mrb[36].mxu1 }
 0x5fd   :  { %v6079_v35 = vpop.f32.mrb[37].mxu1  ;;  %v3197_v18 = vadd.f32 %v3196_v42, %v3195_v17  ;;  %v11268_v17 = vadd.f32 %v10613_v22, %v2865_v63 }
 0x5fe   :  { %v2884_v4 = vpop.f32.mrb[38].mxu1 }
 0x5ff   :  { %v6080_v30 = vpop.f32.mrb[39].mxu1  ;;  %16079 = vst [vmem:[#allocation14_spill] sm:$0xff] %v11268_v17 }
 0x600   :  { %v3198_v30 = vsel %vm962_vm2, %v11247_v62, 0.0  ;;  %v11265_v62 = vadd.f32 %v10613_v22, %v2860_v37 }
 0x601   :  { %v3199_v46 = vadd.f32 %v3198_v30, %v3197_v18  ;;  %v3206_v18 = vsel %vm962_vm2, %v11268_v17, 0.0 }
 0x602   :  { %v3204_v42 = vsel %vm962_vm2, %v11265_v62, 0.0 }
 0x603   :  { %v3201_v54 = vadd.f32 %v3200_v36, %v3199_v46 }
 0x604   :  { %v2889_v35 = vpop.f32.mrb[40].mxu1 }
 0x605   :  { %v6083_v47 = vpop.f32.mrb[41].mxu1 }
 0x606   :  { %v2892_v14 = vpop.f32.mrb[42].mxu1 }
 0x607   :  { %v6084_v12 = vpop.f32.mrb[43].mxu1 }
 0x608   :  { %v3202_v12 = vsel %vm962_vm2, %v11258_v60, 0.0 }
 0x609   :  { %v3203_v34 = vadd.f32 %v3202_v12, %v3201_v54  ;;  %v11285_v54 = vadd.f32 %v10613_v22, %v2876_v5 }
 0x60b   :  { %v3205_v49 = vadd.f32 %v3204_v42, %v3203_v34  ;;  %16081 = vst [vmem:[#allocation19_spill] sm:$0xff] %v11285_v54 }
 0x60c   :  { %v2897_v48 = vpop.f32.mrb[44].mxu1 }
 0x60d   :  { %v6087_v25 = vpop.f32.mrb[45].mxu1  ;;  %v3207_v63 = vadd.f32 %v3206_v18, %v3205_v49  ;;  %v3212_v49 = vsel %vm962_vm2, %v11285_v54, 0.0  ;;  %v11305_v54 = vadd.f32 %v10613_v22, %v2892_v14 }
 0x60e   :  { %v2900_v47 = vpop.f32.mrb[46].mxu1  ;;  %v11275_v25 = vadd.f32 %v10613_v22, %v2868_v51 }
 0x60f   :  { %v6088_v41 = vpop.f32.mrb[47].mxu1  ;;  %16085 = vst [vmem:[#allocation23_spill] sm:$0xff] %v11305_v54 }
 0x610   :  { %v11278_v41 = vadd.f32 %v10613_v22, %v2873_v55  ;;  %v3208_v36 = vsel %vm962_vm2, %v11275_v25, 0.0 }
 0x611   :  { %v3209_v17 = vadd.f32 %v3208_v36, %v3207_v63  ;;  %v11298_v63 = vadd.f32 %v10613_v22, %v2889_v35 }
 0x612   :  { %16080 = vst [vmem:[#allocation18_spill] sm:$0xff] %v11278_v41  ;;  %v3210_v12 = vsel %vm962_vm2, %v11278_v41, 0.0  ;;  %v11295_v41 = vadd.f32 %v10613_v22, %v2884_v4 }
 0x613   :  { %v3211_v42 = vadd.f32 %v3210_v12, %v3209_v17  ;;  %16084 = vst [vmem:[#allocation22_spill] sm:$0xff] %v11298_v63 }
 0x614   :  { %v2905_v30 = vpop.f32.mrb[48].mxu1  ;;  %16083 = vst [vmem:[#allocation21_spill] sm:$0xff] %v11295_v41  ;;  %v3216_v17 = vsel %vm962_vm2, %v11295_v41, 0.0 }
 0x615   :  { %v6091_v60 = vpop.f32.mrb[49].mxu1  ;;  %v3213_v5 = vadd.f32 %v3212_v49, %v3211_v42  ;;  %v11308_v42 = vadd.f32 %v10613_v22, %v2897_v48  ;;  %v3220_v49 = vsel %vm962_vm2, %v11305_v54, 0.0 }
 0x616   :  { %v2908_v37 = vpop.f32.mrb[50].mxu1  ;;  %v11288_v60 = vadd.f32 %v10613_v22, %v2881_v53 }
 0x617   :  { %v6092_v46 = vpop.f32.mrb[51].mxu1  ;;  %16086 = vst [vmem:[#allocation24_spill] sm:$0xff] %v11308_v42 }
 0x618   :  { %16082 = vst [vmem:[#allocation20_spill] sm:$0xff] %v11288_v60  ;;  %v3214_v46 = vsel %vm962_vm2, %v11288_v60, 0.0 }
 0x619   :  { %v3215_v36 = vadd.f32 %v3214_v46, %v3213_v5  ;;  %v3222_v5 = vsel %vm962_vm2, %v11308_v42, 0.0 }
 0x61b   :  { %v3217_v4 = vadd.f32 %v3216_v17, %v3215_v36 }
 0x61c   :  { %v2913_v51 = vpop.f32.mrb[52].mxu1 }
 0x61d   :  { %v6095_v34 = vpop.f32.mrb[53].mxu1 }
 0x61e   :  { %v2916_v55 = vpop.f32.mrb[54].mxu1 }
 0x61f   :  { %v6096_v18 = vpop.f32.mrb[55].mxu1 }
 0x620   :  { %v3218_v18 = vsel %vm962_vm2, %v11298_v63, 0.0 }
 0x621   :  { %v3219_v35 = vadd.f32 %v3218_v18, %v3217_v4  ;;  %v11325_v4 = vadd.f32 %v10613_v22, %v2908_v37 }
 0x623   :  { %v3221_v41 = vadd.f32 %v3220_v49, %v3219_v35  ;;  %16089 = vst [vmem:[#allocation27_spill] sm:$0xff] %v11325_v4 }
 0x624   :  { %v2921_v53 = vpop.f32.mrb[56].mxu1 }
 0x625   :  { %v6099_v12 = vpop.f32.mrb[57].mxu1  ;;  %v3223_v48 = vadd.f32 %v3222_v5, %v3221_v41  ;;  %v3228_v41 = vsel %vm962_vm2, %v11325_v4, 0.0 }
 0x626   :  { %v2924_v34 = vpop.f32.mrb[58].mxu1  ;;  %v11315_v12 = vadd.f32 %v10613_v22, %v2900_v47 }
 0x627   :  { %v6100_v60 = vpop.f32.mrb[59].mxu1  ;;  %v11345_v4 = vadd.f32 %v10613_v22, %v2924_v34 }
 0x628   :  { %16087 = vst [vmem:[#allocation25_spill] sm:$0xff] %v11315_v12  ;;  %v11318_v60 = vadd.f32 %v10613_v22, %v2905_v30  ;;  %v3224_v17 = vsel %vm962_vm2, %v11315_v12, 0.0 }
 0x629   :  { %v3225_v42 = vadd.f32 %v3224_v17, %v3223_v48  ;;  %v11338_v48 = vadd.f32 %v10613_v22, %v2921_v53  ;;  %16093 = vst [vmem:[#allocation31_spill] sm:$0xff] %v11345_v4 }
 0x62a   :  { %16088 = vst [vmem:[#allocation26_spill] sm:$0xff] %v11318_v60  ;;  %v3226_v18 = vsel %vm962_vm2, %v11318_v60, 0.0  ;;  %v11335_v60 = vadd.f32 %v10613_v22, %v2916_v55 }
 0x62b   :  { %v3227_v49 = vadd.f32 %v3226_v18, %v3225_v42  ;;  %16092 = vst [vmem:[#allocation30_spill] sm:$0xff] %v11338_v48 }
 0x62c   :  { %v2929_v46 = vpop.f32.mrb[60].mxu1  ;;  %16091 = vst [vmem:[#allocation29_spill] sm:$0xff] %v11335_v60  ;;  %v3232_v42 = vsel %vm962_vm2, %v11335_v60, 0.0 }
 0x62d   :  { %v6103_v63 = vpop.f32.mrb[61].mxu1  ;;  %v3229_v37 = vadd.f32 %v3228_v41, %v3227_v49  ;;  %v11348_v49 = vadd.f32 %v10613_v22, %v2929_v46  ;;  %v3236_v41 = vsel %vm962_vm2, %v11345_v4, 0.0 }
 0x62e   :  { %v2932_v14 = vpop.f32.mrb[62].mxu1  ;;  %v11328_v63 = vadd.f32 %v10613_v22, %v2913_v51 }
 0x62f   :  { %v6104_v36 = vpop.f32.mrb[63].mxu1  ;;  %16094 = vst [vmem:[#allocation32_spill] sm:$0xff] %v11348_v49 }
 0x630   :  { %16090 = vst [vmem:[#allocation28_spill] sm:$0xff] %v11328_v63  ;;  %v3230_v36 = vsel %vm962_vm2, %v11328_v63, 0.0 }
 0x631   :  { %v3231_v17 = vadd.f32 %v3230_v36, %v3229_v37  ;;  %v3238_v37 = vsel %vm962_vm2, %v11348_v49, 0.0 }
 0x633   :  { %v3233_v55 = vadd.f32 %v3232_v42, %v3231_v17 }
 0x634   :  { %v2937_v47 = vpop.f32.mrb[64].mxu1 }
 0x635   :  { %v6107_v35 = vpop.f32.mrb[65].mxu1 }
 0x636   :  { %v2940_v30 = vpop.f32.mrb[66].mxu1 }
 0x637   :  { %v6108_v5 = vpop.f32.mrb[67].mxu1 }
 0x638   :  { %v3234_v5 = vsel %vm962_vm2, %v11338_v48, 0.0 }
 0x639   :  { %v3235_v53 = vadd.f32 %v3234_v5, %v3233_v55  ;;  %v11365_v55 = vadd.f32 %v10613_v22, %v2940_v30 }
 0x63b   :  { %v3237_v60 = vadd.f32 %v3236_v41, %v3235_v53  ;;  %16097 = vst [vmem:[#allocation35_spill] sm:$0xff] %v11365_v55 }
 0x63c   :  { %v2945_v51 = vpop.f32.mrb[68].mxu1 }
 0x63d   :  { %v6111_v18 = vpop.f32.mrb[69].mxu1  ;;  %v3239_v46 = vadd.f32 %v3238_v37, %v3237_v60  ;;  %v3244_v60 = vsel %vm962_vm2, %v11365_v55, 0.0 }
 0x63e   :  { %v2948_v35 = vpop.f32.mrb[70].mxu1  ;;  %v11355_v18 = vadd.f32 %v10613_v22, %v2932_v14 }
 0x63f   :  { %v6112_v63 = vpop.f32.mrb[71].mxu1 }
 0x640   :  { %16095 = vst [vmem:[#allocation33_spill] sm:$0xff] %v11355_v18  ;;  %v11358_v63 = vadd.f32 %v10613_v22, %v2937_v47  ;;  %v3240_v42 = vsel %vm962_vm2, %v11355_v18, 0.0 }
 0x641   :  { %v3241_v49 = vadd.f32 %v3240_v42, %v3239_v46 }
 0x642   :  { %16096 = vst [vmem:[#allocation34_spill] sm:$0xff] %v11358_v63  ;;  %v3242_v5 = vsel %vm962_vm2, %v11358_v63, 0.0  ;;  %v11375_v63 = vadd.f32 %v10613_v22, %v2948_v35 }
 0x643   :  { %v3243_v41 = vadd.f32 %v3242_v5, %v3241_v49 }
 0x644   :  { %v2953_v36 = vpop.f32.mrb[72].mxu1  ;;  %16099 = vst [vmem:[#allocation37_spill] sm:$0xff] %v11375_v63  ;;  %v3248_v49 = vsel %vm962_vm2, %v11375_v63, 0.0 }
 0x645   :  { %v6115_v48 = vpop.f32.mrb[73].mxu1  ;;  %v3245_v30 = vadd.f32 %v3244_v60, %v3243_v41  ;;  %v11378_v46 = vadd.f32 %v10613_v22, %v2953_v36 }
 0x646   :  { %v2956_v34 = vpop.f32.mrb[74].mxu1  ;;  %v11368_v48 = vadd.f32 %v10613_v22, %v2945_v51 }
 0x647   :  { %v6116_v17 = vpop.f32.mrb[75].mxu1  ;;  %16100 = vst [vmem:[#allocation38_spill] sm:$0xff] %v11378_v46  ;;  %v11385_v55 = vadd.f32 %v10613_v22, %v2956_v34 }
 0x648   :  { %16098 = vst [vmem:[#allocation36_spill] sm:$0xff] %v11368_v48  ;;  %v3246_v17 = vsel %vm962_vm2, %v11368_v48, 0.0 }
 0x649   :  { %v3247_v42 = vadd.f32 %v3246_v17, %v3245_v30  ;;  %16101 = vst [vmem:[#allocation39_spill] sm:$0xff] %v11385_v55  ;;  %v3252_v60 = vsel %vm962_vm2, %v11385_v55, 0.0 }
 0x64b   :  { %v3249_v35 = vadd.f32 %v3248_v49, %v3247_v42 }
 0x64c   :  { %v2961_v14 = vpop.f32.mrb[76].mxu1 }
 0x64d   :  { %v6119_v53 = vpop.f32.mrb[77].mxu1  ;;  %v11388_v41 = vadd.f32 %v10613_v22, %v2961_v14 }
 0x64e   :  { %v2964_v47 = vpop.f32.mrb[78].mxu1 }
 0x64f   :  { %v6120_v37 = vpop.f32.mrb[79].mxu1  ;;  %16102 = vst [vmem:[#allocation40_spill] sm:$0xff] %v11388_v41  ;;  %v3254_v30 = vsel %vm962_vm2, %v11388_v41, 0.0 }
 0x650   :  { %v3250_v37 = vsel %vm962_vm2, %v11378_v46, 0.0 }
 0x651   :  { %v3251_v36 = vadd.f32 %v3250_v37, %v3249_v35 }
 0x653   :  { %v3253_v42 = vadd.f32 %v3252_v60, %v3251_v36 }
 0x654   :  { %v2969_v51 = vpop.f32.mrb[80].mxu1 }
 0x655   :  { %v6123_v5 = vpop.f32.mrb[81].mxu1  ;;  %v3255_v37 = vadd.f32 %v3254_v30, %v3253_v42 }
 0x656   :  { %v2972_v53 = vpop.f32.mrb[82].mxu1  ;;  %v11397_v5 = vld [vmem:[%s14967_s5] ss:$0 sm:$0xff] }
 0x657   :  { %v6124_v48 = vpop.f32.mrb[83].mxu1  ;;  %v11400_v34 = vadd.f32 %v11397_v5, %v2964_v47  ;;  %v11403_v14 = vadd.f32 %v11397_v5, %v2969_v51  ;;  %v11410_v55 = vadd.f32 %v11397_v5, %v2972_v53 }
 0x659   :  { %16103 = vst [vmem:[#allocation41_spill] sm:$0xff] %v11400_v34  ;;  %16104 = vst [vmem:[#allocation43_spill] sm:$0xff] %v11403_v14  ;;  %v3256_v35 = vsel %vm962_vm2, %v11400_v34, 0.0  ;;  %v3258_v41 = vsel %vm962_vm2, %v11403_v14, 0.0  ;;  %v3260_v30 = vsel %vm962_vm2, %v11410_v55, 0.0 }
 0x65a   :  { %16105 = vst [vmem:[#allocation45_spill] sm:$0xff] %v11410_v55  ;;  %v3257_v46 = vadd.f32 %v3256_v35, %v3255_v37 }
 0x65c   :  { %v2977_v17 = vpop.f32.mrb[84].mxu1  ;;  %v3259_v60 = vadd.f32 %v3258_v41, %v3257_v46 }
 0x65d   :  { %v6127_v48 = vpop.f32.mrb[85].mxu1 }
 0x65e   :  { %v2980_v22 = vpop.f32.mrb[86].mxu1  ;;  %v11413_v48 = vadd.f32 %v11397_v5, %v2977_v17  ;;  %v3261_v53 = vadd.f32 %v3260_v30, %v3259_v60 }
 0x65f   :  { %v6128_v49 = vpop.f32.mrb[87].mxu1  ;;  %v11420_v14 = vadd.f32 %v11397_v5, %v2980_v22 }
 0x660   :  { %16106 = vst [vmem:[#allocation46_spill] sm:$0xff] %v11413_v48  ;;  %v3262_v49 = vsel %vm962_vm2, %v11413_v48, 0.0 }
 0x661   :  { %16107 = vst [vmem:[#allocation88_spill] sm:$0xff] %v11420_v14  ;;  %v3263_v35 = vadd.f32 %v3262_v49, %v3261_v53  ;;  %v3264_v46 = vsel %vm962_vm2, %v11420_v14, 0.0 }
 0x663   :  { %v3265_v22 = vadd.f32 %v3264_v46, %v3263_v35 }
 0x664   :  { %v2985_v47 = vpop.f32.mrb[88].mxu1 }
 0x665   :  { %v6131_v36 = vpop.f32.mrb[89].mxu1  ;;  %v11423_v37 = vadd.f32 %v11397_v5, %v2985_v47 }
 0x666   :  { %v2988_v51 = vpop.f32.mrb[90].mxu1 }
 0x667   :  { %v6132_v42 = vpop.f32.mrb[91].mxu1  ;;  %16108 = vst [vmem:[#allocation89_spill] sm:$0xff] %v11423_v37  ;;  %v11430_v55 = vadd.f32 %v11397_v5, %v2988_v51 }
 0x668   :  { %v3266_v42 = vsel %vm962_vm2, %v11423_v37, 0.0 }
 0x669   :  { %16109 = vst [vmem:[#allocation90_spill] sm:$0xff] %v11430_v55  ;;  %v3267_v47 = vadd.f32 %v3266_v42, %v3265_v22  ;;  %v3268_v30 = vsel %vm962_vm2, %v11430_v55, 0.0 }
 0x66b   :  { %v3269_v14 = vadd.f32 %v3268_v30, %v3267_v47 }
 0x66c   :  { %v2993_v17 = vpop.f32.mrb[92].mxu1 }
 0x66d   :  { %v6135_v41 = vpop.f32.mrb[93].mxu1  ;;  %v11433_v60 = vadd.f32 %v11397_v5, %v2993_v17 }
 0x66e   :  { %v2996_v36 = vpop.f32.mrb[94].mxu1 }
 0x66f   :  { %v6136_v48 = vpop.f32.mrb[95].mxu1  ;;  %16110 = vst [vmem:[#allocation92_spill] sm:$0xff] %v11433_v60  ;;  %v3270_v53 = vsel %vm962_vm2, %v11433_v60, 0.0  ;;  %v11440_v41 = vadd.f32 %v11397_v5, %v2996_v36 }
 0x670   :  { %v3271_v17 = vadd.f32 %v3270_v53, %v3269_v14 }
 0x671   :  { %16111 = vst [vmem:[#allocation17_spill] sm:$0xff] %v11440_v41  ;;  %v3272_v46 = vsel %vm962_vm2, %v11440_v41, 0.0 }
 0x672   :  { %v3273_v60 = vadd.f32 %v3272_v46, %v3271_v17 }
 0x674   :  { %v3001_v49 = vpop.f32.mrb[96].mxu1 }
 0x675   :  { %v6139_v37 = vpop.f32.mrb[97].mxu1  ;;  %v11443_v48 = vadd.f32 %v11397_v5, %v3001_v49 }
 0x676   :  { %v3004_v51 = vpop.f32.mrb[98].mxu1 }
 0x677   :  { %16112 = vst [vmem:[#allocation93_spill] sm:$0xff] %v11443_v48  ;;  %v6140_v35 = vpop.f32.mrb[99].mxu1  ;;  %v3274_v42 = vsel %vm962_vm2, %v11443_v48, 0.0  ;;  %v11450_v22 = vadd.f32 %v11397_v5, %v3004_v51 }
 0x678   :  { %v3275_v30 = vadd.f32 %v3274_v42, %v3273_v60 }
 0x679   :  { %16113 = vst [vmem:[#allocation77_spill] sm:$0xff] %v11450_v22  ;;  %v3276_v14 = vsel %vm962_vm2, %v11450_v22, 0.0 }
 0x67a   :  { %v3277_v51 = vadd.f32 %v3276_v14, %v3275_v30 }
 0x67c   :  { %v3009_v36 = vpop.f32.mrb[100].mxu1 }
 0x67d   :  { %v11453_v37 = vadd.f32 %v11397_v5, %v3009_v36  ;;  %v6143_v47 = vpop.f32.mrb[101].mxu1 }
 0x67e   :  { %v3012_v49 = vpop.f32.mrb[102].mxu1 }
 0x67f   :  { %16114 = vst [vmem:[#allocation42_spill] sm:$0xff] %v11453_v37  ;;  %v6144_v53 = vpop.f32.mrb[103].mxu1  ;;  %v3278_v35 = vsel %vm962_vm2, %v11453_v37, 0.0  ;;  %v11460_v48 = vadd.f32 %v11397_v5, %v3012_v49 }
 0x680   :  { %v3279_v41 = vadd.f32 %v3278_v35, %v3277_v51 }
 0x681   :  { %16115 = vst [vmem:[#allocation44_spill] sm:$0xff] %v11460_v48  ;;  %v3280_v46 = vsel %vm962_vm2, %v11460_v48, 0.0 }
 0x682   :  { %v3281_v49 = vadd.f32 %v3280_v46, %v3279_v41 }
 0x684   :  { %v3017_v17 = vpop.f32.mrb[104].mxu1 }
 0x685   :  { %v11465_v36 = vadd.f32 %v11397_v5, %v3017_v17  ;;  %v6147_v60 = vpop.f32.mrb[105].mxu1 }
 0x686   :  { %v3020_v42 = vpop.f32.mrb[106].mxu1 }
 0x687   :  { %16116 = vst [vmem:[#allocation4_spill] sm:$0xff] %v11465_v36  ;;  %v3282_v47 = vsel %vm962_vm2, %v11465_v36, 0.0  ;;  %v11470_v53 = vadd.f32 %v11397_v5, %v3020_v42  ;;  %v6148_v37 = vpop.f32.mrb[107].mxu1 }
 0x688   :  { %v3283_v22 = vadd.f32 %v3282_v47, %v3281_v49 }
 0x689   :  { %16117 = vst [vmem:[#allocation5_spill] sm:$0xff] %v11470_v53  ;;  %v3284_v30 = vsel %vm962_vm2, %v11470_v53, 0.0 }
 0x68a   :  { %v3285_v17 = vadd.f32 %v3284_v30, %v3283_v22 }
 0x68c   :  { %v3025_v14 = vpop.f32.mrb[108].mxu1 }
 0x68d   :  { %v3026_v35 = vadd.f32 %v11397_v5, %v3025_v14  ;;  %v6151_v51 = vpop.f32.mrb[109].mxu1 }
 0x68e   :  { %v3028_v48 = vpop.f32.mrb[110].mxu1 }
 0x68f   :  { %v3286_v60 = vsel %vm962_vm2, %v3026_v35, 0.0  ;;  %v3029_v55 = vadd.f32 %v11397_v5, %v3028_v48  ;;  %v6152_v36 = vpop.f32.mrb[111].mxu1 }
 0x690   :  { %v3287_v34 = vadd.f32 %v3286_v60, %v3285_v17 }
 0x691   :  { %v3288_v42 = vsel %vm962_vm2, %v3029_v55, 0.0 }
 0x692   :  { %v3289_v37 = vadd.f32 %v3288_v42, %v3287_v34 }
 0x694   :  { %v3033_v41 = vpop.f32.mrb[112].mxu1 }
 0x695   :  { %v3034_v46 = vadd.f32 %v11397_v5, %v3033_v41  ;;  %v6155_v47 = vpop.f32.mrb[113].mxu1 }
 0x696   :  { %v3036_v49 = vpop.f32.mrb[114].mxu1 }
 0x697   :  { %v3290_v53 = vsel %vm962_vm2, %v3034_v46, 0.0  ;;  %v3037_v14 = vadd.f32 %v11397_v5, %v3036_v49  ;;  %v6156_v22 = vpop.f32.mrb[115].mxu1 }
 0x698   :  { %v3291_v30 = vadd.f32 %v3290_v53, %v3289_v37 }
 0x699   :  { %v3292_v51 = vsel %vm962_vm2, %v3037_v14, 0.0 }
 0x69a   :  { %v3293_v63 = vadd.f32 %v3292_v51, %v3291_v30 }
 0x69c   :  { %v3041_v48 = vpop.f32.mrb[116].mxu1 }
 0x69d   :  { %v3042_v36 = vadd.f32 %v11397_v5, %v3041_v48  ;;  %v6159_v17 = vpop.f32.mrb[117].mxu1 }
 0x69e   :  { %v3044_v60 = vpop.f32.mrb[118].mxu1 }
 0x69f   :  { %v3294_v34 = vsel %vm962_vm2, %v3042_v36, 0.0  ;;  %v6160_v42 = vpop.f32.mrb[119].mxu1 }
 0x6a0   :  { %v3295_v41 = vadd.f32 %v3294_v34, %v3293_v63 }
 0x6a2   :  { %v3296_v47 = vrot.slane %v3295_v41, 4 }
 0x6a4   :  { %v3297_v18 = vadd.f32 %v3296_v47, %v3295_v41 }
 0x6a6   :  { %v3298_v4 = vrot.slane %v3297_v18, 2 }
 0x6a8   :  { %v3299_v12 = vadd.f32 %v3298_v4, %v3297_v18 }
 0x6aa   :  { %v3300_v54 = vrot.slane %v3299_v12, 1 }
 0x6ac   :  { %v3301_v49 = vadd.f32 %v3300_v54, %v3299_v12 }
 0x6ae   :  { %v11484_v22 = vmul.f32 0.001, %v3301_v49 }
 0x6b0   :  { %v11487_v53 = vsub.f32 %v3026_v35, %v11484_v22  ;;  %v11490_v37 = vsub.f32 %v3029_v55, %v11484_v22  ;;  %v11493_v5 = vsub.f32 %v3034_v46, %v11484_v22  ;;  %v11496_v30 = vsub.f32 %v3037_v14, %v11484_v22 }
 0x6b1   :  { %v11499_v63 = vsub.f32 %v3042_v36, %v11484_v22  ;;  %v11503_v54 = vsub.f32 %v10625_v7, %v11484_v22  ;;  %v11507_v12 = vsub.f32 %v10619_v1, %v11484_v22  ;;  %v11511_v4 = vsub.f32 %v10629_v2, %v11484_v22 }
 0x6b2   :  { %v11515_v18 = vsub.f32 %v10643_v40, %v11484_v22  ;;  %v11523_v7 = vsub.f32 %v10649_v29, %v11484_v22  ;;  %v11529_v2 = vsub.f32 %v10659_v23, %v11484_v22  ;;  %v11537_v48 = vsub.f32 %v10667_v45, %v11484_v22 }
 0x6b3   :  { %16118 = vst [vmem:[#allocation6_spill] sm:$0xff] %v11503_v54  ;;  %16119 = vst [vmem:[#allocation79_spill] sm:$0xff] %v11507_v12  ;;  %v3428_v55 = vmul.f32 %v11503_v54, %v11503_v54  ;;  %v3429_v35 = vmul.f32 %v11507_v12, %v11507_v12  ;;  %v3430_v1 = vmul.f32 %v11511_v4, %v11511_v4 }
 0x6b4   :  { %16120 = vst [vmem:[#allocation80_spill] sm:$0xff] %v11511_v4  ;;  %16121 = vst [vmem:[#allocation47_spill] sm:$0xff] %v11515_v18  ;;  %v3431_v40 = vmul.f32 %v11515_v18, %v11515_v18  ;;  %v3432_v29 = vmul.f32 %v11523_v7, %v11523_v7  ;;  %v11544_v23 = vsub.f32 %v10679_v26, %v11484_v22 }
 0x6b5   :  { %16122 = vst [vmem:[#allocation48_spill] sm:$0xff] %v11523_v7  ;;  %16123 = vst [vmem:[#allocation50_spill] sm:$0xff] %v11529_v2  ;;  %v3553_v46 = vsel %vm962_vm2, %v3428_v55, 0.0  ;;  %v3554_v14 = vsel %vm962_vm2, %v3429_v35, 0.0  ;;  %v3556_v36 = vsel %vm962_vm2, %v3430_v1, 0.0  ;;  %v3433_v60 = vmul.f32 %v11529_v2, %v11529_v2 }
 0x6b6   :  { %v3555_v51 = vadd.f32 %v3554_v14, %v3553_v46  ;;  %16124 = vst [vmem:[#allocation52_spill] sm:$0xff] %v11537_v48  ;;  %16125 = vst [vmem:[#allocation53_spill] sm:$0xff] %v11544_v23  ;;  %v3558_v34 = vsel %vm962_vm2, %v3431_v40, 0.0  ;;  %v11551_v45 = vsub.f32 %v10683_v61, %v11484_v22  ;;  %v3434_v41 = vmul.f32 %v11537_v48, %v11537_v48 }
 0x6b7   :  { %v3560_v47 = vsel %vm962_vm2, %v3432_v29, 0.0  ;;  %v11558_v26 = vsub.f32 %v10697_v6, %v11484_v22  ;;  %v3435_v55 = vmul.f32 %v11544_v23, %v11544_v23  ;;  %v3562_v35 = vsel %vm962_vm2, %v3433_v60, 0.0 }
 0x6b8   :  { %v3557_v17 = vadd.f32 %v3556_v36, %v3555_v51  ;;  %16126 = vst [vmem:[#allocation55_spill] sm:$0xff] %v11551_v45  ;;  %v11565_v61 = vsub.f32 %v10703_v11, %v11484_v22  ;;  %v3436_v40 = vmul.f32 %v11551_v45, %v11551_v45  ;;  %v3564_v46 = vsel %vm962_vm2, %v3434_v41, 0.0 }
 0x6b9   :  { %16127 = vst [vmem:[#allocation78_spill] sm:$0xff] %v11558_v26  ;;  %v11572_v6 = vsub.f32 %v10715_v10, %v11484_v22  ;;  %v3437_v51 = vmul.f32 %v11558_v26, %v11558_v26  ;;  %v3566_v29 = vsel %vm962_vm2, %v3435_v55, 0.0  ;;  %v11579_v11 = vsub.f32 %v10721_v27, %v11484_v22 }
 0x6ba   :  { %v3559_v42 = vadd.f32 %v3558_v34, %v3557_v17  ;;  %16128 = vst [vmem:[#allocation57_spill] sm:$0xff] %v11565_v61  ;;  %v3438_v17 = vmul.f32 %v11565_v61, %v11565_v61  ;;  %v3568_v60 = vsel %vm962_vm2, %v3436_v40, 0.0  ;;  %v11586_v10 = vsub.f32 %v10731_v28, %v11484_v22 }
 0x6bb   :  { %16129 = vst [vmem:[#allocation94_spill] sm:$0xff] %v11572_v6  ;;  %16130 = vst [vmem:[#allocation95_spill] sm:$0xff] %v11579_v11  ;;  %v3570_v41 = vsel %vm962_vm2, %v3437_v51, 0.0  ;;  %v11593_v27 = vsub.f32 %v10739_v38, %v11484_v22  ;;  %v11600_v28 = vsub.f32 %v10751_v50, %v11484_v22  ;;  %v11607_v38 = vsub.f32 %v10755_v43, %v11484_v22 }
 0x6bc   :  { %v3561_v49 = vadd.f32 %v3560_v47, %v3559_v42  ;;  %16131 = vst [vmem:[#allocation96_spill] sm:$0xff] %v11586_v10  ;;  %v3439_v42 = vmul.f32 %v11572_v6, %v11572_v6  ;;  %v3572_v55 = vsel %vm962_vm2, %v3438_v17, 0.0  ;;  %v11614_v50 = vsub.f32 %v10769_v21, %v11484_v22 }
 0x6bd   :  { %16132 = vst [vmem:[#allocation97_spill] sm:$0xff] %v11593_v27  ;;  %16133 = vst [vmem:[#allocation98_spill] sm:$0xff] %v11600_v28  ;;  %v11621_v43 = vsub.f32 %v10775_v52, %v11484_v22  ;;  %v11628_v21 = vsub.f32 %v10787_v9, %v11484_v22  ;;  %v11636_v52 = vld [vmem:[%s14968_s6] sm:$0x3] }
 0x6be   :  { %v3563_v1 = vadd.f32 %v3562_v35, %v3561_v49  ;;  %v3440_v49 = vmul.f32 %v11579_v11, %v11579_v11  ;;  %v3574_v40 = vsel %vm962_vm2, %v3439_v42, 0.0 }
 0x6c0   :  { %v3565_v14 = vadd.f32 %v3564_v46, %v3563_v1  ;;  %v3441_v1 = vmul.f32 %v11586_v10, %v11586_v10  ;;  %v3576_v51 = vsel %vm962_vm2, %v3440_v49, 0.0 }
 0x6c2   :  { %v3567_v36 = vadd.f32 %v3566_v29, %v3565_v14  ;;  %v3442_v14 = vmul.f32 %v11593_v27, %v11593_v27  ;;  %v3578_v17 = vsel %vm962_vm2, %v3441_v1, 0.0  ;;  %v3446_v1 = vmul.f32 %v11621_v43, %v11621_v43 }
 0x6c4   :  { %v3569_v34 = vadd.f32 %v3568_v60, %v3567_v36  ;;  %v3443_v36 = vmul.f32 %v11600_v28, %v11600_v28  ;;  %v3580_v42 = vsel %vm962_vm2, %v3442_v14, 0.0 }
 0x6c6   :  { %v3571_v47 = vadd.f32 %v3570_v41, %v3569_v34  ;;  %v3444_v34 = vmul.f32 %v11607_v38, %v11607_v38  ;;  %v3582_v49 = vsel %vm962_vm2, %v3443_v36, 0.0  ;;  %v3447_v36 = vmul.f32 %v11628_v21, %v11628_v21 }
 0x6c8   :  { %v3573_v35 = vadd.f32 %v3572_v55, %v3571_v47  ;;  %v3445_v47 = vmul.f32 %v11614_v50, %v11614_v50  ;;  %v3584_v9 = vsel %vm962_vm2, %v3444_v34, 0.0 }
 0x6ca   :  { %v3575_v46 = vadd.f32 %v3574_v40, %v3573_v35  ;;  %v11640_v35 = vsub.f32 %v10793_v57, %v11484_v22  ;;  %v3586_v57 = vsel %vm962_vm2, %v3445_v47, 0.0  ;;  %v3590_v47 = vsel %vm962_vm2, %v3447_v36, 0.0 }
 0x6cc   :  { %v3577_v29 = vadd.f32 %v3576_v51, %v3575_v46  ;;  %v16134_v46 = vld [vmem:[#allocation83_spill] sm:$0xff]  ;;  %v3448_v34 = vmul.f32 %v11640_v35, %v11640_v35 }
 0x6cd   :  { %v16135_v14 = vsub.s32 0, %v16134_v46 }
 0x6ce   :  { %v3579_v60 = vadd.f32 %v3578_v17, %v3577_v29  ;;  %v11652_v29 = vsub.f32 %v10803_v15, %v11484_v22  ;;  %v11666_v15 = vsub.f32 %v10823_v44, %v11484_v22  ;;  %v3592_v44 = vsel %vm962_vm2, %v3448_v34, 0.0 }
 0x6cf   :  { %v11648_v51 = vrot.slane %v11636_v52, %v16135_v14  ;;  %v16138_v14 = vld [vmem:[#allocation65_spill] sm:$0xff] }
 0x6d0   :  { %v3581_v41 = vadd.f32 %v3580_v42, %v3579_v60  ;;  %v11659_v60 = vsub.f32 %v10811_v39, %v11484_v22  ;;  %v3588_v42 = vsel %vm962_vm2, %v3446_v1, 0.0  ;;  %v3451_v36 = vmul.f32 %v11666_v15, %v11666_v15 }
 0x6d1   :  { %16136 = vst [vmem:[#allocation83_spill] sm:$0xff] %v11648_v51 }
 0x6d2   :  { %v3583_v55 = vadd.f32 %v3582_v49, %v3581_v41  ;;  %v3449_v49 = vmul.f32 %v11652_v29, %v11652_v29  ;;  %v3450_v1 = vmul.f32 %v11659_v60, %v11659_v60 }
 0x6d4   :  { %v3585_v40 = vadd.f32 %v3584_v9, %v3583_v55  ;;  %v11673_v55 = vmul.f32 %v11648_v51, %v11499_v63  ;;  %v11677_v9 = vsub.f32 %v10827_v0, %v11484_v22  ;;  %v3596_v34 = vsel %vm962_vm2, %v3450_v1, 0.0 }
 0x6d6   :  { %v3587_v17 = vadd.f32 %v3586_v57, %v3585_v40  ;;  %16137 = vst [vmem:[#allocation99_spill] sm:$0xff] %v11673_v55  ;;  %v11684_v57 = vsub.f32 %v16138_v14, %v11484_v22 }
 0x6d8   :  { %v3589_v41 = vadd.f32 %v3588_v42, %v3587_v17  ;;  %v3594_v17 = vsel %vm962_vm2, %v3449_v49, 0.0  ;;  %v3453_v14 = vmul.f32 %v11684_v57, %v11684_v57  ;;  %v3598_v49 = vsel %vm962_vm2, %v3451_v36, 0.0 }
 0x6da   :  { %v3591_v39 = vadd.f32 %v3590_v47, %v3589_v41  ;;  %v16139_v41 = vld [vmem:[#allocation66_spill] sm:$0xff]  ;;  %v3452_v47 = vmul.f32 %v11677_v9, %v11677_v9  ;;  %v3602_v36 = vsel %vm962_vm2, %v3453_v14, 0.0 }
 0x6db   :  { %v11691_v0 = vsub.f32 %v16139_v41, %v11484_v22 }
 0x6dc   :  { %v3593_v40 = vadd.f32 %v3592_v44, %v3591_v39  ;;  %v11698_v44 = vsub.f32 %v10859_v8, %v11484_v22  ;;  %v3600_v1 = vsel %vm962_vm2, %v3452_v47, 0.0 }
 0x6dd   :  { %v3454_v28 = vmul.f32 %v11691_v0, %v11691_v0 }
 0x6de   :  { %v3595_v42 = vadd.f32 %v3594_v17, %v3593_v40  ;;  %v16140_v17 = vld [vmem:[#allocation68_spill] sm:$0xff]  ;;  %v3455_v27 = vmul.f32 %v11698_v44, %v11698_v44 }
 0x6df   :  { %v11705_v41 = vsub.f32 %v16140_v17, %v11484_v22  ;;  %v3604_v47 = vsel %vm962_vm2, %v3454_v28, 0.0 }
 0x6e0   :  { %v3597_v39 = vadd.f32 %v3596_v34, %v3595_v42  ;;  %v16141_v34 = vld [vmem:[#allocation70_spill] sm:$0xff]  ;;  %v3606_v14 = vsel %vm962_vm2, %v3455_v27, 0.0 }
 0x6e1   :  { %v11712_v8 = vsub.f32 %v16141_v34, %v11484_v22  ;;  %v3456_v10 = vmul.f32 %v11705_v41, %v11705_v41 }
 0x6e2   :  { %v3599_v40 = vadd.f32 %v3598_v49, %v3597_v39  ;;  %v16142_v49 = vld [vmem:[#allocation71_spill] sm:$0xff] }
 0x6e3   :  { %v11719_v17 = vsub.f32 %v16142_v49, %v11484_v22  ;;  %v3457_v11 = vmul.f32 %v11712_v8, %v11712_v8  ;;  %v3608_v28 = vsel %vm962_vm2, %v3456_v10, 0.0 }
 0x6e4   :  { %v3601_v42 = vadd.f32 %v3600_v1, %v3599_v40  ;;  %v16143_v1 = vld [vmem:[#allocation75_spill] sm:$0xff] }
 0x6e5   :  { %v11726_v34 = vsub.f32 %v16143_v1, %v11484_v22  ;;  %v3458_v49 = vmul.f32 %v11719_v17, %v11719_v17  ;;  %v3610_v27 = vsel %vm962_vm2, %v3457_v11, 0.0 }
 0x6e6   :  { %v3603_v39 = vadd.f32 %v3602_v36, %v3601_v42  ;;  %v11733_v36 = vsub.f32 %v10899_v33, %v11484_v22 }
 0x6e7   :  { %v3459_v6 = vmul.f32 %v11726_v34, %v11726_v34  ;;  %v3612_v10 = vsel %vm962_vm2, %v3458_v49, 0.0 }
 0x6e8   :  { %v3605_v40 = vadd.f32 %v3604_v47, %v3603_v39  ;;  %v16144_v47 = vld [vmem:[#allocation86_spill] sm:$0xff]  ;;  %v3460_v61 = vmul.f32 %v11733_v36, %v11733_v36 }
 0x6e9   :  { %v11740_v1 = vsub.f32 %v16144_v47, %v11484_v22  ;;  %v3614_v11 = vsel %vm962_vm2, %v3459_v6, 0.0 }
 0x6ea   :  { %v3607_v42 = vadd.f32 %v3606_v14, %v3605_v40  ;;  %v16145_v14 = vld [vmem:[#allocation87_spill] sm:$0xff]  ;;  %v3616_v49 = vsel %vm962_vm2, %v3460_v61, 0.0 }
 0x6eb   :  { %v11747_v33 = vsub.f32 %v16145_v14, %v11484_v22  ;;  %v3461_v47 = vmul.f32 %v11740_v1, %v11740_v1 }
 0x6ec   :  { %v3609_v39 = vadd.f32 %v3608_v28, %v3607_v42  ;;  %v11754_v28 = vsub.f32 %v10931_v16, %v11484_v22 }
 0x6ed   :  { %v3462_v26 = vmul.f32 %v11747_v33, %v11747_v33  ;;  %v3618_v6 = vsel %vm962_vm2, %v3461_v47, 0.0 }
 0x6ee   :  { %v3611_v40 = vadd.f32 %v3610_v27, %v3609_v39  ;;  %v16146_v27 = vld [vmem:[#allocation49_spill] sm:$0xff]  ;;  %v3463_v45 = vmul.f32 %v11754_v28, %v11754_v28 }
 0x6ef   :  { %v11761_v14 = vsub.f32 %v16146_v27, %v11484_v22  ;;  %v3620_v61 = vsel %vm962_vm2, %v3462_v26, 0.0 }
 0x6f0   :  { %v3613_v42 = vadd.f32 %v3612_v10, %v3611_v40  ;;  %v16147_v10 = vld [vmem:[#allocation73_spill] sm:$0xff]  ;;  %v3622_v47 = vsel %vm962_vm2, %v3463_v45, 0.0 }
 0x6f1   :  { %v11768_v16 = vsub.f32 %v16147_v10, %v11484_v22  ;;  %v3464_v23 = vmul.f32 %v11761_v14, %v11761_v14 }
 0x6f2   :  { %v3615_v39 = vadd.f32 %v3614_v11, %v3613_v42  ;;  %v16148_v11 = vld [vmem:[#allocation51_spill] sm:$0xff] }
 0x6f3   :  { %v11775_v27 = vsub.f32 %v16148_v11, %v11484_v22  ;;  %v3465_v48 = vmul.f32 %v11768_v16, %v11768_v16  ;;  %v3624_v26 = vsel %vm962_vm2, %v3464_v23, 0.0 }
 0x6f4   :  { %v3617_v40 = vadd.f32 %v3616_v49, %v3615_v39  ;;  %v16149_v49 = vld [vmem:[#allocation54_spill] sm:$0xff] }
 0x6f5   :  { %v11782_v10 = vsub.f32 %v16149_v49, %v11484_v22  ;;  %v3466_v11 = vmul.f32 %v11775_v27, %v11775_v27  ;;  %v3626_v45 = vsel %vm962_vm2, %v3465_v48, 0.0 }
 0x6f6   :  { %v3619_v42 = vadd.f32 %v3618_v6, %v3617_v40  ;;  %v11789_v6 = vsub.f32 %v10971_v59, %v11484_v22 }
 0x6f7   :  { %v3467_v2 = vmul.f32 %v11782_v10, %v11782_v10  ;;  %v3628_v23 = vsel %vm962_vm2, %v3466_v11, 0.0 }
 0x6f8   :  { %v3621_v39 = vadd.f32 %v3620_v61, %v3619_v42  ;;  %v16150_v61 = vld [vmem:[#allocation56_spill] sm:$0xff]  ;;  %v3468_v7 = vmul.f32 %v11789_v6, %v11789_v6 }
 0x6f9   :  { %v11796_v49 = vsub.f32 %v16150_v61, %v11484_v22  ;;  %v3630_v48 = vsel %vm962_vm2, %v3467_v2, 0.0 }
 0x6fa   :  { %v3623_v40 = vadd.f32 %v3622_v47, %v3621_v39  ;;  %v16151_v47 = vld [vmem:[#allocation85_spill] sm:$0xff]  ;;  %v3632_v11 = vsel %vm962_vm2, %v3468_v7, 0.0 }
 0x6fb   :  { %v11803_v59 = vsub.f32 %v16151_v47, %v11484_v22  ;;  %v3469_v61 = vmul.f32 %v11796_v49, %v11796_v49 }
 0x6fc   :  { %v3625_v42 = vadd.f32 %v3624_v26, %v3623_v40  ;;  %v11810_v26 = vsub.f32 %v11003_v58, %v11484_v22 }
 0x6fd   :  { %v3470_v18 = vmul.f32 %v11803_v59, %v11803_v59  ;;  %v3634_v2 = vsel %vm962_vm2, %v3469_v61, 0.0 }
 0x6fe   :  { %v3627_v39 = vadd.f32 %v3626_v45, %v3625_v42  ;;  %v16152_v45 = vld [vmem:[#allocation81_spill] sm:$0xff]  ;;  %v3471_v4 = vmul.f32 %v11810_v26, %v11810_v26 }
 0x6ff   :  { %v11817_v47 = vsub.f32 %v16152_v45, %v11484_v22  ;;  %v3636_v7 = vsel %vm962_vm2, %v3470_v18, 0.0 }
 0x700   :  { %v3629_v40 = vadd.f32 %v3628_v23, %v3627_v39  ;;  %v16153_v23 = vld [vmem:[#allocation72_spill] sm:$0xff]  ;;  %v3638_v61 = vsel %vm962_vm2, %v3471_v4, 0.0 }
 0x701   :  { %v11824_v58 = vsub.f32 %v16153_v23, %v11484_v22  ;;  %v3472_v12 = vmul.f32 %v11817_v47, %v11817_v47 }
 0x702   :  { %v3631_v42 = vadd.f32 %v3630_v48, %v3629_v40  ;;  %v16155_v48 = vld [vmem:[#allocation58_spill] sm:$0xff] }
 0x703   :  { %16154 = vst [vmem:[#allocation65_spill] sm:$0xff] %v11824_v58  ;;  %v11831_v45 = vsub.f32 %v16155_v48, %v11484_v22  ;;  %v3473_v54 = vmul.f32 %v11824_v58, %v11824_v58  ;;  %v3640_v18 = vsel %vm962_vm2, %v3472_v12, 0.0 }
 0x704   :  { %v3633_v39 = vadd.f32 %v3632_v11, %v3631_v42  ;;  %v16157_v11 = vld [vmem:[#allocation15_spill] sm:$0xff] }
 0x705   :  { %16156 = vst [vmem:[#allocation66_spill] sm:$0xff] %v11831_v45  ;;  %v11838_v23 = vsub.f32 %v16157_v11, %v11484_v22  ;;  %v3474_v55 = vmul.f32 %v11831_v45, %v11831_v45  ;;  %v3642_v4 = vsel %vm962_vm2, %v3473_v54, 0.0 }
 0x706   :  { %v3635_v40 = vadd.f32 %v3634_v2, %v3633_v39  ;;  %v16158_v2 = vld [vmem:[#allocation84_spill] sm:$0xff] }
 0x707   :  { %v11845_v48 = vsub.f32 %v16158_v2, %v11484_v22  ;;  %v3475_v58 = vmul.f32 %v11838_v23, %v11838_v23  ;;  %v3644_v12 = vsel %vm962_vm2, %v3474_v55, 0.0 }
 0x708   :  { %v3637_v42 = vadd.f32 %v3636_v7, %v3635_v40  ;;  %v16160_v7 = vld [vmem:[#allocation91_spill] sm:$0xff] }
 0x709   :  { %16159 = vst [vmem:[#allocation68_spill] sm:$0xff] %v11845_v48  ;;  %v11852_v11 = vsub.f32 %v16160_v7, %v11484_v22  ;;  %v3476_v45 = vmul.f32 %v11845_v48, %v11845_v48  ;;  %v3646_v54 = vsel %vm962_vm2, %v3475_v58, 0.0 }
 0x70a   :  { %v3639_v39 = vadd.f32 %v3638_v61, %v3637_v42  ;;  %v16161_v61 = vld [vmem:[#allocation60_spill] sm:$0xff] }
 0x70b   :  { %v11859_v2 = vsub.f32 %v16161_v61, %v11484_v22  ;;  %v3477_v7 = vmul.f32 %v11852_v11, %v11852_v11  ;;  %v3648_v55 = vsel %vm962_vm2, %v3476_v45, 0.0 }
 0x70c   :  { %v3641_v40 = vadd.f32 %v3640_v18, %v3639_v39  ;;  %v11866_v18 = vsub.f32 %v11075_v31, %v11484_v22  ;;  %v11880_v31 = vsub.f32 %v11093_v56, %v11484_v22  ;;  %v11894_v56 = vsub.f32 %v11113_v3, %v11484_v22 }
 0x70d   :  { %v3478_v48 = vmul.f32 %v11859_v2, %v11859_v2  ;;  %v3650_v58 = vsel %vm962_vm2, %v3477_v7, 0.0 }
 0x70e   :  { %v3643_v42 = vadd.f32 %v3642_v4, %v3641_v40  ;;  %v16162_v4 = vld [vmem:[#allocation7_spill] sm:$0xff]  ;;  %16163 = vst [vmem:[#allocation70_spill] sm:$0xff] %v11880_v31  ;;  %16165 = vst [vmem:[#allocation75_spill] sm:$0xff] %v11894_v56 }
 0x70f   :  { %v11873_v61 = vsub.f32 %v16162_v4, %v11484_v22  ;;  %v3652_v45 = vsel %vm962_vm2, %v3478_v48, 0.0 }
 0x710   :  { %v3645_v39 = vadd.f32 %v3644_v12, %v3643_v42  ;;  %v3479_v12 = vmul.f32 %v11866_v18, %v11866_v18 }
 0x711   :  { %v3480_v4 = vmul.f32 %v11873_v61, %v11873_v61 }
 0x712   :  { %v3647_v40 = vadd.f32 %v3646_v54, %v3645_v39  ;;  %v11887_v54 = vsub.f32 %v11101_v20, %v11484_v22  ;;  %v3654_v7 = vsel %vm962_vm2, %v3479_v12, 0.0  ;;  %v11901_v20 = vsub.f32 %v11117_v13, %v11484_v22 }
 0x713   :  { %v3656_v48 = vsel %vm962_vm2, %v3480_v4, 0.0 }
 0x714   :  { %v3649_v42 = vadd.f32 %v3648_v55, %v3647_v40  ;;  %16164 = vst [vmem:[#allocation71_spill] sm:$0xff] %v11887_v54  ;;  %v3481_v55 = vmul.f32 %v11880_v31, %v11880_v31  ;;  %16166 = vst [vmem:[#allocation86_spill] sm:$0xff] %v11901_v20  ;;  %v3483_v31 = vmul.f32 %v11894_v56, %v11894_v56 }
 0x716   :  { %v3651_v39 = vadd.f32 %v3650_v58, %v3649_v42  ;;  %v3482_v58 = vmul.f32 %v11887_v54, %v11887_v54  ;;  %v3658_v12 = vsel %vm962_vm2, %v3481_v55, 0.0  ;;  %v3484_v54 = vmul.f32 %v11901_v20, %v11901_v20 }
 0x717   :  { %v3662_v55 = vsel %vm962_vm2, %v3483_v31, 0.0 }
 0x718   :  { %v3653_v40 = vadd.f32 %v3652_v45, %v3651_v39  ;;  %v16167_v45 = vld [vmem:[#allocation74_spill] sm:$0xff]  ;;  %v3660_v4 = vsel %vm962_vm2, %v3482_v58, 0.0  ;;  %v3664_v58 = vsel %vm962_vm2, %v3484_v54, 0.0 }
 0x719   :  { %v11908_v3 = vsub.f32 %v16167_v45, %v11484_v22 }
 0x71a   :  { %v3655_v42 = vadd.f32 %v3654_v7, %v3653_v40  ;;  %v16169_v7 = vld [vmem:[#allocation61_spill] sm:$0xff] }
 0x71b   :  { %16168 = vst [vmem:[#allocation87_spill] sm:$0xff] %v11908_v3  ;;  %v11915_v13 = vsub.f32 %v16169_v7, %v11484_v22  ;;  %v3485_v56 = vmul.f32 %v11908_v3, %v11908_v3 }
 0x71c   :  { %v3657_v39 = vadd.f32 %v3656_v48, %v3655_v42  ;;  %v16171_v48 = vld [vmem:[#allocation16_spill] sm:$0xff] }
 0x71d   :  { %16170 = vst [vmem:[#allocation49_spill] sm:$0xff] %v11915_v13  ;;  %v11922_v45 = vsub.f32 %v16171_v48, %v11484_v22  ;;  %v3486_v20 = vmul.f32 %v11915_v13, %v11915_v13  ;;  %v3666_v31 = vsel %vm962_vm2, %v3485_v56, 0.0 }
 0x71e   :  { %v3659_v40 = vadd.f32 %v3658_v12, %v3657_v39  ;;  %v16172_v12 = vld [vmem:[#allocation63_spill] sm:$0xff] }
 0x71f   :  { %v11929_v7 = vsub.f32 %v16172_v12, %v11484_v22  ;;  %v3487_v3 = vmul.f32 %v11922_v45, %v11922_v45  ;;  %v3668_v54 = vsel %vm962_vm2, %v3486_v20, 0.0 }
 0x720   :  { %v3661_v42 = vadd.f32 %v3660_v4, %v3659_v40  ;;  %v16174_v4 = vld [vmem:[#allocation59_spill] sm:$0xff] }
 0x721   :  { %16173 = vst [vmem:[#allocation73_spill] sm:$0xff] %v11929_v7  ;;  %v11936_v48 = vsub.f32 %v16174_v4, %v11484_v22  ;;  %v3488_v13 = vmul.f32 %v11929_v7, %v11929_v7  ;;  %v3670_v56 = vsel %vm962_vm2, %v3487_v3, 0.0 }
 0x722   :  { %v3663_v39 = vadd.f32 %v3662_v55, %v3661_v42  ;;  %v16175_v55 = vld [vmem:[#allocation62_spill] sm:$0xff] }
 0x723   :  { %v11943_v12 = vsub.f32 %v16175_v55, %v11484_v22  ;;  %v3489_v4 = vmul.f32 %v11936_v48, %v11936_v48  ;;  %v3672_v20 = vsel %vm962_vm2, %v3488_v13, 0.0 }
 0x724   :  { %v3665_v40 = vadd.f32 %v3664_v58, %v3663_v39  ;;  %v11950_v58 = vsub.f32 %v11172_v32, %v11484_v22  ;;  %v11964_v32 = vsub.f32 %v11184_v24, %v11484_v22 }
 0x725   :  { %16176 = vst [vmem:[#allocation51_spill] sm:$0xff] %v11943_v12  ;;  %v3490_v7 = vmul.f32 %v11943_v12, %v11943_v12  ;;  %v3674_v3 = vsel %vm962_vm2, %v3489_v4, 0.0 }
 0x726   :  { %v3667_v42 = vadd.f32 %v3666_v31, %v3665_v40  ;;  %16177 = vst [vmem:[#allocation54_spill] sm:$0xff] %v11950_v58  ;;  %v16178_v31 = vld [vmem:[#allocation64_spill] sm:$0xff]  ;;  %16180 = vst [vmem:[#allocation85_spill] sm:$0xff] %v11964_v32 }
 0x727   :  { %v11957_v55 = vsub.f32 %v16178_v31, %v11484_v22  ;;  %v3676_v13 = vsel %vm962_vm2, %v3490_v7, 0.0 }
 0x728   :  { %v3669_v39 = vadd.f32 %v3668_v54, %v3667_v42  ;;  %v3491_v54 = vmul.f32 %v11950_v58, %v11950_v58  ;;  %v3493_v58 = vmul.f32 %v11964_v32, %v11964_v32 }
 0x729   :  { %16179 = vst [vmem:[#allocation56_spill] sm:$0xff] %v11957_v55  ;;  %v3492_v12 = vmul.f32 %v11957_v55, %v11957_v55 }
 0x72a   :  { %v3671_v40 = vadd.f32 %v3670_v56, %v3669_v39  ;;  %v16181_v56 = vld [vmem:[#allocation67_spill] sm:$0xff]  ;;  %v3678_v4 = vsel %vm962_vm2, %v3491_v54, 0.0  ;;  %v3682_v54 = vsel %vm962_vm2, %v3493_v58, 0.0 }
 0x72b   :  { %v11971_v31 = vsub.f32 %v16181_v56, %v11484_v22  ;;  %v3680_v7 = vsel %vm962_vm2, %v3492_v12, 0.0 }
 0x72c   :  { %v3673_v42 = vadd.f32 %v3672_v20, %v3671_v40  ;;  %v16183_v20 = vld [vmem:[#allocation69_spill] sm:$0xff] }
 0x72d   :  { %16182 = vst [vmem:[#allocation81_spill] sm:$0xff] %v11971_v31  ;;  %v11978_v24 = vsub.f32 %v16183_v20, %v11484_v22  ;;  %v3494_v55 = vmul.f32 %v11971_v31, %v11971_v31 }
 0x72e   :  { %v3675_v39 = vadd.f32 %v3674_v3, %v3673_v42  ;;  %v16185_v3 = vld [vmem:[#allocation76_spill] sm:$0xff] }
 0x72f   :  { %16184 = vst [vmem:[#allocation72_spill] sm:$0xff] %v11978_v24  ;;  %v11985_v56 = vsub.f32 %v16185_v3, %v11484_v22  ;;  %v3495_v32 = vmul.f32 %v11978_v24, %v11978_v24  ;;  %v3684_v12 = vsel %vm962_vm2, %v3494_v55, 0.0 }
 0x730   :  { %v3677_v40 = vadd.f32 %v3676_v13, %v3675_v39  ;;  %v16187_v13 = vld [vmem:[#allocation82_spill] sm:$0xff] }
 0x731   :  { %16186 = vst [vmem:[#allocation58_spill] sm:$0xff] %v11985_v56  ;;  %v11992_v20 = vsub.f32 %v16187_v13, %v11484_v22  ;;  %v3496_v31 = vmul.f32 %v11985_v56, %v11985_v56  ;;  %v3686_v58 = vsel %vm962_vm2, %v3495_v32, 0.0 }
 0x732   :  { %v3679_v42 = vadd.f32 %v3678_v4, %v3677_v40  ;;  %v16188_v4 = vld [vmem:[#allocation3_spill] sm:$0xff] }
 0x733   :  { %v11999_v3 = vsub.f32 %v16188_v4, %v11484_v22  ;;  %v3497_v24 = vmul.f32 %v11992_v20, %v11992_v20  ;;  %v3688_v55 = vsel %vm962_vm2, %v3496_v31, 0.0 }
 0x734   :  { %v3681_v39 = vadd.f32 %v3680_v7, %v3679_v42  ;;  %v16190_v7 = vld [vmem:[#allocation8_spill] sm:$0xff] }
 0x735   :  { %16189 = vst [vmem:[#allocation15_spill] sm:$0xff] %v11999_v3  ;;  %v12006_v13 = vsub.f32 %v16190_v7, %v11484_v22  ;;  %v3498_v56 = vmul.f32 %v11999_v3, %v11999_v3  ;;  %v3690_v32 = vsel %vm962_vm2, %v3497_v24, 0.0 }
 0x736   :  { %v3683_v40 = vadd.f32 %v3682_v54, %v3681_v39  ;;  %v16192_v54 = vld [vmem:[#allocation9_spill] sm:$0xff] }
 0x737   :  { %16191 = vst [vmem:[#allocation84_spill] sm:$0xff] %v12006_v13  ;;  %v12013_v4 = vsub.f32 %v16192_v54, %v11484_v22  ;;  %v3499_v7 = vmul.f32 %v12006_v13, %v12006_v13  ;;  %v3692_v31 = vsel %vm962_vm2, %v3498_v56, 0.0 }
 0x738   :  { %v3685_v42 = vadd.f32 %v3684_v12, %v3683_v40  ;;  %v12020_v12 = vsub.f32 %v11232_v19, %v11484_v22 }
 0x739   :  { %16193 = vst [vmem:[#allocation91_spill] sm:$0xff] %v12013_v4  ;;  %v3500_v3 = vmul.f32 %v12013_v4, %v12013_v4  ;;  %v3694_v24 = vsel %vm962_vm2, %v3499_v7, 0.0 }
 0x73a   :  { %v3687_v39 = vadd.f32 %v3686_v58, %v3685_v42  ;;  %16194 = vst [vmem:[#allocation60_spill] sm:$0xff] %v12020_v12  ;;  %v16195_v58 = vld [vmem:[#allocation10_spill] sm:$0xff]  ;;  %v3501_v13 = vmul.f32 %v12020_v12, %v12020_v12 }
 0x73b   :  { %v12027_v54 = vsub.f32 %v16195_v58, %v11484_v22  ;;  %v3696_v56 = vsel %vm962_vm2, %v3500_v3, 0.0 }
 0x73c   :  { %v3689_v40 = vadd.f32 %v3688_v55, %v3687_v39  ;;  %v16197_v55 = vld [vmem:[#allocation11_spill] sm:$0xff]  ;;  %v3698_v7 = vsel %vm962_vm2, %v3501_v13, 0.0 }
 0x73d   :  { %16196 = vst [vmem:[#allocation7_spill] sm:$0xff] %v12027_v54  ;;  %v12034_v19 = vsub.f32 %v16197_v55, %v11484_v22  ;;  %v3502_v4 = vmul.f32 %v12027_v54, %v12027_v54 }
 0x73e   :  { %v3691_v42 = vadd.f32 %v3690_v32, %v3689_v40  ;;  %v16198_v32 = vld [vmem:[#allocation12_spill] sm:$0xff] }
 0x73f   :  { %v12041_v58 = vsub.f32 %v16198_v32, %v11484_v22  ;;  %v3503_v12 = vmul.f32 %v12034_v19, %v12034_v19  ;;  %v3700_v3 = vsel %vm962_vm2, %v3502_v4, 0.0 }
 0x740   :  { %v3693_v39 = vadd.f32 %v3692_v31, %v3691_v42  ;;  %v16200_v31 = vld [vmem:[#allocation2_spill] sm:$0xff] }
 0x741   :  { %16199 = vst [vmem:[#allocation74_spill] sm:$0xff] %v12041_v58  ;;  %v12048_v55 = vsub.f32 %v16200_v31, %v11484_v22  ;;  %v3504_v54 = vmul.f32 %v12041_v58, %v12041_v58  ;;  %v3702_v13 = vsel %vm962_vm2, %v3503_v12, 0.0 }
 0x742   :  { %v3695_v40 = vadd.f32 %v3694_v24, %v3693_v39  ;;  %v16202_v24 = vld [vmem:[#allocation13_spill] sm:$0xff] }
 0x743   :  { %16201 = vst [vmem:[#allocation61_spill] sm:$0xff] %v12048_v55  ;;  %v12055_v32 = vsub.f32 %v16202_v24, %v11484_v22  ;;  %v3505_v31 = vmul.f32 %v12048_v55, %v12048_v55  ;;  %v3704_v4 = vsel %vm962_vm2, %v3504_v54, 0.0 }
 0x744   :  { %v3697_v42 = vadd.f32 %v3696_v56, %v3695_v40  ;;  %v12062_v56 = vsub.f32 %v11265_v62, %v11484_v22  ;;  %v12076_v62 = vsub.f32 %v11275_v25, %v11484_v22 }
 0x745   :  { %16203 = vst [vmem:[#allocation16_spill] sm:$0xff] %v12055_v32  ;;  %v3506_v58 = vmul.f32 %v12055_v32, %v12055_v32  ;;  %v3706_v12 = vsel %vm962_vm2, %v3505_v31, 0.0 }
 0x746   :  { %v3699_v39 = vadd.f32 %v3698_v7, %v3697_v42  ;;  %16204 = vst [vmem:[#allocation63_spill] sm:$0xff] %v12062_v56  ;;  %v16205_v7 = vld [vmem:[#allocation14_spill] sm:$0xff]  ;;  %16207 = vst [vmem:[#allocation62_spill] sm:$0xff] %v12076_v62 }
 0x747   :  { %v12069_v24 = vsub.f32 %v16205_v7, %v11484_v22  ;;  %v3708_v54 = vsel %vm962_vm2, %v3506_v58, 0.0 }
 0x748   :  { %v3701_v40 = vadd.f32 %v3700_v3, %v3699_v39  ;;  %v3507_v3 = vmul.f32 %v12062_v56, %v12062_v56  ;;  %v3509_v56 = vmul.f32 %v12076_v62, %v12076_v62 }
 0x749   :  { %16206 = vst [vmem:[#allocation59_spill] sm:$0xff] %v12069_v24  ;;  %v3508_v32 = vmul.f32 %v12069_v24, %v12069_v24 }
 0x74a   :  { %v3703_v42 = vadd.f32 %v3702_v13, %v3701_v40  ;;  %v16208_v13 = vld [vmem:[#allocation18_spill] sm:$0xff]  ;;  %v3710_v31 = vsel %vm962_vm2, %v3507_v3, 0.0  ;;  %v3714_v3 = vsel %vm962_vm2, %v3509_v56, 0.0 }
 0x74b   :  { %v12083_v7 = vsub.f32 %v16208_v13, %v11484_v22  ;;  %v3712_v58 = vsel %vm962_vm2, %v3508_v32, 0.0 }
 0x74c   :  { %v3705_v39 = vadd.f32 %v3704_v4, %v3703_v42  ;;  %v16210_v4 = vld [vmem:[#allocation19_spill] sm:$0xff] }
 0x74d   :  { %16209 = vst [vmem:[#allocation64_spill] sm:$0xff] %v12083_v7  ;;  %v12090_v25 = vsub.f32 %v16210_v4, %v11484_v22  ;;  %v3510_v24 = vmul.f32 %v12083_v7, %v12083_v7 }
 0x74e   :  { %v3707_v40 = vadd.f32 %v3706_v12, %v3705_v39  ;;  %v16212_v12 = vld [vmem:[#allocation20_spill] sm:$0xff] }
 0x74f   :  { %16211 = vst [vmem:[#allocation67_spill] sm:$0xff] %v12090_v25  ;;  %v12097_v13 = vsub.f32 %v16212_v12, %v11484_v22  ;;  %v3511_v62 = vmul.f32 %v12090_v25, %v12090_v25  ;;  %v3716_v32 = vsel %vm962_vm2, %v3510_v24, 0.0 }
 0x750   :  { %v3709_v42 = vadd.f32 %v3708_v54, %v3707_v40  ;;  %v16214_v54 = vld [vmem:[#allocation21_spill] sm:$0xff] }
 0x751   :  { %16213 = vst [vmem:[#allocation69_spill] sm:$0xff] %v12097_v13  ;;  %v12104_v4 = vsub.f32 %v16214_v54, %v11484_v22  ;;  %v3512_v7 = vmul.f32 %v12097_v13, %v12097_v13  ;;  %v3718_v56 = vsel %vm962_vm2, %v3511_v62, 0.0 }
 0x752   :  { %v3711_v39 = vadd.f32 %v3710_v31, %v3709_v42  ;;  %v16216_v31 = vld [vmem:[#allocation22_spill] sm:$0xff] }
 0x753   :  { %16215 = vst [vmem:[#allocation76_spill] sm:$0xff] %v12104_v4  ;;  %v12111_v12 = vsub.f32 %v16216_v31, %v11484_v22  ;;  %v3513_v25 = vmul.f32 %v12104_v4, %v12104_v4  ;;  %v3720_v24 = vsel %vm962_vm2, %v3512_v7, 0.0 }
 0x754   :  { %v3713_v40 = vadd.f32 %v3712_v58, %v3711_v39  ;;  %v16218_v58 = vld [vmem:[#allocation23_spill] sm:$0xff] }
 0x755   :  { %16217 = vst [vmem:[#allocation82_spill] sm:$0xff] %v12111_v12  ;;  %v12118_v54 = vsub.f32 %v16218_v58, %v11484_v22  ;;  %v3514_v13 = vmul.f32 %v12111_v12, %v12111_v12  ;;  %v3722_v62 = vsel %vm962_vm2, %v3513_v25, 0.0 }
 0x756   :  { %v3715_v42 = vadd.f32 %v3714_v3, %v3713_v40  ;;  %v16220_v3 = vld [vmem:[#allocation24_spill] sm:$0xff] }
 0x757   :  { %16219 = vst [vmem:[#allocation3_spill] sm:$0xff] %v12118_v54  ;;  %v12125_v31 = vsub.f32 %v16220_v3, %v11484_v22  ;;  %v3515_v4 = vmul.f32 %v12118_v54, %v12118_v54  ;;  %v3724_v7 = vsel %vm962_vm2, %v3514_v13, 0.0 }
 0x758   :  { %v3717_v39 = vadd.f32 %v3716_v32, %v3715_v42  ;;  %v16222_v32 = vld [vmem:[#allocation25_spill] sm:$0xff] }
 0x759   :  { %16221 = vst [vmem:[#allocation8_spill] sm:$0xff] %v12125_v31  ;;  %v12132_v58 = vsub.f32 %v16222_v32, %v11484_v22  ;;  %v3516_v12 = vmul.f32 %v12125_v31, %v12125_v31  ;;  %v3726_v25 = vsel %vm962_vm2, %v3515_v4, 0.0 }
 0x75a   :  { %v3719_v40 = vadd.f32 %v3718_v56, %v3717_v39  ;;  %v16224_v56 = vld [vmem:[#allocation26_spill] sm:$0xff] }
 0x75b   :  { %16223 = vst [vmem:[#allocation9_spill] sm:$0xff] %v12132_v58  ;;  %v12139_v3 = vsub.f32 %v16224_v56, %v11484_v22  ;;  %v3517_v54 = vmul.f32 %v12132_v58, %v12132_v58  ;;  %v3728_v13 = vsel %vm962_vm2, %v3516_v12, 0.0 }
 0x75c   :  { %v3721_v42 = vadd.f32 %v3720_v24, %v3719_v40  ;;  %v16226_v24 = vld [vmem:[#allocation27_spill] sm:$0xff] }
 0x75d   :  { %16225 = vst [vmem:[#allocation10_spill] sm:$0xff] %v12139_v3  ;;  %v12146_v32 = vsub.f32 %v16226_v24, %v11484_v22  ;;  %v3518_v31 = vmul.f32 %v12139_v3, %v12139_v3  ;;  %v3730_v4 = vsel %vm962_vm2, %v3517_v54, 0.0 }
 0x75e   :  { %v3723_v39 = vadd.f32 %v3722_v62, %v3721_v42  ;;  %v16228_v62 = vld [vmem:[#allocation28_spill] sm:$0xff] }
 0x75f   :  { %16227 = vst [vmem:[#allocation11_spill] sm:$0xff] %v12146_v32  ;;  %v12153_v56 = vsub.f32 %v16228_v62, %v11484_v22  ;;  %v3519_v58 = vmul.f32 %v12146_v32, %v12146_v32  ;;  %v3732_v12 = vsel %vm962_vm2, %v3518_v31, 0.0 }
 0x760   :  { %v3725_v40 = vadd.f32 %v3724_v7, %v3723_v39  ;;  %v16230_v7 = vld [vmem:[#allocation29_spill] sm:$0xff] }
 0x761   :  { %16229 = vst [vmem:[#allocation12_spill] sm:$0xff] %v12153_v56  ;;  %v12160_v24 = vsub.f32 %v16230_v7, %v11484_v22  ;;  %v3520_v3 = vmul.f32 %v12153_v56, %v12153_v56  ;;  %v3734_v54 = vsel %vm962_vm2, %v3519_v58, 0.0 }
 0x762   :  { %v3727_v42 = vadd.f32 %v3726_v25, %v3725_v40  ;;  %v16232_v25 = vld [vmem:[#allocation30_spill] sm:$0xff] }
 0x763   :  { %16231 = vst [vmem:[#allocation2_spill] sm:$0xff] %v12160_v24  ;;  %v12167_v62 = vsub.f32 %v16232_v25, %v11484_v22  ;;  %v3521_v32 = vmul.f32 %v12160_v24, %v12160_v24  ;;  %v3736_v31 = vsel %vm962_vm2, %v3520_v3, 0.0 }
 0x764   :  { %v3729_v39 = vadd.f32 %v3728_v13, %v3727_v42  ;;  %v16234_v13 = vld [vmem:[#allocation31_spill] sm:$0xff] }
 0x765   :  { %16233 = vst [vmem:[#allocation13_spill] sm:$0xff] %v12167_v62  ;;  %v12174_v7 = vsub.f32 %v16234_v13, %v11484_v22  ;;  %v3522_v56 = vmul.f32 %v12167_v62, %v12167_v62  ;;  %v3738_v58 = vsel %vm962_vm2, %v3521_v32, 0.0 }
 0x766   :  { %v3731_v40 = vadd.f32 %v3730_v4, %v3729_v39  ;;  %v16236_v4 = vld [vmem:[#allocation32_spill] sm:$0xff] }
 0x767   :  { %16235 = vst [vmem:[#allocation14_spill] sm:$0xff] %v12174_v7  ;;  %v12181_v25 = vsub.f32 %v16236_v4, %v11484_v22  ;;  %v3523_v24 = vmul.f32 %v12174_v7, %v12174_v7  ;;  %v3740_v3 = vsel %vm962_vm2, %v3522_v56, 0.0 }
 0x768   :  { %v3733_v42 = vadd.f32 %v3732_v12, %v3731_v40  ;;  %v16238_v12 = vld [vmem:[#allocation33_spill] sm:$0xff] }
 0x769   :  { %16237 = vst [vmem:[#allocation18_spill] sm:$0xff] %v12181_v25  ;;  %v12188_v13 = vsub.f32 %v16238_v12, %v11484_v22  ;;  %v3524_v62 = vmul.f32 %v12181_v25, %v12181_v25  ;;  %v3742_v32 = vsel %vm962_vm2, %v3523_v24, 0.0 }
 0x76a   :  { %v3735_v39 = vadd.f32 %v3734_v54, %v3733_v42  ;;  %v16240_v54 = vld [vmem:[#allocation34_spill] sm:$0xff] }
 0x76b   :  { %16239 = vst [vmem:[#allocation19_spill] sm:$0xff] %v12188_v13  ;;  %v12195_v4 = vsub.f32 %v16240_v54, %v11484_v22  ;;  %v3525_v7 = vmul.f32 %v12188_v13, %v12188_v13  ;;  %v3744_v56 = vsel %vm962_vm2, %v3524_v62, 0.0 }
 0x76c   :  { %v3737_v40 = vadd.f32 %v3736_v31, %v3735_v39  ;;  %v16242_v31 = vld [vmem:[#allocation35_spill] sm:$0xff] }
 0x76d   :  { %16241 = vst [vmem:[#allocation20_spill] sm:$0xff] %v12195_v4  ;;  %v12202_v12 = vsub.f32 %v16242_v31, %v11484_v22  ;;  %v3526_v25 = vmul.f32 %v12195_v4, %v12195_v4  ;;  %v3746_v24 = vsel %vm962_vm2, %v3525_v7, 0.0 }
 0x76e   :  { %v3739_v42 = vadd.f32 %v3738_v58, %v3737_v40  ;;  %v16244_v58 = vld [vmem:[#allocation36_spill] sm:$0xff] }
 0x76f   :  { %16243 = vst [vmem:[#allocation21_spill] sm:$0xff] %v12202_v12  ;;  %v12209_v54 = vsub.f32 %v16244_v58, %v11484_v22  ;;  %v3527_v13 = vmul.f32 %v12202_v12, %v12202_v12  ;;  %v3748_v62 = vsel %vm962_vm2, %v3526_v25, 0.0 }
 0x770   :  { %v3741_v39 = vadd.f32 %v3740_v3, %v3739_v42  ;;  %v16246_v3 = vld [vmem:[#allocation37_spill] sm:$0xff] }
 0x771   :  { %16245 = vst [vmem:[#allocation22_spill] sm:$0xff] %v12209_v54  ;;  %v12216_v31 = vsub.f32 %v16246_v3, %v11484_v22  ;;  %v3528_v4 = vmul.f32 %v12209_v54, %v12209_v54  ;;  %v3750_v7 = vsel %vm962_vm2, %v3527_v13, 0.0 }
 0x772   :  { %v3743_v40 = vadd.f32 %v3742_v32, %v3741_v39  ;;  %v16248_v32 = vld [vmem:[#allocation38_spill] sm:$0xff] }
 0x773   :  { %16247 = vst [vmem:[#allocation23_spill] sm:$0xff] %v12216_v31  ;;  %v12223_v58 = vsub.f32 %v16248_v32, %v11484_v22  ;;  %v3529_v12 = vmul.f32 %v12216_v31, %v12216_v31  ;;  %v3752_v25 = vsel %vm962_vm2, %v3528_v4, 0.0 }
 0x774   :  { %v3745_v42 = vadd.f32 %v3744_v56, %v3743_v40  ;;  %v16250_v56 = vld [vmem:[#allocation39_spill] sm:$0xff] }
 0x775   :  { %16249 = vst [vmem:[#allocation24_spill] sm:$0xff] %v12223_v58  ;;  %v12230_v3 = vsub.f32 %v16250_v56, %v11484_v22  ;;  %v3530_v54 = vmul.f32 %v12223_v58, %v12223_v58  ;;  %v3754_v13 = vsel %vm962_vm2, %v3529_v12, 0.0 }
 0x776   :  { %v3747_v39 = vadd.f32 %v3746_v24, %v3745_v42  ;;  %v16252_v24 = vld [vmem:[#allocation40_spill] sm:$0xff] }
 0x777   :  { %16251 = vst [vmem:[#allocation25_spill] sm:$0xff] %v12230_v3  ;;  %v12237_v32 = vsub.f32 %v16252_v24, %v11484_v22  ;;  %v3531_v31 = vmul.f32 %v12230_v3, %v12230_v3  ;;  %v3756_v4 = vsel %vm962_vm2, %v3530_v54, 0.0 }
 0x778   :  { %v3749_v40 = vadd.f32 %v3748_v62, %v3747_v39  ;;  %v16254_v62 = vld [vmem:[#allocation41_spill] sm:$0xff] }
 0x779   :  { %16253 = vst [vmem:[#allocation26_spill] sm:$0xff] %v12237_v32  ;;  %v12244_v56 = vsub.f32 %v16254_v62, %v11484_v22  ;;  %v3532_v58 = vmul.f32 %v12237_v32, %v12237_v32  ;;  %v3758_v12 = vsel %vm962_vm2, %v3531_v31, 0.0 }
 0x77a   :  { %v3751_v42 = vadd.f32 %v3750_v7, %v3749_v40  ;;  %v16256_v7 = vld [vmem:[#allocation43_spill] sm:$0xff] }
 0x77b   :  { %16255 = vst [vmem:[#allocation27_spill] sm:$0xff] %v12244_v56  ;;  %v12251_v24 = vsub.f32 %v16256_v7, %v11484_v22  ;;  %v3533_v3 = vmul.f32 %v12244_v56, %v12244_v56  ;;  %v3760_v54 = vsel %vm962_vm2, %v3532_v58, 0.0 }
 0x77c   :  { %v3753_v39 = vadd.f32 %v3752_v25, %v3751_v42  ;;  %v16258_v25 = vld [vmem:[#allocation45_spill] sm:$0xff] }
 0x77d   :  { %16257 = vst [vmem:[#allocation28_spill] sm:$0xff] %v12251_v24  ;;  %v12258_v62 = vsub.f32 %v16258_v25, %v11484_v22  ;;  %v3534_v32 = vmul.f32 %v12251_v24, %v12251_v24  ;;  %v3762_v31 = vsel %vm962_vm2, %v3533_v3, 0.0 }
 0x77e   :  { %v3755_v40 = vadd.f32 %v3754_v13, %v3753_v39  ;;  %v16260_v13 = vld [vmem:[#allocation46_spill] sm:$0xff] }
 0x77f   :  { %16259 = vst [vmem:[#allocation29_spill] sm:$0xff] %v12258_v62  ;;  %v12265_v7 = vsub.f32 %v16260_v13, %v11484_v22  ;;  %v3535_v56 = vmul.f32 %v12258_v62, %v12258_v62  ;;  %v3764_v58 = vsel %vm962_vm2, %v3534_v32, 0.0 }
 0x780   :  { %v3757_v42 = vadd.f32 %v3756_v4, %v3755_v40  ;;  %v16262_v4 = vld [vmem:[#allocation88_spill] sm:$0xff] }
 0x781   :  { %16261 = vst [vmem:[#allocation30_spill] sm:$0xff] %v12265_v7  ;;  %v12272_v25 = vsub.f32 %v16262_v4, %v11484_v22  ;;  %v3536_v24 = vmul.f32 %v12265_v7, %v12265_v7  ;;  %v3766_v3 = vsel %vm962_vm2, %v3535_v56, 0.0 }
 0x782   :  { %v3759_v39 = vadd.f32 %v3758_v12, %v3757_v42  ;;  %v16264_v12 = vld [vmem:[#allocation89_spill] sm:$0xff] }
 0x783   :  { %16263 = vst [vmem:[#allocation31_spill] sm:$0xff] %v12272_v25  ;;  %v12279_v13 = vsub.f32 %v16264_v12, %v11484_v22  ;;  %v3537_v62 = vmul.f32 %v12272_v25, %v12272_v25  ;;  %v3768_v32 = vsel %vm962_vm2, %v3536_v24, 0.0 }
 0x784   :  { %v3761_v40 = vadd.f32 %v3760_v54, %v3759_v39  ;;  %v16266_v54 = vld [vmem:[#allocation90_spill] sm:$0xff] }
 0x785   :  { %16265 = vst [vmem:[#allocation32_spill] sm:$0xff] %v12279_v13  ;;  %v12286_v4 = vsub.f32 %v16266_v54, %v11484_v22  ;;  %v3538_v7 = vmul.f32 %v12279_v13, %v12279_v13  ;;  %v3770_v56 = vsel %vm962_vm2, %v3537_v62, 0.0 }
 0x786   :  { %v3763_v42 = vadd.f32 %v3762_v31, %v3761_v40  ;;  %v16268_v31 = vld [vmem:[#allocation92_spill] sm:$0xff] }
 0x787   :  { %16267 = vst [vmem:[#allocation33_spill] sm:$0xff] %v12286_v4  ;;  %v12293_v12 = vsub.f32 %v16268_v31, %v11484_v22  ;;  %v3539_v25 = vmul.f32 %v12286_v4, %v12286_v4  ;;  %v3772_v24 = vsel %vm962_vm2, %v3538_v7, 0.0 }
 0x788   :  { %v3765_v39 = vadd.f32 %v3764_v58, %v3763_v42  ;;  %v16270_v58 = vld [vmem:[#allocation17_spill] sm:$0xff] }
 0x789   :  { %16269 = vst [vmem:[#allocation34_spill] sm:$0xff] %v12293_v12  ;;  %v12300_v54 = vsub.f32 %v16270_v58, %v11484_v22  ;;  %v3540_v13 = vmul.f32 %v12293_v12, %v12293_v12  ;;  %v3774_v62 = vsel %vm962_vm2, %v3539_v25, 0.0 }
 0x78a   :  { %v3767_v40 = vadd.f32 %v3766_v3, %v3765_v39  ;;  %v16272_v3 = vld [vmem:[#allocation93_spill] sm:$0xff] }
 0x78b   :  { %16271 = vst [vmem:[#allocation35_spill] sm:$0xff] %v12300_v54  ;;  %v12307_v31 = vsub.f32 %v16272_v3, %v11484_v22  ;;  %v3541_v4 = vmul.f32 %v12300_v54, %v12300_v54  ;;  %v3776_v7 = vsel %vm962_vm2, %v3540_v13, 0.0 }
 0x78c   :  { %v3769_v42 = vadd.f32 %v3768_v32, %v3767_v40  ;;  %v16274_v32 = vld [vmem:[#allocation77_spill] sm:$0xff] }
 0x78d   :  { %16273 = vst [vmem:[#allocation36_spill] sm:$0xff] %v12307_v31  ;;  %v12314_v58 = vsub.f32 %v16274_v32, %v11484_v22  ;;  %v3542_v12 = vmul.f32 %v12307_v31, %v12307_v31  ;;  %v3778_v25 = vsel %vm962_vm2, %v3541_v4, 0.0 }
 0x78e   :  { %v3771_v39 = vadd.f32 %v3770_v56, %v3769_v42  ;;  %v16276_v56 = vld [vmem:[#allocation42_spill] sm:$0xff] }
 0x78f   :  { %16275 = vst [vmem:[#allocation37_spill] sm:$0xff] %v12314_v58  ;;  %v12321_v3 = vsub.f32 %v16276_v56, %v11484_v22  ;;  %v3543_v54 = vmul.f32 %v12314_v58, %v12314_v58  ;;  %v3780_v13 = vsel %vm962_vm2, %v3542_v12, 0.0 }
 0x790   :  { %v3773_v40 = vadd.f32 %v3772_v24, %v3771_v39  ;;  %v16277_v24 = vld [vmem:[#allocation44_spill] sm:$0xff] }
 0x791   :  { %v12328_v32 = vsub.f32 %v16277_v24, %v11484_v22  ;;  %v3544_v31 = vmul.f32 %v12321_v3, %v12321_v3  ;;  %v3782_v4 = vsel %vm962_vm2, %v3543_v54, 0.0  ;;  %v3549_v54 = vmul.f32 %v11490_v37, %v11490_v37 }
 0x792   :  { %v3775_v42 = vadd.f32 %v3774_v62, %v3773_v40  ;;  %v16279_v62 = vld [vmem:[#allocation4_spill] sm:$0xff] }
 0x793   :  { %16278 = vst [vmem:[#allocation38_spill] sm:$0xff] %v12328_v32  ;;  %v12335_v56 = vsub.f32 %v16279_v62, %v11484_v22  ;;  %v3545_v58 = vmul.f32 %v12328_v32, %v12328_v32  ;;  %v3784_v62 = vsel %vm962_vm2, %v3544_v31, 0.0  ;;  %v3550_v31 = vmul.f32 %v11493_v5, %v11493_v5 }
 0x794   :  { %v3777_v39 = vadd.f32 %v3776_v7, %v3775_v42  ;;  %v16280_v7 = vld [vmem:[#allocation5_spill] sm:$0xff] }
 0x795   :  { %v12342_v24 = vsub.f32 %v16280_v7, %v11484_v22  ;;  %v3548_v22 = vmul.f32 %v11487_v53, %v11487_v53 }
 0x796   :  { %v3779_v40 = vadd.f32 %v3778_v25, %v3777_v39  ;;  %v3546_v25 = vmul.f32 %v12335_v56, %v12335_v56 }
 0x797   :  { %v3547_v12 = vmul.f32 %v12342_v24, %v12342_v24 }
 0x798   :  { %v3781_v42 = vadd.f32 %v3780_v13, %v3779_v40  ;;  %v3786_v40 = vsel %vm962_vm2, %v3545_v58, 0.0  ;;  %v3788_v7 = vsel %vm962_vm2, %v3546_v25, 0.0  ;;  %v3794_v58 = vsel %vm962_vm2, %v3549_v54, 0.0  ;;  %v6425_v54 = vld [vmem:[%s14969_s7 + $0x8] sm:$0xff]  }
 0x799   :  { %v3552_v25 = vmul.f32 %v11499_v63, %v11499_v63 }
 0x79a   :  { %v3783_v39 = vadd.f32 %v3782_v4, %v3781_v42  ;;  %v3790_v42 = vsel %vm962_vm2, %v3547_v12, 0.0 }
 0x79c   :  { %v3785_v55 = vadd.f32 %v3784_v62, %v3783_v39  ;;  %v3792_v39 = vsel %vm962_vm2, %v3548_v22, 0.0 }
 0x79e   :  { %v3787_v13 = vadd.f32 %v3786_v40, %v3785_v55  ;;  %v3551_v55 = vmul.f32 %v11496_v30, %v11496_v30 }
 0x7a0   :  { %v3789_v32 = vadd.f32 %v3788_v7, %v3787_v13  ;;  %v3796_v13 = vsel %vm962_vm2, %v3550_v31, 0.0  ;;  %v3798_v7 = vsel %vm962_vm2, %v3551_v55, 0.0  ;;  %v12384_v55 = vmul.f32 %v11648_v51, %v11607_v38 }
 0x7a1   :  { %v12404_v38 = vmul.f32 %v11648_v51, %v11652_v29  ;;  %v12424_v29 = vmul.f32 %v11648_v51, %v11691_v0  ;;  %v12444_v0 = vmul.f32 %v11648_v51, %v11726_v34  ;;  %v12464_v34 = vmul.f32 %v11648_v51, %v11761_v14 }
 0x7a2   :  { %v3791_v4 = vadd.f32 %v3790_v42, %v3789_v32  ;;  %v6424_v32 = vld [vmem:[%s14969_s7] sm:$0xff]   ;;  %v16281_v42 = vmov 0.0   ;;  %v12484_v14 = vmul.f32 %v11648_v51, %v11796_v49 }
 0x7a3   :  { %6162 = vmatpush3.bf16.msra.mxu0 %v6424_v32 }
 0x7a4   :  { %v3793_v62 = vadd.f32 %v3792_v39, %v3791_v4  ;;  %6163 = vmatprep.subr.bf16.mxu0 %v16281_v42  ;;  %v3800_v4 = vsel %vm962_vm2, %v3552_v25, 0.0  ;;  %v16282_v39 = vsub.s32 1, %v16134_v46  ;;  %v12392_v25 = vmul.f32 %v11648_v51, %v11621_v43  ;;  %v16296_v42 = vld [vmem:[#allocation73_spill] sm:$0xff] }
 0x7a5   :  { %v12412_v43 = vmul.f32 %v11648_v51, %v11666_v15  ;;  %v12432_v15 = vmul.f32 %v11648_v51, %v11705_v41  ;;  %v12452_v41 = vmul.f32 %v11648_v51, %v11740_v1  ;;  %v12472_v1 = vmul.f32 %v11648_v51, %v11775_v27 }
 0x7a6   :  { %v3795_v40 = vadd.f32 %v3794_v58, %v3793_v62  ;;  %v12380_v62 = vrot.slane %v11636_v52, %v16282_v39  ;;  %v12400_v52 = vmul.f32 %v11648_v51, %v11640_v35  ;;  %v12420_v35 = vmul.f32 %v11648_v51, %v11684_v57 }
 0x7a7   :  { %6164 = vmatpush3.bf16.msra.mxu0 %v6425_v54  ;;  %v12440_v57 = vmul.f32 %v11648_v51, %v11719_v17  ;;  %v12460_v17 = vmul.f32 %v11648_v51, %v11754_v28  ;;  %v12480_v28 = vmul.f32 %v11648_v51, %v11789_v6  ;;  %v12492_v27 = vmul.f32 %v11648_v51, %v11810_v26  ;;  %v16286_v54 = vld [vmem:[#allocation68_spill] sm:$0xff] }
 0x7a8   :  { %v3797_v12 = vadd.f32 %v3796_v13, %v3795_v40  ;;  %16283 = vst [vmem:[#allocation39_spill] sm:$0xff] %v12380_v62  ;;  %v12388_v40 = vmul.f32 %v11648_v51, %v11614_v50  ;;  %v12396_v13 = vmul.f32 %v11648_v51, %v11628_v21  ;;  %v12408_v50 = vmul.f32 %v11648_v51, %v11659_v60 }
 0x7a9   :  { %v12416_v21 = vmul.f32 %v11648_v51, %v11677_v9  ;;  %v12428_v60 = vmul.f32 %v11648_v51, %v11698_v44  ;;  %v12436_v9 = vmul.f32 %v11648_v51, %v11712_v8  ;;  %v12448_v44 = vmul.f32 %v11648_v51, %v11733_v36 }
 0x7aa   :  { %v3799_v22 = vadd.f32 %v3798_v7, %v3797_v12  ;;  %v12456_v8 = vmul.f32 %v11648_v51, %v11747_v33  ;;  %v12468_v36 = vmul.f32 %v11648_v51, %v11768_v16  ;;  %v12476_v33 = vmul.f32 %v11648_v51, %v11782_v10 }
 0x7ab   :  { %v12488_v16 = vmul.f32 %v11648_v51, %v11803_v59  ;;  %v12496_v10 = vmul.f32 %v11648_v51, %v11817_v47  ;;  %v12508_v59 = vmul.f32 %v11648_v51, %v11838_v23  ;;  %v12512_v26 = vmul.f32 %v11648_v51, %v16286_v54  ;;  %v16293_v54 = vld [vmem:[#allocation49_spill] sm:$0xff] }
 0x7ac   :  { %v3801_v63 = vadd.f32 %v3800_v4, %v3799_v22  ;;  %v16284_v22 = vld [vmem:[#allocation65_spill] sm:$0xff]  ;;  %v16285_v4 = vld [vmem:[#allocation66_spill] sm:$0xff]  ;;  %v12516_v47 = vmul.f32 %v11648_v51, %v11852_v11  ;;  %v12524_v39 = vmul.f32 %v11648_v51, %v11866_v18  ;;  %v12528_v23 = vmul.f32 %v11648_v51, %v11873_v61 }
 0x7ad   :  { %v12500_v6 = vmul.f32 %v11648_v51, %v16284_v22  ;;  %v12504_v49 = vmul.f32 %v11648_v51, %v16285_v4  ;;  %v16290_v22 = vld [vmem:[#allocation86_spill] sm:$0xff]  ;;  %v16291_v4 = vld [vmem:[#allocation87_spill] sm:$0xff] }
 0x7ae   :  { %v3802_v31 = vrot.slane %v3801_v63, 4  ;;  %v12544_v18 = vmul.f32 %v11648_v51, %v16290_v22  ;;  %v12548_v61 = vmul.f32 %v11648_v51, %v16291_v4  ;;  %v16299_v22 = vld [vmem:[#allocation51_spill] sm:$0xff] }
 0x7af   :  { %v12568_v4 = vmul.f32 %v11648_v51, %v16299_v22 }
 0x7b0   :  { %v3803_v58 = vadd.f32 %v3802_v31, %v3801_v63  ;;  %v12520_v31 = vmul.f32 %v11648_v51, %v11859_v2  ;;  %16292 = vst [vmem:[#allocation40_spill] sm:$0xff] %v12548_v61  ;;  %v16300_v61 = vld [vmem:[#allocation54_spill] sm:$0xff] }
 0x7b2   :  { %v3804_v46 = vrot.slane %v3803_v58, 2 }
 0x7b4   :  { %v3805_v32 = vadd.f32 %v3804_v46, %v3803_v58  ;;  %v16287_v58 = vld [vmem:[#allocation70_spill] sm:$0xff] }
 0x7b5   :  { %v12532_v46 = vmul.f32 %v11648_v51, %v16287_v58  ;;  %v12552_v58 = vmul.f32 %v11648_v51, %v16293_v54  ;;  %v12572_v54 = vmul.f32 %v11648_v51, %v16300_v61 }
 0x7b6   :  { %v3806_v12 = vrot.slane %v3805_v32, 1 }
 0x7b7   :  { %16294 = vst [vmem:[#allocation41_spill] sm:$0xff] %v12552_v58  ;;  %16301 = vst [vmem:[#allocation88_spill] sm:$0xff] %v12572_v54  ;;  %v16302_v58 = vld [vmem:[#allocation56_spill] sm:$0xff] }
 0x7b8   :  { %v3807_v7 = vadd.f32 %v3806_v12, %v3805_v32  ;;  %v16288_v32 = vld [vmem:[#allocation71_spill] sm:$0xff] }
 0x7b9   :  { %v12536_v11 = vmul.f32 %v11648_v51, %v16288_v32  ;;  %v16289_v12 = vld [vmem:[#allocation75_spill] sm:$0xff]  ;;  %v12556_v32 = vmul.f32 %v11648_v51, %v11922_v45  ;;  %v12576_v45 = vmul.f32 %v11648_v51, %v16302_v58  ;;  %v12596_v58 = vmul.f32 %v11648_v51, %v11992_v20 }
 0x7ba   :  { %v3808_v63 = vmul.f32 0.001, %v3807_v7  ;;  %v12540_v2 = vmul.f32 %v11648_v51, %v16289_v12  ;;  %v12560_v12 = vmul.f32 %v11648_v51, %v16296_v42 }
 0x7bb   :  { %16295 = vst [vmem:[#allocation43_spill] sm:$0xff] %v12556_v32  ;;  %16303 = vst [vmem:[#allocation89_spill] sm:$0xff] %v12576_v45  ;;  %v16304_v32 = vld [vmem:[#allocation85_spill] sm:$0xff]  ;;  %v16313_v45 = vld [vmem:[#allocation15_spill] sm:$0xff] }
 0x7bc   :  { %v3939_v7 = vadd.f32 1e-05, %v3808_v63  ;;  %16297 = vst [vmem:[#allocation45_spill] sm:$0xff] %v12560_v12  ;;  %v12564_v63 = vmul.f32 %v11648_v51, %v11936_v48  ;;  %v12580_v42 = vmul.f32 %v11648_v51, %v16304_v32  ;;  %v16306_v12 = vld [vmem:[#allocation81_spill] sm:$0xff]  ;;  %16312 = vst [vmem:[#allocation77_spill] sm:$0xff] %v12596_v58  ;;  %v12600_v32 = vmul.f32 %v11648_v51, %v16313_v45  ;;  %v16386_v58 = vld [vmem:[#allocation28_spill] sm:$0xff] }
 0x7bd   :  { %v12584_v48 = vmul.f32 %v11648_v51, %v16306_v12  ;;  %v12620_v45 = vmul.f32 %v11648_v51, %v12034_v19  ;;  %v12748_v54 = vmul.f32 %v11648_v51, %v16386_v58 }
 0x7be   :  { %16298 = vst [vmem:[#allocation46_spill] sm:$0xff] %v12564_v63  ;;  %6428 = vrsqrt.f32 %v3939_v7  ;;  %16305 = vst [vmem:[#allocation90_spill] sm:$0xff] %v12580_v42  ;;  %v16308_v63 = vld [vmem:[#allocation72_spill] sm:$0xff]  ;;  %v16310_v7 = vld [vmem:[#allocation58_spill] sm:$0xff] }
 0x7bf   :  { %16307 = vst [vmem:[#allocation92_spill] sm:$0xff] %v12584_v48  ;;  %v12588_v22 = vmul.f32 %v11648_v51, %v16308_v63  ;;  %v12592_v61 = vmul.f32 %v11648_v51, %v16310_v7  ;;  %16314 = vst [vmem:[#allocation42_spill] sm:$0xff] %v12600_v32  ;;  %v16315_v42 = vld [vmem:[#allocation84_spill] sm:$0xff]  ;;  %v16317_v48 = vld [vmem:[#allocation91_spill] sm:$0xff] }
 0x7c0   :  { %v12604_v12 = vmul.f32 %v11648_v51, %v16315_v42  ;;  %v12608_v63 = vmul.f32 %v11648_v51, %v16317_v48  ;;  %16323 = vst [vmem:[#allocation66_spill] sm:$0xff] %v12620_v45  ;;  %v16324_v32 = vld [vmem:[#allocation74_spill] sm:$0xff] }
 0x7c1   :  { %16309 = vst [vmem:[#allocation17_spill] sm:$0xff] %v12588_v22  ;;  %16311 = vst [vmem:[#allocation93_spill] sm:$0xff] %v12592_v61  ;;  %v16319_v22 = vld [vmem:[#allocation60_spill] sm:$0xff]  ;;  %v16321_v61 = vld [vmem:[#allocation7_spill] sm:$0xff]  ;;  %v12624_v42 = vmul.f32 %v11648_v51, %v16324_v32 }
 0x7c2   :  { %16316 = vst [vmem:[#allocation44_spill] sm:$0xff] %v12604_v12  ;;  %16318 = vst [vmem:[#allocation4_spill] sm:$0xff] %v12608_v63  ;;  %v12612_v7 = vmul.f32 %v11648_v51, %v16319_v22  ;;  %v12616_v20 = vmul.f32 %v11648_v51, %v16321_v61  ;;  %v16326_v12 = vld [vmem:[#allocation61_spill] sm:$0xff]  ;;  %v16328_v63 = vld [vmem:[#allocation16_spill] sm:$0xff] }
 0x7c3   :  { %16325 = vst [vmem:[#allocation68_spill] sm:$0xff] %v12624_v42  ;;  %v12628_v48 = vmul.f32 %v11648_v51, %v16326_v12  ;;  %v12632_v22 = vmul.f32 %v11648_v51, %v16328_v63  ;;  %v16334_v45 = vld [vmem:[#allocation62_spill] sm:$0xff]  ;;  %v16336_v42 = vld [vmem:[#allocation64_spill] sm:$0xff] }
 0x7c4   :  { %16320 = vst [vmem:[#allocation5_spill] sm:$0xff] %v12612_v7  ;;  %16322 = vst [vmem:[#allocation65_spill] sm:$0xff] %v12616_v20  ;;  %v16330_v7 = vld [vmem:[#allocation63_spill] sm:$0xff]  ;;  %v12644_v32 = vmul.f32 %v11648_v51, %v16334_v45  ;;  %v12648_v12 = vmul.f32 %v11648_v51, %v16336_v42 }
 0x7c5   :  { %16327 = vst [vmem:[#allocation70_spill] sm:$0xff] %v12628_v48  ;;  %16329 = vst [vmem:[#allocation71_spill] sm:$0xff] %v12632_v22  ;;  %v12636_v61 = vmul.f32 %v11648_v51, %v16330_v7  ;;  %v16332_v20 = vld [vmem:[#allocation59_spill] sm:$0xff]  ;;  %v16340_v22 = vld [vmem:[#allocation69_spill] sm:$0xff] }
 0x7c6   :  { %v12640_v19 = vmul.f32 %v11648_v51, %v16332_v20  ;;  %16335 = vst [vmem:[#allocation87_spill] sm:$0xff] %v12644_v32  ;;  %16337 = vst [vmem:[#allocation49_spill] sm:$0xff] %v12648_v12  ;;  %v16338_v48 = vld [vmem:[#allocation67_spill] sm:$0xff]  ;;  %v12656_v7 = vmul.f32 %v11648_v51, %v16340_v22  ;;  %v16348_v12 = vld [vmem:[#allocation8_spill] sm:$0xff] }
 0x7c7   :  { %16331 = vst [vmem:[#allocation75_spill] sm:$0xff] %v12636_v61  ;;  %v12652_v63 = vmul.f32 %v11648_v51, %v16338_v48  ;;  %v16342_v61 = vld [vmem:[#allocation76_spill] sm:$0xff]  ;;  %v16346_v32 = vld [vmem:[#allocation3_spill] sm:$0xff]  ;;  %v12672_v48 = vmul.f32 %v11648_v51, %v16348_v12 }
 0x7c8   :  { %16333 = vst [vmem:[#allocation86_spill] sm:$0xff] %v12640_v19  ;;  %16341 = vst [vmem:[#allocation51_spill] sm:$0xff] %v12656_v7  ;;  %v12660_v20 = vmul.f32 %v11648_v51, %v16342_v61  ;;  %v16344_v19 = vld [vmem:[#allocation82_spill] sm:$0xff]  ;;  %v12668_v42 = vmul.f32 %v11648_v51, %v16346_v32 }
 0x7c9   :  { %16339 = vst [vmem:[#allocation73_spill] sm:$0xff] %v12652_v63  ;;  %v12664_v45 = vmul.f32 %v11648_v51, %v16344_v19  ;;  %16349 = vst [vmem:[#allocation81_spill] sm:$0xff] %v12672_v48  ;;  %v16350_v63 = vld [vmem:[#allocation9_spill] sm:$0xff]  ;;  %v16352_v7 = vld [vmem:[#allocation10_spill] sm:$0xff] }
 0x7ca   :  { %16343 = vst [vmem:[#allocation54_spill] sm:$0xff] %v12660_v20  ;;  %16347 = vst [vmem:[#allocation85_spill] sm:$0xff] %v12668_v42  ;;  %v12676_v22 = vmul.f32 %v11648_v51, %v16350_v63  ;;  %v12680_v61 = vmul.f32 %v11648_v51, %v16352_v7  ;;  %v16354_v20 = vld [vmem:[#allocation11_spill] sm:$0xff]  ;;  %v16358_v42 = vld [vmem:[#allocation2_spill] sm:$0xff] }
 0x7cb   :  { %16345 = vst [vmem:[#allocation56_spill] sm:$0xff] %v12664_v45  ;;  %v12684_v19 = vmul.f32 %v11648_v51, %v16354_v20  ;;  %v16356_v45 = vld [vmem:[#allocation12_spill] sm:$0xff]  ;;  %v12692_v12 = vmul.f32 %v11648_v51, %v16358_v42  ;;  %v16360_v48 = vld [vmem:[#allocation13_spill] sm:$0xff]  ;;  %16387 = vst [vmem:[#allocation3_spill] sm:$0xff] %v12748_v54 }
 0x7cc   :  { %16351 = vst [vmem:[#allocation72_spill] sm:$0xff] %v12676_v22  ;;  %16353 = vst [vmem:[#allocation58_spill] sm:$0xff] %v12680_v61  ;;  %v12688_v32 = vmul.f32 %v11648_v51, %v16356_v45  ;;  %v12696_v63 = vmul.f32 %v11648_v51, %v16360_v48  ;;  %v16362_v22 = vld [vmem:[#allocation14_spill] sm:$0xff] }
 0x7cd   :  { %16355 = vst [vmem:[#allocation15_spill] sm:$0xff] %v12684_v19  ;;  %16359 = vst [vmem:[#allocation91_spill] sm:$0xff] %v12692_v12  ;;  %v12700_v7 = vmul.f32 %v11648_v51, %v16362_v22  ;;  %v16364_v61 = vld [vmem:[#allocation18_spill] sm:$0xff]  ;;  %v16366_v19 = vld [vmem:[#allocation19_spill] sm:$0xff] }
 0x7ce   :  { %16357 = vst [vmem:[#allocation84_spill] sm:$0xff] %v12688_v32  ;;  %16361 = vst [vmem:[#allocation60_spill] sm:$0xff] %v12696_v63  ;;  %v12704_v20 = vmul.f32 %v11648_v51, %v16364_v61  ;;  %v12708_v45 = vmul.f32 %v11648_v51, %v16366_v19  ;;  %v16368_v32 = vld [vmem:[#allocation20_spill] sm:$0xff]  ;;  %v16370_v12 = vld [vmem:[#allocation21_spill] sm:$0xff] }
 0x7cf   :  { %16363 = vst [vmem:[#allocation7_spill] sm:$0xff] %v12700_v7  ;;  %v12712_v42 = vmul.f32 %v11648_v51, %v16368_v32  ;;  %v12716_v48 = vmul.f32 %v11648_v51, %v16370_v12  ;;  %v16372_v63 = vld [vmem:[#allocation22_spill] sm:$0xff]  ;;  %v16374_v7 = vld [vmem:[#allocation23_spill] sm:$0xff]  ;;  %v16377_v19 = vld [vmem:[#allocation24_spill] sm:$0xff] }
 0x7d0   :  { %16365 = vst [vmem:[#allocation74_spill] sm:$0xff] %v12704_v20  ;;  %16367 = vst [vmem:[#allocation61_spill] sm:$0xff] %v12708_v45  ;;  %v12720_v22 = vmul.f32 %v11648_v51, %v16372_v63  ;;  %v12724_v61 = vmul.f32 %v11648_v51, %v16374_v7  ;;  %v12726_v20 = vpop.eup %6428  ;;  %v12730_v45 = vmul.f32 %v11648_v51, %v16377_v19  ;;  %v16379_v32 = vld [vmem:[#allocation25_spill] sm:$0xff]  ;;  %v16381_v12 = vld [vmem:[#allocation26_spill] sm:$0xff] }
 0x7d1   :  { %16369 = vst [vmem:[#allocation16_spill] sm:$0xff] %v12712_v42  ;;  %16371 = vst [vmem:[#allocation63_spill] sm:$0xff] %v12716_v48  ;;  %v12734_v42 = vmul.f32 %v11648_v51, %v16379_v32  ;;  %v12738_v48 = vmul.f32 %v11648_v51, %v16381_v12  ;;  %v16383_v63 = vld [vmem:[#allocation27_spill] sm:$0xff]  ;;  %v16388_v19 = vld [vmem:[#allocation29_spill] sm:$0xff] }
 0x7d2   :  { %16373 = vst [vmem:[#allocation59_spill] sm:$0xff] %v12720_v22  ;;  %16375 = vst [vmem:[#allocation62_spill] sm:$0xff] %v12724_v61  ;;  %v12742_v22 = vmul.f32 %v11648_v51, %v16383_v63  ;;  %v16385_v7 = vld [vmem:[#allocation99_spill] sm:$0xff]  ;;  %v16390_v32 = vld [vmem:[#allocation30_spill] sm:$0xff] }
 0x7d3   :  { %16376 = vst [vmem:[#allocation64_spill] sm:$0xff] %v12726_v20  ;;  %16378 = vst [vmem:[#allocation67_spill] sm:$0xff] %v12730_v45  ;;  %v4065_v61 = vmul.f32 %v12726_v20, %v16385_v7  ;;  %v12752_v45 = vmul.f32 %v11648_v51, %v16388_v19  ;;  %v16392_v12 = vld [vmem:[#allocation31_spill] sm:$0xff]  ;;  %v16394_v63 = vld [vmem:[#allocation32_spill] sm:$0xff] }
 0x7d4   :  { %16380 = vst [vmem:[#allocation69_spill] sm:$0xff] %v12734_v42  ;;  %16382 = vst [vmem:[#allocation76_spill] sm:$0xff] %v12738_v48  ;;  %v12756_v42 = vmul.f32 %v11648_v51, %v16390_v32  ;;  %v12760_v48 = vmul.f32 %v11648_v51, %v16392_v12  ;;  %v16396_v7 = vld [vmem:[#allocation33_spill] sm:$0xff]  ;;  %v16397_v54 = vld [vmem:[#allocation34_spill] sm:$0xff] }
 0x7d5   :  { %16384 = vst [vmem:[#allocation82_spill] sm:$0xff] %v12742_v22  ;;  %16389 = vst [vmem:[#allocation8_spill] sm:$0xff] %v12752_v45  ;;  %v12764_v22 = vmul.f32 %v11648_v51, %v16394_v63  ;;  %v12768_v58 = vmul.f32 %v11648_v51, %v16396_v7  ;;  %v12772_v19 = vmul.f32 %v11648_v51, %v16397_v54  ;;  %v16399_v32 = vld [vmem:[#allocation35_spill] sm:$0xff]  ;;  %v16400_v12 = vld [vmem:[#allocation36_spill] sm:$0xff] }
 0x7d6   :  { %16391 = vst [vmem:[#allocation9_spill] sm:$0xff] %v12756_v42  ;;  %16393 = vst [vmem:[#allocation10_spill] sm:$0xff] %v12760_v48  ;;  %v12775_v45 = vadd.f32 %v12380_v62, %v4065_v61  ;;  %v12779_v42 = vmul.f32 %v11648_v51, %v16399_v32  ;;  %v12783_v48 = vmul.f32 %v11648_v51, %v16400_v12  ;;  %v16401_v63 = vld [vmem:[#allocation37_spill] sm:$0xff]  ;;  %v16402_v54 = vld [vmem:[#allocation38_spill] sm:$0xff] }
 0x7d7   :  { %16395 = vst [vmem:[#allocation11_spill] sm:$0xff] %v12764_v22  ;;  %v12787_v22 = vmul.f32 %v11648_v51, %v16401_v63  ;;  %v12791_v7 = vmul.f32 %v11648_v51, %v12321_v3  ;;  %v12795_v61 = vmul.f32 %v11648_v51, %v16402_v54  ;;  %v12799_v32 = vmul.f32 %v11648_v51, %v12335_v56 }
 0x7d8   :  { %16398 = vst [vmem:[#allocation12_spill] sm:$0xff] %v12775_v45  ;;  %v12803_v12 = vmul.f32 %v11648_v51, %v12342_v24  ;;  %v12807_v63 = vmul.f32 %v11648_v51, %v11487_v53  ;;  %v12811_v3 = vmul.f32 %v11648_v51, %v11490_v37  ;;  %v12815_v54 = vmul.f32 %v11648_v51, %v11493_v5  ;;  %v16407_v45 = vld [vmem:[#allocation40_spill] sm:$0xff] }
 0x7d9   :  { %v12819_v56 = vmul.f32 %v12726_v20, %v12384_v55  ;;  %v12823_v24 = vmul.f32 %v12726_v20, %v12388_v40  ;;  %v12827_v53 = vmul.f32 %v12726_v20, %v12392_v25  ;;  %v12831_v37 = vmul.f32 %v12726_v20, %v12396_v13 }
 0x7da   :  { %v12835_v5 = vmul.f32 %v12726_v20, %v12400_v52  ;;  %v12839_v55 = vmul.f32 %v11648_v51, %v11496_v30  ;;  %v12843_v40 = vmul.f32 %v12726_v20, %v12404_v38  ;;  %v12847_v25 = vmul.f32 %v12726_v20, %v12408_v50 }
 0x7db   :  { %v12851_v13 = vmul.f32 %v12726_v20, %v12412_v43  ;;  %v12855_v52 = vmul.f32 %v12726_v20, %v12416_v21  ;;  %v12859_v30 = vmul.f32 %v12726_v20, %v12420_v35  ;;  %v12863_v38 = vmul.f32 %v12726_v20, %v12424_v29 }
 0x7dc   :  { %v12867_v50 = vmul.f32 %v12726_v20, %v12428_v60  ;;  %v12871_v43 = vmul.f32 %v12726_v20, %v12432_v15  ;;  %v12875_v21 = vmul.f32 %v12726_v20, %v12436_v9  ;;  %v12879_v35 = vmul.f32 %v12726_v20, %v12440_v57 }
 0x7dd   :  { %v12883_v29 = vmul.f32 %v12726_v20, %v12444_v0  ;;  %v12887_v60 = vmul.f32 %v12726_v20, %v12448_v44  ;;  %v12891_v15 = vmul.f32 %v12726_v20, %v12452_v41  ;;  %v12895_v9 = vmul.f32 %v12726_v20, %v12456_v8 }
 0x7de   :  { %v12899_v57 = vmul.f32 %v12726_v20, %v12460_v17  ;;  %v12903_v0 = vmul.f32 %v12726_v20, %v12464_v34  ;;  %v12907_v44 = vmul.f32 %v12726_v20, %v12468_v36  ;;  %v12911_v41 = vmul.f32 %v12726_v20, %v12472_v1 }
 0x7df   :  { %v12915_v8 = vmul.f32 %v12726_v20, %v12476_v33  ;;  %v12919_v17 = vmul.f32 %v12726_v20, %v12480_v28  ;;  %v12923_v34 = vmul.f32 %v12726_v20, %v12484_v14  ;;  %v12927_v36 = vmul.f32 %v12726_v20, %v12488_v16 }
 0x7e0   :  { %v12931_v1 = vmul.f32 %v12726_v20, %v12492_v27  ;;  %v12935_v33 = vmul.f32 %v12726_v20, %v12496_v10  ;;  %v12939_v28 = vmul.f32 %v12726_v20, %v12500_v6  ;;  %v12943_v14 = vmul.f32 %v12726_v20, %v12504_v49 }
 0x7e1   :  { %v12947_v16 = vmul.f32 %v12726_v20, %v12508_v59  ;;  %v12951_v27 = vmul.f32 %v12726_v20, %v12512_v26  ;;  %v12955_v10 = vmul.f32 %v12726_v20, %v12516_v47  ;;  %v12959_v6 = vmul.f32 %v12726_v20, %v12520_v31 }
 0x7e2   :  { %v12963_v49 = vmul.f32 %v12726_v20, %v12524_v39  ;;  %v12967_v59 = vmul.f32 %v12726_v20, %v12528_v23  ;;  %v12971_v26 = vmul.f32 %v12726_v20, %v12532_v46  ;;  %v12975_v47 = vmul.f32 %v12726_v20, %v12536_v11 }
 0x7e3   :  { %v12979_v31 = vmul.f32 %v12726_v20, %v12540_v2  ;;  %v12983_v39 = vmul.f32 %v12726_v20, %v12544_v18  ;;  %v12987_v23 = vmul.f32 %v12726_v20, %v16407_v45  ;;  %v13007_v45 = vmul.f32 %v12726_v20, %v12568_v4 }
 0x7e4   :  { %16403 = vst [vmem:[#allocation2_spill] sm:$0xff] %v12967_v59  ;;  %16404 = vst [vmem:[#allocation13_spill] sm:$0xff] %v12971_v26  ;;  %v16409_v59 = vld [vmem:[#allocation41_spill] sm:$0xff]  ;;  %v16411_v26 = vld [vmem:[#allocation43_spill] sm:$0xff] }
 0x7e5   :  { %16405 = vst [vmem:[#allocation14_spill] sm:$0xff] %v12975_v47  ;;  %16406 = vst [vmem:[#allocation18_spill] sm:$0xff] %v12979_v31  ;;  %v12991_v46 = vmul.f32 %v12726_v20, %v16409_v59  ;;  %v12995_v11 = vmul.f32 %v12726_v20, %v16411_v26  ;;  %v16413_v47 = vld [vmem:[#allocation45_spill] sm:$0xff]  ;;  %v16415_v31 = vld [vmem:[#allocation46_spill] sm:$0xff] }
 0x7e6   :  { %16408 = vst [vmem:[#allocation19_spill] sm:$0xff] %v12987_v23  ;;  %v12999_v2 = vmul.f32 %v12726_v20, %v16413_v47  ;;  %v13003_v18 = vmul.f32 %v12726_v20, %v16415_v31  ;;  %16417 = vst [vmem:[#allocation24_spill] sm:$0xff] %v13007_v45  ;;  %v16418_v23 = vld [vmem:[#allocation88_spill] sm:$0xff]  ;;  %v16428_v45 = vld [vmem:[#allocation93_spill] sm:$0xff] }
 0x7e7   :  { %16410 = vst [vmem:[#allocation20_spill] sm:$0xff] %v12991_v46  ;;  %16412 = vst [vmem:[#allocation21_spill] sm:$0xff] %v12995_v11  ;;  %v13011_v59 = vmul.f32 %v12726_v20, %v16418_v23  ;;  %v16420_v46 = vld [vmem:[#allocation89_spill] sm:$0xff]  ;;  %v16422_v11 = vld [vmem:[#allocation90_spill] sm:$0xff]  ;;  %v13031_v23 = vmul.f32 %v12726_v20, %v16428_v45 }
 0x7e8   :  { %16414 = vst [vmem:[#allocation22_spill] sm:$0xff] %v12999_v2  ;;  %16416 = vst [vmem:[#allocation23_spill] sm:$0xff] %v13003_v18  ;;  %v13015_v26 = vmul.f32 %v12726_v20, %v16420_v46  ;;  %v13019_v47 = vmul.f32 %v12726_v20, %v16422_v11  ;;  %v16424_v2 = vld [vmem:[#allocation92_spill] sm:$0xff]  ;;  %v16426_v18 = vld [vmem:[#allocation17_spill] sm:$0xff] }
 0x7e9   :  { %16419 = vst [vmem:[#allocation25_spill] sm:$0xff] %v13011_v59  ;;  %v13023_v31 = vmul.f32 %v12726_v20, %v16424_v2  ;;  %v13027_v4 = vmul.f32 %v12726_v20, %v16426_v18  ;;  %16429 = vst [vmem:[#allocation29_spill] sm:$0xff] %v13031_v23  ;;  %v16430_v59 = vld [vmem:[#allocation77_spill] sm:$0xff] }
 0x7ea   :  { %16421 = vst [vmem:[#allocation26_spill] sm:$0xff] %v13015_v26  ;;  %16423 = vst [vmem:[#allocation27_spill] sm:$0xff] %v13019_v47  ;;  %v13035_v46 = vmul.f32 %v12726_v20, %v16430_v59  ;;  %v16432_v26 = vld [vmem:[#allocation42_spill] sm:$0xff]  ;;  %v16434_v47 = vld [vmem:[#allocation44_spill] sm:$0xff] }
 0x7eb   :  { %16425 = vst [vmem:[#allocation99_spill] sm:$0xff] %v13023_v31  ;;  %16427 = vst [vmem:[#allocation28_spill] sm:$0xff] %v13027_v4  ;;  %v13039_v11 = vmul.f32 %v12726_v20, %v16432_v26  ;;  %v13043_v2 = vmul.f32 %v12726_v20, %v16434_v47  ;;  %v16436_v31 = vld [vmem:[#allocation4_spill] sm:$0xff]  ;;  %v16438_v4 = vld [vmem:[#allocation5_spill] sm:$0xff] }
 0x7ec   :  { %16431 = vst [vmem:[#allocation30_spill] sm:$0xff] %v13035_v46  ;;  %v13047_v18 = vmul.f32 %v12726_v20, %v16436_v31  ;;  %v13051_v45 = vmul.f32 %v12726_v20, %v16438_v4  ;;  %v16440_v23 = vld [vmem:[#allocation65_spill] sm:$0xff]  ;;  %v16442_v46 = vld [vmem:[#allocation66_spill] sm:$0xff] }
 0x7ed   :  { %16433 = vst [vmem:[#allocation31_spill] sm:$0xff] %v13039_v11  ;;  %16435 = vst [vmem:[#allocation32_spill] sm:$0xff] %v13043_v2  ;;  %v13055_v59 = vmul.f32 %v12726_v20, %v16440_v23  ;;  %v13059_v26 = vmul.f32 %v12726_v20, %v16442_v46  ;;  %v16444_v11 = vld [vmem:[#allocation68_spill] sm:$0xff]  ;;  %v16446_v2 = vld [vmem:[#allocation70_spill] sm:$0xff] }
 0x7ee   :  { %16437 = vst [vmem:[#allocation33_spill] sm:$0xff] %v13047_v18  ;;  %16439 = vst [vmem:[#allocation34_spill] sm:$0xff] %v13051_v45  ;;  %v13063_v47 = vmul.f32 %v12726_v20, %v16444_v11  ;;  %v13067_v31 = vmul.f32 %v12726_v20, %v16446_v2  ;;  %v16448_v18 = vld [vmem:[#allocation71_spill] sm:$0xff] }
 0x7ef   :  { %16441 = vst [vmem:[#allocation35_spill] sm:$0xff] %v13055_v59  ;;  %16443 = vst [vmem:[#allocation36_spill] sm:$0xff] %v13059_v26  ;;  %v13071_v4 = vmul.f32 %v12726_v20, %v16448_v18  ;;  %v16450_v45 = vld [vmem:[#allocation75_spill] sm:$0xff]  ;;  %v16452_v59 = vld [vmem:[#allocation86_spill] sm:$0xff] }
 0x7f0   :  { %16445 = vst [vmem:[#allocation37_spill] sm:$0xff] %v13063_v47  ;;  %16447 = vst [vmem:[#allocation38_spill] sm:$0xff] %v13067_v31  ;;  %v13075_v23 = vmul.f32 %v12726_v20, %v16450_v45  ;;  %v13079_v46 = vmul.f32 %v12726_v20, %v16452_v59  ;;  %v16454_v26 = vld [vmem:[#allocation87_spill] sm:$0xff]  ;;  %v16456_v47 = vld [vmem:[#allocation49_spill] sm:$0xff] }
 0x7f1   :  { %16449 = vst [vmem:[#allocation40_spill] sm:$0xff] %v13071_v4  ;;  %v13083_v11 = vmul.f32 %v12726_v20, %v16454_v26  ;;  %v13087_v2 = vmul.f32 %v12726_v20, %v16456_v47  ;;  %v16458_v31 = vld [vmem:[#allocation73_spill] sm:$0xff]  ;;  %v16460_v4 = vld [vmem:[#allocation51_spill] sm:$0xff] }
 0x7f2   :  { %16451 = vst [vmem:[#allocation41_spill] sm:$0xff] %v13075_v23  ;;  %16453 = vst [vmem:[#allocation43_spill] sm:$0xff] %v13079_v46  ;;  %v13091_v18 = vmul.f32 %v12726_v20, %v16458_v31  ;;  %v13095_v45 = vmul.f32 %v12726_v20, %v16460_v4  ;;  %v16462_v23 = vld [vmem:[#allocation54_spill] sm:$0xff]  ;;  %v16464_v46 = vld [vmem:[#allocation56_spill] sm:$0xff] }
 0x7f3   :  { %16455 = vst [vmem:[#allocation45_spill] sm:$0xff] %v13083_v11  ;;  %16457 = vst [vmem:[#allocation46_spill] sm:$0xff] %v13087_v2  ;;  %v13099_v59 = vmul.f32 %v12726_v20, %v16462_v23  ;;  %v13103_v26 = vmul.f32 %v12726_v20, %v16464_v46  ;;  %v16466_v11 = vld [vmem:[#allocation85_spill] sm:$0xff] }
 0x7f4   :  { %16459 = vst [vmem:[#allocation88_spill] sm:$0xff] %v13091_v18  ;;  %16461 = vst [vmem:[#allocation89_spill] sm:$0xff] %v13095_v45  ;;  %v13107_v47 = vmul.f32 %v12726_v20, %v16466_v11  ;;  %v16468_v2 = vld [vmem:[#allocation81_spill] sm:$0xff]  ;;  %v16470_v18 = vld [vmem:[#allocation72_spill] sm:$0xff] }
 0x7f5   :  { %16463 = vst [vmem:[#allocation90_spill] sm:$0xff] %v13099_v59  ;;  %16465 = vst [vmem:[#allocation92_spill] sm:$0xff] %v13103_v26  ;;  %v13111_v31 = vmul.f32 %v12726_v20, %v16468_v2  ;;  %v13115_v4 = vmul.f32 %v12726_v20, %v16470_v18  ;;  %v16472_v45 = vld [vmem:[#allocation58_spill] sm:$0xff]  ;;  %v16474_v59 = vld [vmem:[#allocation15_spill] sm:$0xff] }
 0x7f6   :  { %16467 = vst [vmem:[#allocation17_spill] sm:$0xff] %v13107_v47  ;;  %v13119_v23 = vmul.f32 %v12726_v20, %v16472_v45  ;;  %v13123_v46 = vmul.f32 %v12726_v20, %v16474_v59  ;;  %v16476_v26 = vld [vmem:[#allocation84_spill] sm:$0xff]  ;;  %v16478_v47 = vld [vmem:[#allocation91_spill] sm:$0xff] }
 0x7f7   :  { %16469 = vst [vmem:[#allocation93_spill] sm:$0xff] %v13111_v31  ;;  %16471 = vst [vmem:[#allocation77_spill] sm:$0xff] %v13115_v4  ;;  %v13127_v11 = vmul.f32 %v12726_v20, %v16476_v26  ;;  %v13131_v2 = vmul.f32 %v12726_v20, %v16478_v47  ;;  %v16480_v31 = vld [vmem:[#allocation60_spill] sm:$0xff]  ;;  %v16482_v4 = vld [vmem:[#allocation7_spill] sm:$0xff] }
 0x7f8   :  { %16473 = vst [vmem:[#allocation42_spill] sm:$0xff] %v13119_v23  ;;  %16475 = vst [vmem:[#allocation44_spill] sm:$0xff] %v13123_v46  ;;  %v13135_v18 = vmul.f32 %v12726_v20, %v16480_v31  ;;  %v13139_v45 = vmul.f32 %v12726_v20, %v16482_v4  ;;  %v16484_v23 = vld [vmem:[#allocation74_spill] sm:$0xff]  ;;  %v16486_v46 = vld [vmem:[#allocation61_spill] sm:$0xff] }
 0x7f9   :  { %16477 = vst [vmem:[#allocation4_spill] sm:$0xff] %v13127_v11  ;;  %16479 = vst [vmem:[#allocation5_spill] sm:$0xff] %v13131_v2  ;;  %v13143_v59 = vmul.f32 %v12726_v20, %v16484_v23  ;;  %v13147_v26 = vmul.f32 %v12726_v20, %v16486_v46  ;;  %v16488_v11 = vld [vmem:[#allocation16_spill] sm:$0xff]  ;;  %v16490_v2 = vld [vmem:[#allocation63_spill] sm:$0xff] }
 0x7fa   :  { %16481 = vst [vmem:[#allocation65_spill] sm:$0xff] %v13135_v18  ;;  %16483 = vst [vmem:[#allocation66_spill] sm:$0xff] %v13139_v45  ;;  %v13151_v47 = vmul.f32 %v12726_v20, %v16488_v11  ;;  %v13155_v31 = vmul.f32 %v12726_v20, %v16490_v2  ;;  %v16492_v18 = vld [vmem:[#allocation59_spill] sm:$0xff]  ;;  %v16494_v45 = vld [vmem:[#allocation62_spill] sm:$0xff] }
 0x7fb   :  { %16485 = vst [vmem:[#allocation68_spill] sm:$0xff] %v13143_v59  ;;  %16487 = vst [vmem:[#allocation70_spill] sm:$0xff] %v13147_v26  ;;  %v13159_v4 = vmul.f32 %v12726_v20, %v16492_v18  ;;  %v13163_v23 = vmul.f32 %v12726_v20, %v16494_v45  ;;  %v16496_v59 = vld [vmem:[#allocation67_spill] sm:$0xff]  ;;  %v16498_v26 = vld [vmem:[#allocation69_spill] sm:$0xff] }
 0x7fc   :  { %16489 = vst [vmem:[#allocation71_spill] sm:$0xff] %v13151_v47  ;;  %16491 = vst [vmem:[#allocation75_spill] sm:$0xff] %v13155_v31  ;;  %v13167_v46 = vmul.f32 %v12726_v20, %v16496_v59  ;;  %v13171_v11 = vmul.f32 %v12726_v20, %v16498_v26  ;;  %v16500_v47 = vld [vmem:[#allocation76_spill] sm:$0xff]  ;;  %v16502_v31 = vld [vmem:[#allocation82_spill] sm:$0xff] }
 0x7fd   :  { %16493 = vst [vmem:[#allocation86_spill] sm:$0xff] %v13159_v4  ;;  %16495 = vst [vmem:[#allocation87_spill] sm:$0xff] %v13163_v23  ;;  %v13175_v2 = vmul.f32 %v12726_v20, %v16500_v47  ;;  %v13179_v18 = vmul.f32 %v12726_v20, %v16502_v31  ;;  %v16503_v4 = vld [vmem:[#allocation3_spill] sm:$0xff]  ;;  %v16504_v23 = vld [vmem:[#allocation8_spill] sm:$0xff] }
 0x7fe   :  { %16497 = vst [vmem:[#allocation49_spill] sm:$0xff] %v13167_v46  ;;  %16499 = vst [vmem:[#allocation73_spill] sm:$0xff] %v13171_v11  ;;  %v13183_v45 = vmul.f32 %v12726_v20, %v16503_v4  ;;  %v13187_v59 = vmul.f32 %v12726_v20, %v16504_v23  ;;  %v16505_v46 = vld [vmem:[#allocation9_spill] sm:$0xff]  ;;  %v16506_v11 = vld [vmem:[#allocation10_spill] sm:$0xff]  ;;  %v13203_v4 = vmul.f32 %v12726_v20, %v12768_v58 }
 0x7ff   :  { %16501 = vst [vmem:[#allocation51_spill] sm:$0xff] %v13175_v2  ;;  %v13191_v26 = vmul.f32 %v12726_v20, %v16505_v46  ;;  %v13195_v47 = vmul.f32 %v12726_v20, %v16506_v11  ;;  %v16507_v2 = vld [vmem:[#allocation11_spill] sm:$0xff]  ;;  %v13207_v23 = vmul.f32 %v12726_v20, %v12772_v19  ;;  %v13211_v46 = vmul.f32 %v12726_v20, %v12779_v42 }
 0x800   :  { %v13199_v31 = vmul.f32 %v12726_v20, %v16507_v2  ;;  %v13215_v11 = vmul.f32 %v12726_v20, %v12783_v48  ;;  %v13219_v2 = vmul.f32 %v12726_v20, %v12787_v22  ;;  %v13223_v58 = vmul.f32 %v12726_v20, %v12791_v7 }
 0x801   :  { %v13227_v19 = vmul.f32 %v12726_v20, %v12795_v61  ;;  %v13231_v42 = vmul.f32 %v12726_v20, %v12799_v32  ;;  %v13235_v48 = vmul.f32 %v12726_v20, %v12803_v12  ;;  %v13239_v22 = vmul.f32 %v12726_v20, %v12807_v63  ;;  %v16518_v63 = vld [vmem:[#allocation80_spill] sm:$0xff] }
 0x802   :  { %16508 = vst [vmem:[#allocation54_spill] sm:$0xff] %v13219_v2  ;;  %16509 = vst [vmem:[#allocation56_spill] sm:$0xff] %v13223_v58  ;;  %v13243_v7 = vmul.f32 %v12726_v20, %v12811_v3  ;;  %v13247_v61 = vmul.f32 %v12726_v20, %v12815_v54  ;;  %v13251_v32 = vmul.f32 %v12726_v20, %v12839_v55  ;;  %v16519_v58 = vld [vmem:[#allocation47_spill] sm:$0xff] }
 0x803   :  { %16510 = vst [vmem:[#allocation85_spill] sm:$0xff] %v13227_v19  ;;  %16511 = vst [vmem:[#allocation81_spill] sm:$0xff] %v13231_v42  ;;  %v16516_v42 = vld [vmem:[#allocation6_spill] sm:$0xff]  ;;  %v3817_v3 = vmul.f32 %v11648_v51, %v16519_v58 }
 0x804   :  { %16512 = vst [vmem:[#allocation72_spill] sm:$0xff] %v13235_v48  ;;  %16513 = vst [vmem:[#allocation58_spill] sm:$0xff] %v13239_v22  ;;  %v3814_v12 = vmul.f32 %v11648_v51, %v16516_v42  ;;  %v16517_v48 = vld [vmem:[#allocation79_spill] sm:$0xff]  ;;  %v3816_v22 = vmul.f32 %v11648_v51, %v16518_v63 }
 0x805   :  { %16514 = vst [vmem:[#allocation15_spill] sm:$0xff] %v13243_v7  ;;  %16515 = vst [vmem:[#allocation84_spill] sm:$0xff] %v13247_v61  ;;  %v3815_v19 = vmul.f32 %v11648_v51, %v16517_v48  ;;  %v16520_v7 = vld [vmem:[#allocation48_spill] sm:$0xff]  ;;  %v16521_v61 = vld [vmem:[#allocation50_spill] sm:$0xff]  ;;  %v13275_v63 = vmul.f32 %v12726_v20, %v3817_v3 }
 0x806   :  { %v3818_v54 = vmul.f32 %v11648_v51, %v16520_v7  ;;  %v3819_v2 = vmul.f32 %v11648_v51, %v16521_v61  ;;  %v13266_v55 = vmul.f32 %v12726_v20, %v3814_v12  ;;  %v13272_v48 = vmul.f32 %v12726_v20, %v3816_v22  ;;  %v16558_v3 = vld [vmem:[#allocation2_spill] sm:$0xff] }
 0x807   :  { %v13269_v42 = vmul.f32 %v12726_v20, %v3815_v19  ;;  %v13285_v61 = vadd.f32 %v12380_v62, %v12819_v56  ;;  %v13289_v19 = vadd.f32 %v12380_v62, %v12823_v24  ;;  %v13293_v22 = vadd.f32 %v12380_v62, %v12827_v53 }
 0x808   :  { %v13278_v58 = vmul.f32 %v12726_v20, %v3818_v54  ;;  %v13281_v7 = vmul.f32 %v12726_v20, %v3819_v2  ;;  %v13297_v12 = vadd.f32 %v12380_v62, %v12831_v37  ;;  %v13301_v2 = vadd.f32 %v12380_v62, %v12835_v5  ;;  %v16560_v54 = vld [vmem:[#allocation13_spill] sm:$0xff] }
 0x809   :  { %16522 = vst [vmem:[#allocation91_spill] sm:$0xff] %v13285_v61  ;;  %16523 = vst [vmem:[#allocation60_spill] sm:$0xff] %v13289_v19  ;;  %v13305_v56 = vadd.f32 %v12380_v62, %v12843_v40  ;;  %v13309_v24 = vadd.f32 %v12380_v62, %v12847_v25  ;;  %v13313_v53 = vadd.f32 %v12380_v62, %v12851_v13 }
 0x80a   :  { %16524 = vst [vmem:[#allocation7_spill] sm:$0xff] %v13293_v22  ;;  %16525 = vst [vmem:[#allocation74_spill] sm:$0xff] %v13297_v12  ;;  %v13317_v37 = vadd.f32 %v12380_v62, %v12855_v52  ;;  %v13321_v5 = vadd.f32 %v12380_v62, %v12859_v30  ;;  %v13325_v40 = vadd.f32 %v12380_v62, %v12863_v38 }
 0x80b   :  { %16526 = vst [vmem:[#allocation61_spill] sm:$0xff] %v13301_v2  ;;  %16527 = vst [vmem:[#allocation16_spill] sm:$0xff] %v13305_v56  ;;  %v13329_v25 = vadd.f32 %v12380_v62, %v12867_v50  ;;  %v13333_v13 = vadd.f32 %v12380_v62, %v12871_v43  ;;  %v13337_v52 = vadd.f32 %v12380_v62, %v12875_v21 }
 0x80c   :  { %16528 = vst [vmem:[#allocation63_spill] sm:$0xff] %v13309_v24  ;;  %16529 = vst [vmem:[#allocation59_spill] sm:$0xff] %v13313_v53  ;;  %v13341_v30 = vadd.f32 %v12380_v62, %v12879_v35  ;;  %v13345_v38 = vadd.f32 %v12380_v62, %v12883_v29  ;;  %v13349_v50 = vadd.f32 %v12380_v62, %v12887_v60 }
 0x80d   :  { %16530 = vst [vmem:[#allocation62_spill] sm:$0xff] %v13317_v37  ;;  %16531 = vst [vmem:[#allocation67_spill] sm:$0xff] %v13321_v5  ;;  %v13353_v43 = vadd.f32 %v12380_v62, %v12891_v15  ;;  %v13357_v21 = vadd.f32 %v12380_v62, %v12895_v9  ;;  %v13361_v35 = vadd.f32 %v12380_v62, %v12899_v57 }
 0x80e   :  { %16532 = vst [vmem:[#allocation69_spill] sm:$0xff] %v13325_v40  ;;  %16533 = vst [vmem:[#allocation76_spill] sm:$0xff] %v13329_v25  ;;  %v13365_v29 = vadd.f32 %v12380_v62, %v12903_v0  ;;  %v13369_v60 = vadd.f32 %v12380_v62, %v12907_v44  ;;  %v13373_v15 = vadd.f32 %v12380_v62, %v12911_v41 }
 0x80f   :  { %16534 = vst [vmem:[#allocation82_spill] sm:$0xff] %v13333_v13  ;;  %16535 = vst [vmem:[#allocation3_spill] sm:$0xff] %v13337_v52  ;;  %v13377_v9 = vadd.f32 %v12380_v62, %v12915_v8  ;;  %v13381_v57 = vadd.f32 %v12380_v62, %v12919_v17  ;;  %v13385_v0 = vadd.f32 %v12380_v62, %v12923_v34 }
 0x810   :  { %16536 = vst [vmem:[#allocation8_spill] sm:$0xff] %v13341_v30  ;;  %16537 = vst [vmem:[#allocation9_spill] sm:$0xff] %v13345_v38  ;;  %v13389_v44 = vadd.f32 %v12380_v62, %v12927_v36  ;;  %v13393_v41 = vadd.f32 %v12380_v62, %v12931_v1  ;;  %v13397_v8 = vadd.f32 %v12380_v62, %v12935_v33 }
 0x811   :  { %16538 = vst [vmem:[#allocation10_spill] sm:$0xff] %v13349_v50  ;;  %16539 = vst [vmem:[#allocation11_spill] sm:$0xff] %v13353_v43  ;;  %v13401_v17 = vadd.f32 %v12380_v62, %v12939_v28  ;;  %v13405_v34 = vadd.f32 %v12380_v62, %v12943_v14  ;;  %v13409_v36 = vadd.f32 %v12380_v62, %v12947_v16 }
 0x812   :  { %16540 = vst [vmem:[#allocation6_spill] sm:$0xff] %v13357_v21  ;;  %16541 = vst [vmem:[#allocation79_spill] sm:$0xff] %v13361_v35  ;;  %v13413_v1 = vadd.f32 %v12380_v62, %v12951_v27  ;;  %v13417_v33 = vadd.f32 %v12380_v62, %v12955_v10  ;;  %v13421_v28 = vadd.f32 %v12380_v62, %v12959_v6 }
 0x813   :  { %16542 = vst [vmem:[#allocation80_spill] sm:$0xff] %v13365_v29  ;;  %16543 = vst [vmem:[#allocation47_spill] sm:$0xff] %v13369_v60  ;;  %v13425_v14 = vadd.f32 %v12380_v62, %v12963_v49  ;;  %v13429_v16 = vadd.f32 %v12380_v62, %v16558_v3  ;;  %v13433_v27 = vadd.f32 %v12380_v62, %v16560_v54 }
 0x814   :  { %16544 = vst [vmem:[#allocation48_spill] sm:$0xff] %v13373_v15  ;;  %16545 = vst [vmem:[#allocation50_spill] sm:$0xff] %v13377_v9  ;;  %v13445_v49 = vadd.f32 %v12380_v62, %v12983_v39 }
 0x815   :  { %16546 = vst [vmem:[#allocation100_spill] sm:$0xff] %v13381_v57  ;;  %16547 = vst [vmem:[#allocation101_spill] sm:$0xff] %v13385_v0 }
 0x816   :  { %16548 = vst [vmem:[#allocation102_spill] sm:$0xff] %v13389_v44  ;;  %16549 = vst [vmem:[#allocation103_spill] sm:$0xff] %v13393_v41 }
 0x817   :  { %16550 = vst [vmem:[#allocation104_spill] sm:$0xff] %v13397_v8  ;;  %16551 = vst [vmem:[#allocation105_spill] sm:$0xff] %v13401_v17 }
 0x818   :  { %16552 = vst [vmem:[#allocation106_spill] sm:$0xff] %v13405_v34  ;;  %16553 = vst [vmem:[#allocation107_spill] sm:$0xff] %v13409_v36 }
 0x819   :  { %16554 = vst [vmem:[#allocation108_spill] sm:$0xff] %v13413_v1  ;;  %16555 = vst [vmem:[#allocation109_spill] sm:$0xff] %v13417_v33  ;;  %v16562_v1 = vld [vmem:[#allocation14_spill] sm:$0xff] }
 0x81a   :  { %16556 = vst [vmem:[#allocation110_spill] sm:$0xff] %v13421_v28  ;;  %16557 = vst [vmem:[#allocation111_spill] sm:$0xff] %v13425_v14  ;;  %v13437_v10 = vadd.f32 %v12380_v62, %v16562_v1  ;;  %v16564_v33 = vld [vmem:[#allocation18_spill] sm:$0xff]  ;;  %v16567_v14 = vld [vmem:[#allocation19_spill] sm:$0xff] }
 0x81b   :  { %16559 = vst [vmem:[#allocation2_spill] sm:$0xff] %v13429_v16  ;;  %16561 = vst [vmem:[#allocation13_spill] sm:$0xff] %v13433_v27  ;;  %v13441_v6 = vadd.f32 %v12380_v62, %v16564_v33  ;;  %v13449_v3 = vadd.f32 %v12380_v62, %v16567_v14  ;;  %v16569_v16 = vld [vmem:[#allocation20_spill] sm:$0xff]  ;;  %v16571_v27 = vld [vmem:[#allocation21_spill] sm:$0xff] }
 0x81c   :  { %16563 = vst [vmem:[#allocation14_spill] sm:$0xff] %v13437_v10  ;;  %16566 = vst [vmem:[#allocation112_spill] sm:$0xff] %v13445_v49  ;;  %v13453_v54 = vadd.f32 %v12380_v62, %v16569_v16  ;;  %v13457_v1 = vadd.f32 %v12380_v62, %v16571_v27  ;;  %v16573_v10 = vld [vmem:[#allocation22_spill] sm:$0xff]  ;;  %v16577_v49 = vld [vmem:[#allocation24_spill] sm:$0xff] }
 0x81d   :  { %16565 = vst [vmem:[#allocation18_spill] sm:$0xff] %v13441_v6  ;;  %16568 = vst [vmem:[#allocation19_spill] sm:$0xff] %v13449_v3  ;;  %v13461_v33 = vadd.f32 %v12380_v62, %v16573_v10  ;;  %v16575_v6 = vld [vmem:[#allocation23_spill] sm:$0xff]  ;;  %v13469_v14 = vadd.f32 %v12380_v62, %v16577_v49  ;;  %v16579_v3 = vld [vmem:[#allocation25_spill] sm:$0xff] }
 0x81e   :  { %16570 = vst [vmem:[#allocation20_spill] sm:$0xff] %v13453_v54  ;;  %16572 = vst [vmem:[#allocation21_spill] sm:$0xff] %v13457_v1  ;;  %v13465_v39 = vadd.f32 %v12380_v62, %v16575_v6  ;;  %v13473_v16 = vadd.f32 %v12380_v62, %v16579_v3  ;;  %v16581_v54 = vld [vmem:[#allocation26_spill] sm:$0xff]  ;;  %v16583_v1 = vld [vmem:[#allocation27_spill] sm:$0xff] }
 0x81f   :  { %16574 = vst [vmem:[#allocation22_spill] sm:$0xff] %v13461_v33  ;;  %16578 = vst [vmem:[#allocation24_spill] sm:$0xff] %v13469_v14  ;;  %v13477_v27 = vadd.f32 %v12380_v62, %v16581_v54  ;;  %v13481_v10 = vadd.f32 %v12380_v62, %v16583_v1  ;;  %v16585_v33 = vld [vmem:[#allocation99_spill] sm:$0xff]  ;;  %v16589_v14 = vld [vmem:[#allocation29_spill] sm:$0xff] }
 0x820   :  { %16576 = vst [vmem:[#allocation23_spill] sm:$0xff] %v13465_v39  ;;  %16580 = vst [vmem:[#allocation25_spill] sm:$0xff] %v13473_v16  ;;  %v13485_v6 = vadd.f32 %v12380_v62, %v16585_v33  ;;  %v16587_v39 = vld [vmem:[#allocation28_spill] sm:$0xff]  ;;  %v13493_v3 = vadd.f32 %v12380_v62, %v16589_v14  ;;  %v16591_v16 = vld [vmem:[#allocation30_spill] sm:$0xff] }
 0x821   :  { %16582 = vst [vmem:[#allocation26_spill] sm:$0xff] %v13477_v27  ;;  %16584 = vst [vmem:[#allocation27_spill] sm:$0xff] %v13481_v10  ;;  %v13489_v49 = vadd.f32 %v12380_v62, %v16587_v39  ;;  %v13497_v54 = vadd.f32 %v12380_v62, %v16591_v16  ;;  %v16593_v27 = vld [vmem:[#allocation31_spill] sm:$0xff]  ;;  %v16595_v10 = vld [vmem:[#allocation32_spill] sm:$0xff] }
 0x822   :  { %16586 = vst [vmem:[#allocation99_spill] sm:$0xff] %v13485_v6  ;;  %16590 = vst [vmem:[#allocation29_spill] sm:$0xff] %v13493_v3  ;;  %v13501_v1 = vadd.f32 %v12380_v62, %v16593_v27  ;;  %v13505_v33 = vadd.f32 %v12380_v62, %v16595_v10  ;;  %v16597_v6 = vld [vmem:[#allocation33_spill] sm:$0xff]  ;;  %v16601_v3 = vld [vmem:[#allocation35_spill] sm:$0xff] }
 0x823   :  { %16588 = vst [vmem:[#allocation28_spill] sm:$0xff] %v13489_v49  ;;  %16592 = vst [vmem:[#allocation30_spill] sm:$0xff] %v13497_v54  ;;  %v13509_v39 = vadd.f32 %v12380_v62, %v16597_v6  ;;  %v16599_v49 = vld [vmem:[#allocation34_spill] sm:$0xff]  ;;  %v13517_v16 = vadd.f32 %v12380_v62, %v16601_v3  ;;  %v16603_v54 = vld [vmem:[#allocation36_spill] sm:$0xff] }
 0x824   :  { %16594 = vst [vmem:[#allocation31_spill] sm:$0xff] %v13501_v1  ;;  %16596 = vst [vmem:[#allocation32_spill] sm:$0xff] %v13505_v33  ;;  %v13513_v14 = vadd.f32 %v12380_v62, %v16599_v49  ;;  %v13521_v27 = vadd.f32 %v12380_v62, %v16603_v54  ;;  %v16605_v1 = vld [vmem:[#allocation37_spill] sm:$0xff]  ;;  %v16607_v33 = vld [vmem:[#allocation38_spill] sm:$0xff] }
 0x825   :  { %16598 = vst [vmem:[#allocation33_spill] sm:$0xff] %v13509_v39  ;;  %16602 = vst [vmem:[#allocation35_spill] sm:$0xff] %v13517_v16  ;;  %v13525_v10 = vadd.f32 %v12380_v62, %v16605_v1  ;;  %v13529_v6 = vadd.f32 %v12380_v62, %v16607_v33  ;;  %v16609_v39 = vld [vmem:[#allocation40_spill] sm:$0xff]  ;;  %v16613_v16 = vld [vmem:[#allocation43_spill] sm:$0xff] }
 0x826   :  { %16600 = vst [vmem:[#allocation34_spill] sm:$0xff] %v13513_v14  ;;  %16604 = vst [vmem:[#allocation36_spill] sm:$0xff] %v13521_v27  ;;  %v13533_v49 = vadd.f32 %v12380_v62, %v16609_v39  ;;  %v16611_v14 = vld [vmem:[#allocation41_spill] sm:$0xff]  ;;  %v13541_v54 = vadd.f32 %v12380_v62, %v16613_v16 }
 0x827   :  { %16606 = vst [vmem:[#allocation37_spill] sm:$0xff] %v13525_v10  ;;  %16608 = vst [vmem:[#allocation38_spill] sm:$0xff] %v13529_v6  ;;  %v13537_v3 = vadd.f32 %v12380_v62, %v16611_v14  ;;  %v16615_v27 = vld [vmem:[#allocation45_spill] sm:$0xff]  ;;  %v16617_v10 = vld [vmem:[#allocation46_spill] sm:$0xff] }
 0x828   :  { %16610 = vst [vmem:[#allocation40_spill] sm:$0xff] %v13533_v49  ;;  %16614 = vst [vmem:[#allocation43_spill] sm:$0xff] %v13541_v54  ;;  %v13545_v1 = vadd.f32 %v12380_v62, %v16615_v27  ;;  %v13549_v33 = vadd.f32 %v12380_v62, %v16617_v10  ;;  %v16619_v6 = vld [vmem:[#allocation88_spill] sm:$0xff]  ;;  %v16621_v49 = vld [vmem:[#allocation89_spill] sm:$0xff] }
 0x829   :  { %16612 = vst [vmem:[#allocation41_spill] sm:$0xff] %v13537_v3  ;;  %v13553_v39 = vadd.f32 %v12380_v62, %v16619_v6  ;;  %v13557_v14 = vadd.f32 %v12380_v62, %v16621_v49  ;;  %v16623_v3 = vld [vmem:[#allocation90_spill] sm:$0xff]  ;;  %v16625_v54 = vld [vmem:[#allocation92_spill] sm:$0xff] }
 0x82a   :  { %16616 = vst [vmem:[#allocation45_spill] sm:$0xff] %v13545_v1  ;;  %16618 = vst [vmem:[#allocation46_spill] sm:$0xff] %v13549_v33  ;;  %v13561_v16 = vadd.f32 %v12380_v62, %v16623_v3  ;;  %v13565_v27 = vadd.f32 %v12380_v62, %v16625_v54  ;;  %v16627_v1 = vld [vmem:[#allocation17_spill] sm:$0xff]  ;;  %v16698_v36 = vld [vmem:[#allocation26_spill] sm:$0xff] }
 0x82b   :  { %16620 = vst [vmem:[#allocation88_spill] sm:$0xff] %v13553_v39  ;;  %16622 = vst [vmem:[#allocation89_spill] sm:$0xff] %v13557_v14  ;;  %v13569_v10 = vadd.f32 %v12380_v62, %v16627_v1  ;;  %v16629_v33 = vld [vmem:[#allocation93_spill] sm:$0xff]  ;;  %v16633_v14 = vld [vmem:[#allocation42_spill] sm:$0xff] }
 0x82c   :  { %16624 = vst [vmem:[#allocation90_spill] sm:$0xff] %v13561_v16  ;;  %16626 = vst [vmem:[#allocation92_spill] sm:$0xff] %v13565_v27  ;;  %v13573_v6 = vadd.f32 %v12380_v62, %v16629_v33  ;;  %v16631_v39 = vld [vmem:[#allocation77_spill] sm:$0xff]  ;;  %v13581_v3 = vadd.f32 %v12380_v62, %v16633_v14  ;;  %v16635_v16 = vld [vmem:[#allocation44_spill] sm:$0xff] }
 0x82d   :  { %16628 = vst [vmem:[#allocation17_spill] sm:$0xff] %v13569_v10  ;;  %v13577_v49 = vadd.f32 %v12380_v62, %v16631_v39  ;;  %v13585_v54 = vadd.f32 %v12380_v62, %v16635_v16  ;;  %v16637_v27 = vld [vmem:[#allocation4_spill] sm:$0xff]  ;;  %v16639_v10 = vld [vmem:[#allocation5_spill] sm:$0xff]  ;;  %v16707_v17 = vld [vmem:[#allocation34_spill] sm:$0xff] }
 0x82e   :  { %16630 = vst [vmem:[#allocation93_spill] sm:$0xff] %v13573_v6  ;;  %16634 = vst [vmem:[#allocation42_spill] sm:$0xff] %v13581_v3  ;;  %v13589_v1 = vadd.f32 %v12380_v62, %v16637_v27  ;;  %v13593_v33 = vadd.f32 %v12380_v62, %v16639_v10  ;;  %v16641_v6 = vld [vmem:[#allocation65_spill] sm:$0xff]  ;;  %v16645_v3 = vld [vmem:[#allocation68_spill] sm:$0xff] }
 0x82f   :  { %16632 = vst [vmem:[#allocation77_spill] sm:$0xff] %v13577_v49  ;;  %16636 = vst [vmem:[#allocation44_spill] sm:$0xff] %v13585_v54  ;;  %v13597_v39 = vadd.f32 %v12380_v62, %v16641_v6  ;;  %v16643_v49 = vld [vmem:[#allocation66_spill] sm:$0xff]  ;;  %v13605_v16 = vadd.f32 %v12380_v62, %v16645_v3  ;;  %v16701_v28 = vld [vmem:[#allocation28_spill] sm:$0xff] }
 0x830   :  { %16638 = vst [vmem:[#allocation4_spill] sm:$0xff] %v13589_v1  ;;  %16640 = vst [vmem:[#allocation5_spill] sm:$0xff] %v13593_v33  ;;  %v13601_v14 = vadd.f32 %v12380_v62, %v16643_v49  ;;  %v16647_v54 = vld [vmem:[#allocation70_spill] sm:$0xff]  ;;  %v16649_v1 = vld [vmem:[#allocation71_spill] sm:$0xff] }
 0x831   :  { %16642 = vst [vmem:[#allocation65_spill] sm:$0xff] %v13597_v39  ;;  %16646 = vst [vmem:[#allocation68_spill] sm:$0xff] %v13605_v16  ;;  %v13609_v27 = vadd.f32 %v12380_v62, %v16647_v54  ;;  %v13613_v10 = vadd.f32 %v12380_v62, %v16649_v1  ;;  %v16651_v33 = vld [vmem:[#allocation75_spill] sm:$0xff]  ;;  %v16652_v39 = vld [vmem:[#allocation86_spill] sm:$0xff] }
 0x832   :  { %16644 = vst [vmem:[#allocation66_spill] sm:$0xff] %v13601_v14  ;;  %v13617_v6 = vadd.f32 %v12380_v62, %v16651_v33  ;;  %v13621_v49 = vadd.f32 %v12380_v62, %v16652_v39  ;;  %v16653_v14 = vld [vmem:[#allocation87_spill] sm:$0xff]  ;;  %v16654_v16 = vld [vmem:[#allocation49_spill] sm:$0xff]  ;;  %v13641_v39 = vadd.f32 %v12380_v62, %v13179_v18  ;;  %v13661_v18 = vadd.f32 %v12380_v62, %v13199_v31  ;;  %v16705_v41 = vld [vmem:[#allocation32_spill] sm:$0xff] }
 0x833   :  { %16648 = vst [vmem:[#allocation70_spill] sm:$0xff] %v13609_v27  ;;  %16650 = vst [vmem:[#allocation71_spill] sm:$0xff] %v13613_v10  ;;  %v13625_v3 = vadd.f32 %v12380_v62, %v16653_v14  ;;  %v13629_v54 = vadd.f32 %v12380_v62, %v16654_v16  ;;  %v16655_v27 = vld [vmem:[#allocation73_spill] sm:$0xff]  ;;  %v16656_v10 = vld [vmem:[#allocation51_spill] sm:$0xff]  ;;  %v13645_v14 = vadd.f32 %v12380_v62, %v13183_v45 }
 0x834   :  { %v13633_v1 = vadd.f32 %v12380_v62, %v16655_v27  ;;  %v13637_v33 = vadd.f32 %v12380_v62, %v16656_v10  ;;  %v13649_v16 = vadd.f32 %v12380_v62, %v13187_v59  ;;  %v13653_v27 = vadd.f32 %v12380_v62, %v13191_v26  ;;  %16658 = vst [vmem:[#allocation86_spill] sm:$0xff] %v13661_v18  ;;  %v16665_v18 = vld [vmem:[#allocation56_spill] sm:$0xff]  ;;  %v16706_v8 = vld [vmem:[#allocation33_spill] sm:$0xff]  ;;  %v16708_v34 = vld [vmem:[#allocation35_spill] sm:$0xff] }
 0x835   :  { %v13657_v10 = vadd.f32 %v12380_v62, %v13195_v47  ;;  %v13665_v45 = vadd.f32 %v12380_v62, %v13203_v4  ;;  %v13669_v59 = vadd.f32 %v12380_v62, %v13207_v23  ;;  %v13673_v26 = vadd.f32 %v12380_v62, %v13211_v46  ;;  %v16709_v44 = vld [vmem:[#allocation36_spill] sm:$0xff]  ;;  %v16710_v0 = vld [vmem:[#allocation37_spill] sm:$0xff]  ;;  %v16711_v57 = vld [vmem:[#allocation38_spill] sm:$0xff] }
 0x836   :  { %v13677_v47 = vadd.f32 %v12380_v62, %v13215_v11  ;;  %v13685_v4 = vadd.f32 %v12380_v62, %v16665_v18  ;;  %v16712_v9 = vld [vmem:[#allocation40_spill] sm:$0xff]  ;;  %v16713_v15 = vld [vmem:[#allocation41_spill] sm:$0xff]  ;;  %v16714_v60 = vld [vmem:[#allocation43_spill] sm:$0xff] }
 0x837   :  { %16657 = vst [vmem:[#allocation75_spill] sm:$0xff] %v13657_v10  ;;  %16659 = vst [vmem:[#allocation87_spill] sm:$0xff] %v13665_v45  ;;  %v16663_v10 = vld [vmem:[#allocation54_spill] sm:$0xff]  ;;  %v16667_v45 = vld [vmem:[#allocation85_spill] sm:$0xff] }
 0x838   :  { %16660 = vst [vmem:[#allocation49_spill] sm:$0xff] %v13669_v59  ;;  %16661 = vst [vmem:[#allocation73_spill] sm:$0xff] %v13673_v26  ;;  %v13681_v31 = vadd.f32 %v12380_v62, %v16663_v10  ;;  %v13689_v23 = vadd.f32 %v12380_v62, %v16667_v45  ;;  %v16668_v59 = vld [vmem:[#allocation81_spill] sm:$0xff]  ;;  %v16670_v26 = vld [vmem:[#allocation72_spill] sm:$0xff] }
 0x839   :  { %16662 = vst [vmem:[#allocation51_spill] sm:$0xff] %v13677_v47  ;;  %16666 = vst [vmem:[#allocation56_spill] sm:$0xff] %v13685_v4  ;;  %v13693_v46 = vadd.f32 %v12380_v62, %v16668_v59  ;;  %v13697_v11 = vadd.f32 %v12380_v62, %v16670_v26  ;;  %v16672_v47 = vld [vmem:[#allocation58_spill] sm:$0xff]  ;;  %v16676_v4 = vld [vmem:[#allocation84_spill] sm:$0xff]  ;;  %v13713_v59 = vadd.f32 %v12380_v62, %v13251_v32 }
 0x83a   :  { %16664 = vst [vmem:[#allocation54_spill] sm:$0xff] %v13681_v31  ;;  %v13701_v10 = vadd.f32 %v12380_v62, %v16672_v47  ;;  %v16674_v31 = vld [vmem:[#allocation15_spill] sm:$0xff]  ;;  %v13709_v45 = vadd.f32 %v12380_v62, %v16676_v4  ;;  %v13717_v26 = vadd.f32 %v12380_v62, %v13266_v55  ;;  %v13721_v47 = vadd.f32 %v12380_v62, %v13269_v42  ;;  %v16715_v29 = vld [vmem:[#allocation45_spill] sm:$0xff]  ;;  %v16716_v35 = vld [vmem:[#allocation46_spill] sm:$0xff] }
 0x83b   :  { %16669 = vst [vmem:[#allocation85_spill] sm:$0xff] %v13693_v46  ;;  %16671 = vst [vmem:[#allocation81_spill] sm:$0xff] %v13697_v11  ;;  %v13705_v18 = vadd.f32 %v12380_v62, %v16674_v31  ;;  %v13725_v31 = vadd.f32 %v12380_v62, %v13272_v48  ;;  %v13729_v4 = vadd.f32 %v12380_v62, %v13275_v63  ;;  %v4266_v11 = vmax.f32 %v16705_v41, 0.0  ;;  %v16717_v21 = vld [vmem:[#allocation88_spill] sm:$0xff]  ;;  %v16718_v43 = vld [vmem:[#allocation89_spill] sm:$0xff] }
 0x83c   :  { %16673 = vst [vmem:[#allocation72_spill] sm:$0xff] %v13701_v10  ;;  %16677 = vst [vmem:[#allocation15_spill] sm:$0xff] %v13709_v45  ;;  %v16683_v45 = vld [vmem:[#allocation52_spill] sm:$0xff]  ;;  %v13737_v55 = vadd.f32 %v12380_v62, %v13278_v58  ;;  %v13741_v42 = vadd.f32 %v12380_v62, %v13281_v7  ;;  %v4259_v62 = vmax.f32 %v16698_v36, 0.0  ;;  %v4267_v7 = vmax.f32 %v16706_v8, 0.0  ;;  %v16719_v50 = vld [vmem:[#allocation90_spill] sm:$0xff] }
 0x83d   :  { %16675 = vst [vmem:[#allocation58_spill] sm:$0xff] %v13705_v18  ;;  %16678 = vst [vmem:[#allocation84_spill] sm:$0xff] %v13713_v59  ;;  %v3820_v32 = vmul.f32 %v11648_v51, %v16683_v45  ;;  %v16684_v59 = vld [vmem:[#allocation53_spill] sm:$0xff]  ;;  %v4262_v45 = vmax.f32 %v16701_v28, 0.0  ;;  %v4269_v36 = vmax.f32 %v16708_v34, 0.0  ;;  %v4272_v28 = vmax.f32 %v16711_v57, 0.0 }
 0x83e   :  { %16679 = vst [vmem:[#allocation113_spill] sm:$0xff] %v13717_v26  ;;  %16680 = vst [vmem:[#allocation114_spill] sm:$0xff] %v13721_v47  ;;  %v3821_v18 = vmul.f32 %v11648_v51, %v16684_v59  ;;  %v4276_v41 = vmax.f32 %v16715_v29, 0.0  ;;  %v4277_v8 = vmax.f32 %v16716_v35, 0.0  ;;  %v4279_v34 = vmax.f32 %v16718_v43, 0.0  ;;  %v16720_v38 = vld [vmem:[#allocation92_spill] sm:$0xff] }
 0x83f   :  { %16681 = vst [vmem:[#allocation115_spill] sm:$0xff] %v13725_v31  ;;  %16682 = vst [vmem:[#allocation116_spill] sm:$0xff] %v13729_v4  ;;  %v13744_v48 = vmul.f32 %v12726_v20, %v3820_v32  ;;  %v4268_v32 = vmax.f32 %v16707_v17, 0.0  ;;  %v4278_v17 = vmax.f32 %v16717_v21, 0.0  ;;  %v16721_v30 = vld [vmem:[#allocation17_spill] sm:$0xff]  ;;  %v16724_v25 = vld [vmem:[#allocation42_spill] sm:$0xff] }
 0x840   :  { %16685 = vst [vmem:[#allocation52_spill] sm:$0xff] %v13737_v55  ;;  %16686 = vst [vmem:[#allocation53_spill] sm:$0xff] %v13741_v42  ;;  %v13747_v63 = vmul.f32 %v12726_v20, %v3821_v18  ;;  %v16699_v20 = vld [vmem:[#allocation27_spill] sm:$0xff]  ;;  %v16702_v55 = vld [vmem:[#allocation29_spill] sm:$0xff]  ;;  %v4282_v57 = vmax.f32 %v16721_v30, 0.0 }
 0x841   :  { %16687 = vst [vmem:[#allocation117_spill] sm:$0xff] %v13744_v48  ;;  %v4260_v18 = vmax.f32 %v16699_v20, 0.0  ;;  %v16700_v42 = vld [vmem:[#allocation99_spill] sm:$0xff]  ;;  %v4263_v59 = vmax.f32 %v16702_v55, 0.0  ;;  %v4270_v20 = vmax.f32 %v16709_v44, 0.0  ;;  %v4273_v55 = vmax.f32 %v16712_v9, 0.0 }
 0x842   :  { %16688 = vst [vmem:[#allocation118_spill] sm:$0xff] %v13747_v63  ;;  %v4261_v10 = vmax.f32 %v16700_v42, 0.0  ;;  %v16703_v63 = vld [vmem:[#allocation30_spill] sm:$0xff]  ;;  %v16704_v48 = vld [vmem:[#allocation31_spill] sm:$0xff]  ;;  %v4271_v42 = vmax.f32 %v16710_v0, 0.0  ;;  %v4280_v44 = vmax.f32 %v16719_v50, 0.0 }
 0x843   :  { %v4264_v51 = vmax.f32 %v16703_v63, 0.0  ;;  %v4265_v58 = vmax.f32 %v16704_v48, 0.0  ;;  %v4274_v63 = vmax.f32 %v16713_v15, 0.0  ;;  %v4275_v48 = vmax.f32 %v16714_v60, 0.0  ;;  %v16722_v52 = vld [vmem:[#allocation93_spill] sm:$0xff]  ;;  %v16725_v40 = vld [vmem:[#allocation44_spill] sm:$0xff] }
 0x844   :  { %v4281_v0 = vmax.f32 %v16720_v38, 0.0  ;;  %v4283_v9 = vmax.f32 %v16722_v52, 0.0  ;;  %v16723_v13 = vld [vmem:[#allocation77_spill] sm:$0xff]  ;;  %v4285_v60 = vmax.f32 %v16724_v25, 0.0  ;;  %v4286_v29 = vmax.f32 %v16725_v40, 0.0  ;;  %v16726_v5 = vld [vmem:[#allocation4_spill] sm:$0xff] }
 0x845   :  { %v4284_v15 = vmax.f32 %v16723_v13, 0.0  ;;  %v4287_v35 = vmax.f32 %v16726_v5, 0.0  ;;  %v16727_v37 = vld [vmem:[#allocation5_spill] sm:$0xff]  ;;  %v16729_v24 = vld [vmem:[#allocation66_spill] sm:$0xff]  ;;  %v16730_v56 = vld [vmem:[#allocation68_spill] sm:$0xff]  ;;  %v4294_v13 = vmax.f32 %v13617_v6, 0.0 }
 0x846   :  { %v4288_v21 = vmax.f32 %v16727_v37, 0.0  ;;  %v16728_v53 = vld [vmem:[#allocation65_spill] sm:$0xff]  ;;  %v4290_v50 = vmax.f32 %v16729_v24, 0.0  ;;  %v4291_v38 = vmax.f32 %v16730_v56, 0.0  ;;  %v16731_v2 = vld [vmem:[#allocation70_spill] sm:$0xff]  ;;  %v16732_v12 = vld [vmem:[#allocation71_spill] sm:$0xff] }
 0x847   :  { %v4289_v43 = vmax.f32 %v16728_v53, 0.0  ;;  %v4292_v30 = vmax.f32 %v16731_v2, 0.0  ;;  %v4293_v52 = vmax.f32 %v16732_v12, 0.0  ;;  %v4295_v25 = vmax.f32 %v13621_v49, 0.0  ;;  %v16733_v22 = vld [vmem:[#allocation75_spill] sm:$0xff]  ;;  %v16734_v19 = vld [vmem:[#allocation86_spill] sm:$0xff] }
 0x848   :  { %v4296_v40 = vmax.f32 %v13625_v3, 0.0  ;;  %v4297_v5 = vmax.f32 %v13629_v54, 0.0  ;;  %v4298_v37 = vmax.f32 %v13633_v1, 0.0  ;;  %v4299_v53 = vmax.f32 %v13637_v33, 0.0  ;;  %v16735_v61 = vld [vmem:[#allocation87_spill] sm:$0xff]  ;;  %v16736_v4 = vld [vmem:[#allocation49_spill] sm:$0xff] }
 0x849   :  { %v4300_v24 = vmax.f32 %v13641_v39, 0.0  ;;  %v4301_v56 = vmax.f32 %v13645_v14, 0.0  ;;  %v4302_v2 = vmax.f32 %v13649_v16, 0.0  ;;  %v4303_v12 = vmax.f32 %v13653_v27, 0.0  ;;  %v16737_v31 = vld [vmem:[#allocation73_spill] sm:$0xff]  ;;  %v16738_v47 = vld [vmem:[#allocation51_spill] sm:$0xff] }
 0x84a   :  { %v4304_v6 = vmax.f32 %v16733_v22, 0.0  ;;  %v4305_v49 = vmax.f32 %v16734_v19, 0.0  ;;  %v4306_v3 = vmax.f32 %v16735_v61, 0.0  ;;  %v4307_v54 = vmax.f32 %v16736_v4, 0.0  ;;  %v16739_v26 = vld [vmem:[#allocation54_spill] sm:$0xff]  ;;  %v16740_v46 = vld [vmem:[#allocation56_spill] sm:$0xff] }
 0x84b   :  { %v4308_v1 = vmax.f32 %v16737_v31, 0.0  ;;  %v4309_v33 = vmax.f32 %v16738_v47, 0.0  ;;  %v4310_v39 = vmax.f32 %v16739_v26, 0.0  ;;  %v4311_v14 = vmax.f32 %v16740_v46, 0.0  ;;  %v16741_v27 = vld [vmem:[#allocation85_spill] sm:$0xff]  ;;  %v16743_v4 = vld [vmem:[#allocation72_spill] sm:$0xff] }
 0x84c   :  { %v4312_v16 = vmax.f32 %v13689_v23, 0.0  ;;  %v4313_v22 = vmax.f32 %v16741_v27, 0.0  ;;  %v16742_v19 = vld [vmem:[#allocation81_spill] sm:$0xff]  ;;  %v4315_v31 = vmax.f32 %v16743_v4, 0.0  ;;  %v16744_v47 = vld [vmem:[#allocation58_spill] sm:$0xff]  ;;  %v16745_v46 = vld [vmem:[#allocation15_spill] sm:$0xff] }
 0x84d   :  { %v4314_v61 = vmax.f32 %v16742_v19, 0.0  ;;  %v4316_v26 = vmax.f32 %v16744_v47, 0.0  ;;  %v4317_v23 = vmax.f32 %v16745_v46, 0.0  ;;  %v16746_v27 = vld [vmem:[#allocation84_spill] sm:$0xff]  ;;  %v16747_v4 = vld [vmem:[#allocation113_spill] sm:$0xff]  ;;  %v16749_v46 = vld [vmem:[#allocation114_spill] sm:$0xff] }
 0x84e   :  { %v4318_v19 = vmax.f32 %v16746_v27, 0.0  ;;  %v16748_v47 = vmax.f32 %v16747_v4, 0.0  ;;  %v16750_v27 = vmax.f32 %v16749_v46, 0.0  ;;  %v13861_v46 = vpack.c.bf16 %v4260_v18, %v4259_v62 }
 0x84f   :  { %v13867_v18 = vpack.c.bf16 %v4266_v11, %v4265_v58  ;;  %v13869_v62 = vpack.c.bf16 %v4268_v32, %v4267_v7  ;;  %v13886_v11 = vpack.c.bf16 %v4284_v15, %v4283_v9  ;;  %v13888_v58 = vpack.c.bf16 %v4286_v29, %v4285_v60  ;;  %v16763_v29 = vld [vmem:[#allocation21_spill] sm:$0xff] }
 0x850   :  { %v4320_v4 = vpack.c.bf16 %v16750_v27, %v16748_v47  ;;  %16751 = vst [vmem:[#allocation26_spill] sm:$0xff] %v13861_v46  ;;  %v13863_v27 = vpack.c.bf16 %v4262_v45, %v4261_v10  ;;  %v13865_v47 = vpack.c.bf16 %v4264_v51, %v4263_v59  ;;  %v13871_v46 = vpack.c.bf16 %v4270_v20, %v4269_v36 }
 0x851   :  { %v13873_v10 = vpack.c.bf16 %v4272_v28, %v4271_v42  ;;  %v13875_v45 = vpack.c.bf16 %v4274_v63, %v4273_v55  ;;  %v13879_v51 = vpack.c.bf16 %v4278_v17, %v4277_v8  ;;  %v13881_v59 = vpack.c.bf16 %v4280_v44, %v4279_v34 }
 0x852   :  { %16752 = vst [vmem:[#allocation27_spill] sm:$0xff] %v13863_v27  ;;  %16753 = vst [vmem:[#allocation99_spill] sm:$0xff] %v13865_v47  ;;  %v13877_v27 = vpack.c.bf16 %v4276_v41, %v4275_v48  ;;  %6166 = vmatmul.mubr.msk.bf16.vlgmr.msra.gmra.mrb[128].mxu0 %vm962_vm2, %v4320_v4  ;;  %v13884_v47 = vpack.c.bf16 %v4282_v57, %v4281_v0  ;;  %v13890_v7 = vpack.c.bf16 %v4288_v21, %v4287_v35  ;;  %v16754_v32 = vmov 0.0   ;;  %v16759_v0 = vld [vmem:[#allocation20_spill] sm:$0xff]  ;;  %v16764_v21 = vld [vmem:[#allocation22_spill] sm:$0xff] }
 0x853   :  { %6169 = vmatprep.mubr.msk.bf16.mxu0 %vm6434_vm0, %v16754_v32  ;;  %v13894_v36 = vpack.c.bf16 %v4290_v50, %v4289_v43  ;;  %v13896_v20 = vpack.c.bf16 %v4292_v30, %v4291_v38  ;;  %v13898_v42 = vpack.c.bf16 %v4294_v13, %v4293_v52  ;;  %v13900_v28 = vpack.c.bf16 %v4296_v40, %v4295_v25  ;;  %v16765_v50 = vld [vmem:[#allocation23_spill] sm:$0xff]  ;;  %v16768_v13 = vld [vmem:[#allocation116_spill] sm:$0xff] }
 0x854   :  { %v13902_v55 = vpack.c.bf16 %v4298_v37, %v4297_v5  ;;  %v13904_v63 = vpack.c.bf16 %v4300_v24, %v4299_v53  ;;  %v13906_v48 = vpack.c.bf16 %v4302_v2, %v4301_v56  ;;  %v13908_v41 = vpack.c.bf16 %v4304_v6, %v4303_v12  ;;  %v16766_v30 = vld [vmem:[#allocation115_spill] sm:$0xff]  ;;  %v16770_v5 = vld [vmem:[#allocation24_spill] sm:$0xff]  ;;  %v16771_v53 = vld [vmem:[#allocation25_spill] sm:$0xff] }
 0x855   :  { %v13910_v8 = vpack.c.bf16 %v4306_v3, %v4305_v49  ;;  %v13912_v17 = vpack.c.bf16 %v4308_v1, %v4307_v54  ;;  %v13914_v34 = vpack.c.bf16 %v4310_v39, %v4309_v33  ;;  %v13916_v44 = vpack.c.bf16 %v4312_v16, %v4311_v14  ;;  %v16772_v56 = vld [vmem:[#allocation91_spill] sm:$0xff]  ;;  %v16774_v12 = vld [vmem:[#allocation60_spill] sm:$0xff]  ;;  %v16778_v1 = vld [vmem:[#allocation74_spill] sm:$0xff] }
 0x856   :  { %v4253_v57 = vmax.f32 %v16759_v0, 0.0  ;;  %v13919_v9 = vpack.c.bf16 %v4314_v61, %v4313_v22  ;;  %v13921_v15 = vpack.c.bf16 %v4316_v26, %v4315_v31  ;;  %v13923_v60 = vpack.c.bf16 %v4318_v19, %v4317_v23  ;;  %v16776_v3 = vld [vmem:[#allocation7_spill] sm:$0xff]  ;;  %v16780_v14 = vld [vmem:[#allocation61_spill] sm:$0xff]  ;;  %v16782_v22 = vld [vmem:[#allocation16_spill] sm:$0xff] }
 0x857   :  { %16755 = vst [vmem:[#allocation28_spill] sm:$0xff] %v13910_v8  ;;  %16756 = vst [vmem:[#allocation29_spill] sm:$0xff] %v13912_v17  ;;  %v4254_v35 = vmax.f32 %v16763_v29, 0.0  ;;  %v4255_v43 = vmax.f32 %v16764_v21, 0.0  ;;  %v4256_v38 = vmax.f32 %v16765_v50, 0.0  ;;  %v16767_v52 = vmax.f32 %v16766_v30, 0.0 }
 0x858   :  { %16757 = vst [vmem:[#allocation30_spill] sm:$0xff] %v13914_v34  ;;  %16758 = vst [vmem:[#allocation31_spill] sm:$0xff] %v13916_v44  ;;  %v16769_v25 = vmax.f32 %v16768_v13, 0.0  ;;  %v4257_v37 = vmax.f32 %v16770_v5, 0.0  ;;  %v4258_v24 = vmax.f32 %v16771_v53, 0.0  ;;  %v16773_v2 = vmax.f32 %v16772_v56, 0.0 }
 0x859   :  { %16760 = vst [vmem:[#allocation32_spill] sm:$0xff] %v13919_v9  ;;  %16761 = vst [vmem:[#allocation33_spill] sm:$0xff] %v13921_v15  ;;  %v16775_v6 = vmax.f32 %v16774_v12, 0.0  ;;  %v16777_v54 = vmax.f32 %v16776_v3, 0.0  ;;  %v16779_v33 = vmax.f32 %v16778_v1, 0.0  ;;  %v16781_v16 = vmax.f32 %v16780_v14, 0.0 }
 0x85a   :  { %16762 = vst [vmem:[#allocation34_spill] sm:$0xff] %v13923_v60  ;;  %v4321_v40 = vpack.c.bf16 %v16769_v25, %v16767_v52  ;;  %v16783_v61 = vmax.f32 %v16782_v22, 0.0  ;;  %v16784_v26 = vld [vmem:[#allocation63_spill] sm:$0xff]  ;;  %v16788_v29 = vld [vmem:[#allocation62_spill] sm:$0xff]  ;;  %v16792_v13 = vld [vmem:[#allocation69_spill] sm:$0xff] }
 0x85b   :  { %v13938_v49 = vpack.c.bf16 %v16775_v6, %v16773_v2  ;;  %v13944_v39 = vpack.c.bf16 %v16779_v33, %v16777_v54  ;;  %v16785_v23 = vmax.f32 %v16784_v26, 0.0  ;;  %v16786_v19 = vld [vmem:[#allocation59_spill] sm:$0xff]  ;;  %v16789_v21 = vmax.f32 %v16788_v29, 0.0  ;;  %v16796_v56 = vld [vmem:[#allocation82_spill] sm:$0xff]  ;;  %v16800_v54 = vld [vmem:[#allocation8_spill] sm:$0xff] }
 0x85c   :  { %6170 = vmatmul.mubr.msk.bf16.gmra.mrb[132].mxu0 %vm962_vm2, %v4321_v40  ;;  %v13951_v31 = vpack.c.bf16 %v16783_v61, %v16781_v16  ;;  %v16787_v4 = vmax.f32 %v16786_v19, 0.0  ;;  %v16790_v50 = vld [vmem:[#allocation67_spill] sm:$0xff]  ;;  %v16793_v25 = vmax.f32 %v16792_v13, 0.0  ;;  %v16794_v40 = vld [vmem:[#allocation76_spill] sm:$0xff]  ;;  %v16797_v2 = vmax.f32 %v16796_v56, 0.0  ;;  %v16802_v33 = vld [vmem:[#allocation9_spill] sm:$0xff] }
 0x85d   :  { %v16791_v30 = vmax.f32 %v16790_v50, 0.0  ;;  %v16795_v5 = vmax.f32 %v16794_v40, 0.0  ;;  %6173 = vmatprep.mubr.msk.bf16.mxu0 %vm6434_vm0, %v16754_v32  ;;  %v16798_v12 = vld [vmem:[#allocation3_spill] sm:$0xff]  ;;  %v16801_v1 = vmax.f32 %v16800_v54, 0.0  ;;  %v16803_v14 = vmax.f32 %v16802_v33, 0.0  ;;  %v16804_v22 = vld [vmem:[#allocation10_spill] sm:$0xff] }
 0x85e   :  { %v13957_v0 = vpack.c.bf16 %v16787_v4, %v16785_v23  ;;  %v16799_v6 = vmax.f32 %v16798_v12, 0.0  ;;  %v16805_v61 = vmax.f32 %v16804_v22, 0.0  ;;  %v16806_v26 = vld [vmem:[#allocation11_spill] sm:$0xff]  ;;  %v16808_v4 = vld [vmem:[#allocation6_spill] sm:$0xff]  ;;  %v16812_v13 = vld [vmem:[#allocation80_spill] sm:$0xff] }
 0x85f   :  { %v13963_v52 = vpack.c.bf16 %v16791_v30, %v16789_v21  ;;  %v13969_v53 = vpack.c.bf16 %v16795_v5, %v16793_v25  ;;  %v13983_v16 = vpack.c.bf16 %v16803_v14, %v16801_v1  ;;  %v16807_v23 = vmax.f32 %v16806_v26, 0.0  ;;  %v16810_v21 = vld [vmem:[#allocation79_spill] sm:$0xff]  ;;  %v16820_v33 = vld [vmem:[#allocation100_spill] sm:$0xff]  ;;  %v16822_v22 = vld [vmem:[#allocation101_spill] sm:$0xff] }
 0x860   :  { %v13977_v3 = vpack.c.bf16 %v16799_v6, %v16797_v2  ;;  %v16809_v29 = vmax.f32 %v16808_v4, 0.0  ;;  %v16811_v50 = vmax.f32 %v16810_v21, 0.0  ;;  %v16813_v25 = vmax.f32 %v16812_v13, 0.0  ;;  %v16814_v40 = vld [vmem:[#allocation47_spill] sm:$0xff]  ;;  %v16816_v2 = vld [vmem:[#allocation48_spill] sm:$0xff]  ;;  %v16818_v6 = vld [vmem:[#allocation50_spill] sm:$0xff] }
 0x861   :  { %v13989_v19 = vpack.c.bf16 %v16807_v23, %v16805_v61  ;;  %v16815_v5 = vmax.f32 %v16814_v40, 0.0  ;;  %v16817_v12 = vmax.f32 %v16816_v2, 0.0  ;;  %v16819_v54 = vmax.f32 %v16818_v6, 0.0  ;;  %v16824_v23 = vld [vmem:[#allocation102_spill] sm:$0xff]  ;;  %v16828_v13 = vld [vmem:[#allocation104_spill] sm:$0xff]  ;;  %v16830_v40 = vld [vmem:[#allocation105_spill] sm:$0xff] }
 0x862   :  { %v13995_v30 = vpack.c.bf16 %v16811_v50, %v16809_v29  ;;  %v16821_v14 = vmax.f32 %v16820_v33, 0.0  ;;  %v16823_v61 = vmax.f32 %v16822_v22, 0.0  ;;  %v16825_v4 = vmax.f32 %v16824_v23, 0.0  ;;  %v16826_v29 = vld [vmem:[#allocation103_spill] sm:$0xff] }
 0x863   :  { %v14001_v56 = vpack.c.bf16 %v16815_v5, %v16813_v25  ;;  %v14007_v1 = vpack.c.bf16 %v16819_v54, %v16817_v12  ;;  %v16827_v21 = vmax.f32 %v16826_v29, 0.0  ;;  %v16829_v25 = vmax.f32 %v16828_v13, 0.0  ;;  %v16832_v12 = vld [vmem:[#allocation106_spill] sm:$0xff]  ;;  %v16834_v54 = vld [vmem:[#allocation107_spill] sm:$0xff] }
 0x864   :  { %v14013_v26 = vpack.c.bf16 %v16823_v61, %v16821_v14  ;;  %v16831_v5 = vmax.f32 %v16830_v40, 0.0  ;;  %v16833_v6 = vmax.f32 %v16832_v12, 0.0  ;;  %v16835_v33 = vmax.f32 %v16834_v54, 0.0  ;;  %v16836_v14 = vld [vmem:[#allocation108_spill] sm:$0xff]  ;;  %v16838_v61 = vld [vmem:[#allocation109_spill] sm:$0xff] }
 0x865   :  { %v14019_v50 = vpack.c.bf16 %v16827_v21, %v16825_v4  ;;  %v16837_v22 = vmax.f32 %v16836_v14, 0.0  ;;  %v16839_v23 = vmax.f32 %v16838_v61, 0.0  ;;  %v16840_v4 = vld [vmem:[#allocation110_spill] sm:$0xff]  ;;  %v16842_v21 = vld [vmem:[#allocation111_spill] sm:$0xff] }
 0x866   :  { %v14025_v2 = vpack.c.bf16 %v16831_v5, %v16829_v25  ;;  %v14031_v60 = vpack.c.bf16 %v16835_v33, %v16833_v6  ;;  %v16841_v29 = vmax.f32 %v16840_v4, 0.0  ;;  %v16843_v13 = vmax.f32 %v16842_v21, 0.0  ;;  %v16844_v25 = vld [vmem:[#allocation2_spill] sm:$0xff]  ;;  %v16846_v5 = vld [vmem:[#allocation13_spill] sm:$0xff] }
 0x867   :  { %v14037_v15 = vpack.c.bf16 %v16839_v23, %v16837_v22  ;;  %v16845_v40 = vmax.f32 %v16844_v25, 0.0  ;;  %v16847_v12 = vmax.f32 %v16846_v5, 0.0  ;;  %v16848_v6 = vld [vmem:[#allocation14_spill] sm:$0xff]  ;;  %v16852_v22 = vld [vmem:[#allocation112_spill] sm:$0xff]  ;;  %v16854_v23 = vld [vmem:[#allocation19_spill] sm:$0xff]  ;;  %v14065_v21 = vpack.c.bf16 %v4256_v38, %v4255_v43 }
 0x868   :  { %v14043_v9 = vpack.c.bf16 %v16843_v13, %v16841_v29  ;;  %v16849_v54 = vmax.f32 %v16848_v6, 0.0  ;;  %v16850_v33 = vld [vmem:[#allocation18_spill] sm:$0xff]  ;;  %v16853_v61 = vmax.f32 %v16852_v22, 0.0  ;;  %v16855_v4 = vmax.f32 %v16854_v23, 0.0  ;;  %v16856_v25 = vld [vmem:[#allocation117_spill] sm:$0xff]  ;;  %v16863_v23 = vld [vmem:[#allocation55_spill] sm:$0xff] }
 0x869   :  { %v14049_v44 = vpack.c.bf16 %v16847_v12, %v16845_v40  ;;  %v16851_v14 = vmax.f32 %v16850_v33, 0.0  ;;  %v14063_v29 = vpack.c.bf16 %v4254_v35, %v4253_v57  ;;  %v14067_v13 = vpack.c.bf16 %v4258_v24, %v4257_v37  ;;  %v16857_v40 = vld [vmem:[#allocation39_spill] sm:$0xff]  ;;  %v16858_v12 = vld [vmem:[#allocation118_spill] sm:$0xff]  ;;  %v16866_v43 = vld [vmem:[#allocation64_spill] sm:$0xff] }
 0x86a   :  { %v14061_v17 = vpack.c.bf16 %v16855_v4, %v16853_v61  ;;  %v4076_v5 = vadd.f32 %v16857_v40, %v16856_v25  ;;  %v4077_v6 = vadd.f32 %v16857_v40, %v16858_v12  ;;  %v16864_v61 = vld [vmem:[#allocation83_spill] sm:$0xff]  ;;  %v16865_v57 = vld [vmem:[#allocation78_spill] sm:$0xff] }
 0x86b   :  { %v14055_v34 = vpack.c.bf16 %v16851_v14, %v16849_v54  ;;  %v16859_v54 = vld [vmem:[#allocation52_spill] sm:$0xff]  ;;  %v16861_v14 = vld [vmem:[#allocation53_spill] sm:$0xff]  ;;  %v3822_v4 = vmul.f32 %v16864_v61, %v16863_v23  ;;  %v3823_v35 = vmul.f32 %v16864_v61, %v16865_v57  ;;  %v16868_v23 = vld [vmem:[#allocation94_spill] sm:$0xff] }
 0x86c   :  { %v16860_v33 = vmax.f32 %v16859_v54, 0.0  ;;  %v16862_v22 = vmax.f32 %v16861_v14, 0.0  ;;  %v4201_v24 = vmax.f32 %v4076_v5, 0.0  ;;  %v4202_v25 = vmax.f32 %v4077_v6, 0.0  ;;  %v16867_v14 = vld [vmem:[#allocation57_spill] sm:$0xff] }
 0x86d   :  { %v3949_v38 = vmul.f32 %v16866_v43, %v3822_v4  ;;  %v3950_v37 = vmul.f32 %v16866_v43, %v3823_v35 }
 0x86e   :  { %v4322_v8 = vpack.c.bf16 %v16862_v22, %v16860_v33  ;;  %v4323_v33 = vpack.c.bf16 %v4202_v25, %v4201_v24  ;;  %v3824_v22 = vmul.f32 %v16864_v61, %v16867_v14  ;;  %v16869_v24 = vld [vmem:[#allocation95_spill] sm:$0xff]  ;;  %v16870_v14 = vld [vmem:[#allocation96_spill] sm:$0xff] }
 0x86f   :  { %v4078_v12 = vadd.f32 %v16857_v40, %v3949_v38  ;;  %v4079_v54 = vadd.f32 %v16857_v40, %v3950_v37  ;;  %v3826_v25 = vmul.f32 %v16864_v61, %v16869_v24  ;;  %v16872_v24 = vld [vmem:[#allocation98_spill] sm:$0xff] }
 0x870   :  { %6174 = vmatmul.mubr.msk.bf16.gmra.mrb[136].mxu0 %vm962_vm2, %v4322_v8  ;;  %v3825_v8 = vmul.f32 %v16864_v61, %v16868_v23  ;;  %v3951_v4 = vmul.f32 %v16866_v43, %v3824_v22 }
 0x871   :  { %6177 = vmatprep.mubr.msk.bf16.mxu0 %vm6434_vm0, %v16754_v32  ;;  %v4203_v6 = vmax.f32 %v4078_v12, 0.0  ;;  %v4204_v57 = vmax.f32 %v4079_v54, 0.0  ;;  %v3953_v22 = vmul.f32 %v16866_v43, %v3826_v25 }
 0x872   :  { %v3952_v5 = vmul.f32 %v16866_v43, %v3825_v8  ;;  %v4080_v35 = vadd.f32 %v16857_v40, %v3951_v4 }
 0x873   :  { %v4324_v37 = vpack.c.bf16 %v4204_v57, %v4203_v6  ;;  %v4082_v8 = vadd.f32 %v16857_v40, %v3953_v22  ;;  %v16871_v6 = vld [vmem:[#allocation97_spill] sm:$0xff] }
 0x874   :  { %v4081_v38 = vadd.f32 %v16857_v40, %v3952_v5  ;;  %v4205_v54 = vmax.f32 %v4080_v35, 0.0  ;;  %v3828_v57 = vmul.f32 %v16864_v61, %v16871_v6 }
 0x876   :  { %v4206_v23 = vmax.f32 %v4081_v38, 0.0  ;;  %v3955_v25 = vmul.f32 %v16866_v43, %v3828_v57  ;;  %v4207_v38 = vmax.f32 %v4082_v8, 0.0 }
 0x878   :  { %6178 = vmatmul.mubr.msk.bf16.gmra.mrb[140].mxu0 %vm962_vm2, %v4323_v33  ;;  %v3827_v33 = vmul.f32 %v16864_v61, %v16870_v14  ;;  %v4325_v5 = vpack.c.bf16 %v4206_v23, %v4205_v54 }
 0x879   :  { %6181 = vmatprep.mubr.msk.bf16.mxu0 %vm6434_vm0, %v16754_v32 }
 0x87a   :  { %v3954_v12 = vmul.f32 %v16866_v43, %v3827_v33  ;;  %v4084_v33 = vadd.f32 %v16857_v40, %v3955_v25 }
 0x87c   :  { %v4083_v4 = vadd.f32 %v16857_v40, %v3954_v12 }
 0x87e   :  { %v4208_v14 = vmax.f32 %v4083_v4, 0.0 }
 0x880   :  { %6182 = vmatmul.mubr.msk.bf16.gmra.mrb[144].mxu0 %vm962_vm2, %v4324_v37  ;;  %v3829_v37 = vmul.f32 %v16864_v61, %v16872_v24  ;;  %v4326_v12 = vpack.c.bf16 %v4208_v14, %v4207_v38  ;;  %v4209_v61 = vmax.f32 %v4084_v33, 0.0 }
 0x881   :  { %6185 = vmatprep.mubr.msk.bf16.mxu0 %vm6434_vm0, %v16754_v32 }
 0x882   :  { %v3956_v35 = vmul.f32 %v16866_v43, %v3829_v37 }
 0x884   :  { %v4085_v22 = vadd.f32 %v16857_v40, %v3956_v35 }
 0x886   :  { %v4210_v54 = vmax.f32 %v4085_v22, 0.0 }
 0x888   :  { %6186 = vmatmul.mubr.msk.bf16.gmra.mrb[148].mxu0 %vm962_vm2, %v4325_v5  ;;  %v4327_v23 = vpack.c.bf16 %v4210_v54, %v4209_v61 }
 0x889   :  { %6189 = vmatprep.mubr.msk.bf16.mxu0 %vm6434_vm0, %v16754_v32 }
 0x890   :  { %6190 = vmatmul.mubr.msk.bf16.gmra.mrb[152].mxu0 %vm962_vm2, %v4326_v12 }
 0x891   :  { %6193 = vmatprep.mubr.msk.bf16.mxu0 %vm6434_vm0, %v16754_v32 }
 0x898   :  { %6194 = vmatmul.mubr.msk.bf16.gmra.mrb[156].mxu0 %vm962_vm2, %v4327_v23 }
 0x899   :  { %6197 = vmatprep.mubr.msk.bf16.mxu0 %vm6434_vm0, %v16754_v32 }
 0x8a0   :  { %6198 = vmatmul.mubr.msk.bf16.gmra.mrb[160].mxu0 %vm962_vm2, %v13938_v49 }
 0x8a1   :  { %6201 = vmatprep.mubr.msk.bf16.mxu0 %vm6434_vm0, %v16754_v32 }
 0x8a8   :  { %6202 = vmatmul.mubr.msk.bf16.gmra.mrb[164].mxu0 %vm962_vm2, %v13944_v39 }
 0x8a9   :  { %6205 = vmatprep.mubr.msk.bf16.mxu0 %vm6434_vm0, %v16754_v32 }
 0x8b0   :  { %6206 = vmatmul.mubr.msk.bf16.gmra.mrb[168].mxu0 %vm962_vm2, %v13951_v31 }
 0x8b1   :  { %6209 = vmatprep.mubr.msk.bf16.mxu0 %vm6434_vm0, %v16754_v32 }
 0x8b8   :  { %6210 = vmatmul.mubr.msk.bf16.gmra.mrb[172].mxu0 %vm962_vm2, %v13957_v0 }
 0x8b9   :  { %6213 = vmatprep.mubr.msk.bf16.mxu0 %vm6434_vm0, %v16754_v32 }
 0x8c0   :  { %6214 = vmatmul.mubr.msk.bf16.gmra.mrb[176].mxu0 %vm962_vm2, %v13963_v52 }
 0x8c1   :  { %6217 = vmatprep.mubr.msk.bf16.mxu0 %vm6434_vm0, %v16754_v32 }
 0x8c8   :  { %6218 = vmatmul.mubr.msk.bf16.gmra.mrb[180].mxu0 %vm962_vm2, %v13969_v53 }
 0x8c9   :  { %6221 = vmatprep.mubr.msk.bf16.mxu0 %vm6434_vm0, %v16754_v32 }
 0x8d0   :  { %6222 = vmatmul.mubr.msk.bf16.gmra.mrb[184].mxu0 %vm962_vm2, %v13977_v3 }
 0x8d1   :  { %6225 = vmatprep.mubr.msk.bf16.mxu0 %vm6434_vm0, %v16754_v32 }
 0x8d8   :  { %6226 = vmatmul.mubr.msk.bf16.gmra.mrb[188].mxu0 %vm962_vm2, %v13983_v16 }
 0x8d9   :  { %6229 = vmatprep.mubr.msk.bf16.mxu0 %vm6434_vm0, %v16754_v32 }
 0x8e0   :  { %6230 = vmatmul.mubr.msk.bf16.gmra.mrb[192].mxu0 %vm962_vm2, %v13989_v19 }
 0x8e1   :  { %6233 = vmatprep.mubr.msk.bf16.mxu0 %vm6434_vm0, %v16754_v32 }
 0x8e8   :  { %6234 = vmatmul.mubr.msk.bf16.gmra.mrb[196].mxu0 %vm962_vm2, %v13995_v30 }
 0x8e9   :  { %6237 = vmatprep.mubr.msk.bf16.mxu0 %vm6434_vm0, %v16754_v32 }
 0x8f0   :  { %6238 = vmatmul.mubr.msk.bf16.gmra.mrb[200].mxu0 %vm962_vm2, %v14001_v56 }
 0x8f1   :  { %6241 = vmatprep.mubr.msk.bf16.mxu0 %vm6434_vm0, %v16754_v32 }
 0x8f8   :  { %6242 = vmatmul.mubr.msk.bf16.gmra.mrb[204].mxu0 %vm962_vm2, %v14007_v1 }
 0x8f9   :  { %6245 = vmatprep.mubr.msk.bf16.mxu0 %vm6434_vm0, %v16754_v32 }
 0x900   :  { %6246 = vmatmul.mubr.msk.bf16.gmra.mrb[208].mxu0 %vm962_vm2, %v14013_v26 }
 0x901   :  { %6249 = vmatprep.mubr.msk.bf16.mxu0 %vm6434_vm0, %v16754_v32 }
 0x908   :  { %6250 = vmatmul.mubr.msk.bf16.gmra.mrb[212].mxu0 %vm962_vm2, %v14019_v50 }
 0x909   :  { %6253 = vmatprep.mubr.msk.bf16.mxu0 %vm6434_vm0, %v16754_v32 }
 0x910   :  { %6254 = vmatmul.mubr.msk.bf16.gmra.mrb[216].mxu0 %vm962_vm2, %v14025_v2 }
 0x911   :  { %6257 = vmatprep.mubr.msk.bf16.mxu0 %vm6434_vm0, %v16754_v32 }
 0x918   :  { %6258 = vmatmul.mubr.msk.bf16.gmra.mrb[220].mxu0 %vm962_vm2, %v14031_v60  ;;  %v14204_v60 = vld [vmem:[%s14970_s8] ss:$0 sm:$0xff] }
 0x919   :  { %6261 = vmatprep.mubr.msk.bf16.mxu0 %vm6434_vm0, %v16754_v32 }
 0x920   :  { %6262 = vmatmul.mubr.msk.bf16.gmra.mrb[224].mxu0 %vm962_vm2, %v14037_v15 }
 0x921   :  { %6265 = vmatprep.mubr.msk.bf16.mxu0 %vm6434_vm0, %v16754_v32 }
 0x925   :  { %v4629_v15 = vpop.f32.mrb[128].mxu0 }
 0x926   :  { %v4630_v49 = vadd.f32 %v14204_v60, %v4629_v15  ;;  %v6167_v39 = vpop.f32.mrb[129].mxu0 }
 0x927   :  { %v4632_v31 = vpop.f32.mrb[130].mxu0 }
 0x928   :  { %6266 = vmatmul.mubr.msk.bf16.gmra.mrb[228].mxu0 %vm962_vm2, %v14043_v9  ;;  %5131 = vst.msk [vmem:[%s14971_s9] sm:$0xff] %vm962_vm2, %v4630_v49  ;;  %v6168_v9 = vpop.f32.mrb[131].mxu0  ;;  %v16874_v49 = vld [vmem:[#allocation27_spill] sm:$0xff] }
 0x929   :  { %6269 = vmatprep.mubr.msk.bf16.mxu0 %vm6434_vm0, %v16754_v32 }
 0x92f   :  { %v4637_v0 = vpop.f32.mrb[132].mxu0 }
 0x930   :  { %6270 = vmatmul.mubr.msk.bf16.gmra.mrb[232].mxu0 %vm962_vm2, %v14049_v44  ;;  %v4633_v44 = vadd.f32 %v14204_v60, %v4632_v31  ;;  %v4638_v52 = vadd.f32 %v14204_v60, %v4637_v0  ;;  %v6171_v53 = vpop.f32.mrb[133].mxu0 }
 0x931   :  { %6273 = vmatprep.mubr.msk.bf16.mxu0 %vm6434_vm0, %v16754_v32  ;;  %v4640_v3 = vpop.f32.mrb[134].mxu0  ;;  %v16875_v53 = vld [vmem:[#allocation99_spill] sm:$0xff] }
 0x932   :  { %5132 = vst.msk [vmem:[%s14971_s9 + $0x8] sm:$0xff] %vm962_vm2, %v4633_v44  ;;  %5133 = vst.msk [vmem:[%s14971_s9 + $0x10] sm:$0xff] %vm962_vm2, %v4638_v52  ;;  %v4641_v16 = vadd.f32 %v14204_v60, %v4640_v3  ;;  %v6172_v19 = vpop.f32.mrb[135].mxu0 }
 0x934   :  { %5134 = vst.msk [vmem:[%s14971_s9 + $0x18] sm:$0xff] %vm962_vm2, %v4641_v16 }
 0x938   :  { %6274 = vmatmul.mubr.msk.bf16.gmra.mrb[236].mxu0 %vm962_vm2, %v14055_v34 }
 0x939   :  { %6277 = vmatprep.mubr.msk.bf16.mxu0 %vm6434_vm0, %v16754_v32 }
 0x940   :  { %6278 = vmatmul.mubr.msk.bf16.gmra.mrb[240].mxu0 %vm962_vm2, %v14061_v17 }
 0x941   :  { %6281 = vmatprep.mubr.msk.bf16.mxu0 %vm6434_vm0, %v16754_v32 }
 0x943   :  { %v4645_v34 = vpop.f32.mrb[136].mxu0 }
 0x944   :  { %v4646_v30 = vadd.f32 %v14204_v60, %v4645_v34  ;;  %v6175_v56 = vpop.f32.mrb[137].mxu0 }
 0x945   :  { %v4648_v1 = vpop.f32.mrb[138].mxu0 }
 0x946   :  { %5135 = vst.msk [vmem:[%s14971_s9 + $0x20] sm:$0xff] %vm962_vm2, %v4646_v30  ;;  %v4649_v26 = vadd.f32 %v14204_v60, %v4648_v1  ;;  %v6176_v50 = vpop.f32.mrb[139].mxu0 }
 0x948   :  { %5136 = vst.msk [vmem:[%s14971_s9 + $0x28] sm:$0xff] %vm962_vm2, %v4649_v26  ;;  %6282 = vmatmul.mubr.msk.bf16.gmra.mrb[244].mxu0 %vm962_vm2, %v14063_v29 }
 0x949   :  { %6285 = vmatprep.mubr.msk.bf16.mxu0 %vm6434_vm0, %v16754_v32 }
 0x94b   :  { %v4653_v17 = vpop.f32.mrb[140].mxu0 }
 0x94c   :  { %v4654_v2 = vadd.f32 %v14204_v60, %v4653_v17  ;;  %v6179_v40 = vpop.f32.mrb[141].mxu0 }
 0x94d   :  { %v4656_v43 = vpop.f32.mrb[142].mxu0 }
 0x94e   :  { %5137 = vst.msk [vmem:[%s14971_s9 + $0x30] sm:$0xff] %vm962_vm2, %v4654_v2  ;;  %v4657_v8 = vadd.f32 %v14204_v60, %v4656_v43  ;;  %v6180_v4 = vpop.f32.mrb[143].mxu0 }
 0x950   :  { %5138 = vst.msk [vmem:[%s14971_s9 + $0x38] sm:$0xff] %vm962_vm2, %v4657_v8  ;;  %6286 = vmatmul.mubr.msk.bf16.gmra.mrb[248].mxu0 %vm962_vm2, %v14065_v21 }
 0x951   :  { %6289 = vmatprep.mubr.msk.bf16.mxu0 %vm6434_vm0, %v16754_v32 }
 0x953   :  { %v4661_v29 = vpop.f32.mrb[144].mxu0 }
 0x954   :  { %v4662_v5 = vadd.f32 %v14204_v60, %v4661_v29  ;;  %v6183_v6 = vpop.f32.mrb[145].mxu0 }
 0x955   :  { %v4664_v57 = vpop.f32.mrb[146].mxu0 }
 0x956   :  { %5139 = vst.msk [vmem:[%s14971_s9 + $0x40] sm:$0xff] %vm962_vm2, %v4662_v5  ;;  %v4665_v24 = vadd.f32 %v14204_v60, %v4664_v57  ;;  %v6184_v37 = vpop.f32.mrb[147].mxu0 }
 0x958   :  { %5140 = vst.msk [vmem:[%s14971_s9 + $0x48] sm:$0xff] %vm962_vm2, %v4665_v24  ;;  %6290 = vmatmul.mubr.msk.bf16.gmra.mrb[252].mxu0 %vm962_vm2, %v14067_v13  ;;  %v16873_v13 = vld [vmem:[#allocation26_spill] sm:$0xff] }
 0x959   :  { %6293 = vmatprep.mubr.msk.bf16.mxu0 %vm6434_vm0, %v16754_v32 }
 0x95b   :  { %v4669_v21 = vpop.f32.mrb[148].mxu0 }
 0x95c   :  { %v4670_v25 = vadd.f32 %v14204_v60, %v4669_v21  ;;  %v6187_v35 = vpop.f32.mrb[149].mxu0 }
 0x95d   :  { %v4672_v38 = vpop.f32.mrb[150].mxu0 }
 0x95e   :  { %5141 = vst.msk [vmem:[%s14971_s9 + $0x50] sm:$0xff] %vm962_vm2, %v4670_v25  ;;  %v4673_v14 = vadd.f32 %v14204_v60, %v4672_v38  ;;  %v6188_v33 = vpop.f32.mrb[151].mxu0 }
 0x960   :  { %5142 = vst.msk [vmem:[%s14971_s9 + $0x58] sm:$0xff] %vm962_vm2, %v4673_v14  ;;  %6294 = vmatmul.mubr.msk.bf16.gmra.mrb[0].mxu0 %vm962_vm2, %v16873_v13 }
 0x961   :  { %6297 = vmatprep.mubr.msk.bf16.mxu0 %vm6434_vm0, %v16754_v32 }
 0x963   :  { %v4677_v22 = vpop.f32.mrb[152].mxu0 }
 0x964   :  { %v4678_v12 = vadd.f32 %v14204_v60, %v4677_v22  ;;  %v6191_v61 = vpop.f32.mrb[153].mxu0 }
 0x965   :  { %v4680_v54 = vpop.f32.mrb[154].mxu0 }
 0x966   :  { %5143 = vst.msk [vmem:[%s14971_s9 + $0x60] sm:$0xff] %vm962_vm2, %v4678_v12  ;;  %v4681_v23 = vadd.f32 %v14204_v60, %v4680_v54  ;;  %v6192_v15 = vpop.f32.mrb[155].mxu0 }
 0x968   :  { %5144 = vst.msk [vmem:[%s14971_s9 + $0x68] sm:$0xff] %vm962_vm2, %v4681_v23  ;;  %6298 = vmatmul.mubr.msk.bf16.gmra.mrb[4].mxu0 %vm962_vm2, %v16874_v49 }
 0x969   :  { %6301 = vmatprep.mubr.msk.bf16.mxu0 %vm6434_vm0, %v16754_v32 }
 0x96b   :  { %v4685_v39 = vpop.f32.mrb[156].mxu0 }
 0x96c   :  { %v4686_v31 = vadd.f32 %v14204_v60, %v4685_v39  ;;  %v6195_v44 = vpop.f32.mrb[157].mxu0 }
 0x96d   :  { %v4688_v9 = vpop.f32.mrb[158].mxu0 }
 0x96e   :  { %5145 = vst.msk [vmem:[%s14971_s9 + $0x70] sm:$0xff] %vm962_vm2, %v4686_v31  ;;  %v4689_v0 = vadd.f32 %v14204_v60, %v4688_v9  ;;  %v6196_v52 = vpop.f32.mrb[159].mxu0 }
 0x970   :  { %5146 = vst.msk [vmem:[%s14971_s9 + $0x78] sm:$0xff] %vm962_vm2, %v4689_v0  ;;  %6302 = vmatmul.mubr.msk.bf16.gmra.mrb[8].mxu0 %vm962_vm2, %v16875_v53 }
 0x971   :  { %6305 = vmatprep.mubr.msk.bf16.mxu0 %vm6434_vm0, %v16754_v32 }
 0x973   :  { %v4693_v3 = vpop.f32.mrb[160].mxu0 }
 0x974   :  { %v4694_v16 = vadd.f32 %v14204_v60, %v4693_v3  ;;  %v6199_v19 = vpop.f32.mrb[161].mxu0 }
 0x975   :  { %v4696_v34 = vpop.f32.mrb[162].mxu0 }
 0x976   :  { %5147 = vst.msk [vmem:[%s14971_s9 + $0x80] sm:$0xff] %vm962_vm2, %v4694_v16  ;;  %v4697_v30 = vadd.f32 %v14204_v60, %v4696_v34  ;;  %v6200_v56 = vpop.f32.mrb[163].mxu0 }
 0x978   :  { %5148 = vst.msk [vmem:[%s14971_s9 + $0x88] sm:$0xff] %vm962_vm2, %v4697_v30  ;;  %6306 = vmatmul.mubr.msk.bf16.gmra.mrb[12].mxu0 %vm962_vm2, %v13867_v18 }
 0x979   :  { %6309 = vmatprep.mubr.msk.bf16.mxu0 %vm6434_vm0, %v16754_v32 }
 0x97b   :  { %v4701_v1 = vpop.f32.mrb[164].mxu0 }
 0x97c   :  { %v4702_v26 = vadd.f32 %v14204_v60, %v4701_v1  ;;  %v6203_v50 = vpop.f32.mrb[165].mxu0 }
 0x97d   :  { %v4704_v17 = vpop.f32.mrb[166].mxu0 }
 0x97e   :  { %5149 = vst.msk [vmem:[%s14971_s9 + $0x90] sm:$0xff] %vm962_vm2, %v4702_v26  ;;  %v4705_v2 = vadd.f32 %v14204_v60, %v4704_v17  ;;  %v6204_v40 = vpop.f32.mrb[167].mxu0 }
 0x980   :  { %5150 = vst.msk [vmem:[%s14971_s9 + $0x98] sm:$0xff] %vm962_vm2, %v4705_v2  ;;  %6310 = vmatmul.mubr.msk.bf16.gmra.mrb[16].mxu0 %vm962_vm2, %v13869_v62 }
 0x981   :  { %6313 = vmatprep.mubr.msk.bf16.mxu0 %vm6434_vm0, %v16754_v32 }
 0x983   :  { %v4709_v18 = vpop.f32.mrb[168].mxu0 }
 0x984   :  { %v4710_v43 = vadd.f32 %v14204_v60, %v4709_v18  ;;  %v6207_v8 = vpop.f32.mrb[169].mxu0 }
 0x985   :  { %v4712_v4 = vpop.f32.mrb[170].mxu0 }
 0x986   :  { %5151 = vst.msk [vmem:[%s14971_s9 + $0xa0] sm:$0xff] %vm962_vm2, %v4710_v43  ;;  %v4713_v29 = vadd.f32 %v14204_v60, %v4712_v4  ;;  %v6208_v5 = vpop.f32.mrb[171].mxu0 }
 0x988   :  { %5152 = vst.msk [vmem:[%s14971_s9 + $0xa8] sm:$0xff] %vm962_vm2, %v4713_v29  ;;  %6314 = vmatmul.mubr.msk.bf16.gmra.mrb[20].mxu0 %vm962_vm2, %v13871_v46 }
 0x989   :  { %6317 = vmatprep.mubr.msk.bf16.mxu0 %vm6434_vm0, %v16754_v32 }
 0x98b   :  { %v4717_v62 = vpop.f32.mrb[172].mxu0 }
 0x98c   :  { %v4718_v6 = vadd.f32 %v14204_v60, %v4717_v62  ;;  %v6211_v57 = vpop.f32.mrb[173].mxu0 }
 0x98d   :  { %v4720_v24 = vpop.f32.mrb[174].mxu0 }
 0x98e   :  { %5153 = vst.msk [vmem:[%s14971_s9 + $0xb0] sm:$0xff] %vm962_vm2, %v4718_v6  ;;  %v4721_v37 = vadd.f32 %v14204_v60, %v4720_v24  ;;  %v6212_v21 = vpop.f32.mrb[175].mxu0 }
 0x990   :  { %5154 = vst.msk [vmem:[%s14971_s9 + $0xb8] sm:$0xff] %vm962_vm2, %v4721_v37  ;;  %6318 = vmatmul.mubr.msk.bf16.gmra.mrb[24].mxu0 %vm962_vm2, %v13873_v10 }
 0x991   :  { %6321 = vmatprep.mubr.msk.bf16.mxu0 %vm6434_vm0, %v16754_v32 }
 0x993   :  { %v4725_v46 = vpop.f32.mrb[176].mxu0 }
 0x994   :  { %v4726_v25 = vadd.f32 %v14204_v60, %v4725_v46  ;;  %v6215_v35 = vpop.f32.mrb[177].mxu0 }
 0x995   :  { %v4728_v38 = vpop.f32.mrb[178].mxu0 }
 0x996   :  { %5155 = vst.msk [vmem:[%s14971_s9 + $0xc0] sm:$0xff] %vm962_vm2, %v4726_v25  ;;  %v4729_v14 = vadd.f32 %v14204_v60, %v4728_v38  ;;  %v6216_v33 = vpop.f32.mrb[179].mxu0 }
 0x998   :  { %5156 = vst.msk [vmem:[%s14971_s9 + $0xc8] sm:$0xff] %vm962_vm2, %v4729_v14  ;;  %6322 = vmatmul.mubr.msk.bf16.gmra.mrb[28].mxu0 %vm962_vm2, %v13875_v45 }
 0x999   :  { %6325 = vmatprep.mubr.msk.bf16.mxu0 %vm6434_vm0, %v16754_v32 }
 0x99b   :  { %v4733_v10 = vpop.f32.mrb[180].mxu0 }
 0x99c   :  { %v4734_v13 = vadd.f32 %v14204_v60, %v4733_v10  ;;  %v6219_v22 = vpop.f32.mrb[181].mxu0 }
 0x99d   :  { %v4736_v12 = vpop.f32.mrb[182].mxu0 }
 0x99e   :  { %5157 = vst.msk [vmem:[%s14971_s9 + $0xd0] sm:$0xff] %vm962_vm2, %v4734_v13  ;;  %v4737_v61 = vadd.f32 %v14204_v60, %v4736_v12  ;;  %v6220_v54 = vpop.f32.mrb[183].mxu0 }
 0x9a0   :  { %5158 = vst.msk [vmem:[%s14971_s9 + $0xd8] sm:$0xff] %vm962_vm2, %v4737_v61  ;;  %6326 = vmatmul.mubr.msk.bf16.gmra.mrb[32].mxu0 %vm962_vm2, %v13877_v27 }
 0x9a1   :  { %6329 = vmatprep.mubr.msk.bf16.mxu0 %vm6434_vm0, %v16754_v32 }
 0x9a3   :  { %v4741_v45 = vpop.f32.mrb[184].mxu0 }
 0x9a4   :  { %v4742_v23 = vadd.f32 %v14204_v60, %v4741_v45  ;;  %v6223_v15 = vpop.f32.mrb[185].mxu0 }
 0x9a5   :  { %v4744_v49 = vpop.f32.mrb[186].mxu0 }
 0x9a6   :  { %5159 = vst.msk [vmem:[%s14971_s9 + $0xe0] sm:$0xff] %vm962_vm2, %v4742_v23  ;;  %v4745_v39 = vadd.f32 %v14204_v60, %v4744_v49  ;;  %v6224_v31 = vpop.f32.mrb[187].mxu0 }
 0x9a8   :  { %5160 = vst.msk [vmem:[%s14971_s9 + $0xe8] sm:$0xff] %vm962_vm2, %v4745_v39  ;;  %6330 = vmatmul.mubr.msk.bf16.gmra.mrb[36].mxu0 %vm962_vm2, %v13879_v51 }
 0x9a9   :  { %6333 = vmatprep.mubr.msk.bf16.mxu0 %vm6434_vm0, %v16754_v32 }
 0x9ab   :  { %v4749_v27 = vpop.f32.mrb[188].mxu0 }
 0x9ac   :  { %v4750_v44 = vadd.f32 %v14204_v60, %v4749_v27  ;;  %v6227_v9 = vpop.f32.mrb[189].mxu0 }
 0x9ad   :  { %v4752_v0 = vpop.f32.mrb[190].mxu0 }
 0x9ae   :  { %5161 = vst.msk [vmem:[%s14971_s9 + $0xf0] sm:$0xff] %vm962_vm2, %v4750_v44  ;;  %v4753_v52 = vadd.f32 %v14204_v60, %v4752_v0  ;;  %v6228_v53 = vpop.f32.mrb[191].mxu0 }
 0x9b0   :  { %5162 = vst.msk [vmem:[%s14971_s9 + $0xf8] sm:$0xff] %vm962_vm2, %v4753_v52  ;;  %6334 = vmatmul.mubr.msk.bf16.gmra.mrb[40].mxu0 %vm962_vm2, %v13881_v59 }
 0x9b1   :  { %6337 = vmatprep.mubr.msk.bf16.mxu0 %vm6434_vm0, %v16754_v32 }
 0x9b3   :  { %v4757_v51 = vpop.f32.mrb[192].mxu0 }
 0x9b4   :  { %v4758_v3 = vadd.f32 %v14204_v60, %v4757_v51  ;;  %v6231_v16 = vpop.f32.mrb[193].mxu0 }
 0x9b5   :  { %v4760_v19 = vpop.f32.mrb[194].mxu0 }
 0x9b6   :  { %5163 = vst.msk [vmem:[%s14971_s9 + $0x100] sm:$0xff] %vm962_vm2, %v4758_v3  ;;  %v4761_v34 = vadd.f32 %v14204_v60, %v4760_v19  ;;  %v6232_v30 = vpop.f32.mrb[195].mxu0 }
 0x9b8   :  { %5164 = vst.msk [vmem:[%s14971_s9 + $0x108] sm:$0xff] %vm962_vm2, %v4761_v34  ;;  %6338 = vmatmul.mubr.msk.bf16.gmra.mrb[44].mxu0 %vm962_vm2, %v13884_v47 }
 0x9b9   :  { %6341 = vmatprep.mubr.msk.bf16.mxu0 %vm6434_vm0, %v16754_v32 }
 0x9bb   :  { %v4765_v59 = vpop.f32.mrb[196].mxu0 }
 0x9bc   :  { %v4766_v56 = vadd.f32 %v14204_v60, %v4765_v59  ;;  %v6235_v1 = vpop.f32.mrb[197].mxu0 }
 0x9bd   :  { %v4768_v26 = vpop.f32.mrb[198].mxu0 }
 0x9be   :  { %5165 = vst.msk [vmem:[%s14971_s9 + $0x110] sm:$0xff] %vm962_vm2, %v4766_v56  ;;  %v4769_v50 = vadd.f32 %v14204_v60, %v4768_v26  ;;  %v6236_v17 = vpop.f32.mrb[199].mxu0 }
 0x9c0   :  { %5166 = vst.msk [vmem:[%s14971_s9 + $0x118] sm:$0xff] %vm962_vm2, %v4769_v50  ;;  %6342 = vmatmul.mubr.msk.bf16.gmra.mrb[48].mxu0 %vm962_vm2, %v13886_v11 }
 0x9c1   :  { %6345 = vmatprep.mubr.msk.bf16.mxu0 %vm6434_vm0, %v16754_v32 }
 0x9c3   :  { %v4773_v47 = vpop.f32.mrb[200].mxu0 }
 0x9c4   :  { %v4774_v2 = vadd.f32 %v14204_v60, %v4773_v47  ;;  %v6239_v40 = vpop.f32.mrb[201].mxu0 }
 0x9c5   :  { %v4776_v18 = vpop.f32.mrb[202].mxu0 }
 0x9c6   :  { %5167 = vst.msk [vmem:[%s14971_s9 + $0x120] sm:$0xff] %vm962_vm2, %v4774_v2  ;;  %v4777_v43 = vadd.f32 %v14204_v60, %v4776_v18  ;;  %v6240_v8 = vpop.f32.mrb[203].mxu0 }
 0x9c8   :  { %5168 = vst.msk [vmem:[%s14971_s9 + $0x128] sm:$0xff] %vm962_vm2, %v4777_v43  ;;  %6346 = vmatmul.mubr.msk.bf16.gmra.mrb[52].mxu0 %vm962_vm2, %v13888_v58 }
 0x9c9   :  { %6349 = vmatprep.mubr.msk.bf16.mxu0 %vm6434_vm0, %v16754_v32 }
 0x9cb   :  { %v4781_v11 = vpop.f32.mrb[204].mxu0 }
 0x9cc   :  { %v4782_v4 = vadd.f32 %v14204_v60, %v4781_v11  ;;  %v6243_v29 = vpop.f32.mrb[205].mxu0 }
 0x9cd   :  { %v4784_v5 = vpop.f32.mrb[206].mxu0 }
 0x9ce   :  { %5169 = vst.msk [vmem:[%s14971_s9 + $0x130] sm:$0xff] %vm962_vm2, %v4782_v4  ;;  %v4785_v62 = vadd.f32 %v14204_v60, %v4784_v5  ;;  %v6244_v6 = vpop.f32.mrb[207].mxu0 }
 0x9cf   :  { %v16877_v6 = vld [vmem:[#allocation29_spill] sm:$0xff] }
 0x9d0   :  { %5170 = vst.msk [vmem:[%s14971_s9 + $0x138] sm:$0xff] %vm962_vm2, %v4785_v62  ;;  %6350 = vmatmul.mubr.msk.bf16.gmra.mrb[56].mxu0 %vm962_vm2, %v13890_v7 }
 0x9d1   :  { %6353 = vmatprep.mubr.msk.bf16.mxu0 %vm6434_vm0, %v16754_v32 }
 0x9d3   :  { %v4789_v58 = vpop.f32.mrb[208].mxu0 }
 0x9d4   :  { %v4790_v57 = vadd.f32 %v14204_v60, %v4789_v58  ;;  %v6247_v24 = vpop.f32.mrb[209].mxu0 }
 0x9d5   :  { %v4792_v37 = vpop.f32.mrb[210].mxu0 }
 0x9d6   :  { %5171 = vst.msk [vmem:[%s14971_s9 + $0x140] sm:$0xff] %vm962_vm2, %v4790_v57  ;;  %v4793_v21 = vadd.f32 %v14204_v60, %v4792_v37  ;;  %v6248_v46 = vpop.f32.mrb[211].mxu0 }
 0x9d8   :  { %5172 = vst.msk [vmem:[%s14971_s9 + $0x148] sm:$0xff] %vm962_vm2, %v4793_v21  ;;  %6354 = vmatmul.mubr.msk.bf16.gmra.mrb[60].mxu0 %vm962_vm2, %v13894_v36 }
 0x9d9   :  { %6357 = vmatprep.mubr.msk.bf16.mxu0 %vm6434_vm0, %v16754_v32 }
 0x9db   :  { %v4797_v7 = vpop.f32.mrb[212].mxu0 }
 0x9dc   :  { %v4798_v25 = vadd.f32 %v14204_v60, %v4797_v7  ;;  %v6251_v35 = vpop.f32.mrb[213].mxu0  ;;  %v16878_v7 = vld [vmem:[#allocation30_spill] sm:$0xff] }
 0x9dd   :  { %v4800_v38 = vpop.f32.mrb[214].mxu0 }
 0x9de   :  { %5173 = vst.msk [vmem:[%s14971_s9 + $0x150] sm:$0xff] %vm962_vm2, %v4798_v25  ;;  %v4801_v14 = vadd.f32 %v14204_v60, %v4800_v38  ;;  %v6252_v33 = vpop.f32.mrb[215].mxu0 }
 0x9e0   :  { %5174 = vst.msk [vmem:[%s14971_s9 + $0x158] sm:$0xff] %vm962_vm2, %v4801_v14  ;;  %6358 = vmatmul.mubr.msk.bf16.gmra.mrb[64].mxu0 %vm962_vm2, %v13896_v20 }
 0x9e1   :  { %6361 = vmatprep.mubr.msk.bf16.mxu0 %vm6434_vm0, %v16754_v32 }
 0x9e3   :  { %v4805_v36 = vpop.f32.mrb[216].mxu0 }
 0x9e4   :  { %v4806_v10 = vadd.f32 %v14204_v60, %v4805_v36  ;;  %v6255_v13 = vpop.f32.mrb[217].mxu0 }
 0x9e5   :  { %v4808_v22 = vpop.f32.mrb[218].mxu0 }
 0x9e6   :  { %5175 = vst.msk [vmem:[%s14971_s9 + $0x160] sm:$0xff] %vm962_vm2, %v4806_v10  ;;  %v4809_v12 = vadd.f32 %v14204_v60, %v4808_v22  ;;  %v6256_v61 = vpop.f32.mrb[219].mxu0  ;;  %v16879_v10 = vld [vmem:[#allocation31_spill] sm:$0xff] }
 0x9e8   :  { %5176 = vst.msk [vmem:[%s14971_s9 + $0x168] sm:$0xff] %vm962_vm2, %v4809_v12  ;;  %6362 = vmatmul.mubr.msk.bf16.gmra.mrb[68].mxu0 %vm962_vm2, %v13898_v42 }
 0x9e9   :  { %6365 = vmatprep.mubr.msk.bf16.mxu0 %vm6434_vm0, %v16754_v32 }
 0x9eb   :  { %v4813_v20 = vpop.f32.mrb[220].mxu0 }
 0x9ec   :  { %v4814_v54 = vadd.f32 %v14204_v60, %v4813_v20  ;;  %v6259_v45 = vpop.f32.mrb[221].mxu0 }
 0x9ed   :  { %v4816_v23 = vpop.f32.mrb[222].mxu0  ;;  %v16880_v45 = vld [vmem:[#allocation32_spill] sm:$0xff] }
 0x9ee   :  { %5177 = vst.msk [vmem:[%s14971_s9 + $0x170] sm:$0xff] %vm962_vm2, %v4814_v54  ;;  %v4817_v15 = vadd.f32 %v14204_v60, %v4816_v23  ;;  %v6260_v49 = vpop.f32.mrb[223].mxu0 }
 0x9f0   :  { %5178 = vst.msk [vmem:[%s14971_s9 + $0x178] sm:$0xff] %vm962_vm2, %v4817_v15  ;;  %6366 = vmatmul.mubr.msk.bf16.gmra.mrb[72].mxu0 %vm962_vm2, %v13900_v28 }
 0x9f1   :  { %6369 = vmatprep.mubr.msk.bf16.mxu0 %vm6434_vm0, %v16754_v32 }
 0x9f3   :  { %v4821_v42 = vpop.f32.mrb[224].mxu0 }
 0x9f4   :  { %v4822_v39 = vadd.f32 %v14204_v60, %v4821_v42  ;;  %v6263_v31 = vpop.f32.mrb[225].mxu0 }
 0x9f5   :  { %v4824_v27 = vpop.f32.mrb[226].mxu0 }
 0x9f6   :  { %5179 = vst.msk [vmem:[%s14971_s9 + $0x180] sm:$0xff] %vm962_vm2, %v4822_v39  ;;  %v4825_v44 = vadd.f32 %v14204_v60, %v4824_v27  ;;  %v6264_v9 = vpop.f32.mrb[227].mxu0  ;;  %v16881_v27 = vld [vmem:[#allocation33_spill] sm:$0xff] }
 0x9f8   :  { %5180 = vst.msk [vmem:[%s14971_s9 + $0x188] sm:$0xff] %vm962_vm2, %v4825_v44  ;;  %6370 = vmatmul.mubr.msk.bf16.gmra.mrb[76].mxu0 %vm962_vm2, %v13902_v55 }
 0x9f9   :  { %6373 = vmatprep.mubr.msk.bf16.mxu0 %vm6434_vm0, %v16754_v32 }
 0x9fb   :  { %v4829_v28 = vpop.f32.mrb[228].mxu0 }
 0x9fc   :  { %v4830_v0 = vadd.f32 %v14204_v60, %v4829_v28  ;;  %v6267_v52 = vpop.f32.mrb[229].mxu0 }
 0x9fd   :  { %v4832_v53 = vpop.f32.mrb[230].mxu0 }
 0x9fe   :  { %5181 = vst.msk [vmem:[%s14971_s9 + $0x190] sm:$0xff] %vm962_vm2, %v4830_v0  ;;  %v4833_v51 = vadd.f32 %v14204_v60, %v4832_v53  ;;  %v6268_v3 = vpop.f32.mrb[231].mxu0 }
 0x9ff   :  { %v16883_v3 = vld [vmem:[#allocation12_spill] sm:$0xff] }
 0xa00   :  { %5182 = vst.msk [vmem:[%s14971_s9 + $0x198] sm:$0xff] %vm962_vm2, %v4833_v51  ;;  %6374 = vmatmul.mubr.msk.bf16.gmra.mrb[80].mxu0 %vm962_vm2, %v13904_v63  ;;  %v16882_v51 = vld [vmem:[#allocation34_spill] sm:$0xff] }
 0xa01   :  { %6377 = vmatprep.mubr.msk.bf16.mxu0 %vm6434_vm0, %v16754_v32 }
 0xa03   :  { %v4837_v55 = vpop.f32.mrb[232].mxu0 }
 0xa04   :  { %v4838_v16 = vadd.f32 %v14204_v60, %v4837_v55  ;;  %v6271_v19 = vpop.f32.mrb[233].mxu0  ;;  %v4319_v55 = vmax.f32 %v16883_v3, 0.0 }
 0xa05   :  { %v4840_v34 = vpop.f32.mrb[234].mxu0 }
 0xa06   :  { %5183 = vst.msk [vmem:[%s14971_s9 + $0x1a0] sm:$0xff] %vm962_vm2, %v4838_v16  ;;  %v4841_v30 = vadd.f32 %v14204_v60, %v4840_v34  ;;  %v6272_v59 = vpop.f32.mrb[235].mxu0 }
 0xa07   :  { %v4382_v59 = vpack.c.bf16 %v4319_v55, %v4319_v55 }
 0xa08   :  { %5184 = vst.msk [vmem:[%s14971_s9 + $0x1a8] sm:$0xff] %vm962_vm2, %v4841_v30  ;;  %6378 = vmatmul.mubr.msk.bf16.gmra.mrb[84].mxu0 %vm962_vm2, %v13906_v48 }
 0xa09   :  { %6381 = vmatprep.mubr.msk.bf16.mxu0 %vm6434_vm0, %v16754_v32 }
 0xa0b   :  { %v4845_v63 = vpop.f32.mrb[236].mxu0 }
 0xa0c   :  { %v4846_v56 = vadd.f32 %v14204_v60, %v4845_v63  ;;  %v6275_v1 = vpop.f32.mrb[237].mxu0 }
 0xa0d   :  { %v4848_v26 = vpop.f32.mrb[238].mxu0 }
 0xa0e   :  { %5185 = vst.msk [vmem:[%s14971_s9 + $0x1b0] sm:$0xff] %vm962_vm2, %v4846_v56  ;;  %v4849_v50 = vadd.f32 %v14204_v60, %v4848_v26  ;;  %v6276_v17 = vpop.f32.mrb[239].mxu0 }
 0xa10   :  { %5186 = vst.msk [vmem:[%s14971_s9 + $0x1b8] sm:$0xff] %vm962_vm2, %v4849_v50  ;;  %6382 = vmatmul.mubr.msk.bf16.gmra.mrb[88].mxu0 %vm962_vm2, %v13908_v41  ;;  %v16876_v41 = vld [vmem:[#allocation28_spill] sm:$0xff] }
 0xa11   :  { %6385 = vmatprep.mubr.msk.bf16.mxu0 %vm6434_vm0, %v16754_v32 }
 0xa13   :  { %v4853_v48 = vpop.f32.mrb[240].mxu0 }
 0xa14   :  { %v4854_v47 = vadd.f32 %v14204_v60, %v4853_v48  ;;  %v6279_v2 = vpop.f32.mrb[241].mxu0 }
 0xa15   :  { %v4856_v40 = vpop.f32.mrb[242].mxu0 }
 0xa16   :  { %5187 = vst.msk [vmem:[%s14971_s9 + $0x1c0] sm:$0xff] %vm962_vm2, %v4854_v47  ;;  %v4857_v18 = vadd.f32 %v14204_v60, %v4856_v40  ;;  %v6280_v43 = vpop.f32.mrb[243].mxu0 }
 0xa18   :  { %5188 = vst.msk [vmem:[%s14971_s9 + $0x1c8] sm:$0xff] %vm962_vm2, %v4857_v18  ;;  %6386 = vmatmul.mubr.msk.bf16.gmra.mrb[92].mxu0 %vm962_vm2, %v16876_v41 }
 0xa19   :  { %6389 = vmatprep.mubr.msk.bf16.mxu0 %vm6434_vm0, %v16754_v32 }
 0xa1b   :  { %v4861_v8 = vpop.f32.mrb[244].mxu0 }
 0xa1c   :  { %v4862_v11 = vadd.f32 %v14204_v60, %v4861_v8  ;;  %v6283_v4 = vpop.f32.mrb[245].mxu0 }
 0xa1d   :  { %v4864_v29 = vpop.f32.mrb[246].mxu0 }
 0xa1e   :  { %5189 = vst.msk [vmem:[%s14971_s9 + $0x1d0] sm:$0xff] %vm962_vm2, %v4862_v11  ;;  %v4865_v5 = vadd.f32 %v14204_v60, %v4864_v29  ;;  %v6284_v62 = vpop.f32.mrb[247].mxu0 }
 0xa20   :  { %5190 = vst.msk [vmem:[%s14971_s9 + $0x1d8] sm:$0xff] %vm962_vm2, %v4865_v5  ;;  %6390 = vmatmul.mubr.msk.bf16.gmra.mrb[96].mxu0 %vm962_vm2, %v16877_v6 }
 0xa21   :  { %6393 = vmatprep.mubr.msk.bf16.mxu0 %vm6434_vm0, %v16754_v32 }
 0xa23   :  { %v4869_v58 = vpop.f32.mrb[248].mxu0 }
 0xa24   :  { %v4870_v57 = vadd.f32 %v14204_v60, %v4869_v58  ;;  %v6287_v24 = vpop.f32.mrb[249].mxu0 }
 0xa25   :  { %v4872_v37 = vpop.f32.mrb[250].mxu0 }
 0xa26   :  { %5191 = vst.msk [vmem:[%s14971_s9 + $0x1e0] sm:$0xff] %vm962_vm2, %v4870_v57  ;;  %v4873_v21 = vadd.f32 %v14204_v60, %v4872_v37  ;;  %v6288_v46 = vpop.f32.mrb[251].mxu0 }
 0xa28   :  { %5192 = vst.msk [vmem:[%s14971_s9 + $0x1e8] sm:$0xff] %vm962_vm2, %v4873_v21  ;;  %6394 = vmatmul.mubr.msk.bf16.gmra.mrb[100].mxu0 %vm962_vm2, %v16878_v7 }
 0xa29   :  { %6397 = vmatprep.mubr.msk.bf16.mxu0 %vm6434_vm0, %v16754_v32 }
 0xa2b   :  { %v4877_v25 = vpop.f32.mrb[252].mxu0 }
 0xa2c   :  { %v4878_v35 = vadd.f32 %v14204_v60, %v4877_v25  ;;  %v6291_v38 = vpop.f32.mrb[253].mxu0 }
 0xa2d   :  { %v4880_v14 = vpop.f32.mrb[254].mxu0 }
 0xa2e   :  { %5193 = vst.msk [vmem:[%s14971_s9 + $0x1f0] sm:$0xff] %vm962_vm2, %v4878_v35  ;;  %v4881_v33 = vadd.f32 %v14204_v60, %v4880_v14  ;;  %v6292_v36 = vpop.f32.mrb[255].mxu0 }
 0xa30   :  { %5194 = vst.msk [vmem:[%s14971_s9 + $0x1f8] sm:$0xff] %vm962_vm2, %v4881_v33  ;;  %6398 = vmatmul.mubr.msk.bf16.gmra.mrb[104].mxu0 %vm962_vm2, %v16879_v10 }
 0xa31   :  { %6401 = vmatprep.mubr.msk.bf16.mxu0 %vm6434_vm0, %v16754_v32 }
 0xa33   :  { %v4885_v13 = vpop.f32.mrb[0].mxu0 }
 0xa34   :  { %v4886_v22 = vadd.f32 %v14204_v60, %v4885_v13  ;;  %v6295_v12 = vpop.f32.mrb[1].mxu0 }
 0xa35   :  { %v4888_v61 = vpop.f32.mrb[2].mxu0 }
 0xa36   :  { %5195 = vst.msk [vmem:[%s14971_s9 + $0x200] sm:$0xff] %vm962_vm2, %v4886_v22  ;;  %v4889_v20 = vadd.f32 %v14204_v60, %v4888_v61  ;;  %v6296_v54 = vpop.f32.mrb[3].mxu0 }
 0xa38   :  { %5196 = vst.msk [vmem:[%s14971_s9 + $0x208] sm:$0xff] %vm962_vm2, %v4889_v20  ;;  %6402 = vmatmul.mubr.msk.bf16.gmra.mrb[108].mxu0 %vm962_vm2, %v16880_v45 }
 0xa39   :  { %6405 = vmatprep.mubr.msk.bf16.mxu0 %vm6434_vm0, %v16754_v32 }
 0xa3b   :  { %v4893_v23 = vpop.f32.mrb[4].mxu0 }
 0xa3c   :  { %v4894_v15 = vadd.f32 %v14204_v60, %v4893_v23  ;;  %v6299_v49 = vpop.f32.mrb[5].mxu0 }
 0xa3d   :  { %v4896_v42 = vpop.f32.mrb[6].mxu0 }
 0xa3e   :  { %5197 = vst.msk [vmem:[%s14971_s9 + $0x210] sm:$0xff] %vm962_vm2, %v4894_v15  ;;  %v4897_v39 = vadd.f32 %v14204_v60, %v4896_v42  ;;  %v6300_v31 = vpop.f32.mrb[7].mxu0 }
 0xa40   :  { %5198 = vst.msk [vmem:[%s14971_s9 + $0x218] sm:$0xff] %vm962_vm2, %v4897_v39  ;;  %6406 = vmatmul.mubr.msk.bf16.gmra.mrb[112].mxu0 %vm962_vm2, %v16881_v27 }
 0xa41   :  { %6409 = vmatprep.mubr.msk.bf16.mxu0 %vm6434_vm0, %v16754_v32 }
 0xa43   :  { %v4901_v44 = vpop.f32.mrb[8].mxu0 }
 0xa44   :  { %v4902_v9 = vadd.f32 %v14204_v60, %v4901_v44  ;;  %v6303_v28 = vpop.f32.mrb[9].mxu0 }
 0xa45   :  { %v4904_v0 = vpop.f32.mrb[10].mxu0 }
 0xa46   :  { %5199 = vst.msk [vmem:[%s14971_s9 + $0x220] sm:$0xff] %vm962_vm2, %v4902_v9  ;;  %v4905_v52 = vadd.f32 %v14204_v60, %v4904_v0  ;;  %v6304_v53 = vpop.f32.mrb[11].mxu0 }
 0xa48   :  { %5200 = vst.msk [vmem:[%s14971_s9 + $0x228] sm:$0xff] %vm962_vm2, %v4905_v52  ;;  %6410 = vmatmul.mubr.msk.bf16.gmra.mrb[116].mxu0 %vm962_vm2, %v16882_v51 }
 0xa49   :  { %6413 = vmatprep.mubr.msk.bf16.mxu0 %vm6434_vm0, %v16754_v32 }
 0xa4b   :  { %v4909_v16 = vpop.f32.mrb[12].mxu0 }
 0xa4c   :  { %v4910_v19 = vadd.f32 %v14204_v60, %v4909_v16  ;;  %v6307_v34 = vpop.f32.mrb[13].mxu0 }
 0xa4d   :  { %v4912_v30 = vpop.f32.mrb[14].mxu0 }
 0xa4e   :  { %5201 = vst.msk [vmem:[%s14971_s9 + $0x230] sm:$0xff] %vm962_vm2, %v4910_v19  ;;  %v4913_v63 = vadd.f32 %v14204_v60, %v4912_v30  ;;  %v6308_v56 = vpop.f32.mrb[15].mxu0 }
 0xa50   :  { %5202 = vst.msk [vmem:[%s14971_s9 + $0x238] sm:$0xff] %vm962_vm2, %v4913_v63  ;;  %6414 = vmatmul.mubr.msk.bf16.gmra.mrb[120].mxu0 %vm962_vm2, %v4382_v59 }
 0xa53   :  { %v4917_v32 = vpop.f32.mrb[16].mxu0 }
 0xa54   :  { %v4918_v1 = vadd.f32 %v14204_v60, %v4917_v32  ;;  %v6311_v26 = vpop.f32.mrb[17].mxu0 }
 0xa55   :  { %v4920_v50 = vpop.f32.mrb[18].mxu0 }
 0xa56   :  { %5203 = vst.msk [vmem:[%s14971_s9 + $0x240] sm:$0xff] %vm962_vm2, %v4918_v1  ;;  %v4921_v17 = vadd.f32 %v14204_v60, %v4920_v50  ;;  %v6312_v48 = vpop.f32.mrb[19].mxu0 }
 0xa58   :  { %5204 = vst.msk [vmem:[%s14971_s9 + $0x248] sm:$0xff] %vm962_vm2, %v4921_v17 }
 0xa5b   :  { %v4925_v47 = vpop.f32.mrb[20].mxu0 }
 0xa5c   :  { %v4926_v2 = vadd.f32 %v14204_v60, %v4925_v47  ;;  %v6315_v40 = vpop.f32.mrb[21].mxu0 }
 0xa5d   :  { %v4928_v18 = vpop.f32.mrb[22].mxu0 }
 0xa5e   :  { %5205 = vst.msk [vmem:[%s14971_s9 + $0x250] sm:$0xff] %vm962_vm2, %v4926_v2  ;;  %v4929_v43 = vadd.f32 %v14204_v60, %v4928_v18  ;;  %v6316_v41 = vpop.f32.mrb[23].mxu0 }
 0xa60   :  { %5206 = vst.msk [vmem:[%s14971_s9 + $0x258] sm:$0xff] %vm962_vm2, %v4929_v43 }
 0xa63   :  { %v4933_v8 = vpop.f32.mrb[24].mxu0 }
 0xa64   :  { %v4934_v11 = vadd.f32 %v14204_v60, %v4933_v8  ;;  %v6319_v4 = vpop.f32.mrb[25].mxu0 }
 0xa65   :  { %v4936_v29 = vpop.f32.mrb[26].mxu0 }
 0xa66   :  { %5207 = vst.msk [vmem:[%s14971_s9 + $0x260] sm:$0xff] %vm962_vm2, %v4934_v11  ;;  %v4937_v5 = vadd.f32 %v14204_v60, %v4936_v29  ;;  %v6320_v62 = vpop.f32.mrb[27].mxu0 }
 0xa68   :  { %5208 = vst.msk [vmem:[%s14971_s9 + $0x268] sm:$0xff] %vm962_vm2, %v4937_v5 }
 0xa6b   :  { %v4941_v6 = vpop.f32.mrb[28].mxu0 }
 0xa6c   :  { %v4942_v58 = vadd.f32 %v14204_v60, %v4941_v6  ;;  %v6323_v57 = vpop.f32.mrb[29].mxu0 }
 0xa6d   :  { %v4944_v24 = vpop.f32.mrb[30].mxu0 }
 0xa6e   :  { %5209 = vst.msk [vmem:[%s14971_s9 + $0x270] sm:$0xff] %vm962_vm2, %v4942_v58  ;;  %v4945_v37 = vadd.f32 %v14204_v60, %v4944_v24  ;;  %v6324_v21 = vpop.f32.mrb[31].mxu0 }
 0xa70   :  { %5210 = vst.msk [vmem:[%s14971_s9 + $0x278] sm:$0xff] %vm962_vm2, %v4945_v37 }
 0xa73   :  { %v4949_v46 = vpop.f32.mrb[32].mxu0 }
 0xa74   :  { %v4950_v7 = vadd.f32 %v14204_v60, %v4949_v46  ;;  %v6327_v25 = vpop.f32.mrb[33].mxu0 }
 0xa75   :  { %v4952_v35 = vpop.f32.mrb[34].mxu0 }
 0xa76   :  { %5211 = vst.msk [vmem:[%s14971_s9 + $0x280] sm:$0xff] %vm962_vm2, %v4950_v7  ;;  %v4953_v38 = vadd.f32 %v14204_v60, %v4952_v35  ;;  %v6328_v14 = vpop.f32.mrb[35].mxu0 }
 0xa78   :  { %5212 = vst.msk [vmem:[%s14971_s9 + $0x288] sm:$0xff] %vm962_vm2, %v4953_v38 }
 0xa7b   :  { %v4957_v33 = vpop.f32.mrb[36].mxu0 }
 0xa7c   :  { %v4958_v36 = vadd.f32 %v14204_v60, %v4957_v33  ;;  %v6331_v10 = vpop.f32.mrb[37].mxu0 }
 0xa7d   :  { %v4960_v13 = vpop.f32.mrb[38].mxu0 }
 0xa7e   :  { %5213 = vst.msk [vmem:[%s14971_s9 + $0x290] sm:$0xff] %vm962_vm2, %v4958_v36  ;;  %v4961_v22 = vadd.f32 %v14204_v60, %v4960_v13  ;;  %v6332_v12 = vpop.f32.mrb[39].mxu0 }
 0xa80   :  { %5214 = vst.msk [vmem:[%s14971_s9 + $0x298] sm:$0xff] %vm962_vm2, %v4961_v22 }
 0xa83   :  { %v4965_v61 = vpop.f32.mrb[40].mxu0 }
 0xa84   :  { %v4966_v20 = vadd.f32 %v14204_v60, %v4965_v61  ;;  %v6335_v54 = vpop.f32.mrb[41].mxu0 }
 0xa85   :  { %v4968_v45 = vpop.f32.mrb[42].mxu0 }
 0xa86   :  { %5215 = vst.msk [vmem:[%s14971_s9 + $0x2a0] sm:$0xff] %vm962_vm2, %v4966_v20  ;;  %v4969_v23 = vadd.f32 %v14204_v60, %v4968_v45  ;;  %v6336_v15 = vpop.f32.mrb[43].mxu0 }
 0xa88   :  { %5216 = vst.msk [vmem:[%s14971_s9 + $0x2a8] sm:$0xff] %vm962_vm2, %v4969_v23 }
 0xa8b   :  { %v4973_v49 = vpop.f32.mrb[44].mxu0 }
 0xa8c   :  { %v4974_v42 = vadd.f32 %v14204_v60, %v4973_v49  ;;  %v6339_v39 = vpop.f32.mrb[45].mxu0 }
 0xa8d   :  { %v4976_v31 = vpop.f32.mrb[46].mxu0 }
 0xa8e   :  { %5217 = vst.msk [vmem:[%s14971_s9 + $0x2b0] sm:$0xff] %vm962_vm2, %v4974_v42  ;;  %v4977_v27 = vadd.f32 %v14204_v60, %v4976_v31  ;;  %v6340_v44 = vpop.f32.mrb[47].mxu0 }
 0xa90   :  { %5218 = vst.msk [vmem:[%s14971_s9 + $0x2b8] sm:$0xff] %vm962_vm2, %v4977_v27 }
 0xa93   :  { %v4981_v9 = vpop.f32.mrb[48].mxu0 }
 0xa94   :  { %v4982_v28 = vadd.f32 %v14204_v60, %v4981_v9  ;;  %v6343_v0 = vpop.f32.mrb[49].mxu0 }
 0xa95   :  { %v4984_v52 = vpop.f32.mrb[50].mxu0 }
 0xa96   :  { %5219 = vst.msk [vmem:[%s14971_s9 + $0x2c0] sm:$0xff] %vm962_vm2, %v4982_v28  ;;  %v4985_v53 = vadd.f32 %v14204_v60, %v4984_v52  ;;  %v6344_v51 = vpop.f32.mrb[51].mxu0  ;;  %v6432_v28 = vld [vmem:[%s14970_s8] ss:$0 sm:$0xff] }
 0xa98   :  { %5220 = vst.msk [vmem:[%s14971_s9 + $0x2c8] sm:$0xff] %vm962_vm2, %v4985_v53 }
 0xa9b   :  { %v4989_v3 = vpop.f32.mrb[52].mxu0 }
 0xa9c   :  { %v4990_v55 = vadd.f32 %v14204_v60, %v4989_v3  ;;  %v6347_v16 = vpop.f32.mrb[53].mxu0 }
 0xa9d   :  { %v4992_v19 = vpop.f32.mrb[54].mxu0 }
 0xa9e   :  { %5221 = vst.msk [vmem:[%s14971_s9 + $0x2d0] sm:$0xff] %vm962_vm2, %v4990_v55  ;;  %v4993_v34 = vadd.f32 %v14204_v60, %v4992_v19  ;;  %v6348_v30 = vpop.f32.mrb[55].mxu0 }
 0xaa0   :  { %5222 = vst.msk [vmem:[%s14971_s9 + $0x2d8] sm:$0xff] %vm962_vm2, %v4993_v34 }
 0xaa3   :  { %v4997_v59 = vpop.f32.mrb[56].mxu0 }
 0xaa4   :  { %v4998_v63 = vadd.f32 %v14204_v60, %v4997_v59  ;;  %v6351_v56 = vpop.f32.mrb[57].mxu0 }
 0xaa5   :  { %v5000_v32 = vpop.f32.mrb[58].mxu0 }
 0xaa6   :  { %5223 = vst.msk [vmem:[%s14971_s9 + $0x2e0] sm:$0xff] %vm962_vm2, %v4998_v63  ;;  %v5001_v1 = vadd.f32 %v14204_v60, %v5000_v32  ;;  %v6352_v26 = vpop.f32.mrb[59].mxu0 }
 0xaa8   :  { %5224 = vst.msk [vmem:[%s14971_s9 + $0x2e8] sm:$0xff] %vm962_vm2, %v5001_v1 }
 0xaab   :  { %v5005_v50 = vpop.f32.mrb[60].mxu0 }
 0xaac   :  { %v5006_v17 = vadd.f32 %v14204_v60, %v5005_v50  ;;  %v6355_v48 = vpop.f32.mrb[61].mxu0 }
 0xaad   :  { %v5008_v47 = vpop.f32.mrb[62].mxu0 }
 0xaae   :  { %5225 = vst.msk [vmem:[%s14971_s9 + $0x2f0] sm:$0xff] %vm962_vm2, %v5006_v17  ;;  %v5009_v2 = vadd.f32 %v14204_v60, %v5008_v47  ;;  %v6356_v40 = vpop.f32.mrb[63].mxu0 }
 0xab0   :  { %5226 = vst.msk [vmem:[%s14971_s9 + $0x2f8] sm:$0xff] %vm962_vm2, %v5009_v2 }
 0xab3   :  { %v5013_v18 = vpop.f32.mrb[64].mxu0 }
 0xab4   :  { %v5014_v43 = vadd.f32 %v14204_v60, %v5013_v18  ;;  %v6359_v41 = vpop.f32.mrb[65].mxu0 }
 0xab5   :  { %v5016_v8 = vpop.f32.mrb[66].mxu0 }
 0xab6   :  { %5227 = vst.msk [vmem:[%s14971_s9 + $0x300] sm:$0xff] %vm962_vm2, %v5014_v43  ;;  %v5017_v11 = vadd.f32 %v14204_v60, %v5016_v8  ;;  %v6360_v4 = vpop.f32.mrb[67].mxu0 }
 0xab8   :  { %5228 = vst.msk [vmem:[%s14971_s9 + $0x308] sm:$0xff] %vm962_vm2, %v5017_v11 }
 0xabb   :  { %v5021_v29 = vpop.f32.mrb[68].mxu0 }
 0xabc   :  { %v5022_v5 = vadd.f32 %v14204_v60, %v5021_v29  ;;  %v6363_v62 = vpop.f32.mrb[69].mxu0 }
 0xabd   :  { %v5024_v6 = vpop.f32.mrb[70].mxu0 }
 0xabe   :  { %5229 = vst.msk [vmem:[%s14971_s9 + $0x310] sm:$0xff] %vm962_vm2, %v5022_v5  ;;  %v5025_v58 = vadd.f32 %v14204_v60, %v5024_v6  ;;  %v6364_v57 = vpop.f32.mrb[71].mxu0 }
 0xac0   :  { %5230 = vst.msk [vmem:[%s14971_s9 + $0x318] sm:$0xff] %vm962_vm2, %v5025_v58 }
 0xac3   :  { %v5029_v24 = vpop.f32.mrb[72].mxu0 }
 0xac4   :  { %v5030_v37 = vadd.f32 %v14204_v60, %v5029_v24  ;;  %v6367_v21 = vpop.f32.mrb[73].mxu0 }
 0xac5   :  { %v5032_v46 = vpop.f32.mrb[74].mxu0 }
 0xac6   :  { %5231 = vst.msk [vmem:[%s14971_s9 + $0x320] sm:$0xff] %vm962_vm2, %v5030_v37  ;;  %v5033_v7 = vadd.f32 %v14204_v60, %v5032_v46  ;;  %v6368_v25 = vpop.f32.mrb[75].mxu0 }
 0xac8   :  { %5232 = vst.msk [vmem:[%s14971_s9 + $0x328] sm:$0xff] %vm962_vm2, %v5033_v7 }
 0xacb   :  { %v5037_v35 = vpop.f32.mrb[76].mxu0 }
 0xacc   :  { %v5038_v38 = vadd.f32 %v14204_v60, %v5037_v35  ;;  %v6371_v14 = vpop.f32.mrb[77].mxu0 }
 0xacd   :  { %v5040_v33 = vpop.f32.mrb[78].mxu0 }
 0xace   :  { %5233 = vst.msk [vmem:[%s14971_s9 + $0x330] sm:$0xff] %vm962_vm2, %v5038_v38  ;;  %v5041_v36 = vadd.f32 %v14204_v60, %v5040_v33  ;;  %v6372_v10 = vpop.f32.mrb[79].mxu0 }
 0xad0   :  { %5234 = vst.msk [vmem:[%s14971_s9 + $0x338] sm:$0xff] %vm962_vm2, %v5041_v36 }
 0xad3   :  { %v5045_v13 = vpop.f32.mrb[80].mxu0 }
 0xad4   :  { %v5046_v22 = vadd.f32 %v14204_v60, %v5045_v13  ;;  %v6375_v12 = vpop.f32.mrb[81].mxu0 }
 0xad5   :  { %v5048_v61 = vpop.f32.mrb[82].mxu0 }
 0xad6   :  { %5235 = vst.msk [vmem:[%s14971_s9 + $0x340] sm:$0xff] %vm962_vm2, %v5046_v22  ;;  %v5049_v20 = vadd.f32 %v14204_v60, %v5048_v61  ;;  %v6376_v54 = vpop.f32.mrb[83].mxu0 }
 0xad8   :  { %5236 = vst.msk [vmem:[%s14971_s9 + $0x348] sm:$0xff] %vm962_vm2, %v5049_v20 }
 0xadb   :  { %v5053_v45 = vpop.f32.mrb[84].mxu0 }
 0xadc   :  { %v5054_v23 = vadd.f32 %v14204_v60, %v5053_v45  ;;  %v6379_v15 = vpop.f32.mrb[85].mxu0 }
 0xadd   :  { %v5056_v49 = vpop.f32.mrb[86].mxu0 }
 0xade   :  { %5237 = vst.msk [vmem:[%s14971_s9 + $0x350] sm:$0xff] %vm962_vm2, %v5054_v23  ;;  %v5057_v42 = vadd.f32 %v14204_v60, %v5056_v49  ;;  %v6380_v39 = vpop.f32.mrb[87].mxu0 }
 0xae0   :  { %5238 = vst.msk [vmem:[%s14971_s9 + $0x358] sm:$0xff] %vm962_vm2, %v5057_v42 }
 0xae3   :  { %v5061_v31 = vpop.f32.mrb[88].mxu0 }
 0xae4   :  { %v5062_v27 = vadd.f32 %v14204_v60, %v5061_v31  ;;  %v6383_v44 = vpop.f32.mrb[89].mxu0 }
 0xae5   :  { %v5064_v9 = vpop.f32.mrb[90].mxu0 }
 0xae6   :  { %5239 = vst.msk [vmem:[%s14971_s9 + $0x360] sm:$0xff] %vm962_vm2, %v5062_v27  ;;  %v5065_v0 = vadd.f32 %v6432_v28, %v5064_v9  ;;  %v6384_v52 = vpop.f32.mrb[91].mxu0 }
 0xae8   :  { %5240 = vst.msk [vmem:[%s14971_s9 + $0x368] sm:$0xff] %vm962_vm2, %v5065_v0 }
 0xaeb   :  { %v5069_v53 = vpop.f32.mrb[92].mxu0 }
 0xaec   :  { %v5070_v60 = vadd.f32 %v6432_v28, %v5069_v53  ;;  %v6387_v51 = vpop.f32.mrb[93].mxu0 }
 0xaed   :  { %v5072_v3 = vpop.f32.mrb[94].mxu0 }
 0xaee   :  { %5241 = vst.msk [vmem:[%s14971_s9 + $0x370] sm:$0xff] %vm962_vm2, %v5070_v60  ;;  %v5073_v55 = vadd.f32 %v6432_v28, %v5072_v3  ;;  %v6388_v16 = vpop.f32.mrb[95].mxu0 }
 0xaf0   :  { %5242 = vst.msk [vmem:[%s14971_s9 + $0x378] sm:$0xff] %vm962_vm2, %v5073_v55 }
 0xaf3   :  { %v5077_v19 = vpop.f32.mrb[96].mxu0 }
 0xaf4   :  { %v5078_v34 = vadd.f32 %v6432_v28, %v5077_v19  ;;  %v6391_v30 = vpop.f32.mrb[97].mxu0 }
 0xaf5   :  { %v5080_v59 = vpop.f32.mrb[98].mxu0 }
 0xaf6   :  { %5243 = vst.msk [vmem:[%s14971_s9 + $0x380] sm:$0xff] %vm962_vm2, %v5078_v34  ;;  %v5081_v63 = vadd.f32 %v6432_v28, %v5080_v59  ;;  %v6392_v56 = vpop.f32.mrb[99].mxu0 }
 0xaf8   :  { %5244 = vst.msk [vmem:[%s14971_s9 + $0x388] sm:$0xff] %vm962_vm2, %v5081_v63 }
 0xafb   :  { %v5085_v32 = vpop.f32.mrb[100].mxu0 }
 0xafc   :  { %v5086_v1 = vadd.f32 %v6432_v28, %v5085_v32  ;;  %v6395_v26 = vpop.f32.mrb[101].mxu0 }
 0xafd   :  { %v5088_v50 = vpop.f32.mrb[102].mxu0 }
 0xafe   :  { %5245 = vst.msk [vmem:[%s14971_s9 + $0x390] sm:$0xff] %vm962_vm2, %v5086_v1  ;;  %v5089_v17 = vadd.f32 %v6432_v28, %v5088_v50  ;;  %v6396_v48 = vpop.f32.mrb[103].mxu0 }
 0xb00   :  { %5246 = vst.msk [vmem:[%s14971_s9 + $0x398] sm:$0xff] %vm962_vm2, %v5089_v17 }
 0xb03   :  { %v5093_v47 = vpop.f32.mrb[104].mxu0 }
 0xb04   :  { %v5094_v2 = vadd.f32 %v6432_v28, %v5093_v47  ;;  %v6399_v40 = vpop.f32.mrb[105].mxu0 }
 0xb05   :  { %v5096_v18 = vpop.f32.mrb[106].mxu0 }
 0xb06   :  { %5247 = vst.msk [vmem:[%s14971_s9 + $0x3a0] sm:$0xff] %vm962_vm2, %v5094_v2  ;;  %v5097_v43 = vadd.f32 %v6432_v28, %v5096_v18  ;;  %v6400_v41 = vpop.f32.mrb[107].mxu0 }
 0xb08   :  { %5248 = vst.msk [vmem:[%s14971_s9 + $0x3a8] sm:$0xff] %vm962_vm2, %v5097_v43 }
 0xb0b   :  { %v5101_v8 = vpop.f32.mrb[108].mxu0 }
 0xb0c   :  { %v5102_v11 = vadd.f32 %v6432_v28, %v5101_v8  ;;  %v6403_v4 = vpop.f32.mrb[109].mxu0 }
 0xb0d   :  { %v5104_v29 = vpop.f32.mrb[110].mxu0 }
 0xb0e   :  { %5249 = vst.msk [vmem:[%s14971_s9 + $0x3b0] sm:$0xff] %vm962_vm2, %v5102_v11  ;;  %v5105_v5 = vadd.f32 %v6432_v28, %v5104_v29  ;;  %v6404_v62 = vpop.f32.mrb[111].mxu0 }
 0xb10   :  { %5250 = vst.msk [vmem:[%s14971_s9 + $0x3b8] sm:$0xff] %vm962_vm2, %v5105_v5 }
 0xb13   :  { %v5109_v6 = vpop.f32.mrb[112].mxu0 }
 0xb14   :  { %v5110_v58 = vadd.f32 %v6432_v28, %v5109_v6  ;;  %v6407_v57 = vpop.f32.mrb[113].mxu0 }
 0xb15   :  { %v5112_v24 = vpop.f32.mrb[114].mxu0 }
 0xb16   :  { %5251 = vst.msk [vmem:[%s14971_s9 + $0x3c0] sm:$0xff] %vm962_vm2, %v5110_v58  ;;  %v5113_v37 = vadd.f32 %v6432_v28, %v5112_v24  ;;  %v6408_v21 = vpop.f32.mrb[115].mxu0 }
 0xb18   :  { %5252 = vst.msk [vmem:[%s14971_s9 + $0x3c8] sm:$0xff] %vm962_vm2, %v5113_v37 }
 0xb1b   :  { %v5117_v46 = vpop.f32.mrb[116].mxu0 }
 0xb1c   :  { %v5118_v7 = vadd.f32 %v6432_v28, %v5117_v46  ;;  %v6411_v25 = vpop.f32.mrb[117].mxu0 }
 0xb1d   :  { %v5120_v35 = vpop.f32.mrb[118].mxu0 }
 0xb1e   :  { %5253 = vst.msk [vmem:[%s14971_s9 + $0x3d0] sm:$0xff] %vm962_vm2, %v5118_v7  ;;  %v5121_v38 = vadd.f32 %v6432_v28, %v5120_v35  ;;  %v6412_v14 = vpop.f32.mrb[119].mxu0 }
 0xb20   :  { %5254 = vst.msk [vmem:[%s14971_s9 + $0x3d8] sm:$0xff] %vm962_vm2, %v5121_v38 }
 0xb23   :  { %v5125_v33 = vpop.f32.mrb[120].mxu0 }
 0xb24   :  { %v5126_v36 = vadd.f32 %v6432_v28, %v5125_v33  ;;  %v6415_v10 = vpop.f32.mrb[121].mxu0 }
 0xb25   :  { %v5128_v13 = vpop.f32.mrb[122].mxu0 }
 0xb26   :  { %5255 = vst.msk [vmem:[%s14971_s9 + $0x3e0] sm:$0xff] %vm962_vm2, %v5126_v36  ;;  %v6416_v22 = vpop.f32.mrb[123].mxu0 }

</bundles_post_ra>
